<compile_context>
chip_gen: v6e
topology: v6e:2x2x1
jax: 0.10.0
libtpu: 0.0.40
codegen_flags: <defaults>
</compile_context>

<pallas_src>
import functools

import jax
import jax.numpy as jnp
from jax.experimental import pallas as pl
from jax.experimental.pallas import tpu as pltpu

_VMEM_LIMIT = 48 * 1024 * 1024   # <= physical VMEM on v5e/v6e (128 MiB) and v7x (64 MiB)


# ----------------------------------------------------------------------------
# tiling helpers (all static python ints)
# ----------------------------------------------------------------------------
def _row_tile(n, cap):
    """Largest divisor of n that is <= cap and a multiple of 8 (or n itself)."""
    cap = max(1, min(cap, n))
    for d in range(cap, 0, -1):
        if n % d == 0 and (d % 8 == 0 or d == n):
            return d
    return n


def _band_tile(n, cap, multiple=1):
    """Largest divisor of n that is <= cap and a multiple of `multiple`."""
    cap = max(1, min(cap, n))
    for d in range(cap, 0, -1):
        if n % d == 0 and d % multiple == 0:
            return d
    return n


# ----------------------------------------------------------------------------
# Pallas kernels
# ----------------------------------------------------------------------------
def _dual_conv1x1_bn_relu_kernel(x_ref, wa_ref, wb_ref, sa_ref, ba_ref,
                                 sb_ref, bb_ref, oa_ref, ob_ref):
    """Fused conv1_a and conv1_b (1x1 convs == matmuls) + BN + ReLU.

    x is loaded once per row-tile and fed to both matmuls (bf16 MXU inputs,
    f32 accumulation, BN/ReLU epilogue in f32)."""
    x = x_ref[...].astype(jnp.bfloat16)
    ya = jnp.dot(x, wa_ref[...], preferred_element_type=jnp.float32)
    oa_ref[...] = jnp.maximum(ya * sa_ref[...] + ba_ref[...], 0.0)
    yb = jnp.dot(x, wb_ref[...], preferred_element_type=jnp.float32)
    ob_ref[...] = jnp.maximum(yb * sb_ref[...] + bb_ref[...], 0.0)


def _conv3x3_bn_kernel(x_ref, w_ref, s_ref, b_ref, o_ref, *, RH, W, dil, relu):
    """3x3 conv (stride 1, pre-padded input) on one row band of one image.

    x_ref: (1, Hp, Wp, Cin) full padded image (resident across the h axis).
    o_ref: (1, RH, W, Cout) row band.  9 shifted bf16 matmuls, f32 acc."""
    cin = w_ref.shape[2]
    cout = w_ref.shape[3]
    row0 = pl.multiple_of(pl.program_id(1) * RH, RH)
    acc = jnp.zeros((RH * W, cout), jnp.float32)
    for dh in range(3):
        for dw in range(3):
            tap = x_ref[0, pl.ds(row0 + dh * dil, RH), pl.ds(dw * dil, W), :]
            acc = acc + jnp.dot(tap.reshape(RH * W, cin).astype(jnp.bfloat16),
                                w_ref[dh, dw],
                                preferred_element_type=jnp.float32)
    y = acc * s_ref[...] + b_ref[...]
    if relu:
        y = jnp.maximum(y, 0.0)
    o_ref[0] = y.reshape(RH, W, cout)


def _avgpool_kernel(x_ref, o_ref, *, r):
    """AvgPool2d(kernel=r, stride=r) on one row band of one image."""
    x = x_ref[0]                         # (RH, W, C), RH % r == 0
    RH, W, C = x.shape
    o_ref[0] = jnp.mean(x.reshape(RH // r, r, W // r, r, C), axis=(1, 3))


def _gate_kernel(k3_ref, id_ref, up_ref, o_ref, *, r):
    """SCConv gate: k3(x) * sigmoid(identity + upsample(k2(x))).

    up_ref holds the k2 output already W-expanded but NOT H-expanded
    ((RH/r, W, C)); the H-expansion (nearest) is a free outer-dim broadcast."""
    k3 = k3_ref[0]
    idb = id_ref[0]
    upw = up_ref[0]                      # (RH // r, W, C)
    hh, W, C = upw.shape
    up = jnp.broadcast_to(upw[:, None, :, :], (hh, r, W, C)).reshape(hh * r, W, C)
    o_ref[0] = k3 * jax.nn.sigmoid(idb + up)


# ----------------------------------------------------------------------------
# Wrappers around pallas_call
# ----------------------------------------------------------------------------
def dual_conv1x1_bn_relu(x_nhwc, wa, wb, sa, ba, sb, bb, row_tile=1024):
    N, H, W, Cin = x_nhwc.shape
    Ca, Cb = wa.shape[1], wb.shape[1]
    R = N * H * W
    cap = min(row_tile, R)
    if R >= 16:
        cap = min(cap, R // 2)           # at least 2 grid blocks (v7x megacore)
    TR = _row_tile(R, cap)
    xf = x_nhwc.reshape(R, Cin)
    out_a, out_b = pl.pallas_call(
        _dual_conv1x1_bn_relu_kernel,
        grid=(R // TR,),
        in_specs=[
            pl.BlockSpec((TR, Cin), lambda i: (i, 0)),
            pl.BlockSpec((Cin, Ca), lambda i: (0, 0)),
            pl.BlockSpec((Cin, Cb), lambda i: (0, 0)),
            pl.BlockSpec((1, Ca), lambda i: (0, 0)),
            pl.BlockSpec((1, Ca), lambda i: (0, 0)),
            pl.BlockSpec((1, Cb), lambda i: (0, 0)),
            pl.BlockSpec((1, Cb), lambda i: (0, 0)),
        ],
        out_specs=(pl.BlockSpec((TR, Ca), lambda i: (i, 0)),
                   pl.BlockSpec((TR, Cb), lambda i: (i, 0))),
        out_shape=(jax.ShapeDtypeStruct((R, Ca), jnp.float32),
                   jax.ShapeDtypeStruct((R, Cb), jnp.float32)),
        compiler_params=pltpu.CompilerParams(
            dimension_semantics=("parallel",),
            vmem_limit_bytes=_VMEM_LIMIT),
    )(xf, wa, wb, sa, ba, sb, bb)
    return out_a.reshape(N, H, W, Ca), out_b.reshape(N, H, W, Cb)


def conv3x3_bn(x_pad, w, scale, bias, *, H, W, relu, dil=1, row_tile=32):
    # stride=1 only (module defaults); TODO(synk): strided path if stride > 1.
    N = x_pad.shape[0]
    Cin, Cout = w.shape[2], w.shape[3]
    Hp, Wp = H + 2 * dil, W + 2 * dil
    RH = _band_tile(H, row_tile)
    kern = functools.partial(_conv3x3_bn_kernel, RH=RH, W=W, dil=dil, relu=relu)
    return pl.pallas_call(
        kern,
        grid=(N, H // RH),
        in_specs=[
            pl.BlockSpec((1, Hp, Wp, Cin), lambda n, h: (n, 0, 0, 0)),
            pl.BlockSpec((3, 3, Cin, Cout), lambda n, h: (0, 0, 0, 0)),
            pl.BlockSpec((1, Cout), lambda n, h: (0, 0)),
            pl.BlockSpec((1, Cout), lambda n, h: (0, 0)),
        ],
        out_specs=pl.BlockSpec((1, RH, W, Cout), lambda n, h: (n, h, 0, 0)),
        out_shape=jax.ShapeDtypeStruct((N, H, W, Cout), jnp.float32),
        compiler_params=pltpu.CompilerParams(
            dimension_semantics=("parallel", "parallel"),
            vmem_limit_bytes=_VMEM_LIMIT),
    )(x_pad, w, scale, bias)


def avgpool(x_nhwc, r, row_tile=32):
    N, H, W, C = x_nhwc.shape
    RH = _band_tile(H, row_tile, multiple=r)
    return pl.pallas_call(
        functools.partial(_avgpool_kernel, r=r),
        grid=(N, H // RH),
        in_specs=[pl.BlockSpec((1, RH, W, C), lambda n, h: (n, h, 0, 0))],
        out_specs=pl.BlockSpec((1, RH // r, W // r, C), lambda n, h: (n, h, 0, 0)),
        out_shape=jax.ShapeDtypeStruct((N, H // r, W // r, C), jnp.float32),
        compiler_params=pltpu.CompilerParams(
            dimension_semantics=("parallel", "parallel"),
            vmem_limit_bytes=_VMEM_LIMIT),
    )(x_nhwc)


def gate_mul(k3_out, identity, up_w, r, row_tile=32):
    N, H, W, C = k3_out.shape
    RH = _band_tile(H, row_tile, multiple=r)
    return pl.pallas_call(
        functools.partial(_gate_kernel, r=r),
        grid=(N, H // RH),
        in_specs=[
            pl.BlockSpec((1, RH, W, C), lambda n, h: (n, h, 0, 0)),
            pl.BlockSpec((1, RH, W, C), lambda n, h: (n, h, 0, 0)),
            pl.BlockSpec((1, RH // r, W, C), lambda n, h: (n, h, 0, 0)),
        ],
        out_specs=pl.BlockSpec((1, RH, W, C), lambda n, h: (n, h, 0, 0)),
        out_shape=jax.ShapeDtypeStruct((N, H, W, C), jnp.float32),
        compiler_params=pltpu.CompilerParams(
            dimension_semantics=("parallel", "parallel"),
            vmem_limit_bytes=_VMEM_LIMIT),
    )(k3_out, identity, up_w)


# ----------------------------------------------------------------------------
# Parameter initialization (deterministic, synthetic)
# ----------------------------------------------------------------------------
def _bn_fold(key, c, eps=1e-5):
    k1, k2, k3, k4 = jax.random.split(key, 4)
    gamma = 1.0 + 0.1 * jax.random.normal(k1, (c,), jnp.float32)
    beta = 0.1 * jax.random.normal(k2, (c,), jnp.float32)
    mean = 0.1 * jax.random.normal(k3, (c,), jnp.float32)
    var = 1.0 + 0.1 * jnp.abs(jax.random.normal(k4, (c,), jnp.float32))
    scale = gamma / jnp.sqrt(var + eps)
    bias = beta - mean * scale
    return scale.reshape(1, c), bias.reshape(1, c)


def init_params(key, inplanes, planes, bottleneck_width=32, cardinality=1):
    gw = int(planes * (bottleneck_width / 64.0)) * cardinality
    ks = jax.random.split(key, 12)

    def w1x1(k, cin, cout):
        return ((2.0 / cin) ** 0.5) * jax.random.normal(k, (cin, cout), jnp.float32)

    def w3x3(k, cin, cout):
        return ((2.0 / (cin * 9)) ** 0.5) * jax.random.normal(
            k, (3, 3, cin, cout), jnp.float32)

    p = {}
    p["w1a"] = w1x1(ks[0], inplanes, gw); p["s1a"], p["b1a"] = _bn_fold(ks[1], gw)
    p["w1b"] = w1x1(ks[2], inplanes, gw); p["s1b"], p["b1b"] = _bn_fold(ks[3], gw)
    p["wk1"] = w3x3(ks[4], gw, gw); p["sk1"], p["bk1"] = _bn_fold(ks[5], gw)
    p["wk2"] = w3x3(ks[6], gw, gw); p["sk2"], p["bk2"] = _bn_fold(ks[7], gw)
    p["wk3"] = w3x3(ks[8], gw, gw); p["sk3"], p["bk3"] = _bn_fold(ks[9], gw)
    p["wk4"] = w3x3(ks[10], gw, gw); p["sk4"], p["bk4"] = _bn_fold(ks[11], gw)
    return p


# ----------------------------------------------------------------------------
# SCBottleneck forward
# ----------------------------------------------------------------------------
def sc_bottleneck_forward(x_nchw, params, pooling_r=4, dilation=1):
    bf16 = jnp.bfloat16
    x = jnp.transpose(x_nchw, (0, 2, 3, 1)).astype(jnp.float32)   # NCHW -> NHWC
    N, H, W, _ = x.shape
    r = pooling_r
    pad = dilation
    # TODO(synk): PyTorch AvgPool2d/F.interpolate also handle H,W not divisible
    # by pooling_r; this implementation requires exact divisibility.
    assert H % r == 0 and W % r == 0

    # conv1_a/bn1_a/relu and conv1_b/bn1_b/relu, fused (x read once).
    out_a, out_b = dual_conv1x1_bn_relu(
        x, params["w1a"].astype(bf16), params["w1b"].astype(bf16),
        params["s1a"], params["b1a"], params["s1b"], params["b1b"])

    # k1 branch: 3x3 conv + BN, then the forward's ReLU (fused).
    a_pad = jnp.pad(out_a, ((0, 0), (pad, pad), (pad, pad), (0, 0)))
    out_a = conv3x3_bn(a_pad, params["wk1"].astype(bf16), params["sk1"],
                       params["bk1"], H=H, W=W, relu=True, dil=dilation)

    # SCConv branch on out_b.
    identity = out_b
    b_pad = jnp.pad(out_b, ((0, 0), (pad, pad), (pad, pad), (0, 0)))

    pooled = avgpool(out_b, r)                                            # k2 avgpool
    pooled_pad = jnp.pad(pooled, ((0, 0), (pad, pad), (pad, pad), (0, 0)))
    k2 = conv3x3_bn(pooled_pad, params["wk2"].astype(bf16), params["sk2"],
                    params["bk2"], H=H // r, W=W // r, relu=False, dil=dilation)
    # Nearest upsample: W-expansion at pooled resolution (1/r traffic); the
    # H-expansion is fused into the gate kernel.
    up_w = jnp.repeat(k2, r, axis=2)                                      # (N, H/r, W, C)

    k3 = conv3x3_bn(b_pad, params["wk3"].astype(bf16), params["sk3"],
                    params["bk3"], H=H, W=W, relu=False, dil=dilation)    # k3 conv+bn
    gated = gate_mul(k3, identity, up_w, r)                               # sigmoid gate

    g_pad = jnp.pad(gated, ((0, 0), (pad, pad), (pad, pad), (0, 0)))
    out_b = conv3x3_bn(g_pad, params["wk4"].astype(bf16), params["sk4"],
                       params["bk4"], H=H, W=W, relu=True, dil=dilation)  # k4 + ReLU

    out = jnp.concatenate([out_a, out_b], axis=-1)        # torch.cat(dim=1)
    return jnp.transpose(out, (0, 3, 1, 2))               # NHWC -> NCHW


# ----------------------------------------------------------------------------
if __name__ == "__main__":
    key = jax.random.PRNGKey(0)
    k_x, k_p = jax.random.split(key)

    N, inplanes, planes, H, W = 2, 8, 8, 16, 16   # group_width = planes // 2 = 4
    x = jax.random.normal(k_x, (N, inplanes, H, W), jnp.float32)   # NCHW like PyTorch
    params = init_params(k_p, inplanes, planes)
    gw = params["w1a"].shape[1]

    fwd = jax.jit(sc_bottleneck_forward)
    out = fwd(x, params)
    jax.block_until_ready(out)

    assert out.shape == (N, 2 * gw, H, W), out.shape
    assert out.dtype == jnp.float32
    print("KERNEL_OK")
</pallas_src>

<mosaic_0001>
module attributes {stable_mosaic.version = 11 : i64} {
  func.func @_dual_conv1x1_bn_relu_kernel(%arg0: i32, %arg1: memref<256x8xf32, #tpu.memory_space<vmem>>, %arg2: memref<8x4xbf16, #tpu.memory_space<vmem>>, %arg3: memref<8x4xbf16, #tpu.memory_space<vmem>>, %arg4: memref<1x4xf32, #tpu.memory_space<vmem>>, %arg5: memref<1x4xf32, #tpu.memory_space<vmem>>, %arg6: memref<1x4xf32, #tpu.memory_space<vmem>>, %arg7: memref<1x4xf32, #tpu.memory_space<vmem>>, %arg8: memref<256x4xf32, #tpu.memory_space<vmem>>, %arg9: memref<256x4xf32, #tpu.memory_space<vmem>>) attributes {dimension_semantics = [#tpu.dimension_semantics<parallel>], iteration_bounds = array<i64: 2>, scalar_prefetch = 0 : i64, scratch_operands = 0 : i64, tpu.core_type = #tpu.core_type<tc>, window_params = [{transform_indices = @transform_0, window_bounds = array<i64: 256, 8>}, {pipeline_mode = #tpu.pipeline_mode<synchronous>, transform_indices = @transform_1, window_bounds = array<i64: 8, 4>}, {pipeline_mode = #tpu.pipeline_mode<synchronous>, transform_indices = @transform_2, window_bounds = array<i64: 8, 4>}, {pipeline_mode = #tpu.pipeline_mode<synchronous>, transform_indices = @transform_3, window_bounds = array<i64: 1, 4>}, {pipeline_mode = #tpu.pipeline_mode<synchronous>, transform_indices = @transform_4, window_bounds = array<i64: 1, 4>}, {pipeline_mode = #tpu.pipeline_mode<synchronous>, transform_indices = @transform_5, window_bounds = array<i64: 1, 4>}, {pipeline_mode = #tpu.pipeline_mode<synchronous>, transform_indices = @transform_6, window_bounds = array<i64: 1, 4>}, {transform_indices = @transform_7, window_bounds = array<i64: 256, 4>}, {transform_indices = @transform_8, window_bounds = array<i64: 256, 4>}]} {
    %c0 = arith.constant 0 : index
    %c0_0 = arith.constant 0 : index
    %0 = vector.load %arg1[%c0, %c0_0] : memref<256x8xf32, #tpu.memory_space<vmem>>, vector<256x8xf32>
    %1 = arith.truncf %0 : vector<256x8xf32> to vector<256x8xbf16>
    %c0_1 = arith.constant 0 : index
    %c0_2 = arith.constant 0 : index
    %2 = vector.load %arg2[%c0_1, %c0_2] : memref<8x4xbf16, #tpu.memory_space<vmem>>, vector<8x4xbf16>
    %cst = arith.constant dense<0.000000e+00> : vector<256x4xf32>
    %3 = tpu.matmul %1, %2, %cst {dimension_numbers = #tpu.dot_dimension_numbers<[1], [0], [0], [1], [0, 0, 1, 1], [], []>} : vector<256x8xbf16>, vector<8x4xbf16>, vector<256x4xf32> -> vector<256x4xf32>
    %c0_3 = arith.constant 0 : index
    %c0_4 = arith.constant 0 : index
    %4 = vector.load %arg4[%c0_3, %c0_4] : memref<1x4xf32, #tpu.memory_space<vmem>>, vector<1x4xf32>
    %5 = vector.broadcast %4 : vector<1x4xf32> to vector<256x4xf32>
    %6 = arith.mulf %3, %5 : vector<256x4xf32>
    %c0_5 = arith.constant 0 : index
    %c0_6 = arith.constant 0 : index
    %7 = vector.load %arg5[%c0_5, %c0_6] : memref<1x4xf32, #tpu.memory_space<vmem>>, vector<1x4xf32>
    %8 = vector.broadcast %7 : vector<1x4xf32> to vector<256x4xf32>
    %9 = arith.addf %6, %8 : vector<256x4xf32>
    %cst_7 = arith.constant 0.000000e+00 : f32
    %10 = vector.broadcast %cst_7 : f32 to vector<256x4xf32>
    %11 = arith.maximumf %9, %10 : vector<256x4xf32>
    %c0_8 = arith.constant 0 : index
    %c0_9 = arith.constant 0 : index
    %12 = vector.load %arg8[%c0_8, %c0_9] : memref<256x4xf32, #tpu.memory_space<vmem>>, vector<256x4xf32>
    tpu.vector_store %arg8[%c0_8, %c0_9], %11 {strides = array<i32>} : memref<256x4xf32, #tpu.memory_space<vmem>>, vector<256x4xf32>,
    %c0_10 = arith.constant 0 : index
    %c0_11 = arith.constant 0 : index
    %13 = vector.load %arg3[%c0_10, %c0_11] : memref<8x4xbf16, #tpu.memory_space<vmem>>, vector<8x4xbf16>
    %cst_12 = arith.constant dense<0.000000e+00> : vector<256x4xf32>
    %14 = tpu.matmul %1, %13, %cst_12 {dimension_numbers = #tpu.dot_dimension_numbers<[1], [0], [0], [1], [0, 0, 1, 1], [], []>} : vector<256x8xbf16>, vector<8x4xbf16>, vector<256x4xf32> -> vector<256x4xf32>
    %c0_13 = arith.constant 0 : index
    %c0_14 = arith.constant 0 : index
    %15 = vector.load %arg6[%c0_13, %c0_14] : memref<1x4xf32, #tpu.memory_space<vmem>>, vector<1x4xf32>
    %16 = vector.broadcast %15 : vector<1x4xf32> to vector<256x4xf32>
    %17 = arith.mulf %14, %16 : vector<256x4xf32>
    %c0_15 = arith.constant 0 : index
    %c0_16 = arith.constant 0 : index
    %18 = vector.load %arg7[%c0_15, %c0_16] : memref<1x4xf32, #tpu.memory_space<vmem>>, vector<1x4xf32>
    %19 = vector.broadcast %18 : vector<1x4xf32> to vector<256x4xf32>
    %20 = arith.addf %17, %19 : vector<256x4xf32>
    %cst_17 = arith.constant 0.000000e+00 : f32
    %21 = vector.broadcast %cst_17 : f32 to vector<256x4xf32>
    %22 = arith.maximumf %20, %21 : vector<256x4xf32>
    %c0_18 = arith.constant 0 : index
    %c0_19 = arith.constant 0 : index
    %23 = vector.load %arg9[%c0_18, %c0_19] : memref<256x4xf32, #tpu.memory_space<vmem>>, vector<256x4xf32>
    tpu.vector_store %arg9[%c0_18, %c0_19], %22 {strides = array<i32>} : memref<256x4xf32, #tpu.memory_space<vmem>>, vector<256x4xf32>,
    return
  }
  func.func @transform_0(%arg0: i32) -> (i32, i32) {
    %c0_i32 = arith.constant 0 : i32
    %c0_i32_0 = arith.constant 0 : i32
    return %arg0, %c0_i32 : i32, i32
  }
  func.func @transform_1(%arg0: i32) -> (i32, i32) {
    %c0_i32 = arith.constant 0 : i32
    %c0_i32_0 = arith.constant 0 : i32
    %c0_i32_1 = arith.constant 0 : i32
    return %c0_i32, %c0_i32_0 : i32, i32
  }
  func.func @transform_2(%arg0: i32) -> (i32, i32) {
    %c0_i32 = arith.constant 0 : i32
    %c0_i32_0 = arith.constant 0 : i32
    %c0_i32_1 = arith.constant 0 : i32
    return %c0_i32, %c0_i32_0 : i32, i32
  }
  func.func @transform_3(%arg0: i32) -> (i32, i32) {
    %c0_i32 = arith.constant 0 : i32
    %c0_i32_0 = arith.constant 0 : i32
    %c0_i32_1 = arith.constant 0 : i32
    return %c0_i32, %c0_i32_0 : i32, i32
  }
  func.func @transform_4(%arg0: i32) -> (i32, i32) {
    %c0_i32 = arith.constant 0 : i32
    %c0_i32_0 = arith.constant 0 : i32
    %c0_i32_1 = arith.constant 0 : i32
    return %c0_i32, %c0_i32_0 : i32, i32
  }
  func.func @transform_5(%arg0: i32) -> (i32, i32) {
    %c0_i32 = arith.constant 0 : i32
    %c0_i32_0 = arith.constant 0 : i32
    %c0_i32_1 = arith.constant 0 : i32
    return %c0_i32, %c0_i32_0 : i32, i32
  }
  func.func @transform_6(%arg0: i32) -> (i32, i32) {
    %c0_i32 = arith.constant 0 : i32
    %c0_i32_0 = arith.constant 0 : i32
    %c0_i32_1 = arith.constant 0 : i32
    return %c0_i32, %c0_i32_0 : i32, i32
  }
  func.func @transform_7(%arg0: i32) -> (i32, i32) {
    %c0_i32 = arith.constant 0 : i32
    %c0_i32_0 = arith.constant 0 : i32
    return %arg0, %c0_i32 : i32, i32
  }
  func.func @transform_8(%arg0: i32) -> (i32, i32) {
    %c0_i32 = arith.constant 0 : i32
    %c0_i32_0 = arith.constant 0 : i32
    return %arg0, %c0_i32 : i32, i32
  }
}

module attributes {stable_mosaic.version = 11 : i64} {
  func.func @_avgpool_kernel(%arg0: i32, %arg1: i32, %arg2: memref<1x16x16x4xf32, #tpu.memory_space<vmem>>, %arg3: memref<1x4x4x4xf32, #tpu.memory_space<vmem>>) attributes {dimension_semantics = [#tpu.dimension_semantics<parallel>, #tpu.dimension_semantics<parallel>], iteration_bounds = array<i64: 2, 1>, scalar_prefetch = 0 : i64, scratch_operands = 0 : i64, tpu.core_type = #tpu.core_type<tc>, window_params = [{transform_indices = @transform_0, window_bounds = array<i64: 1, 16, 16, 4>}, {transform_indices = @transform_1, window_bounds = array<i64: 1, 4, 4, 4>}]} {
    %c0 = arith.constant 0 : index
    %c0_0 = arith.constant 0 : index
    %c0_1 = arith.constant 0 : index
    %c0_2 = arith.constant 0 : index
    %0 = vector.load %arg2[%c0, %c0_0, %c0_1, %c0_2] : memref<1x16x16x4xf32, #tpu.memory_space<vmem>>, vector<1x16x16x4xf32>
    %1 = vector.shape_cast %0 : vector<1x16x16x4xf32> to vector<16x16x4xf32>
    %2 = vector.shape_cast %1 : vector<16x16x4xf32> to vector<4x4x4x4x4xf32>
    %cst = arith.constant dense<0.000000e+00> : vector<4x4x4xf32>
    %3 = vector.multi_reduction <add>, %2, %cst [1, 3] : vector<4x4x4x4x4xf32> to vector<4x4x4xf32>
    %cst_3 = arith.constant 1.600000e+01 : f32
    %4 = vector.broadcast %cst_3 : f32 to vector<4x4x4xf32>
    %5 = arith.divf %3, %4 : vector<4x4x4xf32>
    %c0_4 = arith.constant 0 : index
    %c0_5 = arith.constant 0 : index
    %c0_6 = arith.constant 0 : index
    %c0_7 = arith.constant 0 : index
    %6 = vector.load %arg3[%c0_4, %c0_5, %c0_6, %c0_7] : memref<1x4x4x4xf32, #tpu.memory_space<vmem>>, vector<1x4x4x4xf32>
    %7 = vector.shape_cast %6 : vector<1x4x4x4xf32> to vector<4x4x4xf32>
    %8 = vector.shape_cast %5 : vector<4x4x4xf32> to vector<1x4x4x4xf32>
    tpu.vector_store %arg3[%c0_4, %c0_5, %c0_6, %c0_7], %8 {strides = array<i32>} : memref<1x4x4x4xf32, #tpu.memory_space<vmem>>, vector<1x4x4x4xf32>,
    return
  }
  func.func @transform_0(%arg0: i32, %arg1: i32) -> (i32, i32, i32, i32) {
    %c0_i32 = arith.constant 0 : i32
    %c0_i32_0 = arith.constant 0 : i32
    %c0_i32_1 = arith.constant 0 : i32
    return %arg0, %arg1, %c0_i32, %c0_i32_0 : i32, i32, i32, i32
  }
  func.func @transform_1(%arg0: i32, %arg1: i32) -> (i32, i32, i32, i32) {
    %c0_i32 = arith.constant 0 : i32
    %c0_i32_0 = arith.constant 0 : i32
    %c0_i32_1 = arith.constant 0 : i32
    return %arg0, %arg1, %c0_i32, %c0_i32_0 : i32, i32, i32, i32
  }
}

module attributes {stable_mosaic.version = 11 : i64} {
  func.func @_conv3x3_bn_kernel(%arg0: i32, %arg1: i32, %arg2: memref<1x18x18x4xf32, #tpu.memory_space<vmem>>, %arg3: memref<3x3x4x4xbf16, #tpu.memory_space<vmem>>, %arg4: memref<1x4xf32, #tpu.memory_space<vmem>>, %arg5: memref<1x4xf32, #tpu.memory_space<vmem>>, %arg6: memref<1x16x16x4xf32, #tpu.memory_space<vmem>>) attributes {dimension_semantics = [#tpu.dimension_semantics<parallel>, #tpu.dimension_semantics<parallel>], iteration_bounds = array<i64: 2, 1>, scalar_prefetch = 0 : i64, scratch_operands = 0 : i64, tpu.core_type = #tpu.core_type<tc>, window_params = [{transform_indices = @transform_0, window_bounds = array<i64: 1, 18, 18, 4>}, {pipeline_mode = #tpu.pipeline_mode<synchronous>, transform_indices = @transform_1, window_bounds = array<i64: 3, 3, 4, 4>}, {pipeline_mode = #tpu.pipeline_mode<synchronous>, transform_indices = @transform_2, window_bounds = array<i64: 1, 4>}, {pipeline_mode = #tpu.pipeline_mode<synchronous>, transform_indices = @transform_3, window_bounds = array<i64: 1, 4>}, {transform_indices = @transform_4, window_bounds = array<i64: 1, 16, 16, 4>}]} {
    %c16_i32 = arith.constant 16 : i32
    %0 = arith.muli %arg1, %c16_i32 : i32
    %1 = tpu.assume_multiple %0, 16 : i32
    %cst = arith.constant 0.000000e+00 : f32
    %2 = vector.broadcast %cst : f32 to vector<256x4xf32>
    %c0_i32 = arith.constant 0 : i32
    %3 = arith.addi %1, %c0_i32 : i32
    %c0 = arith.constant 0 : index
    %4 = arith.index_cast %3 : i32 to index
    %c0_0 = arith.constant 0 : index
    %c0_1 = arith.constant 0 : index
    %5 = vector.load %arg2[%c0, %4, %c0_0, %c0_1] : memref<1x18x18x4xf32, #tpu.memory_space<vmem>>, vector<1x16x16x4xf32>
    %6 = vector.shape_cast %5 : vector<1x16x16x4xf32> to vector<16x16x4xf32>
    %7 = vector.shape_cast %6 : vector<16x16x4xf32> to vector<256x4xf32>
    %8 = arith.truncf %7 : vector<256x4xf32> to vector<256x4xbf16>
    %c0_2 = arith.constant 0 : index
    %c0_3 = arith.constant 0 : index
    %c0_4 = arith.constant 0 : index
    %c0_5 = arith.constant 0 : index
    %9 = vector.load %arg3[%c0_2, %c0_3, %c0_4, %c0_5] : memref<3x3x4x4xbf16, #tpu.memory_space<vmem>>, vector<1x1x4x4xbf16>
    %10 = vector.shape_cast %9 : vector<1x1x4x4xbf16> to vector<4x4xbf16>
    %cst_6 = arith.constant dense<0.000000e+00> : vector<256x4xf32>
    %11 = tpu.matmul %8, %10, %cst_6 {dimension_numbers = #tpu.dot_dimension_numbers<[1], [0], [0], [1], [0, 0, 1, 1], [], []>} : vector<256x4xbf16>, vector<4x4xbf16>, vector<256x4xf32> -> vector<256x4xf32>
    %12 = arith.addf %2, %11 : vector<256x4xf32>
    %c0_i32_7 = arith.constant 0 : i32
    %13 = arith.addi %1, %c0_i32_7 : i32
    %c0_8 = arith.constant 0 : index
    %14 = arith.index_cast %13 : i32 to index
    %c1 = arith.constant 1 : index
    %c0_9 = arith.constant 0 : index
    %15 = vector.load %arg2[%c0_8, %14, %c1, %c0_9] : memref<1x18x18x4xf32, #tpu.memory_space<vmem>>, vector<1x16x16x4xf32>
    %16 = vector.shape_cast %15 : vector<1x16x16x4xf32> to vector<16x16x4xf32>
    %17 = vector.shape_cast %16 : vector<16x16x4xf32> to vector<256x4xf32>
    %18 = arith.truncf %17 : vector<256x4xf32> to vector<256x4xbf16>
    %c0_10 = arith.constant 0 : index
    %c1_11 = arith.constant 1 : index
    %c0_12 = arith.constant 0 : index
    %c0_13 = arith.constant 0 : index
    %19 = vector.load %arg3[%c0_10, %c1_11, %c0_12, %c0_13] : memref<3x3x4x4xbf16, #tpu.memory_space<vmem>>, vector<1x1x4x4xbf16>
    %20 = vector.shape_cast %19 : vector<1x1x4x4xbf16> to vector<4x4xbf16>
    %cst_14 = arith.constant dense<0.000000e+00> : vector<256x4xf32>
    %21 = tpu.matmul %18, %20, %cst_14 {dimension_numbers = #tpu.dot_dimension_numbers<[1], [0], [0], [1], [0, 0, 1, 1], [], []>} : vector<256x4xbf16>, vector<4x4xbf16>, vector<256x4xf32> -> vector<256x4xf32>
    %22 = arith.addf %12, %21 : vector<256x4xf32>
    %c0_i32_15 = arith.constant 0 : i32
    %23 = arith.addi %1, %c0_i32_15 : i32
    %c0_16 = arith.constant 0 : index
    %24 = arith.index_cast %23 : i32 to index
    %c2 = arith.constant 2 : index
    %c0_17 = arith.constant 0 : index
    %25 = vector.load %arg2[%c0_16, %24, %c2, %c0_17] : memref<1x18x18x4xf32, #tpu.memory_space<vmem>>, vector<1x16x16x4xf32>
    %26 = vector.shape_cast %25 : vector<1x16x16x4xf32> to vector<16x16x4xf32>
    %27 = vector.shape_cast %26 : vector<16x16x4xf32> to vector<256x4xf32>
    %28 = arith.truncf %27 : vector<256x4xf32> to vector<256x4xbf16>
    %c0_18 = arith.constant 0 : index
    %c2_19 = arith.constant 2 : index
    %c0_20 = arith.constant 0 : index
    %c0_21 = arith.constant 0 : index
    %29 = vector.load %arg3[%c0_18, %c2_19, %c0_20, %c0_21] : memref<3x3x4x4xbf16, #tpu.memory_space<vmem>>, vector<1x1x4x4xbf16>
    %30 = vector.shape_cast %29 : vector<1x1x4x4xbf16> to vector<4x4xbf16>
    %cst_22 = arith.constant dense<0.000000e+00> : vector<256x4xf32>
    %31 = tpu.matmul %28, %30, %cst_22 {dimension_numbers = #tpu.dot_dimension_numbers<[1], [0], [0], [1], [0, 0, 1, 1], [], []>} : vector<256x4xbf16>, vector<4x4xbf16>, vector<256x4xf32> -> vector<256x4xf32>
    %32 = arith.addf %22, %31 : vector<256x4xf32>
    %c1_i32 = arith.constant 1 : i32
    %33 = arith.addi %1, %c1_i32 : i32
    %c0_23 = arith.constant 0 : index
    %34 = arith.index_cast %33 : i32 to index
    %c0_24 = arith.constant 0 : index
    %c0_25 = arith.constant 0 : index
    %35 = vector.load %arg2[%c0_23, %34, %c0_24, %c0_25] : memref<1x18x18x4xf32, #tpu.memory_space<vmem>>, vector<1x16x16x4xf32>
    %36 = vector.shape_cast %35 : vector<1x16x16x4xf32> to vector<16x16x4xf32>
    %37 = vector.shape_cast %36 : vector<16x16x4xf32> to vector<256x4xf32>
    %38 = arith.truncf %37 : vector<256x4xf32> to vector<256x4xbf16>
    %c1_26 = arith.constant 1 : index
    %c0_27 = arith.constant 0 : index
    %c0_28 = arith.constant 0 : index
    %c0_29 = arith.constant 0 : index
    %39 = vector.load %arg3[%c1_26, %c0_27, %c0_28, %c0_29] : memref<3x3x4x4xbf16, #tpu.memory_space<vmem>>, vector<1x1x4x4xbf16>
    %40 = vector.shape_cast %39 : vector<1x1x4x4xbf16> to vector<4x4xbf16>
    %cst_30 = arith.constant dense<0.000000e+00> : vector<256x4xf32>
    %41 = tpu.matmul %38, %40, %cst_30 {dimension_numbers = #tpu.dot_dimension_numbers<[1], [0], [0], [1], [0, 0, 1, 1], [], []>} : vector<256x4xbf16>, vector<4x4xbf16>, vector<256x4xf32> -> vector<256x4xf32>
    %42 = arith.addf %32, %41 : vector<256x4xf32>
    %c1_i32_31 = arith.constant 1 : i32
    %43 = arith.addi %1, %c1_i32_31 : i32
    %c0_32 = arith.constant 0 : index
    %44 = arith.index_cast %43 : i32 to index
    %c1_33 = arith.constant 1 : index
    %c0_34 = arith.constant 0 : index
    %45 = vector.load %arg2[%c0_32, %44, %c1_33, %c0_34] : memref<1x18x18x4xf32, #tpu.memory_space<vmem>>, vector<1x16x16x4xf32>
    %46 = vector.shape_cast %45 : vector<1x16x16x4xf32> to vector<16x16x4xf32>
    %47 = vector.shape_cast %46 : vector<16x16x4xf32> to vector<256x4xf32>
    %48 = arith.truncf %47 : vector<256x4xf32> to vector<256x4xbf16>
    %c1_35 = arith.constant 1 : index
    %c1_36 = arith.constant 1 : index
    %c0_37 = arith.constant 0 : index
    %c0_38 = arith.constant 0 : index
    %49 = vector.load %arg3[%c1_35, %c1_36, %c0_37, %c0_38] : memref<3x3x4x4xbf16, #tpu.memory_space<vmem>>, vector<1x1x4x4xbf16>
    %50 = vector.shape_cast %49 : vector<1x1x4x4xbf16> to vector<4x4xbf16>
    %cst_39 = arith.constant dense<0.000000e+00> : vector<256x4xf32>
    %51 = tpu.matmul %48, %50, %cst_39 {dimension_numbers = #tpu.dot_dimension_numbers<[1], [0], [0], [1], [0, 0, 1, 1], [], []>} : vector<256x4xbf16>, vector<4x4xbf16>, vector<256x4xf32> -> vector<256x4xf32>
    %52 = arith.addf %42, %51 : vector<256x4xf32>
    %c1_i32_40 = arith.constant 1 : i32
    %53 = arith.addi %1, %c1_i32_40 : i32
    %c0_41 = arith.constant 0 : index
    %54 = arith.index_cast %53 : i32 to index
    %c2_42 = arith.constant 2 : index
    %c0_43 = arith.constant 0 : index
    %55 = vector.load %arg2[%c0_41, %54, %c2_42, %c0_43] : memref<1x18x18x4xf32, #tpu.memory_space<vmem>>, vector<1x16x16x4xf32>
    %56 = vector.shape_cast %55 : vector<1x16x16x4xf32> to vector<16x16x4xf32>
    %57 = vector.shape_cast %56 : vector<16x16x4xf32> to vector<256x4xf32>
    %58 = arith.truncf %57 : vector<256x4xf32> to vector<256x4xbf16>
    %c1_44 = arith.constant 1 : index
    %c2_45 = arith.constant 2 : index
    %c0_46 = arith.constant 0 : index
    %c0_47 = arith.constant 0 : index
    %59 = vector.load %arg3[%c1_44, %c2_45, %c0_46, %c0_47] : memref<3x3x4x4xbf16, #tpu.memory_space<vmem>>, vector<1x1x4x4xbf16>
    %60 = vector.shape_cast %59 : vector<1x1x4x4xbf16> to vector<4x4xbf16>
    %cst_48 = arith.constant dense<0.000000e+00> : vector<256x4xf32>
    %61 = tpu.matmul %58, %60, %cst_48 {dimension_numbers = #tpu.dot_dimension_numbers<[1], [0], [0], [1], [0, 0, 1, 1], [], []>} : vector<256x4xbf16>, vector<4x4xbf16>, vector<256x4xf32> -> vector<256x4xf32>
    %62 = arith.addf %52, %61 : vector<256x4xf32>
    %c2_i32 = arith.constant 2 : i32
    %63 = arith.addi %1, %c2_i32 : i32
    %c0_49 = arith.constant 0 : index
    %64 = arith.index_cast %63 : i32 to index
    %c0_50 = arith.constant 0 : index
    %c0_51 = arith.constant 0 : index
    %65 = vector.load %arg2[%c0_49, %64, %c0_50, %c0_51] : memref<1x18x18x4xf32, #tpu.memory_space<vmem>>, vector<1x16x16x4xf32>
    %66 = vector.shape_cast %65 : vector<1x16x16x4xf32> to vector<16x16x4xf32>
    %67 = vector.shape_cast %66 : vector<16x16x4xf32> to vector<256x4xf32>
    %68 = arith.truncf %67 : vector<256x4xf32> to vector<256x4xbf16>
    %c2_52 = arith.constant 2 : index
    %c0_53 = arith.constant 0 : index
    %c0_54 = arith.constant 0 : index
    %c0_55 = arith.constant 0 : index
    %69 = vector.load %arg3[%c2_52, %c0_53, %c0_54, %c0_55] : memref<3x3x4x4xbf16, #tpu.memory_space<vmem>>, vector<1x1x4x4xbf16>
    %70 = vector.shape_cast %69 : vector<1x1x4x4xbf16> to vector<4x4xbf16>
    %cst_56 = arith.constant dense<0.000000e+00> : vector<256x4xf32>
    %71 = tpu.matmul %68, %70, %cst_56 {dimension_numbers = #tpu.dot_dimension_numbers<[1], [0], [0], [1], [0, 0, 1, 1], [], []>} : vector<256x4xbf16>, vector<4x4xbf16>, vector<256x4xf32> -> vector<256x4xf32>
    %72 = arith.addf %62, %71 : vector<256x4xf32>
    %c2_i32_57 = arith.constant 2 : i32
    %73 = arith.addi %1, %c2_i32_57 : i32
    %c0_58 = arith.constant 0 : index
    %74 = arith.index_cast %73 : i32 to index
    %c1_59 = arith.constant 1 : index
    %c0_60 = arith.constant 0 : index
    %75 = vector.load %arg2[%c0_58, %74, %c1_59, %c0_60] : memref<1x18x18x4xf32, #tpu.memory_space<vmem>>, vector<1x16x16x4xf32>
    %76 = vector.shape_cast %75 : vector<1x16x16x4xf32> to vector<16x16x4xf32>
    %77 = vector.shape_cast %76 : vector<16x16x4xf32> to vector<256x4xf32>
    %78 = arith.truncf %77 : vector<256x4xf32> to vector<256x4xbf16>
    %c2_61 = arith.constant 2 : index
    %c1_62 = arith.constant 1 : index
    %c0_63 = arith.constant 0 : index
    %c0_64 = arith.constant 0 : index
    %79 = vector.load %arg3[%c2_61, %c1_62, %c0_63, %c0_64] : memref<3x3x4x4xbf16, #tpu.memory_space<vmem>>, vector<1x1x4x4xbf16>
    %80 = vector.shape_cast %79 : vector<1x1x4x4xbf16> to vector<4x4xbf16>
    %cst_65 = arith.constant dense<0.000000e+00> : vector<256x4xf32>
    %81 = tpu.matmul %78, %80, %cst_65 {dimension_numbers = #tpu.dot_dimension_numbers<[1], [0], [0], [1], [0, 0, 1, 1], [], []>} : vector<256x4xbf16>, vector<4x4xbf16>, vector<256x4xf32> -> vector<256x4xf32>
    %82 = arith.addf %72, %81 : vector<256x4xf32>
    %c2_i32_66 = arith.constant 2 : i32
    %83 = arith.addi %1, %c2_i32_66 : i32
    %c0_67 = arith.constant 0 : index
    %84 = arith.index_cast %83 : i32 to index
    %c2_68 = arith.constant 2 : index
    %c0_69 = arith.constant 0 : index
    %85 = vector.load %arg2[%c0_67, %84, %c2_68, %c0_69] : memref<1x18x18x4xf32, #tpu.memory_space<vmem>>, vector<1x16x16x4xf32>
    %86 = vector.shape_cast %85 : vector<1x16x16x4xf32> to vector<16x16x4xf32>
    %87 = vector.shape_cast %86 : vector<16x16x4xf32> to vector<256x4xf32>
    %88 = arith.truncf %87 : vector<256x4xf32> to vector<256x4xbf16>
    %c2_70 = arith.constant 2 : index
    %c2_71 = arith.constant 2 : index
    %c0_72 = arith.constant 0 : index
    %c0_73 = arith.constant 0 : index
    %89 = vector.load %arg3[%c2_70, %c2_71, %c0_72, %c0_73] : memref<3x3x4x4xbf16, #tpu.memory_space<vmem>>, vector<1x1x4x4xbf16>
    %90 = vector.shape_cast %89 : vector<1x1x4x4xbf16> to vector<4x4xbf16>
    %cst_74 = arith.constant dense<0.000000e+00> : vector<256x4xf32>
    %91 = tpu.matmul %88, %90, %cst_74 {dimension_numbers = #tpu.dot_dimension_numbers<[1], [0], [0], [1], [0, 0, 1, 1], [], []>} : vector<256x4xbf16>, vector<4x4xbf16>, vector<256x4xf32> -> vector<256x4xf32>
    %92 = arith.addf %82, %91 : vector<256x4xf32>
    %c0_75 = arith.constant 0 : index
    %c0_76 = arith.constant 0 : index
    %93 = vector.load %arg4[%c0_75, %c0_76] : memref<1x4xf32, #tpu.memory_space<vmem>>, vector<1x4xf32>
    %94 = vector.broadcast %93 : vector<1x4xf32> to vector<256x4xf32>
    %95 = arith.mulf %92, %94 : vector<256x4xf32>
    %c0_77 = arith.constant 0 : index
    %c0_78 = arith.constant 0 : index
    %96 = vector.load %arg5[%c0_77, %c0_78] : memref<1x4xf32, #tpu.memory_space<vmem>>, vector<1x4xf32>
    %97 = vector.broadcast %96 : vector<1x4xf32> to vector<256x4xf32>
    %98 = arith.addf %95, %97 : vector<256x4xf32>
    %99 = vector.shape_cast %98 : vector<256x4xf32> to vector<16x16x4xf32>
    %c0_79 = arith.constant 0 : index
    %c0_80 = arith.constant 0 : index
    %c0_81 = arith.constant 0 : index
    %c0_82 = arith.constant 0 : index
    %100 = vector.load %arg6[%c0_79, %c0_80, %c0_81, %c0_82] : memref<1x16x16x4xf32, #tpu.memory_space<vmem>>, vector<1x16x16x4xf32>
    %101 = vector.shape_cast %100 : vector<1x16x16x4xf32> to vector<16x16x4xf32>
    %102 = vector.shape_cast %99 : vector<16x16x4xf32> to vector<1x16x16x4xf32>
    tpu.vector_store %arg6[%c0_79, %c0_80, %c0_81, %c0_82], %102 {strides = array<i32>} : memref<1x16x16x4xf32, #tpu.memory_space<vmem>>, vector<1x16x16x4xf32>,
    return
  }
  func.func @transform_0(%arg0: i32, %arg1: i32) -> (i32, i32, i32, i32) {
    %c0_i32 = arith.constant 0 : i32
    %c0_i32_0 = arith.constant 0 : i32
    %c0_i32_1 = arith.constant 0 : i32
    %c0_i32_2 = arith.constant 0 : i32
    return %arg0, %c0_i32, %c0_i32_0, %c0_i32_1 : i32, i32, i32, i32
  }
  func.func @transform_1(%arg0: i32, %arg1: i32) -> (i32, i32, i32, i32) {
    %c0_i32 = arith.constant 0 : i32
    %c0_i32_0 = arith.constant 0 : i32
    %c0_i32_1 = arith.constant 0 : i32
    %c0_i32_2 = arith.constant 0 : i32
    %c0_i32_3 = arith.constant 0 : i32
    return %c0_i32, %c0_i32_0, %c0_i32_1, %c0_i32_2 : i32, i32, i32, i32
  }
  func.func @transform_2(%arg0: i32, %arg1: i32) -> (i32, i32) {
    %c0_i32 = arith.constant 0 : i32
    %c0_i32_0 = arith.constant 0 : i32
    %c0_i32_1 = arith.constant 0 : i32
    return %c0_i32, %c0_i32_0 : i32, i32
  }
  func.func @transform_3(%arg0: i32, %arg1: i32) -> (i32, i32) {
    %c0_i32 = arith.constant 0 : i32
    %c0_i32_0 = arith.constant 0 : i32
    %c0_i32_1 = arith.constant 0 : i32
    return %c0_i32, %c0_i32_0 : i32, i32
  }
  func.func @transform_4(%arg0: i32, %arg1: i32) -> (i32, i32, i32, i32) {
    %c0_i32 = arith.constant 0 : i32
    %c0_i32_0 = arith.constant 0 : i32
    %c0_i32_1 = arith.constant 0 : i32
    return %arg0, %arg1, %c0_i32, %c0_i32_0 : i32, i32, i32, i32
  }
}

module attributes {stable_mosaic.version = 11 : i64} {
  func.func @_conv3x3_bn_kernel(%arg0: i32, %arg1: i32, %arg2: memref<1x6x6x4xf32, #tpu.memory_space<vmem>>, %arg3: memref<3x3x4x4xbf16, #tpu.memory_space<vmem>>, %arg4: memref<1x4xf32, #tpu.memory_space<vmem>>, %arg5: memref<1x4xf32, #tpu.memory_space<vmem>>, %arg6: memref<1x4x4x4xf32, #tpu.memory_space<vmem>>) attributes {dimension_semantics = [#tpu.dimension_semantics<parallel>, #tpu.dimension_semantics<parallel>], iteration_bounds = array<i64: 2, 1>, scalar_prefetch = 0 : i64, scratch_operands = 0 : i64, tpu.core_type = #tpu.core_type<tc>, window_params = [{transform_indices = @transform_0, window_bounds = array<i64: 1, 6, 6, 4>}, {pipeline_mode = #tpu.pipeline_mode<synchronous>, transform_indices = @transform_1, window_bounds = array<i64: 3, 3, 4, 4>}, {pipeline_mode = #tpu.pipeline_mode<synchronous>, transform_indices = @transform_2, window_bounds = array<i64: 1, 4>}, {pipeline_mode = #tpu.pipeline_mode<synchronous>, transform_indices = @transform_3, window_bounds = array<i64: 1, 4>}, {transform_indices = @transform_4, window_bounds = array<i64: 1, 4, 4, 4>}]} {
    %c4_i32 = arith.constant 4 : i32
    %0 = arith.muli %arg1, %c4_i32 : i32
    %1 = tpu.assume_multiple %0, 4 : i32
    %cst = arith.constant 0.000000e+00 : f32
    %2 = vector.broadcast %cst : f32 to vector<16x4xf32>
    %c0_i32 = arith.constant 0 : i32
    %3 = arith.addi %1, %c0_i32 : i32
    %c0 = arith.constant 0 : index
    %4 = arith.index_cast %3 : i32 to index
    %c0_0 = arith.constant 0 : index
    %c0_1 = arith.constant 0 : index
    %5 = vector.load %arg2[%c0, %4, %c0_0, %c0_1] : memref<1x6x6x4xf32, #tpu.memory_space<vmem>>, vector<1x4x4x4xf32>
    %6 = vector.shape_cast %5 : vector<1x4x4x4xf32> to vector<4x4x4xf32>
    %7 = vector.shape_cast %6 : vector<4x4x4xf32> to vector<16x4xf32>
    %8 = arith.truncf %7 : vector<16x4xf32> to vector<16x4xbf16>
    %c0_2 = arith.constant 0 : index
    %c0_3 = arith.constant 0 : index
    %c0_4 = arith.constant 0 : index
    %c0_5 = arith.constant 0 : index
    %9 = vector.load %arg3[%c0_2, %c0_3, %c0_4, %c0_5] : memref<3x3x4x4xbf16, #tpu.memory_space<vmem>>, vector<1x1x4x4xbf16>
    %10 = vector.shape_cast %9 : vector<1x1x4x4xbf16> to vector<4x4xbf16>
    %cst_6 = arith.constant dense<0.000000e+00> : vector<16x4xf32>
    %11 = tpu.matmul %8, %10, %cst_6 {dimension_numbers = #tpu.dot_dimension_numbers<[1], [0], [0], [1], [0, 0, 1, 1], [], []>} : vector<16x4xbf16>, vector<4x4xbf16>, vector<16x4xf32> -> vector<16x4xf32>
    %12 = arith.addf %2, %11 : vector<16x4xf32>
    %c0_i32_7 = arith.constant 0 : i32
    %13 = arith.addi %1, %c0_i32_7 : i32
    %c0_8 = arith.constant 0 : index
    %14 = arith.index_cast %13 : i32 to index
    %c1 = arith.constant 1 : index
    %c0_9 = arith.constant 0 : index
    %15 = vector.load %arg2[%c0_8, %14, %c1, %c0_9] : memref<1x6x6x4xf32, #tpu.memory_space<vmem>>, vector<1x4x4x4xf32>
    %16 = vector.shape_cast %15 : vector<1x4x4x4xf32> to vector<4x4x4xf32>
    %17 = vector.shape_cast %16 : vector<4x4x4xf32> to vector<16x4xf32>
    %18 = arith.truncf %17 : vector<16x4xf32> to vector<16x4xbf16>
    %c0_10 = arith.constant 0 : index
    %c1_11 = arith.constant 1 : index
    %c0_12 = arith.constant 0 : index
    %c0_13 = arith.constant 0 : index
    %19 = vector.load %arg3[%c0_10, %c1_11, %c0_12, %c0_13] : memref<3x3x4x4xbf16, #tpu.memory_space<vmem>>, vector<1x1x4x4xbf16>
    %20 = vector.shape_cast %19 : vector<1x1x4x4xbf16> to vector<4x4xbf16>
    %cst_14 = arith.constant dense<0.000000e+00> : vector<16x4xf32>
    %21 = tpu.matmul %18, %20, %cst_14 {dimension_numbers = #tpu.dot_dimension_numbers<[1], [0], [0], [1], [0, 0, 1, 1], [], []>} : vector<16x4xbf16>, vector<4x4xbf16>, vector<16x4xf32> -> vector<16x4xf32>
    %22 = arith.addf %12, %21 : vector<16x4xf32>
    %c0_i32_15 = arith.constant 0 : i32
    %23 = arith.addi %1, %c0_i32_15 : i32
    %c0_16 = arith.constant 0 : index
    %24 = arith.index_cast %23 : i32 to index
    %c2 = arith.constant 2 : index
    %c0_17 = arith.constant 0 : index
    %25 = vector.load %arg2[%c0_16, %24, %c2, %c0_17] : memref<1x6x6x4xf32, #tpu.memory_space<vmem>>, vector<1x4x4x4xf32>
    %26 = vector.shape_cast %25 : vector<1x4x4x4xf32> to vector<4x4x4xf32>
    %27 = vector.shape_cast %26 : vector<4x4x4xf32> to vector<16x4xf32>
    %28 = arith.truncf %27 : vector<16x4xf32> to vector<16x4xbf16>
    %c0_18 = arith.constant 0 : index
    %c2_19 = arith.constant 2 : index
    %c0_20 = arith.constant 0 : index
    %c0_21 = arith.constant 0 : index
    %29 = vector.load %arg3[%c0_18, %c2_19, %c0_20, %c0_21] : memref<3x3x4x4xbf16, #tpu.memory_space<vmem>>, vector<1x1x4x4xbf16>
    %30 = vector.shape_cast %29 : vector<1x1x4x4xbf16> to vector<4x4xbf16>
    %cst_22 = arith.constant dense<0.000000e+00> : vector<16x4xf32>
    %31 = tpu.matmul %28, %30, %cst_22 {dimension_numbers = #tpu.dot_dimension_numbers<[1], [0], [0], [1], [0, 0, 1, 1], [], []>} : vector<16x4xbf16>, vector<4x4xbf16>, vector<16x4xf32> -> vector<16x4xf32>
    %32 = arith.addf %22, %31 : vector<16x4xf32>
    %c1_i32 = arith.constant 1 : i32
    %33 = arith.addi %1, %c1_i32 : i32
    %c0_23 = arith.constant 0 : index
    %34 = arith.index_cast %33 : i32 to index
    %c0_24 = arith.constant 0 : index
    %c0_25 = arith.constant 0 : index
    %35 = vector.load %arg2[%c0_23, %34, %c0_24, %c0_25] : memref<1x6x6x4xf32, #tpu.memory_space<vmem>>, vector<1x4x4x4xf32>
    %36 = vector.shape_cast %35 : vector<1x4x4x4xf32> to vector<4x4x4xf32>
    %37 = vector.shape_cast %36 : vector<4x4x4xf32> to vector<16x4xf32>
    %38 = arith.truncf %37 : vector<16x4xf32> to vector<16x4xbf16>
    %c1_26 = arith.constant 1 : index
    %c0_27 = arith.constant 0 : index
    %c0_28 = arith.constant 0 : index
    %c0_29 = arith.constant 0 : index
    %39 = vector.load %arg3[%c1_26, %c0_27, %c0_28, %c0_29] : memref<3x3x4x4xbf16, #tpu.memory_space<vmem>>, vector<1x1x4x4xbf16>
    %40 = vector.shape_cast %39 : vector<1x1x4x4xbf16> to vector<4x4xbf16>
    %cst_30 = arith.constant dense<0.000000e+00> : vector<16x4xf32>
    %41 = tpu.matmul %38, %40, %cst_30 {dimension_numbers = #tpu.dot_dimension_numbers<[1], [0], [0], [1], [0, 0, 1, 1], [], []>} : vector<16x4xbf16>, vector<4x4xbf16>, vector<16x4xf32> -> vector<16x4xf32>
    %42 = arith.addf %32, %41 : vector<16x4xf32>
    %c1_i32_31 = arith.constant 1 : i32
    %43 = arith.addi %1, %c1_i32_31 : i32
    %c0_32 = arith.constant 0 : index
    %44 = arith.index_cast %43 : i32 to index
    %c1_33 = arith.constant 1 : index
    %c0_34 = arith.constant 0 : index
    %45 = vector.load %arg2[%c0_32, %44, %c1_33, %c0_34] : memref<1x6x6x4xf32, #tpu.memory_space<vmem>>, vector<1x4x4x4xf32>
    %46 = vector.shape_cast %45 : vector<1x4x4x4xf32> to vector<4x4x4xf32>
    %47 = vector.shape_cast %46 : vector<4x4x4xf32> to vector<16x4xf32>
    %48 = arith.truncf %47 : vector<16x4xf32> to vector<16x4xbf16>
    %c1_35 = arith.constant 1 : index
    %c1_36 = arith.constant 1 : index
    %c0_37 = arith.constant 0 : index
    %c0_38 = arith.constant 0 : index
    %49 = vector.load %arg3[%c1_35, %c1_36, %c0_37, %c0_38] : memref<3x3x4x4xbf16, #tpu.memory_space<vmem>>, vector<1x1x4x4xbf16>
    %50 = vector.shape_cast %49 : vector<1x1x4x4xbf16> to vector<4x4xbf16>
    %cst_39 = arith.constant dense<0.000000e+00> : vector<16x4xf32>
    %51 = tpu.matmul %48, %50, %cst_39 {dimension_numbers = #tpu.dot_dimension_numbers<[1], [0], [0], [1], [0, 0, 1, 1], [], []>} : vector<16x4xbf16>, vector<4x4xbf16>, vector<16x4xf32> -> vector<16x4xf32>
    %52 = arith.addf %42, %51 : vector<16x4xf32>
    %c1_i32_40 = arith.constant 1 : i32
    %53 = arith.addi %1, %c1_i32_40 : i32
    %c0_41 = arith.constant 0 : index
    %54 = arith.index_cast %53 : i32 to index
    %c2_42 = arith.constant 2 : index
    %c0_43 = arith.constant 0 : index
    %55 = vector.load %arg2[%c0_41, %54, %c2_42, %c0_43] : memref<1x6x6x4xf32, #tpu.memory_space<vmem>>, vector<1x4x4x4xf32>
    %56 = vector.shape_cast %55 : vector<1x4x4x4xf32> to vector<4x4x4xf32>
    %57 = vector.shape_cast %56 : vector<4x4x4xf32> to vector<16x4xf32>
    %58 = arith.truncf %57 : vector<16x4xf32> to vector<16x4xbf16>
    %c1_44 = arith.constant 1 : index
    %c2_45 = arith.constant 2 : index
    %c0_46 = arith.constant 0 : index
    %c0_47 = arith.constant 0 : index
    %59 = vector.load %arg3[%c1_44, %c2_45, %c0_46, %c0_47] : memref<3x3x4x4xbf16, #tpu.memory_space<vmem>>, vector<1x1x4x4xbf16>
    %60 = vector.shape_cast %59 : vector<1x1x4x4xbf16> to vector<4x4xbf16>
    %cst_48 = arith.constant dense<0.000000e+00> : vector<16x4xf32>
    %61 = tpu.matmul %58, %60, %cst_48 {dimension_numbers = #tpu.dot_dimension_numbers<[1], [0], [0], [1], [0, 0, 1, 1], [], []>} : vector<16x4xbf16>, vector<4x4xbf16>, vector<16x4xf32> -> vector<16x4xf32>
    %62 = arith.addf %52, %61 : vector<16x4xf32>
    %c2_i32 = arith.constant 2 : i32
    %63 = arith.addi %1, %c2_i32 : i32
    %c0_49 = arith.constant 0 : index
    %64 = arith.index_cast %63 : i32 to index
    %c0_50 = arith.constant 0 : index
    %c0_51 = arith.constant 0 : index
    %65 = vector.load %arg2[%c0_49, %64, %c0_50, %c0_51] : memref<1x6x6x4xf32, #tpu.memory_space<vmem>>, vector<1x4x4x4xf32>
    %66 = vector.shape_cast %65 : vector<1x4x4x4xf32> to vector<4x4x4xf32>
    %67 = vector.shape_cast %66 : vector<4x4x4xf32> to vector<16x4xf32>
    %68 = arith.truncf %67 : vector<16x4xf32> to vector<16x4xbf16>
    %c2_52 = arith.constant 2 : index
    %c0_53 = arith.constant 0 : index
    %c0_54 = arith.constant 0 : index
    %c0_55 = arith.constant 0 : index
    %69 = vector.load %arg3[%c2_52, %c0_53, %c0_54, %c0_55] : memref<3x3x4x4xbf16, #tpu.memory_space<vmem>>, vector<1x1x4x4xbf16>
    %70 = vector.shape_cast %69 : vector<1x1x4x4xbf16> to vector<4x4xbf16>
    %cst_56 = arith.constant dense<0.000000e+00> : vector<16x4xf32>
    %71 = tpu.matmul %68, %70, %cst_56 {dimension_numbers = #tpu.dot_dimension_numbers<[1], [0], [0], [1], [0, 0, 1, 1], [], []>} : vector<16x4xbf16>, vector<4x4xbf16>, vector<16x4xf32> -> vector<16x4xf32>
    %72 = arith.addf %62, %71 : vector<16x4xf32>
    %c2_i32_57 = arith.constant 2 : i32
    %73 = arith.addi %1, %c2_i32_57 : i32
    %c0_58 = arith.constant 0 : index
    %74 = arith.index_cast %73 : i32 to index
    %c1_59 = arith.constant 1 : index
    %c0_60 = arith.constant 0 : index
    %75 = vector.load %arg2[%c0_58, %74, %c1_59, %c0_60] : memref<1x6x6x4xf32, #tpu.memory_space<vmem>>, vector<1x4x4x4xf32>
    %76 = vector.shape_cast %75 : vector<1x4x4x4xf32> to vector<4x4x4xf32>
    %77 = vector.shape_cast %76 : vector<4x4x4xf32> to vector<16x4xf32>
    %78 = arith.truncf %77 : vector<16x4xf32> to vector<16x4xbf16>
    %c2_61 = arith.constant 2 : index
    %c1_62 = arith.constant 1 : index
    %c0_63 = arith.constant 0 : index
    %c0_64 = arith.constant 0 : index
    %79 = vector.load %arg3[%c2_61, %c1_62, %c0_63, %c0_64] : memref<3x3x4x4xbf16, #tpu.memory_space<vmem>>, vector<1x1x4x4xbf16>
    %80 = vector.shape_cast %79 : vector<1x1x4x4xbf16> to vector<4x4xbf16>
    %cst_65 = arith.constant dense<0.000000e+00> : vector<16x4xf32>
    %81 = tpu.matmul %78, %80, %cst_65 {dimension_numbers = #tpu.dot_dimension_numbers<[1], [0], [0], [1], [0, 0, 1, 1], [], []>} : vector<16x4xbf16>, vector<4x4xbf16>, vector<16x4xf32> -> vector<16x4xf32>
    %82 = arith.addf %72, %81 : vector<16x4xf32>
    %c2_i32_66 = arith.constant 2 : i32
    %83 = arith.addi %1, %c2_i32_66 : i32
    %c0_67 = arith.constant 0 : index
    %84 = arith.index_cast %83 : i32 to index
    %c2_68 = arith.constant 2 : index
    %c0_69 = arith.constant 0 : index
    %85 = vector.load %arg2[%c0_67, %84, %c2_68, %c0_69] : memref<1x6x6x4xf32, #tpu.memory_space<vmem>>, vector<1x4x4x4xf32>
    %86 = vector.shape_cast %85 : vector<1x4x4x4xf32> to vector<4x4x4xf32>
    %87 = vector.shape_cast %86 : vector<4x4x4xf32> to vector<16x4xf32>
    %88 = arith.truncf %87 : vector<16x4xf32> to vector<16x4xbf16>
    %c2_70 = arith.constant 2 : index
    %c2_71 = arith.constant 2 : index
    %c0_72 = arith.constant 0 : index
    %c0_73 = arith.constant 0 : index
    %89 = vector.load %arg3[%c2_70, %c2_71, %c0_72, %c0_73] : memref<3x3x4x4xbf16, #tpu.memory_space<vmem>>, vector<1x1x4x4xbf16>
    %90 = vector.shape_cast %89 : vector<1x1x4x4xbf16> to vector<4x4xbf16>
    %cst_74 = arith.constant dense<0.000000e+00> : vector<16x4xf32>
    %91 = tpu.matmul %88, %90, %cst_74 {dimension_numbers = #tpu.dot_dimension_numbers<[1], [0], [0], [1], [0, 0, 1, 1], [], []>} : vector<16x4xbf16>, vector<4x4xbf16>, vector<16x4xf32> -> vector<16x4xf32>
    %92 = arith.addf %82, %91 : vector<16x4xf32>
    %c0_75 = arith.constant 0 : index
    %c0_76 = arith.constant 0 : index
    %93 = vector.load %arg4[%c0_75, %c0_76] : memref<1x4xf32, #tpu.memory_space<vmem>>, vector<1x4xf32>
    %94 = vector.broadcast %93 : vector<1x4xf32> to vector<16x4xf32>
    %95 = arith.mulf %92, %94 : vector<16x4xf32>
    %c0_77 = arith.constant 0 : index
    %c0_78 = arith.constant 0 : index
    %96 = vector.load %arg5[%c0_77, %c0_78] : memref<1x4xf32, #tpu.memory_space<vmem>>, vector<1x4xf32>
    %97 = vector.broadcast %96 : vector<1x4xf32> to vector<16x4xf32>
    %98 = arith.addf %95, %97 : vector<16x4xf32>
    %99 = vector.shape_cast %98 : vector<16x4xf32> to vector<4x4x4xf32>
    %c0_79 = arith.constant 0 : index
    %c0_80 = arith.constant 0 : index
    %c0_81 = arith.constant 0 : index
    %c0_82 = arith.constant 0 : index
    %100 = vector.load %arg6[%c0_79, %c0_80, %c0_81, %c0_82] : memref<1x4x4x4xf32, #tpu.memory_space<vmem>>, vector<1x4x4x4xf32>
    %101 = vector.shape_cast %100 : vector<1x4x4x4xf32> to vector<4x4x4xf32>
    %102 = vector.shape_cast %99 : vector<4x4x4xf32> to vector<1x4x4x4xf32>
    tpu.vector_store %arg6[%c0_79, %c0_80, %c0_81, %c0_82], %102 {strides = array<i32>} : memref<1x4x4x4xf32, #tpu.memory_space<vmem>>, vector<1x4x4x4xf32>,
    return
  }
  func.func @transform_0(%arg0: i32, %arg1: i32) -> (i32, i32, i32, i32) {
    %c0_i32 = arith.constant 0 : i32
    %c0_i32_0 = arith.constant 0 : i32
    %c0_i32_1 = arith.constant 0 : i32
    %c0_i32_2 = arith.constant 0 : i32
    return %arg0, %c0_i32, %c0_i32_0, %c0_i32_1 : i32, i32, i32, i32
  }
  func.func @transform_1(%arg0: i32, %arg1: i32) -> (i32, i32, i32, i32) {
    %c0_i32 = arith.constant 0 : i32
    %c0_i32_0 = arith.constant 0 : i32
    %c0_i32_1 = arith.constant 0 : i32
    %c0_i32_2 = arith.constant 0 : i32
    %c0_i32_3 = arith.constant 0 : i32
    return %c0_i32, %c0_i32_0, %c0_i32_1, %c0_i32_2 : i32, i32, i32, i32
  }
  func.func @transform_2(%arg0: i32, %arg1: i32) -> (i32, i32) {
    %c0_i32 = arith.constant 0 : i32
    %c0_i32_0 = arith.constant 0 : i32
    %c0_i32_1 = arith.constant 0 : i32
    return %c0_i32, %c0_i32_0 : i32, i32
  }
  func.func @transform_3(%arg0: i32, %arg1: i32) -> (i32, i32) {
    %c0_i32 = arith.constant 0 : i32
    %c0_i32_0 = arith.constant 0 : i32
    %c0_i32_1 = arith.constant 0 : i32
    return %c0_i32, %c0_i32_0 : i32, i32
  }
  func.func @transform_4(%arg0: i32, %arg1: i32) -> (i32, i32, i32, i32) {
    %c0_i32 = arith.constant 0 : i32
    %c0_i32_0 = arith.constant 0 : i32
    %c0_i32_1 = arith.constant 0 : i32
    return %arg0, %arg1, %c0_i32, %c0_i32_0 : i32, i32, i32, i32
  }
}

module attributes {stable_mosaic.version = 11 : i64} {
  func.func @_gate_kernel(%arg0: i32, %arg1: i32, %arg2: memref<1x16x16x4xf32, #tpu.memory_space<vmem>>, %arg3: memref<1x16x16x4xf32, #tpu.memory_space<vmem>>, %arg4: memref<1x4x16x4xf32, #tpu.memory_space<vmem>>, %arg5: memref<1x16x16x4xf32, #tpu.memory_space<vmem>>) attributes {dimension_semantics = [#tpu.dimension_semantics<parallel>, #tpu.dimension_semantics<parallel>], iteration_bounds = array<i64: 2, 1>, scalar_prefetch = 0 : i64, scratch_operands = 0 : i64, tpu.core_type = #tpu.core_type<tc>, window_params = [{transform_indices = @transform_0, window_bounds = array<i64: 1, 16, 16, 4>}, {transform_indices = @transform_1, window_bounds = array<i64: 1, 16, 16, 4>}, {transform_indices = @transform_2, window_bounds = array<i64: 1, 4, 16, 4>}, {transform_indices = @transform_3, window_bounds = array<i64: 1, 16, 16, 4>}]} {
    %c0 = arith.constant 0 : index
    %c0_0 = arith.constant 0 : index
    %c0_1 = arith.constant 0 : index
    %c0_2 = arith.constant 0 : index
    %0 = vector.load %arg2[%c0, %c0_0, %c0_1, %c0_2] : memref<1x16x16x4xf32, #tpu.memory_space<vmem>>, vector<1x16x16x4xf32>
    %1 = vector.shape_cast %0 : vector<1x16x16x4xf32> to vector<16x16x4xf32>
    %c0_3 = arith.constant 0 : index
    %c0_4 = arith.constant 0 : index
    %c0_5 = arith.constant 0 : index
    %c0_6 = arith.constant 0 : index
    %2 = vector.load %arg3[%c0_3, %c0_4, %c0_5, %c0_6] : memref<1x16x16x4xf32, #tpu.memory_space<vmem>>, vector<1x16x16x4xf32>
    %3 = vector.shape_cast %2 : vector<1x16x16x4xf32> to vector<16x16x4xf32>
    %c0_7 = arith.constant 0 : index
    %c0_8 = arith.constant 0 : index
    %c0_9 = arith.constant 0 : index
    %c0_10 = arith.constant 0 : index
    %4 = vector.load %arg4[%c0_7, %c0_8, %c0_9, %c0_10] : memref<1x4x16x4xf32, #tpu.memory_space<vmem>>, vector<1x4x16x4xf32>
    %5 = vector.shape_cast %4 : vector<1x4x16x4xf32> to vector<4x16x4xf32>
    %6 = vector.shape_cast %5 : vector<4x16x4xf32> to vector<4x1x16x4xf32>
    %7 = vector.shape_cast %6 : vector<4x1x16x4xf32> to vector<4x1x16x4xf32>
    %8 = vector.broadcast %7 : vector<4x1x16x4xf32> to vector<4x4x16x4xf32>
    %9 = vector.shape_cast %8 : vector<4x4x16x4xf32> to vector<16x16x4xf32>
    %10 = arith.addf %3, %9 : vector<16x16x4xf32>
    %11 = arith.negf %10 : vector<16x16x4xf32>
    %12 = math.exp %11 : vector<16x16x4xf32>
    %cst = arith.constant 1.000000e+00 : f32
    %13 = vector.broadcast %cst : f32 to vector<16x16x4xf32>
    %14 = arith.addf %13, %12 : vector<16x16x4xf32>
    %15 = arith.divf %13, %14 : vector<16x16x4xf32>
    %16 = arith.mulf %1, %15 : vector<16x16x4xf32>
    %c0_11 = arith.constant 0 : index
    %c0_12 = arith.constant 0 : index
    %c0_13 = arith.constant 0 : index
    %c0_14 = arith.constant 0 : index
    %17 = vector.load %arg5[%c0_11, %c0_12, %c0_13, %c0_14] : memref<1x16x16x4xf32, #tpu.memory_space<vmem>>, vector<1x16x16x4xf32>
    %18 = vector.shape_cast %17 : vector<1x16x16x4xf32> to vector<16x16x4xf32>
    %19 = vector.shape_cast %16 : vector<16x16x4xf32> to vector<1x16x16x4xf32>
    tpu.vector_store %arg5[%c0_11, %c0_12, %c0_13, %c0_14], %19 {strides = array<i32>} : memref<1x16x16x4xf32, #tpu.memory_space<vmem>>, vector<1x16x16x4xf32>,
    return
  }
  func.func @transform_0(%arg0: i32, %arg1: i32) -> (i32, i32, i32, i32) {
    %c0_i32 = arith.constant 0 : i32
    %c0_i32_0 = arith.constant 0 : i32
    %c0_i32_1 = arith.constant 0 : i32
    return %arg0, %arg1, %c0_i32, %c0_i32_0 : i32, i32, i32, i32
  }
  func.func @transform_1(%arg0: i32, %arg1: i32) -> (i32, i32, i32, i32) {
    %c0_i32 = arith.constant 0 : i32
    %c0_i32_0 = arith.constant 0 : i32
    %c0_i32_1 = arith.constant 0 : i32
    return %arg0, %arg1, %c0_i32, %c0_i32_0 : i32, i32, i32, i32
  }
  func.func @transform_2(%arg0: i32, %arg1: i32) -> (i32, i32, i32, i32) {
    %c0_i32 = arith.constant 0 : i32
    %c0_i32_0 = arith.constant 0 : i32
    %c0_i32_1 = arith.constant 0 : i32
    return %arg0, %arg1, %c0_i32, %c0_i32_0 : i32, i32, i32, i32
  }
  func.func @transform_3(%arg0: i32, %arg1: i32) -> (i32, i32, i32, i32) {
    %c0_i32 = arith.constant 0 : i32
    %c0_i32_0 = arith.constant 0 : i32
    %c0_i32_1 = arith.constant 0 : i32
    return %arg0, %arg1, %c0_i32, %c0_i32_0 : i32, i32, i32, i32
  }
}

module attributes {stable_mosaic.version = 11 : i64} {
  func.func @_conv3x3_bn_kernel(%arg0: i32, %arg1: i32, %arg2: memref<1x18x18x4xf32, #tpu.memory_space<vmem>>, %arg3: memref<3x3x4x4xbf16, #tpu.memory_space<vmem>>, %arg4: memref<1x4xf32, #tpu.memory_space<vmem>>, %arg5: memref<1x4xf32, #tpu.memory_space<vmem>>, %arg6: memref<1x16x16x4xf32, #tpu.memory_space<vmem>>) attributes {dimension_semantics = [#tpu.dimension_semantics<parallel>, #tpu.dimension_semantics<parallel>], iteration_bounds = array<i64: 2, 1>, scalar_prefetch = 0 : i64, scratch_operands = 0 : i64, tpu.core_type = #tpu.core_type<tc>, window_params = [{transform_indices = @transform_0, window_bounds = array<i64: 1, 18, 18, 4>}, {pipeline_mode = #tpu.pipeline_mode<synchronous>, transform_indices = @transform_1, window_bounds = array<i64: 3, 3, 4, 4>}, {pipeline_mode = #tpu.pipeline_mode<synchronous>, transform_indices = @transform_2, window_bounds = array<i64: 1, 4>}, {pipeline_mode = #tpu.pipeline_mode<synchronous>, transform_indices = @transform_3, window_bounds = array<i64: 1, 4>}, {transform_indices = @transform_4, window_bounds = array<i64: 1, 16, 16, 4>}]} {
    %c16_i32 = arith.constant 16 : i32
    %0 = arith.muli %arg1, %c16_i32 : i32
    %1 = tpu.assume_multiple %0, 16 : i32
    %cst = arith.constant 0.000000e+00 : f32
    %2 = vector.broadcast %cst : f32 to vector<256x4xf32>
    %c0_i32 = arith.constant 0 : i32
    %3 = arith.addi %1, %c0_i32 : i32
    %c0 = arith.constant 0 : index
    %4 = arith.index_cast %3 : i32 to index
    %c0_0 = arith.constant 0 : index
    %c0_1 = arith.constant 0 : index
    %5 = vector.load %arg2[%c0, %4, %c0_0, %c0_1] : memref<1x18x18x4xf32, #tpu.memory_space<vmem>>, vector<1x16x16x4xf32>
    %6 = vector.shape_cast %5 : vector<1x16x16x4xf32> to vector<16x16x4xf32>
    %7 = vector.shape_cast %6 : vector<16x16x4xf32> to vector<256x4xf32>
    %8 = arith.truncf %7 : vector<256x4xf32> to vector<256x4xbf16>
    %c0_2 = arith.constant 0 : index
    %c0_3 = arith.constant 0 : index
    %c0_4 = arith.constant 0 : index
    %c0_5 = arith.constant 0 : index
    %9 = vector.load %arg3[%c0_2, %c0_3, %c0_4, %c0_5] : memref<3x3x4x4xbf16, #tpu.memory_space<vmem>>, vector<1x1x4x4xbf16>
    %10 = vector.shape_cast %9 : vector<1x1x4x4xbf16> to vector<4x4xbf16>
    %cst_6 = arith.constant dense<0.000000e+00> : vector<256x4xf32>
    %11 = tpu.matmul %8, %10, %cst_6 {dimension_numbers = #tpu.dot_dimension_numbers<[1], [0], [0], [1], [0, 0, 1, 1], [], []>} : vector<256x4xbf16>, vector<4x4xbf16>, vector<256x4xf32> -> vector<256x4xf32>
    %12 = arith.addf %2, %11 : vector<256x4xf32>
    %c0_i32_7 = arith.constant 0 : i32
    %13 = arith.addi %1, %c0_i32_7 : i32
    %c0_8 = arith.constant 0 : index
    %14 = arith.index_cast %13 : i32 to index
    %c1 = arith.constant 1 : index
    %c0_9 = arith.constant 0 : index
    %15 = vector.load %arg2[%c0_8, %14, %c1, %c0_9] : memref<1x18x18x4xf32, #tpu.memory_space<vmem>>, vector<1x16x16x4xf32>
    %16 = vector.shape_cast %15 : vector<1x16x16x4xf32> to vector<16x16x4xf32>
    %17 = vector.shape_cast %16 : vector<16x16x4xf32> to vector<256x4xf32>
    %18 = arith.truncf %17 : vector<256x4xf32> to vector<256x4xbf16>
    %c0_10 = arith.constant 0 : index
    %c1_11 = arith.constant 1 : index
    %c0_12 = arith.constant 0 : index
    %c0_13 = arith.constant 0 : index
    %19 = vector.load %arg3[%c0_10, %c1_11, %c0_12, %c0_13] : memref<3x3x4x4xbf16, #tpu.memory_space<vmem>>, vector<1x1x4x4xbf16>
    %20 = vector.shape_cast %19 : vector<1x1x4x4xbf16> to vector<4x4xbf16>
    %cst_14 = arith.constant dense<0.000000e+00> : vector<256x4xf32>
    %21 = tpu.matmul %18, %20, %cst_14 {dimension_numbers = #tpu.dot_dimension_numbers<[1], [0], [0], [1], [0, 0, 1, 1], [], []>} : vector<256x4xbf16>, vector<4x4xbf16>, vector<256x4xf32> -> vector<256x4xf32>
    %22 = arith.addf %12, %21 : vector<256x4xf32>
    %c0_i32_15 = arith.constant 0 : i32
    %23 = arith.addi %1, %c0_i32_15 : i32
    %c0_16 = arith.constant 0 : index
    %24 = arith.index_cast %23 : i32 to index
    %c2 = arith.constant 2 : index
    %c0_17 = arith.constant 0 : index
    %25 = vector.load %arg2[%c0_16, %24, %c2, %c0_17] : memref<1x18x18x4xf32, #tpu.memory_space<vmem>>, vector<1x16x16x4xf32>
    %26 = vector.shape_cast %25 : vector<1x16x16x4xf32> to vector<16x16x4xf32>
    %27 = vector.shape_cast %26 : vector<16x16x4xf32> to vector<256x4xf32>
    %28 = arith.truncf %27 : vector<256x4xf32> to vector<256x4xbf16>
    %c0_18 = arith.constant 0 : index
    %c2_19 = arith.constant 2 : index
    %c0_20 = arith.constant 0 : index
    %c0_21 = arith.constant 0 : index
    %29 = vector.load %arg3[%c0_18, %c2_19, %c0_20, %c0_21] : memref<3x3x4x4xbf16, #tpu.memory_space<vmem>>, vector<1x1x4x4xbf16>
    %30 = vector.shape_cast %29 : vector<1x1x4x4xbf16> to vector<4x4xbf16>
    %cst_22 = arith.constant dense<0.000000e+00> : vector<256x4xf32>
    %31 = tpu.matmul %28, %30, %cst_22 {dimension_numbers = #tpu.dot_dimension_numbers<[1], [0], [0], [1], [0, 0, 1, 1], [], []>} : vector<256x4xbf16>, vector<4x4xbf16>, vector<256x4xf32> -> vector<256x4xf32>
    %32 = arith.addf %22, %31 : vector<256x4xf32>
    %c1_i32 = arith.constant 1 : i32
    %33 = arith.addi %1, %c1_i32 : i32
    %c0_23 = arith.constant 0 : index
    %34 = arith.index_cast %33 : i32 to index
    %c0_24 = arith.constant 0 : index
    %c0_25 = arith.constant 0 : index
    %35 = vector.load %arg2[%c0_23, %34, %c0_24, %c0_25] : memref<1x18x18x4xf32, #tpu.memory_space<vmem>>, vector<1x16x16x4xf32>
    %36 = vector.shape_cast %35 : vector<1x16x16x4xf32> to vector<16x16x4xf32>
    %37 = vector.shape_cast %36 : vector<16x16x4xf32> to vector<256x4xf32>
    %38 = arith.truncf %37 : vector<256x4xf32> to vector<256x4xbf16>
    %c1_26 = arith.constant 1 : index
    %c0_27 = arith.constant 0 : index
    %c0_28 = arith.constant 0 : index
    %c0_29 = arith.constant 0 : index
    %39 = vector.load %arg3[%c1_26, %c0_27, %c0_28, %c0_29] : memref<3x3x4x4xbf16, #tpu.memory_space<vmem>>, vector<1x1x4x4xbf16>
    %40 = vector.shape_cast %39 : vector<1x1x4x4xbf16> to vector<4x4xbf16>
    %cst_30 = arith.constant dense<0.000000e+00> : vector<256x4xf32>
    %41 = tpu.matmul %38, %40, %cst_30 {dimension_numbers = #tpu.dot_dimension_numbers<[1], [0], [0], [1], [0, 0, 1, 1], [], []>} : vector<256x4xbf16>, vector<4x4xbf16>, vector<256x4xf32> -> vector<256x4xf32>
    %42 = arith.addf %32, %41 : vector<256x4xf32>
    %c1_i32_31 = arith.constant 1 : i32
    %43 = arith.addi %1, %c1_i32_31 : i32
    %c0_32 = arith.constant 0 : index
    %44 = arith.index_cast %43 : i32 to index
    %c1_33 = arith.constant 1 : index
    %c0_34 = arith.constant 0 : index
    %45 = vector.load %arg2[%c0_32, %44, %c1_33, %c0_34] : memref<1x18x18x4xf32, #tpu.memory_space<vmem>>, vector<1x16x16x4xf32>
    %46 = vector.shape_cast %45 : vector<1x16x16x4xf32> to vector<16x16x4xf32>
    %47 = vector.shape_cast %46 : vector<16x16x4xf32> to vector<256x4xf32>
    %48 = arith.truncf %47 : vector<256x4xf32> to vector<256x4xbf16>
    %c1_35 = arith.constant 1 : index
    %c1_36 = arith.constant 1 : index
    %c0_37 = arith.constant 0 : index
    %c0_38 = arith.constant 0 : index
    %49 = vector.load %arg3[%c1_35, %c1_36, %c0_37, %c0_38] : memref<3x3x4x4xbf16, #tpu.memory_space<vmem>>, vector<1x1x4x4xbf16>
    %50 = vector.shape_cast %49 : vector<1x1x4x4xbf16> to vector<4x4xbf16>
    %cst_39 = arith.constant dense<0.000000e+00> : vector<256x4xf32>
    %51 = tpu.matmul %48, %50, %cst_39 {dimension_numbers = #tpu.dot_dimension_numbers<[1], [0], [0], [1], [0, 0, 1, 1], [], []>} : vector<256x4xbf16>, vector<4x4xbf16>, vector<256x4xf32> -> vector<256x4xf32>
    %52 = arith.addf %42, %51 : vector<256x4xf32>
    %c1_i32_40 = arith.constant 1 : i32
    %53 = arith.addi %1, %c1_i32_40 : i32
    %c0_41 = arith.constant 0 : index
    %54 = arith.index_cast %53 : i32 to index
    %c2_42 = arith.constant 2 : index
    %c0_43 = arith.constant 0 : index
    %55 = vector.load %arg2[%c0_41, %54, %c2_42, %c0_43] : memref<1x18x18x4xf32, #tpu.memory_space<vmem>>, vector<1x16x16x4xf32>
    %56 = vector.shape_cast %55 : vector<1x16x16x4xf32> to vector<16x16x4xf32>
    %57 = vector.shape_cast %56 : vector<16x16x4xf32> to vector<256x4xf32>
    %58 = arith.truncf %57 : vector<256x4xf32> to vector<256x4xbf16>
    %c1_44 = arith.constant 1 : index
    %c2_45 = arith.constant 2 : index
    %c0_46 = arith.constant 0 : index
    %c0_47 = arith.constant 0 : index
    %59 = vector.load %arg3[%c1_44, %c2_45, %c0_46, %c0_47] : memref<3x3x4x4xbf16, #tpu.memory_space<vmem>>, vector<1x1x4x4xbf16>
    %60 = vector.shape_cast %59 : vector<1x1x4x4xbf16> to vector<4x4xbf16>
    %cst_48 = arith.constant dense<0.000000e+00> : vector<256x4xf32>
    %61 = tpu.matmul %58, %60, %cst_48 {dimension_numbers = #tpu.dot_dimension_numbers<[1], [0], [0], [1], [0, 0, 1, 1], [], []>} : vector<256x4xbf16>, vector<4x4xbf16>, vector<256x4xf32> -> vector<256x4xf32>
    %62 = arith.addf %52, %61 : vector<256x4xf32>
    %c2_i32 = arith.constant 2 : i32
    %63 = arith.addi %1, %c2_i32 : i32
    %c0_49 = arith.constant 0 : index
    %64 = arith.index_cast %63 : i32 to index
    %c0_50 = arith.constant 0 : index
    %c0_51 = arith.constant 0 : index
    %65 = vector.load %arg2[%c0_49, %64, %c0_50, %c0_51] : memref<1x18x18x4xf32, #tpu.memory_space<vmem>>, vector<1x16x16x4xf32>
    %66 = vector.shape_cast %65 : vector<1x16x16x4xf32> to vector<16x16x4xf32>
    %67 = vector.shape_cast %66 : vector<16x16x4xf32> to vector<256x4xf32>
    %68 = arith.truncf %67 : vector<256x4xf32> to vector<256x4xbf16>
    %c2_52 = arith.constant 2 : index
    %c0_53 = arith.constant 0 : index
    %c0_54 = arith.constant 0 : index
    %c0_55 = arith.constant 0 : index
    %69 = vector.load %arg3[%c2_52, %c0_53, %c0_54, %c0_55] : memref<3x3x4x4xbf16, #tpu.memory_space<vmem>>, vector<1x1x4x4xbf16>
    %70 = vector.shape_cast %69 : vector<1x1x4x4xbf16> to vector<4x4xbf16>
    %cst_56 = arith.constant dense<0.000000e+00> : vector<256x4xf32>
    %71 = tpu.matmul %68, %70, %cst_56 {dimension_numbers = #tpu.dot_dimension_numbers<[1], [0], [0], [1], [0, 0, 1, 1], [], []>} : vector<256x4xbf16>, vector<4x4xbf16>, vector<256x4xf32> -> vector<256x4xf32>
    %72 = arith.addf %62, %71 : vector<256x4xf32>
    %c2_i32_57 = arith.constant 2 : i32
    %73 = arith.addi %1, %c2_i32_57 : i32
    %c0_58 = arith.constant 0 : index
    %74 = arith.index_cast %73 : i32 to index
    %c1_59 = arith.constant 1 : index
    %c0_60 = arith.constant 0 : index
    %75 = vector.load %arg2[%c0_58, %74, %c1_59, %c0_60] : memref<1x18x18x4xf32, #tpu.memory_space<vmem>>, vector<1x16x16x4xf32>
    %76 = vector.shape_cast %75 : vector<1x16x16x4xf32> to vector<16x16x4xf32>
    %77 = vector.shape_cast %76 : vector<16x16x4xf32> to vector<256x4xf32>
    %78 = arith.truncf %77 : vector<256x4xf32> to vector<256x4xbf16>
    %c2_61 = arith.constant 2 : index
    %c1_62 = arith.constant 1 : index
    %c0_63 = arith.constant 0 : index
    %c0_64 = arith.constant 0 : index
    %79 = vector.load %arg3[%c2_61, %c1_62, %c0_63, %c0_64] : memref<3x3x4x4xbf16, #tpu.memory_space<vmem>>, vector<1x1x4x4xbf16>
    %80 = vector.shape_cast %79 : vector<1x1x4x4xbf16> to vector<4x4xbf16>
    %cst_65 = arith.constant dense<0.000000e+00> : vector<256x4xf32>
    %81 = tpu.matmul %78, %80, %cst_65 {dimension_numbers = #tpu.dot_dimension_numbers<[1], [0], [0], [1], [0, 0, 1, 1], [], []>} : vector<256x4xbf16>, vector<4x4xbf16>, vector<256x4xf32> -> vector<256x4xf32>
    %82 = arith.addf %72, %81 : vector<256x4xf32>
    %c2_i32_66 = arith.constant 2 : i32
    %83 = arith.addi %1, %c2_i32_66 : i32
    %c0_67 = arith.constant 0 : index
    %84 = arith.index_cast %83 : i32 to index
    %c2_68 = arith.constant 2 : index
    %c0_69 = arith.constant 0 : index
    %85 = vector.load %arg2[%c0_67, %84, %c2_68, %c0_69] : memref<1x18x18x4xf32, #tpu.memory_space<vmem>>, vector<1x16x16x4xf32>
    %86 = vector.shape_cast %85 : vector<1x16x16x4xf32> to vector<16x16x4xf32>
    %87 = vector.shape_cast %86 : vector<16x16x4xf32> to vector<256x4xf32>
    %88 = arith.truncf %87 : vector<256x4xf32> to vector<256x4xbf16>
    %c2_70 = arith.constant 2 : index
    %c2_71 = arith.constant 2 : index
    %c0_72 = arith.constant 0 : index
    %c0_73 = arith.constant 0 : index
    %89 = vector.load %arg3[%c2_70, %c2_71, %c0_72, %c0_73] : memref<3x3x4x4xbf16, #tpu.memory_space<vmem>>, vector<1x1x4x4xbf16>
    %90 = vector.shape_cast %89 : vector<1x1x4x4xbf16> to vector<4x4xbf16>
    %cst_74 = arith.constant dense<0.000000e+00> : vector<256x4xf32>
    %91 = tpu.matmul %88, %90, %cst_74 {dimension_numbers = #tpu.dot_dimension_numbers<[1], [0], [0], [1], [0, 0, 1, 1], [], []>} : vector<256x4xbf16>, vector<4x4xbf16>, vector<256x4xf32> -> vector<256x4xf32>
    %92 = arith.addf %82, %91 : vector<256x4xf32>
    %c0_75 = arith.constant 0 : index
    %c0_76 = arith.constant 0 : index
    %93 = vector.load %arg4[%c0_75, %c0_76] : memref<1x4xf32, #tpu.memory_space<vmem>>, vector<1x4xf32>
    %94 = vector.broadcast %93 : vector<1x4xf32> to vector<256x4xf32>
    %95 = arith.mulf %92, %94 : vector<256x4xf32>
    %c0_77 = arith.constant 0 : index
    %c0_78 = arith.constant 0 : index
    %96 = vector.load %arg5[%c0_77, %c0_78] : memref<1x4xf32, #tpu.memory_space<vmem>>, vector<1x4xf32>
    %97 = vector.broadcast %96 : vector<1x4xf32> to vector<256x4xf32>
    %98 = arith.addf %95, %97 : vector<256x4xf32>
    %cst_79 = arith.constant 0.000000e+00 : f32
    %99 = vector.broadcast %cst_79 : f32 to vector<256x4xf32>
    %100 = arith.maximumf %98, %99 : vector<256x4xf32>
    %101 = vector.shape_cast %100 : vector<256x4xf32> to vector<16x16x4xf32>
    %c0_80 = arith.constant 0 : index
    %c0_81 = arith.constant 0 : index
    %c0_82 = arith.constant 0 : index
    %c0_83 = arith.constant 0 : index
    %102 = vector.load %arg6[%c0_80, %c0_81, %c0_82, %c0_83] : memref<1x16x16x4xf32, #tpu.memory_space<vmem>>, vector<1x16x16x4xf32>
    %103 = vector.shape_cast %102 : vector<1x16x16x4xf32> to vector<16x16x4xf32>
    %104 = vector.shape_cast %101 : vector<16x16x4xf32> to vector<1x16x16x4xf32>
    tpu.vector_store %arg6[%c0_80, %c0_81, %c0_82, %c0_83], %104 {strides = array<i32>} : memref<1x16x16x4xf32, #tpu.memory_space<vmem>>, vector<1x16x16x4xf32>,
    return
  }
  func.func @transform_0(%arg0: i32, %arg1: i32) -> (i32, i32, i32, i32) {
    %c0_i32 = arith.constant 0 : i32
    %c0_i32_0 = arith.constant 0 : i32
    %c0_i32_1 = arith.constant 0 : i32
    %c0_i32_2 = arith.constant 0 : i32
    return %arg0, %c0_i32, %c0_i32_0, %c0_i32_1 : i32, i32, i32, i32
  }
  func.func @transform_1(%arg0: i32, %arg1: i32) -> (i32, i32, i32, i32) {
    %c0_i32 = arith.constant 0 : i32
    %c0_i32_0 = arith.constant 0 : i32
    %c0_i32_1 = arith.constant 0 : i32
    %c0_i32_2 = arith.constant 0 : i32
    %c0_i32_3 = arith.constant 0 : i32
    return %c0_i32, %c0_i32_0, %c0_i32_1, %c0_i32_2 : i32, i32, i32, i32
  }
  func.func @transform_2(%arg0: i32, %arg1: i32) -> (i32, i32) {
    %c0_i32 = arith.constant 0 : i32
    %c0_i32_0 = arith.constant 0 : i32
    %c0_i32_1 = arith.constant 0 : i32
    return %c0_i32, %c0_i32_0 : i32, i32
  }
  func.func @transform_3(%arg0: i32, %arg1: i32) -> (i32, i32) {
    %c0_i32 = arith.constant 0 : i32
    %c0_i32_0 = arith.constant 0 : i32
    %c0_i32_1 = arith.constant 0 : i32
    return %c0_i32, %c0_i32_0 : i32, i32
  }
  func.func @transform_4(%arg0: i32, %arg1: i32) -> (i32, i32, i32, i32) {
    %c0_i32 = arith.constant 0 : i32
    %c0_i32_0 = arith.constant 0 : i32
    %c0_i32_1 = arith.constant 0 : i32
    return %arg0, %arg1, %c0_i32, %c0_i32_0 : i32, i32, i32, i32
  }
}

</mosaic_0001>

<bundles_post_ra>
// kernel: sc_bottleneck_forward.9
= control target key start
LH: loop header
LB: loop body
LE: loop exit
PB: predicated region body
PF: predicated region fallthrough
CT: control target
= control target key end

     0   :  { %s745_s6 = smov 0   ;;  %s747_s7 = smov 0   ;;  %s1162_s0 = inlined_call_operand.vmem [shape: f32[2,16,16,4], index: 0, kind: input, shape index: {}]   ;;  %s1163_s1 = inlined_call_operand.vmem [shape: f32[2,4,4,4], index: 1, kind: output, shape index: {}]  }
   0x1   :  { %s749_s8 = smov 0  }
   0x2 LB: > { %s23_s9 = sadd.s32 1, %s729_s7  ;;  %p646_p0 = scmp.ge.s32.totalorder %s733_s8, 1  ;;  %s733_s8 = sphi %s749_s8, %s11_s8   ;;  %s729_s7 = sphi %s747_s7, %s1173_s7   ;;  %s725_s6 = sphi %s745_s6, %s1172_s6  }
   0x3   : > { %p25_p1 = scmp.ge.s32.totalorder %s23_s9, 2  ;;  %p109_p2 = scmp.lt.s32.totalorder %s733_s8, 3 }
   0x5   : > { %s1175_s9 = smov (%p25_p1, %s23_s9), 0  ;;  %p110_p3 = pnand %p646_p0, %p109_p2 }
   0x6   : > { %p139_p4 = scmp.lt.s32.totalorder (!%p110_p3), %s725_s6, 1 }
   0x7   : > { %113 = sbr.rel (%p110_p3) target bundleno = 91 (0x5b), region = 24 }
   0xc   : > { %s1177_s6 = smov (!%p139_p4, %s725_s6), 1  ;;  %vm287_vm0 = vcmask 27648   ;;  %vm529_vm1 = vcmask 1041409   ;;  %vm531_vm2 = vcmask 1042434   ;;  %vm533_vm3 = vcmask 1043459  }
   0xd   : > { %s653_s10 = sshll.u32 %s1177_s6, 8  ;;  %s654_s14 = sshll.u32 %s1177_s6, 4 }
   0xe   : > { %s769_s13 = scalar_lea.vmem %s1162_s0, %s653_s10  ;;  %s157_s17 = scalar_lea.vmem %s1163_s1, %s654_s14 }
   0xf   : > { %v159_v0 = vld [vmem:[%s769_s13] sm:$0xff]  ;;  %v773_v1 = vld [vmem:[%s769_s13 + $0x8] sm:$0xff]  ;;  %v776_v2 = vld [vmem:[%s769_s13 + $0x10] sm:$0xff] }
  0x10   : > { %v779_v3 = vld [vmem:[%s769_s13 + $0x18] sm:$0xff]  ;;  %v782_v4 = vld [vmem:[%s769_s13 + $0x20] sm:$0xff]  ;;  %v785_v5 = vld [vmem:[%s769_s13 + $0x28] sm:$0xff]  ;;  %v223_v6 = vcombine.high %v159_v0, %v159_v0  ;;  %v224_v7 = vcombine.high %v773_v1, %v773_v1  ;;  %v225_v8 = vcombine.high %v776_v2, %v776_v2  ;;  %v288_v9 = vsel %vm287_vm0, %v159_v0, 0.0 }
  0x11   : > { %v793_v10 = vld [vmem:[%s769_s13 + $0x30] sm:$0xff]  ;;  %v796_v11 = vld [vmem:[%s769_s13 + $0x38] sm:$0xff]  ;;  %v799_v12 = vld [vmem:[%s769_s13 + $0x40] sm:$0xff]  ;;  %v226_v13 = vcombine.high %v779_v3, %v779_v3  ;;  %v227_v14 = vcombine.high %v782_v4, %v782_v4  ;;  %v228_v15 = vcombine.high %v785_v5, %v785_v5  ;;  %v289_v16 = vsel %vm287_vm0, %v776_v2, 0.0 }
  0x12   : > { %v810_v17 = vld [vmem:[%s769_s13 + $0x48] sm:$0xff]  ;;  %v813_v18 = vld [vmem:[%s769_s13 + $0x50] sm:$0xff]  ;;  %v816_v19 = vld [vmem:[%s769_s13 + $0x58] sm:$0xff]  ;;  %v229_v20 = vcombine.high %v793_v10, %v793_v10  ;;  %v230_v21 = vcombine.high %v796_v11, %v796_v11  ;;  %v231_v22 = vcombine.high %v799_v12, %v799_v12  ;;  %v290_v23 = vadd.f32 %v289_v16, %v288_v9 }
  0x13   : > { %v825_v24 = vld [vmem:[%s769_s13 + $0x60] sm:$0xff]  ;;  %v828_v25 = vld [vmem:[%s769_s13 + $0x68] sm:$0xff]  ;;  %v831_v26 = vld [vmem:[%s769_s13 + $0x70] sm:$0xff]  ;;  %v232_v27 = vcombine.high %v810_v17, %v810_v17  ;;  %v233_v28 = vcombine.high %v813_v18, %v813_v18  ;;  %v234_v29 = vcombine.high %v816_v19, %v816_v19  ;;  %v291_v30 = vsel %vm287_vm0, %v782_v4, 0.0 }
  0x14   : > { %v842_v31 = vld [vmem:[%s769_s13 + $0x78] sm:$0xff]  ;;  %v845_v32 = vld [vmem:[%s769_s13 + $0x80] sm:$0xff]  ;;  %v848_v33 = vld [vmem:[%s769_s13 + $0x88] sm:$0xff]  ;;  %v235_v34 = vcombine.high %v825_v24, %v825_v24  ;;  %v236_v35 = vcombine.high %v828_v25, %v828_v25  ;;  %v237_v36 = vcombine.high %v831_v26, %v831_v26  ;;  %v292_v37 = vadd.f32 %v291_v30, %v290_v23 }
  0x15   : > { %v857_v38 = vld [vmem:[%s769_s13 + $0x90] sm:$0xff]  ;;  %v860_v39 = vld [vmem:[%s769_s13 + $0x98] sm:$0xff]  ;;  %v863_v40 = vld [vmem:[%s769_s13 + $0xa0] sm:$0xff]  ;;  %v238_v41 = vcombine.high %v842_v31, %v842_v31  ;;  %v239_v42 = vcombine.high %v845_v32, %v845_v32  ;;  %v240_v43 = vcombine.high %v848_v33, %v848_v33  ;;  %v293_v44 = vsel %vm287_vm0, %v793_v10, 0.0 }
  0x16   : > { %v874_v45 = vld [vmem:[%s769_s13 + $0xa8] sm:$0xff]  ;;  %v877_v46 = vld [vmem:[%s769_s13 + $0xb0] sm:$0xff]  ;;  %v880_v47 = vld [vmem:[%s769_s13 + $0xb8] sm:$0xff]  ;;  %v241_v48 = vcombine.high %v857_v38, %v857_v38  ;;  %v242_v49 = vcombine.high %v860_v39, %v860_v39  ;;  %v243_v50 = vcombine.high %v863_v40, %v863_v40  ;;  %v294_v51 = vadd.f32 %v293_v44, %v292_v37 }
  0x17   : > { %v889_v52 = vld [vmem:[%s769_s13 + $0xc0] sm:$0xff]  ;;  %v892_v53 = vld [vmem:[%s769_s13 + $0xc8] sm:$0xff]  ;;  %v895_v54 = vld [vmem:[%s769_s13 + $0xd0] sm:$0xff]  ;;  %v244_v55 = vcombine.high %v874_v45, %v874_v45  ;;  %v245_v56 = vcombine.high %v877_v46, %v877_v46  ;;  %v301_v58 = vsel %vm287_vm0, %v223_v6, 0.0  ;;  %v302_v30 = vsel %vm287_vm0, %v225_v8, 0.0 }
  0x18   : > { %v905_v59 = vld [vmem:[%s769_s13 + $0xd8] sm:$0xff]  ;;  %v908_v60 = vld [vmem:[%s769_s13 + $0xe0] sm:$0xff]  ;;  %v911_v61 = vld [vmem:[%s769_s13 + $0xe8] sm:$0xff]  ;;  %v295_v4 = vrot.slane %v294_v51, 4  ;;  %v303_v0 = vadd.f32 %v302_v30, %v301_v58  ;;  %v304_v6 = vsel %vm287_vm0, %v227_v14, 0.0  ;;  %v306_v16 = vsel %vm287_vm0, %v229_v20, 0.0 }
  0x19   : > { %v920_v9 = vld [vmem:[%s769_s13 + $0xf0] sm:$0xff]  ;;  %v923_v10 = vld [vmem:[%s769_s13 + $0xf8] sm:$0xff]  ;;  %v314_v23 = vsel %vm287_vm0, %v773_v1, 0.0  ;;  %v315_v2 = vsel %vm287_vm0, %v779_v3, 0.0  ;;  %v317_v37 = vsel %vm287_vm0, %v785_v5, 0.0  ;;  %v327_v14 = vsel %vm287_vm0, %v224_v7, 0.0 }
  0x1a   : > { %v254_v44 = vcombine.high %v923_v10, %v923_v10  ;;  %v296_v63 = vadd.f32 %v295_v4, %v294_v51  ;;  %v305_v8 = vadd.f32 %v304_v6, %v303_v0  ;;  %v316_v57 = vadd.f32 %v315_v2, %v314_v23 }
  0x1b   : > { %v319_v51 = vsel %vm287_vm0, %v796_v11, 0.0  ;;  %v328_v20 = vsel %vm287_vm0, %v226_v13, 0.0  ;;  %v330_v58 = vsel %vm287_vm0, %v228_v15, 0.0  ;;  %v332_v1 = vsel %vm287_vm0, %v230_v21, 0.0 }
  0x1c   : > { %v297_v62 = vrot.slane %v296_v63, 2  ;;  %v307_v4 = vadd.f32 %v306_v16, %v305_v8  ;;  %v318_v6 = vadd.f32 %v317_v37, %v316_v57  ;;  %v329_v23 = vadd.f32 %v328_v20, %v327_v14 }
  0x1d   : > { %v340_v7 = vsel %vm287_vm0, %v799_v12, 0.0  ;;  %v341_v3 = vsel %vm287_vm0, %v813_v18, 0.0  ;;  %v343_v5 = vsel %vm287_vm0, %v825_v24, 0.0  ;;  %v345_v16 = vsel %vm287_vm0, %v831_v26, 0.0 }
  0x1e   : > { %v298_v0 = vadd.f32 %v297_v62, %v296_v63  ;;  %v308_v15 = vrot.slane %v307_v4, 4  ;;  %v320_v62 = vadd.f32 %v319_v51, %v318_v6  ;;  %v331_v63 = vadd.f32 %v330_v58, %v329_v23 }
  0x1f   : > { %v342_v57 = vadd.f32 %v341_v3, %v340_v7  ;;  %v353_v11 = vsel %vm287_vm0, %v231_v22, 0.0  ;;  %v354_v21 = vsel %vm287_vm0, %v233_v28, 0.0  ;;  %v356_v20 = vsel %vm287_vm0, %v235_v34, 0.0 }
  0x20   : > { %v299_v13 = vrot.slane %v298_v0, 1  ;;  %v309_v37 = vadd.f32 %v308_v15, %v307_v4  ;;  %v321_v2 = vrot.slane %v320_v62, 4  ;;  %v333_v8 = vadd.f32 %v332_v1, %v331_v63 }
  0x21   : > { %v344_v51 = vadd.f32 %v343_v5, %v342_v57  ;;  %v355_v14 = vadd.f32 %v354_v21, %v353_v11  ;;  %v358_v12 = vsel %vm287_vm0, %v237_v36, 0.0  ;;  %v366_v58 = vsel %vm287_vm0, %v810_v17, 0.0 }
  0x22   : > { %v981_v30 = vadd.f32 %v299_v13, %v298_v0  ;;  %v310_v18 = vrot.slane %v309_v37, 2  ;;  %v322_v22 = vadd.f32 %v321_v2, %v320_v62  ;;  %v334_v28 = vrot.slane %v333_v8, 4 }
  0x23   : > { %v346_v0 = vadd.f32 %v345_v16, %v344_v51  ;;  %v357_v4 = vadd.f32 %v356_v20, %v355_v14  ;;  %v367_v6 = vsel %vm287_vm0, %v816_v19, 0.0  ;;  %v369_v24 = vsel %vm287_vm0, %v828_v25, 0.0 }
  0x24   : > { %v311_v34 = vadd.f32 %v310_v18, %v309_v37  ;;  %v323_v23 = vrot.slane %v322_v22, 2  ;;  %v335_v1 = vadd.f32 %v334_v28, %v333_v8  ;;  %v368_v26 = vadd.f32 %v367_v6, %v366_v58 }
  0x25   : > { %v347_v7 = vrot.slane %v346_v0, 4  ;;  %v359_v36 = vadd.f32 %v358_v12, %v357_v4  ;;  %v371_v3 = vsel %vm287_vm0, %v842_v31, 0.0  ;;  %v379_v5 = vsel %vm287_vm0, %v232_v27, 0.0 }
  0x26   : > { %v312_v13 = vrot.slane %v311_v34, 1  ;;  %v324_v15 = vadd.f32 %v323_v23, %v322_v22  ;;  %v336_v62 = vrot.slane %v335_v1, 2  ;;  %v370_v63 = vadd.f32 %v369_v24, %v368_v26 }
  0x27   : > { %v348_v57 = vadd.f32 %v347_v7, %v346_v0  ;;  %v360_v16 = vrot.slane %v359_v36, 4  ;;  %v380_v11 = vsel %vm287_vm0, %v234_v29, 0.0  ;;  %v382_v21 = vsel %vm287_vm0, %v236_v35, 0.0 }
  0x28   : > { %v1011_v37 = vadd.f32 %v312_v13, %v311_v34  ;;  %v325_v17 = vrot.slane %v324_v15, 1  ;;  %v337_v27 = vadd.f32 %v336_v62, %v335_v1  ;;  %v372_v2 = vadd.f32 %v371_v3, %v370_v63 }
  0x29   : > { %v349_v8 = vrot.slane %v348_v57, 2  ;;  %v361_v51 = vadd.f32 %v360_v16, %v359_v36  ;;  %v381_v14 = vadd.f32 %v380_v11, %v379_v5  ;;  %v384_v19 = vsel %vm287_vm0, %v238_v41, 0.0 }
  0x2a   : > { %v1017_v20 = vadd.f32 %v325_v17, %v324_v15  ;;  %v338_v29 = vrot.slane %v337_v27, 1  ;;  %v373_v12 = vrot.slane %v372_v2, 4  ;;  %v392_v25 = vsel %vm287_vm0, %v845_v32, 0.0 }
  0x2b   : > { %v350_v35 = vadd.f32 %v349_v8, %v348_v57  ;;  %v362_v18 = vrot.slane %v361_v51, 2  ;;  %v383_v22 = vadd.f32 %v382_v21, %v381_v14  ;;  %v393_v28 = vsel %vm287_vm0, %v857_v38, 0.0 }
  0x2c   : > { %v1023_v58 = vadd.f32 %v338_v29, %v337_v27  ;;  %v374_v0 = vadd.f32 %v373_v12, %v372_v2  ;;  %v394_v4 = vadd.f32 %v393_v28, %v392_v25  ;;  %v395_v31 = vsel %vm287_vm0, %v863_v40, 0.0 }
  0x2d   : > { %v351_v41 = vrot.slane %v350_v35, 1  ;;  %v363_v6 = vadd.f32 %v362_v18, %v361_v51  ;;  %v385_v24 = vadd.f32 %v384_v19, %v383_v22  ;;  %v397_v34 = vsel %vm287_vm0, %v877_v46, 0.0 }
  0x2e   : > { %v375_v23 = vrot.slane %v374_v0, 2  ;;  %v396_v1 = vadd.f32 %v395_v31, %v394_v4  ;;  %v405_v26 = vsel %vm287_vm0, %v239_v42, 0.0  ;;  %v406_v7 = vsel %vm287_vm0, %v241_v48, 0.0 }
  0x2f   : > { %v1037_v36 = vadd.f32 %v351_v41, %v350_v35  ;;  %v364_v3 = vrot.slane %v363_v6, 1  ;;  %v386_v5 = vrot.slane %v385_v24, 4  ;;  %v407_v13 = vadd.f32 %v406_v7, %v405_v26 }
  0x30   : > { %v376_v15 = vadd.f32 %v375_v23, %v374_v0  ;;  %v398_v62 = vadd.f32 %v397_v34, %v396_v1  ;;  %v408_v63 = vsel %vm287_vm0, %v243_v50, 0.0  ;;  %v410_v32 = vsel %vm287_vm0, %v245_v56, 0.0 }
  0x31   : > { %v1047_v38 = vadd.f32 %v364_v3, %v363_v6  ;;  %v387_v42 = vadd.f32 %v386_v5, %v385_v24  ;;  %v409_v48 = vadd.f32 %v408_v63, %v407_v13  ;;  %v418_v57 = vsel %vm287_vm0, %v848_v33, 0.0 }
  0x32   : > { %v377_v16 = vrot.slane %v376_v15, 1  ;;  %v399_v11 = vrot.slane %v398_v62, 4  ;;  %v419_v21 = vsel %vm287_vm0, %v860_v39, 0.0  ;;  %v421_v40 = vsel %vm287_vm0, %v874_v45, 0.0 }
  0x33   : > { %v388_v50 = vrot.slane %v387_v42, 2  ;;  %v411_v17 = vadd.f32 %v410_v32, %v409_v48  ;;  %v420_v46 = vadd.f32 %v419_v21, %v418_v57  ;;  %v423_v56 = vsel %vm287_vm0, %v880_v47, 0.0 }
  0x34   : > { %v1057_v27 = vadd.f32 %v377_v16, %v376_v15  ;;  %v400_v2 = vadd.f32 %v399_v11, %v398_v62  ;;  %v431_v8 = vsel %vm287_vm0, %v240_v43, 0.0  ;;  %v432_v51 = vsel %vm287_vm0, %v242_v49, 0.0 }
  0x35   : > { %v389_v14 = vadd.f32 %v388_v50, %v387_v42  ;;  %v412_v19 = vrot.slane %v411_v17, 4  ;;  %v422_v29 = vadd.f32 %v421_v40, %v420_v46  ;;  %v433_v12 = vadd.f32 %v432_v51, %v431_v8 }
  0x36   : > { %v401_v25 = vrot.slane %v400_v2, 2  ;;  %v434_v35 = vsel %vm287_vm0, %v244_v55, 0.0  ;;  %v1164_v33 = vcombine.high %v880_v47, %v880_v47  ;;  %v444_v39 = vsel %vm287_vm0, %v889_v52, 0.0 }
  0x37   : > { %v390_v18 = vrot.slane %v389_v14, 1  ;;  %v413_v49 = vadd.f32 %v412_v19, %v411_v17  ;;  %v424_v22 = vadd.f32 %v423_v56, %v422_v29  ;;  %v435_v28 = vadd.f32 %v434_v35, %v433_v12 }
  0x38   : > { %v436_v43 = vsel %vm287_vm0, %v1164_v33, 0.0  ;;  %v402_v0 = vadd.f32 %v401_v25, %v400_v2  ;;  %v445_v4 = vsel %vm287_vm0, %v895_v54, 0.0  ;;  %v447_v45 = vsel %vm287_vm0, %v908_v60, 0.0 }
  0x39   : > { %v449_v55 = vsel %vm287_vm0, %v920_v9, 0.0  ;;  %v1083_v47 = vadd.f32 %v390_v18, %v389_v14  ;;  %v414_v31 = vrot.slane %v413_v49, 2  ;;  %v425_v41 = vrot.slane %v424_v22, 4 }
  0x3a   : > { %v437_v6 = vadd.f32 %v436_v43, %v435_v28  ;;  %v403_v24 = vrot.slane %v402_v0, 1  ;;  %v446_v34 = vadd.f32 %v445_v4, %v444_v39  ;;  %v1165_v23 = vcombine.high %v889_v52, %v889_v52 }
  0x3b   : > { %v1166_v26 = vcombine.high %v895_v54, %v895_v54  ;;  %v415_v3 = vadd.f32 %v414_v31, %v413_v49  ;;  %v426_v5 = vadd.f32 %v425_v41, %v424_v22  ;;  %v1167_v32 = vcombine.high %v908_v60, %v908_v60 }
  0x3c   : > { %v457_v1 = vsel %vm287_vm0, %v1165_v23, 0.0  ;;  %v438_v13 = vrot.slane %v437_v6, 4  ;;  %v404_v62 = vadd.f32 %v403_v24, %v402_v0  ;;  %v448_v63 = vadd.f32 %v447_v45, %v446_v34 }
  0x3d   : > { %v458_v7 = vsel %vm287_vm0, %v1166_v26, 0.0  ;;  %v460_v42 = vsel %vm287_vm0, %v1167_v32, 0.0  ;;  %v1168_v52 = vcombine.high %v920_v9, %v920_v9  ;;  %v416_v57 = vrot.slane %v415_v3, 1 }
  0x3e   : > { %v459_v15 = vadd.f32 %v458_v7, %v457_v1  ;;  %v427_v54 = vrot.slane %v426_v5, 2  ;;  %v439_v16 = vadd.f32 %v438_v13, %v437_v6  ;;  %v450_v21 = vadd.f32 %v449_v55, %v448_v63 }
  0x3f   : > { %v462_v48 = vsel %vm287_vm0, %v1168_v52, 0.0  ;;  %v470_v40 = vsel %vm287_vm0, %v892_v53, 0.0  ;;  %v471_v50 = vsel %vm287_vm0, %v905_v59, 0.0  ;;  %v473_v60 = vsel %vm287_vm0, %v911_v61, 0.0 }
  0x40   : > { %v461_v11 = vadd.f32 %v460_v42, %v459_v15  ;;  %v417_v17 = vadd.f32 %v416_v57, %v415_v3  ;;  %v428_v46 = vadd.f32 %v427_v54, %v426_v5  ;;  %v440_v56 = vrot.slane %v439_v16, 2 }
  0x41   : > { %v451_v2 = vrot.slane %v450_v21, 4  ;;  %v472_v8 = vadd.f32 %v471_v50, %v470_v40  ;;  %v475_v51 = vsel %vm287_vm0, %v923_v10, 0.0  ;;  %v1169_v14 = vcombine.high %v892_v53, %v892_v53 }
  0x42   : > { %v463_v9 = vadd.f32 %v462_v48, %v461_v11  ;;  %v429_v29 = vrot.slane %v428_v46, 1  ;;  %v441_v12 = vadd.f32 %v440_v56, %v439_v16  ;;  %v1170_v35 = vcombine.high %v905_v59, %v905_v59 }
  0x43   : > { %v483_v19 = vsel %vm287_vm0, %v1169_v14, 0.0  ;;  %v452_v43 = vadd.f32 %v451_v2, %v450_v21  ;;  %v474_v39 = vadd.f32 %v473_v60, %v472_v8  ;;  %v1171_v49 = vcombine.high %v911_v61, %v911_v61 }
  0x44   : > { %v464_v25 = vrot.slane %v463_v9, 4  ;;  %v484_v33 = vsel %vm287_vm0, %v1170_v35, 0.0  ;;  %v430_v22 = vadd.f32 %v429_v29, %v428_v46  ;;  %v442_v28 = vrot.slane %v441_v12, 1 }
  0x45   : > { %v485_v18 = vadd.f32 %v484_v33, %v483_v19  ;;  %v486_v53 = vsel %vm287_vm0, %v1171_v49, 0.0  ;;  %v488_v59 = vsel %vm287_vm0, %v254_v44, 0.0  ;;  %v453_v4 = vrot.slane %v452_v43, 2 }
  0x46   : > { %v465_v0 = vadd.f32 %v464_v25, %v463_v9  ;;  %v476_v45 = vadd.f32 %v475_v51, %v474_v39  ;;  %v497_v31 = vmul.f32 0.0625, %v981_v30  ;;  %v443_v41 = vadd.f32 %v442_v28, %v441_v12 }
  0x47   : > { %v487_v55 = vadd.f32 %v486_v53, %v485_v18  ;;  %v498_v61 = vmul.f32 0.0625, %v1011_v37  ;;  %v499_v24 = vmul.f32 0.0625, %v1017_v20  ;;  %v454_v34 = vadd.f32 %v453_v4, %v452_v43 }
  0x48   : > { %v466_v6 = vrot.slane %v465_v0, 2  ;;  %v477_v23 = vrot.slane %v476_v45, 4  ;;  %v500_v26 = vmul.f32 0.0625, %v1023_v58  ;;  %v501_v44 = vmul.f32 0.0625, %v1037_v36 }
  0x49   : > { %v489_v1 = vadd.f32 %v488_v59, %v487_v55  ;;  %v502_v7 = vmul.f32 0.0625, %v1047_v38  ;;  %v503_v3 = vmul.f32 0.0625, %v1057_v27  ;;  %v455_v30 = vrot.slane %v454_v34, 1 }
  0x4a   : > { %v467_v10 = vadd.f32 %v466_v6, %v465_v0  ;;  %v478_v5 = vadd.f32 %v477_v23, %v476_v45  ;;  %v504_v37 = vmul.f32 0.0625, %v1083_v47  ;;  %v505_v20 = vmul.f32 0.0625, %v404_v62 }
  0x4b   : > { %v490_v13 = vrot.slane %v489_v1, 4  ;;  %v506_v63 = vmul.f32 0.0625, %v417_v17  ;;  %v507_v32 = vmul.f32 0.0625, %v430_v22  ;;  %v456_v42 = vadd.f32 %v455_v30, %v454_v34 }
  0x4c   : > { %v468_v15 = vrot.slane %v467_v10, 1  ;;  %v479_v52 = vrot.slane %v478_v5, 2  ;;  %v508_v48 = vmul.f32 0.0625, %v443_v41  ;;  %v530_v38 = vsel %vm529_vm1, %v498_v61, %v497_v31 }
  0x4d   : > { %v491_v58 = vadd.f32 %v490_v13, %v489_v1  ;;  %v535_v27 = vsel %vm529_vm1, %v502_v7, %v501_v44  ;;  %v538_v57 = vsel %vm529_vm1, %v506_v63, %v505_v20  ;;  %v509_v62 = vmul.f32 0.0625, %v456_v42 }
  0x4e   : > { %v469_v36 = vadd.f32 %v468_v15, %v467_v10  ;;  %v480_v47 = vadd.f32 %v479_v52, %v478_v5  ;;  %v532_v16 = vsel %vm531_vm2, %v499_v24, %v530_v38  ;;  %v536_v40 = vsel %vm531_vm2, %v503_v3, %v535_v27 }
  0x4f   : > { %v492_v54 = vrot.slane %v491_v58, 2  ;;  %v534_v21 = vsel %vm533_vm3, %v500_v26, %v532_v16  ;;  %v539_v50 = vsel %vm531_vm2, %v507_v32, %v538_v57  ;;  %v537_v46 = vsel %vm533_vm3, %v504_v37, %v536_v40 }
  0x50   : > { %v510_v11 = vmul.f32 0.0625, %v469_v36  ;;  %v481_v60 = vrot.slane %v480_v47, 1  ;;  %v540_v56 = vsel %vm533_vm3, %v508_v48, %v539_v50  ;;  %548 = vst.msk [vmem:[%s157_s17] sm:$0xf] %vm287_vm0, %v534_v21  ;;  %549 = vst.msk [vmem:[%s157_s17 + $0x4] sm:$0xf] %vm287_vm0, %v537_v46 }
  0x51   : > { %v493_v17 = vadd.f32 %v492_v54, %v491_v58  ;;  %550 = vst.msk [vmem:[%s157_s17 + $0x8] sm:$0xf] %vm287_vm0, %v540_v56 }
  0x52   : > { %v482_v9 = vadd.f32 %v481_v60, %v480_v47  ;;  %v541_v8 = vsel %vm529_vm1, %v510_v11, %v509_v62 }
  0x53   : > { %v494_v2 = vrot.slane %v493_v17, 1 }
  0x54   : > { %v511_v14 = vmul.f32 0.0625, %v482_v9 }
  0x55   : > { %v495_v51 = vadd.f32 %v494_v2, %v493_v17 }
  0x56   : > { %v542_v29 = vsel %vm531_vm2, %v511_v14, %v541_v8 }
  0x57   : > { %v512_v19 = vmul.f32 0.0625, %v495_v51 }
  0x59   : > { %v543_v12 = vsel %vm533_vm3, %v512_v19, %v542_v29 }
  0x5a   : > { %551 = vst.msk [vmem:[%s157_s17 + $0xc] sm:$0xf] %vm287_vm0, %v543_v12 }
  0x5b PF: > { %s11_s8 = sadd.s32 1, %s733_s8   ;;  %s1172_s6 = smov %s729_s7 }
  0x5c   : > { %p8_p5 = scmp.ge.s32.totalorder %s11_s8, 4   ;;  %s1173_s7 = smov %s1175_s9 }
  0x5e   :  { %10 = sbr.rel (!%p8_p5) target bundleno = 2 (0x2), region = 54 }

// kernel: sc_bottleneck_forward.7
= control target key start
LH: loop header
LB: loop body
LE: loop exit
PB: predicated region body
PF: predicated region fallthrough
CT: control target
= control target key end

     0   :  { %s1341_s27 = smov 0   ;;  %s1718_s0 = inlined_call_operand.vmem [shape: f32[512,8], index: 0, kind: input, shape index: {}]   ;;  %s1719_s1 = inlined_call_operand.vmem [shape: bf16[8,4], index: 1, kind: input, shape index: {}]   ;;  %s1720_s2 = inlined_call_operand.vmem [shape: bf16[8,4], index: 2, kind: input, shape index: {}]   ;;  %s1721_s3 = inlined_call_operand.vmem [shape: f32[1,4], index: 3, kind: input, shape index: {}]   ;;  %s1722_s4 = inlined_call_operand.vmem [shape: f32[1,4], index: 4, kind: input, shape index: {}]   ;;  %s1723_s5 = inlined_call_operand.vmem [shape: f32[1,4], index: 5, kind: input, shape index: {}]   ;;  %s1724_s6 = inlined_call_operand.vmem [shape: f32[1,4], index: 6, kind: input, shape index: {}]   ;;  %s1725_s7 = inlined_call_operand.vmem [shape: f32[512,4], index: 7, kind: output, shape index: {0}]   ;;  %s1726_s8 = inlined_call_operand.vmem [shape: f32[512,4], index: 8, kind: output, shape index: {1}]  }
   0x1 LB: > { %s1127_s28 = sadd.s32 4294967295, %s1294_s27   ;;  %p1131_p0 = scmp.ge.s32.totalorder %s1294_s27, 1  ;;  %s1294_s27 = sphi %s1341_s27, %s19_s27  }
   0x2   : > { %p266_p1 = scmp.lt.s32.totalorder %s1294_s27, 3 }
   0x4   : > { %p267_p2 = pnand %p1131_p0, %p266_p1 }
   0x5   : > { %s1132_s11 = sshll.u32 (!%p267_p2), %s1127_s28, 5 }
   0x6   : > { %270 = sbr.rel (%p267_p2) target bundleno = 280 (0x118), region = 48  ;;  %p306_p3 = scmp.lt.s32.totalorder (!%p267_p2), %s1132_s11, 63 }
   0xb   : > { %v372_v0 = vld [vmem:[%s1719_s1] sm:$0xf]  ;;  %vm422_vm0 = vcmask 1043456   ;;  %s1728_s11 = smov (!%p306_p3, %s1132_s11), 63  ;;  %vm373_vm1 = vcmask 64512   ;;  %vm697_vm2 = vcmask 31744  }
   0xc   : > { %v730_v1 = vld [vmem:[%s1720_s2] sm:$0xf]  ;;  %1278 = vmatprep.subr.msk.bf16.mxu0 %vm422_vm0, %v372_v0  ;;  %v424_v2 = vsel %vm422_vm0, %v372_v0, 0  ;;  %s1355_s12 = sshll.u32 %s1728_s11, 3 }
   0xd   : > { %1279 = vmatprep.subr.msk.bf16.mxu1 %vm422_vm0, %v730_v1  ;;  %v732_v3 = vsel %vm422_vm0, %v730_v1, 0  ;;  %1211 = vmatpush3.bf16.msra.mxu0 %v424_v2  ;;  %s1361_s15 = scalar_lea.vmem %s1718_s0, %s1355_s12  ;;  %v1430_v52 = vld [vmem:[%s1721_s3] ss:$0 sm:$0xff]  ;;  %s1457_s26 = scalar_lea.vmem %s1725_s7, %s1355_s12 }
   0xe   : > { %1245 = vmatpush3.bf16.msra.mxu1 %v732_v3  ;;  %v324_v4 = vld [vmem:[%s1361_s15] sm:$0xff]  ;;  %v325_v5 = vld [vmem:[%s1361_s15 + $0x8] sm:$0xff]  ;;  %v326_v6 = vld [vmem:[%s1361_s15 + $0x10] sm:$0xff]  ;;  %s1463_s30 = scalar_lea.vmem %s1726_s8, %s1355_s12 }
   0xf   : > { %v356_v7 = vpack.c.bf16 %v325_v5, %v324_v4  ;;  %v327_v8 = vld [vmem:[%s1361_s15 + $0x18] sm:$0xff]  ;;  %v328_v9 = vld [vmem:[%s1361_s15 + $0x20] sm:$0xff]  ;;  %v329_v10 = vld [vmem:[%s1361_s15 + $0x28] sm:$0xff] }
  0x10   : > { %v357_v11 = vpack.c.bf16 %v327_v8, %v326_v6  ;;  %v358_v12 = vpack.c.bf16 %v329_v10, %v328_v9  ;;  %v330_v13 = vld [vmem:[%s1361_s15 + $0x30] sm:$0xff]  ;;  %v331_v14 = vld [vmem:[%s1361_s15 + $0x38] sm:$0xff]  ;;  %v332_v15 = vld [vmem:[%s1361_s15 + $0x40] sm:$0xff] }
  0x11   : > { %1212 = vmatprep.mubr.msk.bf16.mxu0 %vm373_vm1, %v356_v7  ;;  %1246 = vmatprep.mubr.msk.bf16.mxu1 %vm373_vm1, %v356_v7  ;;  %v333_v16 = vld [vmem:[%s1361_s15 + $0x48] sm:$0xff]  ;;  %v359_v17 = vpack.c.bf16 %v331_v14, %v330_v13  ;;  %v334_v19 = vld [vmem:[%s1361_s15 + $0x50] sm:$0xff]  ;;  %v335_v20 = vld [vmem:[%s1361_s15 + $0x58] sm:$0xff] }
  0x12   : > { %1213 = vmatmul.mubr.msk.bf16.vlgmr.msra.gmra.mxu0 %vm373_vm1, %v357_v11  ;;  %1247 = vmatmul.mubr.msk.bf16.vlgmr.msra.gmra.mxu1 %vm373_vm1, %v357_v11  ;;  %v360_v18 = vpack.c.bf16 %v333_v16, %v332_v15  ;;  %v336_v21 = vld [vmem:[%s1361_s15 + $0x60] sm:$0xff]  ;;  %v337_v22 = vld [vmem:[%s1361_s15 + $0x68] sm:$0xff]  ;;  %v361_v23 = vpack.c.bf16 %v335_v20, %v334_v19  ;;  %v338_v25 = vld [vmem:[%s1361_s15 + $0x70] sm:$0xff] }
  0x13   : > { %1216 = vmatprep.mubr.msk.bf16.mxu0 %vm373_vm1, %v358_v12  ;;  %1250 = vmatprep.mubr.msk.bf16.mxu1 %vm373_vm1, %v358_v12  ;;  %v362_v24 = vpack.c.bf16 %v337_v22, %v336_v21  ;;  %v339_v26 = vld [vmem:[%s1361_s15 + $0x78] sm:$0xff]  ;;  %v340_v27 = vld [vmem:[%s1361_s15 + $0x80] sm:$0xff]  ;;  %v341_v28 = vld [vmem:[%s1361_s15 + $0x88] sm:$0xff] }
  0x14   : > { %v363_v29 = vpack.c.bf16 %v339_v26, %v338_v25  ;;  %v364_v30 = vpack.c.bf16 %v341_v28, %v340_v27  ;;  %v342_v31 = vld [vmem:[%s1361_s15 + $0x90] sm:$0xff]  ;;  %v343_v32 = vld [vmem:[%s1361_s15 + $0x98] sm:$0xff]  ;;  %v344_v33 = vld [vmem:[%s1361_s15 + $0xa0] sm:$0xff] }
  0x15   : > { %v345_v34 = vld [vmem:[%s1361_s15 + $0xa8] sm:$0xff]  ;;  %v365_v35 = vpack.c.bf16 %v343_v32, %v342_v31  ;;  %v346_v37 = vld [vmem:[%s1361_s15 + $0xb0] sm:$0xff]  ;;  %v347_v38 = vld [vmem:[%s1361_s15 + $0xb8] sm:$0xff] }
  0x16   : > { %v366_v36 = vpack.c.bf16 %v345_v34, %v344_v33  ;;  %v348_v39 = vld [vmem:[%s1361_s15 + $0xc0] sm:$0xff]  ;;  %v349_v40 = vld [vmem:[%s1361_s15 + $0xc8] sm:$0xff]  ;;  %v367_v41 = vpack.c.bf16 %v347_v38, %v346_v37  ;;  %v350_v43 = vld [vmem:[%s1361_s15 + $0xd0] sm:$0xff] }
  0x17   : > { %v368_v42 = vpack.c.bf16 %v349_v40, %v348_v39  ;;  %v351_v44 = vld [vmem:[%s1361_s15 + $0xd8] sm:$0xff]  ;;  %v352_v45 = vld [vmem:[%s1361_s15 + $0xe0] sm:$0xff]  ;;  %v353_v46 = vld [vmem:[%s1361_s15 + $0xe8] sm:$0xff] }
  0x18   : > { %v369_v47 = vpack.c.bf16 %v351_v44, %v350_v43  ;;  %v370_v48 = vpack.c.bf16 %v353_v46, %v352_v45  ;;  %v354_v49 = vld [vmem:[%s1361_s15 + $0xf0] sm:$0xff]  ;;  %v355_v50 = vld [vmem:[%s1361_s15 + $0xf8] sm:$0xff]  ;;  %v1435_v53 = vld [vmem:[%s1723_s5] ss:$0 sm:$0xff] }
  0x19   : > { %v371_v51 = vpack.c.bf16 %v355_v50, %v354_v49  ;;  %v1440_v55 = vld [vmem:[%s1722_s4] ss:$0 sm:$0xff] }
  0x1a   : > { %1217 = vmatmul.mubr.msk.bf16.gmra.mxu0 %vm373_vm1, %v359_v17  ;;  %1251 = vmatmul.mubr.msk.bf16.gmra.mxu1 %vm373_vm1, %v359_v17  ;;  %v1445_v57 = vld [vmem:[%s1724_s6] ss:$0 sm:$0xff] }
  0x1b   : > { %1220 = vmatprep.mubr.msk.bf16.mxu0 %vm373_vm1, %v360_v18  ;;  %1254 = vmatprep.mubr.msk.bf16.mxu1 %vm373_vm1, %v360_v18 }
  0x22   : > { %1221 = vmatmul.mubr.msk.bf16.gmra.mxu0 %vm373_vm1, %v361_v23  ;;  %1255 = vmatmul.mubr.msk.bf16.gmra.mxu1 %vm373_vm1, %v361_v23 }
  0x23   : > { %1224 = vmatprep.mubr.msk.bf16.mxu0 %vm373_vm1, %v362_v24  ;;  %1258 = vmatprep.mubr.msk.bf16.mxu1 %vm373_vm1, %v362_v24 }
  0x2a   : > { %1225 = vmatmul.mubr.msk.bf16.gmra.mxu0 %vm373_vm1, %v363_v29  ;;  %1259 = vmatmul.mubr.msk.bf16.gmra.mxu1 %vm373_vm1, %v363_v29 }
  0x2b   : > { %1228 = vmatprep.mubr.msk.bf16.mxu0 %vm373_vm1, %v364_v30  ;;  %1262 = vmatprep.mubr.msk.bf16.mxu1 %vm373_vm1, %v364_v30 }
  0x32   : > { %1229 = vmatmul.mubr.msk.bf16.gmra.mxu0 %vm373_vm1, %v365_v35  ;;  %1263 = vmatmul.mubr.msk.bf16.gmra.mxu1 %vm373_vm1, %v365_v35 }
  0x33   : > { %1232 = vmatprep.mubr.msk.bf16.mxu0 %vm373_vm1, %v366_v36  ;;  %1266 = vmatprep.mubr.msk.bf16.mxu1 %vm373_vm1, %v366_v36 }
  0x3a   : > { %1233 = vmatmul.mubr.msk.bf16.gmra.mxu0 %vm373_vm1, %v367_v41  ;;  %1267 = vmatmul.mubr.msk.bf16.gmra.mxu1 %vm373_vm1, %v367_v41 }
  0x3b   : > { %1236 = vmatprep.mubr.msk.bf16.mxu0 %vm373_vm1, %v368_v42  ;;  %1270 = vmatprep.mubr.msk.bf16.mxu1 %vm373_vm1, %v368_v42 }
  0x42   : > { %1237 = vmatmul.mubr.msk.bf16.gmra.mxu0 %vm373_vm1, %v369_v47  ;;  %1271 = vmatmul.mubr.msk.bf16.gmra.mxu1 %vm373_vm1, %v369_v47 }
  0x43   : > { %1240 = vmatprep.mubr.msk.bf16.mxu0 %vm373_vm1, %v370_v48  ;;  %1274 = vmatprep.mubr.msk.bf16.mxu1 %vm373_vm1, %v370_v48 }
  0x4a   : > { %1241 = vmatmul.mubr.msk.bf16.gmra.mxu0 %vm373_vm1, %v371_v51  ;;  %1275 = vmatmul.mubr.msk.bf16.gmra.mxu1 %vm373_vm1, %v371_v51 }
  0xd2   : > { %v1214_v54 = vpop.f32.mrf.mxu0  ;;  %v1248_v56 = vpop.f32.mrf.mxu1 }
  0xd3   : > { %v596_v58 = vmul.f32 %v1214_v54, %v1430_v52  ;;  %v904_v59 = vmul.f32 %v1248_v56, %v1435_v53 }
  0xd4   : > { %v460_v60 = vpop.f32.mrf.mxu0  ;;  %v768_v61 = vpop.f32.mrf.mxu1 }
  0xd5   : > { %v635_v62 = vadd.f32 %v1440_v55, %v596_v58  ;;  %v943_v63 = vadd.f32 %v1445_v57, %v904_v59  ;;  %v594_v0 = vmul.f32 %v1430_v52, %v460_v60  ;;  %v902_v1 = vmul.f32 %v1435_v53, %v768_v61 }
  0xd6   : > { %v1215_v2 = vpop.f32.mrf.mxu0  ;;  %v1249_v3 = vpop.f32.mrf.mxu1 }
  0xd7   : > { %v667_v4 = vmax.f32 %v635_v62, 0.0  ;;  %v975_v5 = vmax.f32 %v943_v63, 0.0  ;;  %v633_v6 = vadd.f32 %v1440_v55, %v594_v0  ;;  %v941_v7 = vadd.f32 %v1445_v57, %v902_v1 }
  0xd8   : > { %v597_v8 = vmul.f32 %v1215_v2, %v1430_v52  ;;  %v905_v9 = vmul.f32 %v1249_v3, %v1435_v53  ;;  %v463_v10 = vpop.f32.mrf.mxu0  ;;  %v771_v11 = vpop.f32.mrf.mxu1 }
  0xd9   : > { %700 = vst.msk [vmem:[%s1457_s26 + $0x10] sm:$0xff] %vm697_vm2, %v667_v4  ;;  %1007 = vst.msk [vmem:[%s1463_s30 + $0x10] sm:$0xff] %vm697_vm2, %v975_v5  ;;  %v665_v12 = vmax.f32 %v633_v6, 0.0  ;;  %v973_v13 = vmax.f32 %v941_v7, 0.0  ;;  %v595_v14 = vmul.f32 %v1430_v52, %v463_v10  ;;  %v903_v15 = vmul.f32 %v1435_v53, %v771_v11 }
  0xda   : > { %v636_v16 = vadd.f32 %v1440_v55, %v597_v8  ;;  %v944_v17 = vadd.f32 %v1445_v57, %v905_v9  ;;  %v1218_v18 = vpop.f32.mrf.mxu0  ;;  %v1252_v19 = vpop.f32.mrf.mxu1 }
  0xdb   : > { %698 = vst.msk [vmem:[%s1457_s26] sm:$0xff] %vm697_vm2, %v665_v12  ;;  %1005 = vst.msk [vmem:[%s1463_s30] sm:$0xff] %vm697_vm2, %v973_v13  ;;  %v634_v20 = vadd.f32 %v1440_v55, %v595_v14  ;;  %v942_v21 = vadd.f32 %v1445_v57, %v903_v15  ;;  %v600_v22 = vmul.f32 %v1218_v18, %v1430_v52 }
  0xdc   : > { %v908_v23 = vmul.f32 %v1252_v19, %v1435_v53  ;;  %v668_v24 = vmax.f32 %v636_v16, 0.0  ;;  %v976_v25 = vmax.f32 %v944_v17, 0.0  ;;  %v476_v26 = vpop.f32.mrf.mxu0  ;;  %v784_v27 = vpop.f32.mrf.mxu1 }
  0xdd   : > { %v666_v28 = vmax.f32 %v634_v20, 0.0  ;;  %v974_v29 = vmax.f32 %v942_v21, 0.0  ;;  %v639_v30 = vadd.f32 %v1440_v55, %v600_v22  ;;  %v598_v32 = vmul.f32 %v1430_v52, %v476_v26 }
  0xde   : > { %v947_v31 = vadd.f32 %v1445_v57, %v908_v23  ;;  %701 = vst.msk [vmem:[%s1457_s26 + $0x18] sm:$0xff] %vm697_vm2, %v668_v24  ;;  %1008 = vst.msk [vmem:[%s1463_s30 + $0x18] sm:$0xff] %vm697_vm2, %v976_v25  ;;  %v906_v33 = vmul.f32 %v1435_v53, %v784_v27  ;;  %v1219_v34 = vpop.f32.mrf.mxu0  ;;  %v1253_v35 = vpop.f32.mrf.mxu1 }
  0xdf   : > { %699 = vst.msk [vmem:[%s1457_s26 + $0x8] sm:$0xff] %vm697_vm2, %v666_v28  ;;  %1006 = vst.msk [vmem:[%s1463_s30 + $0x8] sm:$0xff] %vm697_vm2, %v974_v29  ;;  %v671_v36 = vmax.f32 %v639_v30, 0.0  ;;  %v601_v38 = vmul.f32 %v1219_v34, %v1430_v52  ;;  %v909_v39 = vmul.f32 %v1253_v35, %v1435_v53  ;;  %v637_v40 = vadd.f32 %v1440_v55, %v598_v32 }
  0xe0   : > { %v979_v37 = vmax.f32 %v947_v31, 0.0  ;;  %v945_v41 = vadd.f32 %v1445_v57, %v906_v33  ;;  %v479_v42 = vpop.f32.mrf.mxu0  ;;  %v787_v43 = vpop.f32.mrf.mxu1 }
  0xe1   : > { %704 = vst.msk [vmem:[%s1457_s26 + $0x30] sm:$0xff] %vm697_vm2, %v671_v36  ;;  %v640_v44 = vadd.f32 %v1440_v55, %v601_v38  ;;  %v948_v45 = vadd.f32 %v1445_v57, %v909_v39  ;;  %v599_v46 = vmul.f32 %v1430_v52, %v479_v42  ;;  %v907_v47 = vmul.f32 %v1435_v53, %v787_v43 }
  0xe2   : > { %1011 = vst.msk [vmem:[%s1463_s30 + $0x30] sm:$0xff] %vm697_vm2, %v979_v37  ;;  %v669_v48 = vmax.f32 %v637_v40, 0.0  ;;  %v977_v49 = vmax.f32 %v945_v41, 0.0  ;;  %v1222_v50 = vpop.f32.mrf.mxu0  ;;  %v1256_v51 = vpop.f32.mrf.mxu1 }
  0xe3   : > { %v672_v54 = vmax.f32 %v640_v44, 0.0  ;;  %v980_v56 = vmax.f32 %v948_v45, 0.0  ;;  %v638_v58 = vadd.f32 %v1440_v55, %v599_v46  ;;  %v946_v59 = vadd.f32 %v1445_v57, %v907_v47 }
  0xe4   : > { %702 = vst.msk [vmem:[%s1457_s26 + $0x20] sm:$0xff] %vm697_vm2, %v669_v48  ;;  %1009 = vst.msk [vmem:[%s1463_s30 + $0x20] sm:$0xff] %vm697_vm2, %v977_v49  ;;  %v604_v60 = vmul.f32 %v1222_v50, %v1430_v52  ;;  %v912_v61 = vmul.f32 %v1256_v51, %v1435_v53  ;;  %v492_v62 = vpop.f32.mrf.mxu0  ;;  %v800_v63 = vpop.f32.mrf.mxu1 }
  0xe5   : > { %705 = vst.msk [vmem:[%s1457_s26 + $0x38] sm:$0xff] %vm697_vm2, %v672_v54  ;;  %1012 = vst.msk [vmem:[%s1463_s30 + $0x38] sm:$0xff] %vm697_vm2, %v980_v56  ;;  %v670_v0 = vmax.f32 %v638_v58, 0.0  ;;  %v978_v1 = vmax.f32 %v946_v59, 0.0  ;;  %v602_v2 = vmul.f32 %v1430_v52, %v492_v62  ;;  %v910_v3 = vmul.f32 %v1435_v53, %v800_v63 }
  0xe6   : > { %v643_v4 = vadd.f32 %v1440_v55, %v604_v60  ;;  %v951_v5 = vadd.f32 %v1445_v57, %v912_v61  ;;  %v1223_v6 = vpop.f32.mrf.mxu0  ;;  %v1257_v7 = vpop.f32.mrf.mxu1 }
  0xe7   : > { %703 = vst.msk [vmem:[%s1457_s26 + $0x28] sm:$0xff] %vm697_vm2, %v670_v0  ;;  %1010 = vst.msk [vmem:[%s1463_s30 + $0x28] sm:$0xff] %vm697_vm2, %v978_v1  ;;  %v641_v8 = vadd.f32 %v1440_v55, %v602_v2  ;;  %v949_v9 = vadd.f32 %v1445_v57, %v910_v3  ;;  %v605_v10 = vmul.f32 %v1223_v6, %v1430_v52 }
  0xe8   : > { %v913_v11 = vmul.f32 %v1257_v7, %v1435_v53  ;;  %v675_v12 = vmax.f32 %v643_v4, 0.0  ;;  %v983_v13 = vmax.f32 %v951_v5, 0.0  ;;  %v495_v14 = vpop.f32.mrf.mxu0  ;;  %v803_v15 = vpop.f32.mrf.mxu1 }
  0xe9   : > { %v673_v16 = vmax.f32 %v641_v8, 0.0  ;;  %v981_v17 = vmax.f32 %v949_v9, 0.0  ;;  %v644_v18 = vadd.f32 %v1440_v55, %v605_v10  ;;  %v603_v20 = vmul.f32 %v1430_v52, %v495_v14 }
  0xea   : > { %v952_v19 = vadd.f32 %v1445_v57, %v913_v11  ;;  %708 = vst.msk [vmem:[%s1457_s26 + $0x50] sm:$0xff] %vm697_vm2, %v675_v12  ;;  %1015 = vst.msk [vmem:[%s1463_s30 + $0x50] sm:$0xff] %vm697_vm2, %v983_v13  ;;  %v911_v21 = vmul.f32 %v1435_v53, %v803_v15  ;;  %v1226_v22 = vpop.f32.mrf.mxu0  ;;  %v1260_v23 = vpop.f32.mrf.mxu1 }
  0xeb   : > { %706 = vst.msk [vmem:[%s1457_s26 + $0x40] sm:$0xff] %vm697_vm2, %v673_v16  ;;  %1013 = vst.msk [vmem:[%s1463_s30 + $0x40] sm:$0xff] %vm697_vm2, %v981_v17  ;;  %v676_v24 = vmax.f32 %v644_v18, 0.0  ;;  %v608_v26 = vmul.f32 %v1226_v22, %v1430_v52  ;;  %v916_v27 = vmul.f32 %v1260_v23, %v1435_v53  ;;  %v642_v28 = vadd.f32 %v1440_v55, %v603_v20 }
  0xec   : > { %v984_v25 = vmax.f32 %v952_v19, 0.0  ;;  %v950_v29 = vadd.f32 %v1445_v57, %v911_v21  ;;  %v508_v30 = vpop.f32.mrf.mxu0  ;;  %v816_v31 = vpop.f32.mrf.mxu1 }
  0xed   : > { %709 = vst.msk [vmem:[%s1457_s26 + $0x58] sm:$0xff] %vm697_vm2, %v676_v24  ;;  %v647_v32 = vadd.f32 %v1440_v55, %v608_v26  ;;  %v955_v33 = vadd.f32 %v1445_v57, %v916_v27  ;;  %v606_v34 = vmul.f32 %v1430_v52, %v508_v30  ;;  %v914_v35 = vmul.f32 %v1435_v53, %v816_v31 }
  0xee   : > { %1016 = vst.msk [vmem:[%s1463_s30 + $0x58] sm:$0xff] %vm697_vm2, %v984_v25  ;;  %v674_v36 = vmax.f32 %v642_v28, 0.0  ;;  %v982_v37 = vmax.f32 %v950_v29, 0.0  ;;  %v1227_v38 = vpop.f32.mrf.mxu0  ;;  %v1261_v39 = vpop.f32.mrf.mxu1 }
  0xef   : > { %v679_v40 = vmax.f32 %v647_v32, 0.0  ;;  %v987_v41 = vmax.f32 %v955_v33, 0.0  ;;  %v645_v42 = vadd.f32 %v1440_v55, %v606_v34  ;;  %v953_v43 = vadd.f32 %v1445_v57, %v914_v35 }
  0xf0   : > { %707 = vst.msk [vmem:[%s1457_s26 + $0x48] sm:$0xff] %vm697_vm2, %v674_v36  ;;  %1014 = vst.msk [vmem:[%s1463_s30 + $0x48] sm:$0xff] %vm697_vm2, %v982_v37  ;;  %v609_v44 = vmul.f32 %v1227_v38, %v1430_v52  ;;  %v917_v45 = vmul.f32 %v1261_v39, %v1435_v53  ;;  %v511_v46 = vpop.f32.mrf.mxu0  ;;  %v819_v47 = vpop.f32.mrf.mxu1 }
  0xf1   : > { %712 = vst.msk [vmem:[%s1457_s26 + $0x70] sm:$0xff] %vm697_vm2, %v679_v40  ;;  %1019 = vst.msk [vmem:[%s1463_s30 + $0x70] sm:$0xff] %vm697_vm2, %v987_v41  ;;  %v677_v48 = vmax.f32 %v645_v42, 0.0  ;;  %v985_v49 = vmax.f32 %v953_v43, 0.0  ;;  %v607_v50 = vmul.f32 %v1430_v52, %v511_v46  ;;  %v915_v51 = vmul.f32 %v1435_v53, %v819_v47 }
  0xf2   : > { %v648_v54 = vadd.f32 %v1440_v55, %v609_v44  ;;  %v956_v56 = vadd.f32 %v1445_v57, %v917_v45  ;;  %v1230_v58 = vpop.f32.mrf.mxu0  ;;  %v1264_v59 = vpop.f32.mrf.mxu1 }
  0xf3   : > { %710 = vst.msk [vmem:[%s1457_s26 + $0x60] sm:$0xff] %vm697_vm2, %v677_v48  ;;  %1017 = vst.msk [vmem:[%s1463_s30 + $0x60] sm:$0xff] %vm697_vm2, %v985_v49  ;;  %v646_v60 = vadd.f32 %v1440_v55, %v607_v50  ;;  %v954_v61 = vadd.f32 %v1445_v57, %v915_v51  ;;  %v612_v62 = vmul.f32 %v1230_v58, %v1430_v52 }
  0xf4   : > { %v920_v63 = vmul.f32 %v1264_v59, %v1435_v53  ;;  %v680_v0 = vmax.f32 %v648_v54, 0.0  ;;  %v988_v1 = vmax.f32 %v956_v56, 0.0  ;;  %v524_v2 = vpop.f32.mrf.mxu0  ;;  %v832_v3 = vpop.f32.mrf.mxu1 }
  0xf5   : > { %v678_v4 = vmax.f32 %v646_v60, 0.0  ;;  %v986_v5 = vmax.f32 %v954_v61, 0.0  ;;  %v651_v6 = vadd.f32 %v1440_v55, %v612_v62  ;;  %v610_v8 = vmul.f32 %v1430_v52, %v524_v2 }
  0xf6   : > { %v959_v7 = vadd.f32 %v1445_v57, %v920_v63  ;;  %713 = vst.msk [vmem:[%s1457_s26 + $0x78] sm:$0xff] %vm697_vm2, %v680_v0  ;;  %1020 = vst.msk [vmem:[%s1463_s30 + $0x78] sm:$0xff] %vm697_vm2, %v988_v1  ;;  %v918_v9 = vmul.f32 %v1435_v53, %v832_v3  ;;  %v1231_v10 = vpop.f32.mrf.mxu0  ;;  %v1265_v11 = vpop.f32.mrf.mxu1 }
  0xf7   : > { %711 = vst.msk [vmem:[%s1457_s26 + $0x68] sm:$0xff] %vm697_vm2, %v678_v4  ;;  %1018 = vst.msk [vmem:[%s1463_s30 + $0x68] sm:$0xff] %vm697_vm2, %v986_v5  ;;  %v683_v12 = vmax.f32 %v651_v6, 0.0  ;;  %v613_v14 = vmul.f32 %v1231_v10, %v1430_v52  ;;  %v921_v15 = vmul.f32 %v1265_v11, %v1435_v53  ;;  %v649_v16 = vadd.f32 %v1440_v55, %v610_v8 }
  0xf8   : > { %v991_v13 = vmax.f32 %v959_v7, 0.0  ;;  %v957_v17 = vadd.f32 %v1445_v57, %v918_v9  ;;  %v527_v18 = vpop.f32.mrf.mxu0  ;;  %v835_v19 = vpop.f32.mrf.mxu1 }
  0xf9   : > { %716 = vst.msk [vmem:[%s1457_s26 + $0x90] sm:$0xff] %vm697_vm2, %v683_v12  ;;  %v652_v20 = vadd.f32 %v1440_v55, %v613_v14  ;;  %v960_v21 = vadd.f32 %v1445_v57, %v921_v15  ;;  %v611_v22 = vmul.f32 %v1430_v52, %v527_v18  ;;  %v919_v23 = vmul.f32 %v1435_v53, %v835_v19 }
  0xfa   : > { %1023 = vst.msk [vmem:[%s1463_s30 + $0x90] sm:$0xff] %vm697_vm2, %v991_v13  ;;  %v681_v24 = vmax.f32 %v649_v16, 0.0  ;;  %v989_v25 = vmax.f32 %v957_v17, 0.0  ;;  %v1234_v26 = vpop.f32.mrf.mxu0  ;;  %v1268_v27 = vpop.f32.mrf.mxu1 }
  0xfb   : > { %v684_v28 = vmax.f32 %v652_v20, 0.0  ;;  %v992_v29 = vmax.f32 %v960_v21, 0.0  ;;  %v650_v30 = vadd.f32 %v1440_v55, %v611_v22  ;;  %v958_v31 = vadd.f32 %v1445_v57, %v919_v23 }
  0xfc   : > { %714 = vst.msk [vmem:[%s1457_s26 + $0x80] sm:$0xff] %vm697_vm2, %v681_v24  ;;  %1021 = vst.msk [vmem:[%s1463_s30 + $0x80] sm:$0xff] %vm697_vm2, %v989_v25  ;;  %v616_v32 = vmul.f32 %v1234_v26, %v1430_v52  ;;  %v924_v33 = vmul.f32 %v1268_v27, %v1435_v53  ;;  %v540_v34 = vpop.f32.mrf.mxu0  ;;  %v848_v35 = vpop.f32.mrf.mxu1 }
  0xfd   : > { %717 = vst.msk [vmem:[%s1457_s26 + $0x98] sm:$0xff] %vm697_vm2, %v684_v28  ;;  %1024 = vst.msk [vmem:[%s1463_s30 + $0x98] sm:$0xff] %vm697_vm2, %v992_v29  ;;  %v682_v36 = vmax.f32 %v650_v30, 0.0  ;;  %v990_v37 = vmax.f32 %v958_v31, 0.0  ;;  %v614_v38 = vmul.f32 %v1430_v52, %v540_v34  ;;  %v922_v39 = vmul.f32 %v1435_v53, %v848_v35 }
  0xfe   : > { %v655_v40 = vadd.f32 %v1440_v55, %v616_v32  ;;  %v963_v41 = vadd.f32 %v1445_v57, %v924_v33  ;;  %v1235_v42 = vpop.f32.mrf.mxu0  ;;  %v1269_v43 = vpop.f32.mrf.mxu1 }
  0xff   : > { %715 = vst.msk [vmem:[%s1457_s26 + $0x88] sm:$0xff] %vm697_vm2, %v682_v36  ;;  %1022 = vst.msk [vmem:[%s1463_s30 + $0x88] sm:$0xff] %vm697_vm2, %v990_v37  ;;  %v653_v44 = vadd.f32 %v1440_v55, %v614_v38  ;;  %v961_v45 = vadd.f32 %v1445_v57, %v922_v39  ;;  %v617_v46 = vmul.f32 %v1235_v42, %v1430_v52 }
 0x100   : > { %v925_v47 = vmul.f32 %v1269_v43, %v1435_v53  ;;  %v687_v48 = vmax.f32 %v655_v40, 0.0  ;;  %v995_v49 = vmax.f32 %v963_v41, 0.0  ;;  %v543_v50 = vpop.f32.mrf.mxu0  ;;  %v851_v51 = vpop.f32.mrf.mxu1 }
 0x101   : > { %v685_v54 = vmax.f32 %v653_v44, 0.0  ;;  %v993_v56 = vmax.f32 %v961_v45, 0.0  ;;  %v656_v58 = vadd.f32 %v1440_v55, %v617_v46  ;;  %v615_v60 = vmul.f32 %v1430_v52, %v543_v50 }
 0x102   : > { %v964_v59 = vadd.f32 %v1445_v57, %v925_v47  ;;  %720 = vst.msk [vmem:[%s1457_s26 + $0xb0] sm:$0xff] %vm697_vm2, %v687_v48  ;;  %1027 = vst.msk [vmem:[%s1463_s30 + $0xb0] sm:$0xff] %vm697_vm2, %v995_v49  ;;  %v923_v61 = vmul.f32 %v1435_v53, %v851_v51  ;;  %v1238_v62 = vpop.f32.mrf.mxu0  ;;  %v1272_v63 = vpop.f32.mrf.mxu1 }
 0x103   : > { %718 = vst.msk [vmem:[%s1457_s26 + $0xa0] sm:$0xff] %vm697_vm2, %v685_v54  ;;  %1025 = vst.msk [vmem:[%s1463_s30 + $0xa0] sm:$0xff] %vm697_vm2, %v993_v56  ;;  %v688_v0 = vmax.f32 %v656_v58, 0.0  ;;  %v620_v2 = vmul.f32 %v1238_v62, %v1430_v52  ;;  %v928_v3 = vmul.f32 %v1272_v63, %v1435_v53  ;;  %v654_v4 = vadd.f32 %v1440_v55, %v615_v60 }
 0x104   : > { %v996_v1 = vmax.f32 %v964_v59, 0.0  ;;  %v962_v5 = vadd.f32 %v1445_v57, %v923_v61  ;;  %v556_v6 = vpop.f32.mrf.mxu0  ;;  %v864_v7 = vpop.f32.mrf.mxu1 }
 0x105   : > { %721 = vst.msk [vmem:[%s1457_s26 + $0xb8] sm:$0xff] %vm697_vm2, %v688_v0  ;;  %v659_v8 = vadd.f32 %v1440_v55, %v620_v2  ;;  %v967_v9 = vadd.f32 %v1445_v57, %v928_v3  ;;  %v618_v10 = vmul.f32 %v1430_v52, %v556_v6  ;;  %v926_v11 = vmul.f32 %v1435_v53, %v864_v7 }
 0x106   : > { %1028 = vst.msk [vmem:[%s1463_s30 + $0xb8] sm:$0xff] %vm697_vm2, %v996_v1  ;;  %v686_v12 = vmax.f32 %v654_v4, 0.0  ;;  %v994_v13 = vmax.f32 %v962_v5, 0.0  ;;  %v1239_v14 = vpop.f32.mrf.mxu0  ;;  %v1273_v15 = vpop.f32.mrf.mxu1 }
 0x107   : > { %v691_v16 = vmax.f32 %v659_v8, 0.0  ;;  %v999_v17 = vmax.f32 %v967_v9, 0.0  ;;  %v657_v18 = vadd.f32 %v1440_v55, %v618_v10  ;;  %v965_v19 = vadd.f32 %v1445_v57, %v926_v11 }
 0x108   : > { %719 = vst.msk [vmem:[%s1457_s26 + $0xa8] sm:$0xff] %vm697_vm2, %v686_v12  ;;  %1026 = vst.msk [vmem:[%s1463_s30 + $0xa8] sm:$0xff] %vm697_vm2, %v994_v13  ;;  %v621_v20 = vmul.f32 %v1239_v14, %v1430_v52  ;;  %v929_v21 = vmul.f32 %v1273_v15, %v1435_v53  ;;  %v559_v22 = vpop.f32.mrf.mxu0  ;;  %v867_v23 = vpop.f32.mrf.mxu1 }
 0x109   : > { %724 = vst.msk [vmem:[%s1457_s26 + $0xd0] sm:$0xff] %vm697_vm2, %v691_v16  ;;  %1031 = vst.msk [vmem:[%s1463_s30 + $0xd0] sm:$0xff] %vm697_vm2, %v999_v17  ;;  %v689_v24 = vmax.f32 %v657_v18, 0.0  ;;  %v997_v25 = vmax.f32 %v965_v19, 0.0  ;;  %v619_v26 = vmul.f32 %v1430_v52, %v559_v22  ;;  %v927_v27 = vmul.f32 %v1435_v53, %v867_v23 }
 0x10a   : > { %v660_v28 = vadd.f32 %v1440_v55, %v621_v20  ;;  %v968_v29 = vadd.f32 %v1445_v57, %v929_v21  ;;  %v1242_v30 = vpop.f32.mrf.mxu0  ;;  %v1276_v31 = vpop.f32.mrf.mxu1 }
 0x10b   : > { %722 = vst.msk [vmem:[%s1457_s26 + $0xc0] sm:$0xff] %vm697_vm2, %v689_v24  ;;  %1029 = vst.msk [vmem:[%s1463_s30 + $0xc0] sm:$0xff] %vm697_vm2, %v997_v25  ;;  %v658_v32 = vadd.f32 %v1440_v55, %v619_v26  ;;  %v966_v33 = vadd.f32 %v1445_v57, %v927_v27  ;;  %v624_v34 = vmul.f32 %v1242_v30, %v1430_v52 }
 0x10c   : > { %v932_v35 = vmul.f32 %v1276_v31, %v1435_v53  ;;  %v692_v36 = vmax.f32 %v660_v28, 0.0  ;;  %v1000_v37 = vmax.f32 %v968_v29, 0.0  ;;  %v572_v38 = vpop.f32.mrf.mxu0  ;;  %v880_v39 = vpop.f32.mrf.mxu1 }
 0x10d   : > { %v690_v40 = vmax.f32 %v658_v32, 0.0  ;;  %v998_v41 = vmax.f32 %v966_v33, 0.0  ;;  %v663_v42 = vadd.f32 %v1440_v55, %v624_v34  ;;  %v622_v44 = vmul.f32 %v1430_v52, %v572_v38 }
 0x10e   : > { %v971_v43 = vadd.f32 %v1445_v57, %v932_v35  ;;  %725 = vst.msk [vmem:[%s1457_s26 + $0xd8] sm:$0xff] %vm697_vm2, %v692_v36  ;;  %1032 = vst.msk [vmem:[%s1463_s30 + $0xd8] sm:$0xff] %vm697_vm2, %v1000_v37  ;;  %v930_v45 = vmul.f32 %v1435_v53, %v880_v39  ;;  %v1243_v46 = vpop.f32.mrf.mxu0  ;;  %v1277_v47 = vpop.f32.mrf.mxu1 }
 0x10f   : > { %723 = vst.msk [vmem:[%s1457_s26 + $0xc8] sm:$0xff] %vm697_vm2, %v690_v40  ;;  %1030 = vst.msk [vmem:[%s1463_s30 + $0xc8] sm:$0xff] %vm697_vm2, %v998_v41  ;;  %v695_v48 = vmax.f32 %v663_v42, 0.0  ;;  %v625_v50 = vmul.f32 %v1243_v46, %v1430_v52  ;;  %v933_v51 = vmul.f32 %v1277_v47, %v1435_v53  ;;  %v661_v54 = vadd.f32 %v1440_v55, %v622_v44 }
 0x110   : > { %v1003_v49 = vmax.f32 %v971_v43, 0.0  ;;  %v969_v56 = vadd.f32 %v1445_v57, %v930_v45  ;;  %v575_v58 = vpop.f32.mrf.mxu0  ;;  %v883_v59 = vpop.f32.mrf.mxu1 }
 0x111   : > { %728 = vst.msk [vmem:[%s1457_s26 + $0xf0] sm:$0xff] %vm697_vm2, %v695_v48  ;;  %v664_v60 = vadd.f32 %v1440_v55, %v625_v50  ;;  %v972_v61 = vadd.f32 %v1445_v57, %v933_v51  ;;  %v623_v62 = vmul.f32 %v1430_v52, %v575_v58  ;;  %v931_v63 = vmul.f32 %v1435_v53, %v883_v59 }
 0x112   : > { %1035 = vst.msk [vmem:[%s1463_s30 + $0xf0] sm:$0xff] %vm697_vm2, %v1003_v49  ;;  %v693_v0 = vmax.f32 %v661_v54, 0.0  ;;  %v1001_v1 = vmax.f32 %v969_v56, 0.0 }
 0x113   : > { %v696_v2 = vmax.f32 %v664_v60, 0.0  ;;  %v1004_v3 = vmax.f32 %v972_v61, 0.0  ;;  %v662_v4 = vadd.f32 %v1440_v55, %v623_v62  ;;  %v970_v5 = vadd.f32 %v1445_v57, %v931_v63 }
 0x114   : > { %726 = vst.msk [vmem:[%s1457_s26 + $0xe0] sm:$0xff] %vm697_vm2, %v693_v0  ;;  %1033 = vst.msk [vmem:[%s1463_s30 + $0xe0] sm:$0xff] %vm697_vm2, %v1001_v1 }
 0x115   : > { %729 = vst.msk [vmem:[%s1457_s26 + $0xf8] sm:$0xff] %vm697_vm2, %v696_v2  ;;  %1036 = vst.msk [vmem:[%s1463_s30 + $0xf8] sm:$0xff] %vm697_vm2, %v1004_v3  ;;  %v694_v6 = vmax.f32 %v662_v4, 0.0  ;;  %v1002_v52 = vmax.f32 %v970_v5, 0.0 }
 0x117   : > { %727 = vst.msk [vmem:[%s1457_s26 + $0xe8] sm:$0xff] %vm697_vm2, %v694_v6  ;;  %1034 = vst.msk [vmem:[%s1463_s30 + $0xe8] sm:$0xff] %vm697_vm2, %v1002_v52 }
 0x118 PF: > { %s19_s27 = sadd.s32 1, %s1294_s27  }
 0x119   : > { %p16_p4 = scmp.ge.s32.totalorder %s19_s27, 4  }
 0x11b   :  { %18 = sbr.rel (!%p16_p4) target bundleno = 1 (0x1), region = 90 }

// kernel: sc_bottleneck_forward.10
= control target key start
LH: loop header
LB: loop body
LE: loop exit
PB: predicated region body
PF: predicated region fallthrough
CT: control target
= control target key end

     0   :  { %s1146_s15 = smov 0   ;;  %s1148_s16 = smov 0   ;;  %s1281_s0 = inlined_call_operand.vmem [shape: f32[2,6,6,4], index: 0, kind: input, shape index: {}]   ;;  %s1282_s1 = inlined_call_operand.vmem [shape: bf16[3,3,4,4], index: 1, kind: input, shape index: {}]   ;;  %s1283_s2 = inlined_call_operand.vmem [shape: f32[1,4], index: 2, kind: input, shape index: {}]   ;;  %s1284_s3 = inlined_call_operand.vmem [shape: f32[1,4], index: 3, kind: input, shape index: {}]   ;;  %s1285_s4 = inlined_call_operand.vmem [shape: f32[2,4,4,4], index: 4, kind: output, shape index: {}]  }
   0x1   :  { %s1150_s17 = smov 0  }
   0x2 LB: > { %s26_s18 = sadd.s32 1, %s1113_s16  ;;  %p928_p0 = scmp.ge.s32.totalorder %s1117_s17, 1  ;;  %s1117_s17 = sphi %s1150_s17, %s14_s17   ;;  %s1113_s16 = sphi %s1148_s16, %s1287_s16   ;;  %s1109_s15 = sphi %s1146_s15, %s1286_s15  }
   0x3   : > { %p28_p1 = scmp.ge.s32.totalorder %s26_s18, 2  ;;  %p176_p2 = scmp.lt.s32.totalorder %s1117_s17, 3 }
   0x5   : > { %s1289_s18 = smov (%p28_p1, %s26_s18), 0  ;;  %p177_p3 = pnand %p928_p0, %p176_p2 }
   0x6   : > { %p206_p4 = scmp.lt.s32.totalorder (!%p177_p3), %s1109_s15, 1 }
   0x7   : > { %180 = sbr.rel (%p177_p3) target bundleno = 258 (0x102), region = 36 }
   0xc   : > { %v932_v0 = vld [vmem:[%s1282_s1 + $0x2] sm:$0x3]  ;;  %vm258_vm0 = vcmask 1041408   ;;  %v238_v1 = vld [vmem:[%s1282_s1] sm:$0x3]  ;;  %v1119_v2 = vmov 0.0  }
   0xd   : > { %996 = vmatprep.subr.bf16.mxu0 %v1119_v2  ;;  %v260_v3 = vsel %vm258_vm0, %v932_v0, 0  ;;  %1002 = vmatprep.subr.bf16.mxu1 %v1119_v2  ;;  %v307_v4 = vsel %vm258_vm0, %v238_v1, 0  ;;  %vm1120_vm1 = vmmov 0   ;;  %s1291_s15 = smov (!%p206_p4, %s1109_s15), 1  ;;  %v935_v5 = vld [vmem:[%s1282_s1 + $0x4] sm:$0x3] }
   0xe   : > { %997 = vmatpush3.bf16.msra.mxu0 %v260_v3  ;;  %1003 = vmatpush3.bf16.msra.mxu1 %v307_v4  ;;  %v941_v6 = vld [vmem:[%s1282_s1 + $0x6] sm:$0x3]  ;;  %s1050_s27 = smul.u32 48, %s1291_s15  ;;  %vm254_vm2 = vcmask 31744   ;;  %v369_v7 = vsel %vm258_vm0, %v935_v5, 0  ;;  %s977_s21 = sshll.u32 %s1291_s15, 4 }
   0xf   : > { %998 = vmatprep.mubr.msk.bf16.mxu0 %vm1120_vm1, %v1119_v2  ;;  %1004 = vmatprep.mubr.msk.bf16.mxu1 %vm1120_vm1, %v1119_v2  ;;  %v436_v8 = vsel %vm258_vm0, %v941_v6, 0  ;;  %v947_v17 = vld [vmem:[%s1282_s1 + $0x8] sm:$0x3]  ;;  %v953_v18 = vld [vmem:[%s1282_s1 + $0xa] sm:$0x3]  ;;  %s219_s26 = scalar_lea.vmem %s1285_s4, %s977_s21  ;;  %vm828_vm3 = vcmask 27648  }
  0x10   : > { %1008 = vmatprep.subr.bf16.mxu0 %v1119_v2  ;;  %1014 = vmatprep.subr.bf16.mxu1 %v1119_v2  ;;  %s1192_s30 = scalar_lea.vmem %s1281_s0, %s1050_s27  ;;  %v500_v23 = vsel %vm258_vm0, %v947_v17, 0  ;;  %v564_v24 = vsel %vm258_vm0, %v953_v18, 0  ;;  %v959_v27 = vld [vmem:[%s1282_s1 + $0xc] sm:$0x3]  ;;  %v965_v31 = vld [vmem:[%s1282_s1 + $0xe] sm:$0x3] }
  0x11   : > { %v1077_v9 = vld [vmem:[%s1192_s30 + $0x1] ss:$8 sps:$4 sm:$0xff]   ;;  %v1078_v10 = vld [vmem:[%s1192_s30 + $0x11] ss:$8 sps:$4 sm:$0xff]   ;;  %v631_v33 = vsel %vm258_vm0, %v959_v27, 0  ;;  %v695_v34 = vsel %vm258_vm0, %v965_v31, 0 }
  0x12   : > { %v251_v11 = vpack.c.bf16 %v1078_v10, %v1077_v9  ;;  %v1079_v12 = vld [vmem:[%s1192_s30] ss:$8 sps:$4 sm:$0xff]   ;;  %v1080_v13 = vld [vmem:[%s1192_s30 + $0x10] ss:$8 sps:$4 sm:$0xff]  }
  0x13   : > { %v237_v14 = vpack.c.bf16 %v1080_v13, %v1079_v12  ;;  %v1081_v15 = vld [vmem:[%s1192_s30 + $0x2] ss:$8 sps:$4 sm:$0xff]   ;;  %v1082_v16 = vld [vmem:[%s1192_s30 + $0x12] ss:$8 sps:$4 sm:$0xff]   ;;  %v971_v39 = vld [vmem:[%s1282_s1 + $0x10] sm:$0x3] }
  0x14   : > { %999 = vmatmul.mubr.msk.bf16.vlgmr.msra.gmra.mxu0 %vm254_vm2, %v251_v11  ;;  %v1083_v19 = vld [vmem:[%s1192_s30 + $0x8] ss:$8 sps:$4 sm:$0xff]   ;;  %v1084_v20 = vld [vmem:[%s1192_s30 + $0x18] ss:$8 sps:$4 sm:$0xff]   ;;  %v362_v21 = vpack.c.bf16 %v1082_v16, %v1081_v15  ;;  %v759_v42 = vsel %vm258_vm0, %v971_v39, 0 }
  0x15   : > { %1009 = vmatpush3.bf16.msra.mxu0 %v369_v7  ;;  %1010 = vmatprep.mubr.msk.bf16.mxu0 %vm1120_vm1, %v1119_v2  ;;  %v429_v22 = vpack.c.bf16 %v1084_v20, %v1083_v19  ;;  %v1085_v25 = vld [vmem:[%s1192_s30 + $0x9] ss:$8 sps:$4 sm:$0xff]   ;;  %v1086_v26 = vld [vmem:[%s1192_s30 + $0x19] ss:$8 sps:$4 sm:$0xff]  }
  0x16   : > { %1005 = vmatmul.mubr.msk.bf16.vlgmr.msra.gmra.mxu1 %vm254_vm2, %v237_v14  ;;  %1020 = vmatprep.subr.bf16.mxu0 %v1119_v2  ;;  %v1087_v28 = vld [vmem:[%s1192_s30 + $0xa] ss:$8 sps:$4 sm:$0xff]   ;;  %v1088_v29 = vld [vmem:[%s1192_s30 + $0x1a] ss:$8 sps:$4 sm:$0xff]   ;;  %v493_v30 = vpack.c.bf16 %v1086_v26, %v1085_v25 }
  0x17   : > { %1015 = vmatpush3.bf16.msra.mxu1 %v436_v8  ;;  %1016 = vmatprep.mubr.msk.bf16.mxu1 %vm1120_vm1, %v1119_v2  ;;  %v557_v32 = vpack.c.bf16 %v1088_v29, %v1087_v28  ;;  %v1089_v35 = vld [vmem:[%s1192_s30 + $0x10] ss:$8 sps:$4 sm:$0xff]   ;;  %v1090_v36 = vld [vmem:[%s1192_s30 + $0x20] ss:$8 sps:$4 sm:$0xff]  }
  0x18   : > { %1026 = vmatprep.subr.bf16.mxu1 %v1119_v2  ;;  %v1091_v37 = vld [vmem:[%s1192_s30 + $0x11] ss:$8 sps:$4 sm:$0xff]   ;;  %v1092_v38 = vld [vmem:[%s1192_s30 + $0x21] ss:$8 sps:$4 sm:$0xff]   ;;  %v624_v40 = vpack.c.bf16 %v1090_v36, %v1089_v35  ;;  %v973_v28 = vld [vmem:[%s1283_s2] ss:$0 sm:$0xff] }
  0x19   : > { %v688_v41 = vpack.c.bf16 %v1092_v38, %v1091_v37  ;;  %v1093_v43 = vld [vmem:[%s1192_s30 + $0x12] ss:$8 sps:$4 sm:$0xff]   ;;  %v1094_v44 = vld [vmem:[%s1192_s30 + $0x22] ss:$8 sps:$4 sm:$0xff]  }
  0x1a   : > { %v752_v45 = vpack.c.bf16 %v1094_v44, %v1093_v43 }
  0x1c   : > { %1011 = vmatmul.mubr.msk.bf16.vlgmr.msra.gmra.mxu0 %vm254_vm2, %v362_v21 }
  0x1d   : > { %1021 = vmatpush3.bf16.msra.mxu0 %v500_v23  ;;  %1022 = vmatprep.mubr.msk.bf16.mxu0 %vm1120_vm1, %v1119_v2 }
  0x1e   : > { %1017 = vmatmul.mubr.msk.bf16.vlgmr.msra.gmra.mxu1 %vm254_vm2, %v429_v22  ;;  %1032 = vmatprep.subr.bf16.mxu0 %v1119_v2 }
  0x1f   : > { %1027 = vmatpush3.bf16.msra.mxu1 %v564_v24  ;;  %1028 = vmatprep.mubr.msk.bf16.mxu1 %vm1120_vm1, %v1119_v2 }
  0x20   : > { %1038 = vmatprep.subr.bf16.mxu1 %v1119_v2 }
  0x24   : > { %1023 = vmatmul.mubr.msk.bf16.vlgmr.msra.gmra.mxu0 %vm254_vm2, %v493_v30  ;;  %v974_v30 = vld [vmem:[%s1284_s3] ss:$0 sm:$0xff] }
  0x25   : > { %1033 = vmatpush3.bf16.msra.mxu0 %v631_v33  ;;  %1034 = vmatprep.mubr.msk.bf16.mxu0 %vm1120_vm1, %v1119_v2 }
  0x26   : > { %1029 = vmatmul.mubr.msk.bf16.vlgmr.msra.gmra.mxu1 %vm254_vm2, %v557_v32  ;;  %1044 = vmatprep.subr.bf16.mxu0 %v1119_v2 }
  0x27   : > { %1039 = vmatpush3.bf16.msra.mxu1 %v695_v34  ;;  %1040 = vmatprep.mubr.msk.bf16.mxu1 %vm1120_vm1, %v1119_v2 }
  0x2c   : > { %1035 = vmatmul.mubr.msk.bf16.vlgmr.msra.gmra.mxu0 %vm254_vm2, %v624_v40 }
  0x2d   : > { %1045 = vmatpush3.bf16.msra.mxu0 %v759_v42  ;;  %1046 = vmatprep.mubr.msk.bf16.mxu0 %vm1120_vm1, %v1119_v2 }
  0x2e   : > { %1041 = vmatmul.mubr.msk.bf16.vlgmr.msra.gmra.mxu1 %vm254_vm2, %v688_v41 }
  0x34   : > { %1047 = vmatmul.mubr.msk.bf16.vlgmr.msra.gmra.mxu0 %vm254_vm2, %v752_v45 }
  0xd4   : > { %v296_v46 = vpop.f32.mrf.mxu0 }
  0xd6   : > { %v343_v47 = vpop.f32.mrf.mxu1  ;;  %v1000_v48 = vpop.f32.mrf.mxu0 }
  0xd7   : > { %v344_v59 = vadd.f32 %v343_v47, %v296_v46 }
  0xd8   : > { %v1006_v49 = vpop.f32.mrf.mxu1  ;;  %v299_v50 = vpop.f32.mrf.mxu0 }
  0xda   : > { %v346_v51 = vpop.f32.mrf.mxu1  ;;  %v1001_v52 = vpop.f32.mrf.mxu0 }
  0xdb   : > { %v347_v1 = vadd.f32 %v346_v51, %v299_v50 }
  0xdc   : > { %v1007_v53 = vpop.f32.mrf.mxu1  ;;  %v405_v54 = vpop.f32.mrf.mxu0 }
  0xdd   : > { %v412_v62 = vadd.f32 %v405_v54, %v344_v59 }
  0xde   : > { %v472_v55 = vpop.f32.mrf.mxu1  ;;  %v1012_v56 = vpop.f32.mrf.mxu0 }
  0xdf   : > { %v479_v4 = vadd.f32 %v472_v55, %v412_v62 }
  0xe0   : > { %v1018_v57 = vpop.f32.mrf.mxu1  ;;  %v408_v58 = vpop.f32.mrf.mxu0 }
  0xe1   : > { %v413_v5 = vadd.f32 %v408_v58, %v347_v1 }
  0xe2   : > { %v475_v60 = vpop.f32.mrf.mxu1  ;;  %v1013_v61 = vpop.f32.mrf.mxu0 }
  0xe3   : > { %v480_v11 = vadd.f32 %v475_v60, %v413_v5 }
  0xe4   : > { %v1019_v63 = vpop.f32.mrf.mxu1  ;;  %v536_v0 = vpop.f32.mrf.mxu0 }
  0xe5   : > { %v543_v8 = vadd.f32 %v536_v0, %v479_v4 }
  0xe6   : > { %v600_v2 = vpop.f32.mrf.mxu1  ;;  %v1024_v3 = vpop.f32.mrf.mxu0 }
  0xe7   : > { %v607_v14 = vadd.f32 %v600_v2, %v543_v8 }
  0xe8   : > { %v1030_v6 = vpop.f32.mrf.mxu1  ;;  %v539_v7 = vpop.f32.mrf.mxu0 }
  0xe9   : > { %v544_v15 = vadd.f32 %v539_v7, %v480_v11 }
  0xea   : > { %v603_v9 = vpop.f32.mrf.mxu1  ;;  %v1025_v10 = vpop.f32.mrf.mxu0 }
  0xeb   : > { %v608_v21 = vadd.f32 %v603_v9, %v544_v15 }
  0xec   : > { %v1031_v12 = vpop.f32.mrf.mxu1  ;;  %v667_v13 = vpop.f32.mrf.mxu0 }
  0xed   : > { %v674_v18 = vadd.f32 %v667_v13, %v607_v14 }
  0xee   : > { %v731_v16 = vpop.f32.mrf.mxu1  ;;  %v1036_v17 = vpop.f32.mrf.mxu0 }
  0xef   : > { %v738_v24 = vadd.f32 %v731_v16, %v674_v18 }
  0xf0   : > { %v1042_v19 = vpop.f32.mrf.mxu1  ;;  %v670_v20 = vpop.f32.mrf.mxu0 }
  0xf1   : > { %v675_v25 = vadd.f32 %v670_v20, %v608_v21 }
  0xf2   : > { %v734_v22 = vpop.f32.mrf.mxu1  ;;  %v1037_v23 = vpop.f32.mrf.mxu0 }
  0xf3   : > { %v739_v32 = vadd.f32 %v734_v22, %v675_v25 }
  0xf4   : > { %v1043_v26 = vpop.f32.mrf.mxu1  ;;  %v795_v27 = vpop.f32.mrf.mxu0 }
  0xf5   : > { %v802_v29 = vadd.f32 %v795_v27, %v738_v24 }
  0xf6   : > { %v1048_v31 = vpop.f32.mrf.mxu0 }
  0xf7   : > { %v811_v33 = vmul.f32 %v973_v28, %v802_v29 }
  0xf8   : > { %v798_v34 = vpop.f32.mrf.mxu0 }
  0xf9   : > { %v820_v35 = vadd.f32 %v974_v30, %v811_v33  ;;  %v803_v36 = vadd.f32 %v798_v34, %v739_v32 }
  0xfa   : > { %v1049_v37 = vpop.f32.mrf.mxu0 }
  0xfb   : > { %v824_v38 = vcombine.high %v820_v35, %v820_v35  ;;  %829 = vst.msk [vmem:[%s219_s26] sm:$0xf] %vm828_vm3, %v820_v35  ;;  %v812_v39 = vmul.f32 %v973_v28, %v803_v36 }
  0xfd   : > { %830 = vst.msk [vmem:[%s219_s26 + $0x4] sm:$0xf] %vm828_vm3, %v824_v38  ;;  %v821_v40 = vadd.f32 %v974_v30, %v812_v39 }
  0xff   : > { %v825_v41 = vcombine.high %v821_v40, %v821_v40  ;;  %831 = vst.msk [vmem:[%s219_s26 + $0x8] sm:$0xf] %vm828_vm3, %v821_v40 }
 0x101   : > { %832 = vst.msk [vmem:[%s219_s26 + $0xc] sm:$0xf] %vm828_vm3, %v825_v41 }
 0x102 PF: > { %s14_s17 = sadd.s32 1, %s1117_s17   ;;  %s1286_s15 = smov %s1113_s16 }
 0x103   : > { %p11_p5 = scmp.ge.s32.totalorder %s14_s17, 4   ;;  %s1287_s16 = smov %s1289_s18 }
 0x105   :  { %13 = sbr.rel (!%p11_p5) target bundleno = 2 (0x2), region = 77 }

// kernel: sc_bottleneck_forward.12
= control target key start
LH: loop header
LB: loop body
LE: loop exit
PB: predicated region body
PF: predicated region fallthrough
CT: control target
= control target key end

     0   :  { %s1039_s12 = smov 0   ;;  %s1041_s13 = smov 0   ;;  %s1239_s0 = inlined_call_operand.vmem [shape: f32[2,16,16,4], index: 0, kind: input, shape index: {}]   ;;  %s1240_s1 = inlined_call_operand.vmem [shape: f32[2,16,16,4], index: 1, kind: input, shape index: {}]   ;;  %s1241_s2 = inlined_call_operand.vmem [shape: f32[2,4,16,4], index: 2, kind: input, shape index: {}]   ;;  %s1242_s3 = inlined_call_operand.vmem [shape: f32[2,16,16,4], index: 3, kind: output, shape index: {}]  }
   0x1   :  { %s1043_s14 = smov 0  }
   0x2 LB: > { %s25_s15 = sadd.s32 1, %s1013_s13  ;;  %p796_p0 = scmp.ge.s32.totalorder %s1017_s14, 1  ;;  %s1017_s14 = sphi %s1043_s14, %s13_s14   ;;  %s1013_s13 = sphi %s1041_s13, %s1244_s13   ;;  %s1009_s12 = sphi %s1039_s12, %s1243_s12  }
   0x3   : > { %p27_p1 = scmp.ge.s32.totalorder %s25_s15, 2  ;;  %p195_p2 = scmp.lt.s32.totalorder %s1017_s14, 3 }
   0x5   : > { %s1246_s15 = smov (%p27_p1, %s25_s15), 0  ;;  %p196_p3 = pnand %p796_p0, %p195_p2 }
   0x6   : > { %p250_p4 = scmp.lt.s32.totalorder (!%p196_p3), %s1009_s12, 1 }
   0x7   : > { %199 = sbr.rel (%p196_p3) target bundleno = 101 (0x65), region = 32 }
   0xc   : > { %s1248_s12 = smov (!%p250_p4, %s1009_s12), 1  ;;  %vm621_vm0 = vcmask 31744  }
   0xd   : > { %s1057_s16 = sshll.u32 %s1248_s12, 8  ;;  %s841_s17 = sshll.u32 %s1248_s12, 6 }
   0xe   : > { %s1063_s20 = scalar_lea.vmem %s1240_s1, %s1057_s16  ;;  %s1068_s23 = scalar_lea.vmem %s1241_s2, %s841_s17 }
   0xf   : > { %v325_v0 = vld [vmem:[%s1063_s20] sm:$0xff]  ;;  %v326_v2 = vld [vmem:[%s1063_s20 + $0x8] sm:$0xff]  ;;  %v327_v6 = vld [vmem:[%s1063_s20 + $0x10] sm:$0xff]  ;;  %s1099_s26 = scalar_lea.vmem %s1239_s0, %s1057_s16  ;;  %s1112_s29 = scalar_lea.vmem %s1242_s3, %s1057_s16 }
  0x10   : > { %v357_v1 = vld [vmem:[%s1068_s23] sm:$0xff]  ;;  %v358_v3 = vld [vmem:[%s1068_s23 + $0x8] sm:$0xff]  ;;  %v328_v8 = vld [vmem:[%s1063_s20 + $0x18] sm:$0xff] }
  0x11   : > { %v365_v4 = vadd.f32 %v357_v1, %v325_v0  ;;  %v366_v5 = vadd.f32 %v358_v3, %v326_v2  ;;  %v367_v7 = vadd.f32 %v357_v1, %v327_v6  ;;  %v329_v9 = vld [vmem:[%s1063_s20 + $0x20] sm:$0xff]  ;;  %v368_v12 = vadd.f32 %v358_v3, %v328_v8  ;;  %v330_v14 = vld [vmem:[%s1063_s20 + $0x28] sm:$0xff]  ;;  %v331_v17 = vld [vmem:[%s1063_s20 + $0x30] sm:$0xff] }
  0x12   : > { %v369_v13 = vadd.f32 %v357_v1, %v329_v9  ;;  %v370_v16 = vadd.f32 %v358_v3, %v330_v14  ;;  %v371_v20 = vadd.f32 %v357_v1, %v331_v17  ;;  %v332_v21 = vld [vmem:[%s1063_s20 + $0x38] sm:$0xff]  ;;  %v333_v24 = vld [vmem:[%s1063_s20 + $0x40] sm:$0xff]  ;;  %v359_v25 = vld [vmem:[%s1068_s23 + $0x10] sm:$0xff] }
  0x13   : > { %v805_v10 = vmul.f32 -1.442695, %v365_v4  ;;  %v806_v11 = vmul.f32 -1.442695, %v366_v5  ;;  %v807_v15 = vmul.f32 -1.442695, %v367_v7  ;;  %v372_v23 = vadd.f32 %v358_v3, %v332_v21 }
  0x14   : > { %v808_v18 = vmul.f32 -1.442695, %v368_v12  ;;  %v809_v19 = vmul.f32 -1.442695, %v369_v13  ;;  %v810_v22 = vmul.f32 -1.442695, %v370_v16  ;;  %v373_v27 = vadd.f32 %v359_v25, %v333_v24 }
  0x15   : > { %867 = vpow2.f32 %v805_v10  ;;  %v811_v26 = vmul.f32 -1.442695, %v371_v20  ;;  %v334_v28 = vld [vmem:[%s1063_s20 + $0x48] sm:$0xff]  ;;  %v360_v29 = vld [vmem:[%s1068_s23 + $0x18] sm:$0xff]  ;;  %v812_v30 = vmul.f32 -1.442695, %v372_v23 }
  0x16   : > { %869 = vpow2.f32 %v806_v11  ;;  %v374_v31 = vadd.f32 %v360_v29, %v334_v28  ;;  %v335_v32 = vld [vmem:[%s1063_s20 + $0x50] sm:$0xff]  ;;  %v336_v33 = vld [vmem:[%s1063_s20 + $0x58] sm:$0xff]  ;;  %v813_v34 = vmul.f32 -1.442695, %v373_v27  ;;  %v337_v37 = vld [vmem:[%s1063_s20 + $0x60] sm:$0xff] }
  0x17   : > { %871 = vpow2.f32 %v807_v15  ;;  %v375_v35 = vadd.f32 %v359_v25, %v335_v32  ;;  %v376_v36 = vadd.f32 %v360_v29, %v336_v33  ;;  %v377_v39 = vadd.f32 %v359_v25, %v337_v37  ;;  %v338_v40 = vld [vmem:[%s1063_s20 + $0x68] sm:$0xff]  ;;  %v339_v41 = vld [vmem:[%s1063_s20 + $0x70] sm:$0xff]  ;;  %v340_v44 = vld [vmem:[%s1063_s20 + $0x78] sm:$0xff] }
  0x18   : > { %873 = vpow2.f32 %v808_v18  ;;  %v814_v38 = vmul.f32 -1.442695, %v374_v31  ;;  %v378_v43 = vadd.f32 %v360_v29, %v338_v40  ;;  %v379_v46 = vadd.f32 %v359_v25, %v339_v41  ;;  %v341_v5 = vld [vmem:[%s1063_s20 + $0x80] sm:$0xff]  ;;  %v342_v9 = vld [vmem:[%s1063_s20 + $0x88] sm:$0xff]  ;;  %v343_v13 = vld [vmem:[%s1063_s20 + $0x90] sm:$0xff] }
  0x19   : > { %875 = vpow2.f32 %v809_v19  ;;  %v815_v42 = vmul.f32 -1.442695, %v375_v35  ;;  %v816_v45 = vmul.f32 -1.442695, %v376_v36  ;;  %v380_v47 = vadd.f32 %v360_v29, %v340_v44  ;;  %v361_v6 = vld [vmem:[%s1068_s23 + $0x20] sm:$0xff]  ;;  %v362_v10 = vld [vmem:[%s1068_s23 + $0x28] sm:$0xff] }
  0x1a   : > { %877 = vpow2.f32 %v810_v22  ;;  %v817_v48 = vmul.f32 -1.442695, %v377_v39  ;;  %v818_v49 = vmul.f32 -1.442695, %v378_v43  ;;  %v819_v50 = vmul.f32 -1.442695, %v379_v46 }
  0x1b   : > { %879 = vpow2.f32 %v811_v26  ;;  %v820_v51 = vmul.f32 -1.442695, %v380_v47  ;;  %v381_v16 = vadd.f32 %v361_v6, %v341_v5  ;;  %v344_v17 = vld [vmem:[%s1063_s20 + $0x98] sm:$0xff]  ;;  %v382_v20 = vadd.f32 %v362_v10, %v342_v9  ;;  %v345_v21 = vld [vmem:[%s1063_s20 + $0xa0] sm:$0xff]  ;;  %v346_v25 = vld [vmem:[%s1063_s20 + $0xa8] sm:$0xff] }
  0x1c   : > { %881 = vpow2.f32 %v812_v30  ;;  %v383_v24 = vadd.f32 %v361_v6, %v343_v13  ;;  %v293_v27 = vld [vmem:[%s1099_s26] sm:$0xff]  ;;  %v384_v29 = vadd.f32 %v362_v10, %v344_v17  ;;  %v347_v30 = vld [vmem:[%s1063_s20 + $0xb0] sm:$0xff]  ;;  %v294_v32 = vld [vmem:[%s1099_s26 + $0x8] sm:$0xff]  ;;  %v385_v35 = vadd.f32 %v361_v6, %v345_v21 }
  0x1d   : > { %883 = vpow2.f32 %v813_v34  ;;  %v821_v34 = vmul.f32 -1.442695, %v381_v16  ;;  %v348_v36 = vld [vmem:[%s1063_s20 + $0xb8] sm:$0xff]  ;;  %v822_v40 = vmul.f32 -1.442695, %v382_v20  ;;  %v386_v41 = vadd.f32 %v362_v10, %v346_v25  ;;  %v1117_v43 = vld [vmem:[%s1068_s23 + $0x30] sm:$0xff] }
  0x1e   : > { %885 = vpow2.f32 %v814_v38  ;;  %v295_v38 = vld [vmem:[%s1099_s26 + $0x10] sm:$0xff]  ;;  %v296_v46 = vld [vmem:[%s1099_s26 + $0x18] sm:$0xff]  ;;  %v823_v47 = vmul.f32 -1.442695, %v383_v24  ;;  %v301_v13 = vld [vmem:[%s1099_s26 + $0x40] sm:$0xff] }
  0x1f   : > { %887 = vpow2.f32 %v815_v42  ;;  %v349_v42 = vld [vmem:[%s1063_s20 + $0xc0] sm:$0xff]  ;;  %v355_v16 = vld [vmem:[%s1063_s20 + $0xf0] sm:$0xff] }
  0x20   : > { %889 = vpow2.f32 %v816_v45  ;;  %v303_v25 = vld [vmem:[%s1099_s26 + $0x50] sm:$0xff] }
  0x21   : > { %891 = vpow2.f32 %v817_v48  ;;  %v387_v48 = vadd.f32 %v361_v6, %v347_v30  ;;  %v304_v30 = vld [vmem:[%s1099_s26 + $0x58] sm:$0xff] }
  0x22   : > { %v868_v52 = vpop.eup %867  ;;  %893 = vpow2.f32 %v818_v49  ;;  %v350_v49 = vld [vmem:[%s1063_s20 + $0xc8] sm:$0xff] }
  0x23   : > { %v870_v53 = vpop.eup %869  ;;  %v493_v54 = vadd.f32 1.0, %v868_v52  ;;  %895 = vpow2.f32 %v819_v50  ;;  %v1122_v50 = vld [vmem:[%s1068_s23 + $0x38] sm:$0xff] }
  0x24   : > { %v872_v55 = vpop.eup %871  ;;  %v494_v56 = vadd.f32 1.0, %v870_v53  ;;  %897 = vpow2.f32 %v820_v51  ;;  %v297_v53 = vld [vmem:[%s1099_s26 + $0x20] sm:$0xff] }
  0x25   : > { %v874_v57 = vpop.eup %873  ;;  %899 = vrcp.f32 %v493_v54  ;;  %v495_v58 = vadd.f32 1.0, %v872_v55  ;;  %v824_v54 = vmul.f32 -1.442695, %v384_v29  ;;  %v388_v55 = vadd.f32 %v362_v10, %v348_v36  ;;  %v354_v10 = vld [vmem:[%s1063_s20 + $0xe8] sm:$0xff] }
  0x26   : > { %v876_v59 = vpop.eup %875  ;;  %901 = vrcp.f32 %v494_v56  ;;  %v496_v60 = vadd.f32 1.0, %v874_v57  ;;  %v351_v56 = vld [vmem:[%s1063_s20 + $0xd0] sm:$0xff] }
  0x27   : > { %v878_v61 = vpop.eup %877  ;;  %903 = vrcp.f32 %v495_v58  ;;  %v497_v62 = vadd.f32 1.0, %v876_v59  ;;  %v298_v59 = vld [vmem:[%s1099_s26 + $0x28] sm:$0xff]  ;;  %v391_v9 = vadd.f32 %v1117_v43, %v351_v56 }
  0x28   : > { %v880_v63 = vpop.eup %879  ;;  %905 = vrcp.f32 %v496_v60  ;;  %v498_v0 = vadd.f32 1.0, %v878_v61  ;;  %v825_v60 = vmul.f32 -1.442695, %v385_v35  ;;  %v389_v61 = vadd.f32 %v1117_v43, %v349_v42  ;;  %v305_v35 = vld [vmem:[%s1099_s26 + $0x60] sm:$0xff] }
  0x29   : > { %v882_v1 = vpop.eup %881  ;;  %907 = vrcp.f32 %v497_v62  ;;  %v499_v2 = vadd.f32 1.0, %v880_v63  ;;  %v352_v62 = vld [vmem:[%s1063_s20 + $0xd8] sm:$0xff] }
  0x2a   : > { %v884_v3 = vpop.eup %883  ;;  %909 = vrcp.f32 %v498_v0  ;;  %v500_v4 = vadd.f32 1.0, %v882_v1  ;;  %v299_v1 = vld [vmem:[%s1099_s26 + $0x30] sm:$0xff]  ;;  %v829_v20 = vmul.f32 -1.442695, %v389_v61 }
  0x2b   : > { %v886_v7 = vpop.eup %885  ;;  %911 = vrcp.f32 %v499_v2  ;;  %v501_v8 = vadd.f32 1.0, %v884_v3  ;;  %v826_v2 = vmul.f32 -1.442695, %v386_v41  ;;  %v390_v3 = vadd.f32 %v1122_v50, %v350_v49 }
  0x2c   : > { %v888_v11 = vpop.eup %887  ;;  %913 = vrcp.f32 %v500_v4  ;;  %v502_v12 = vadd.f32 1.0, %v886_v7  ;;  %v353_v4 = vld [vmem:[%s1063_s20 + $0xe0] sm:$0xff]  ;;  %v300_v7 = vld [vmem:[%s1099_s26 + $0x38] sm:$0xff] }
  0x2d   : > { %v890_v14 = vpop.eup %889  ;;  %915 = vrcp.f32 %v501_v8  ;;  %v503_v15 = vadd.f32 1.0, %v888_v11  ;;  %v827_v8 = vmul.f32 -1.442695, %v387_v48  ;;  %v393_v21 = vadd.f32 %v1117_v43, %v353_v4  ;;  %v308_v48 = vld [vmem:[%s1099_s26 + $0x78] sm:$0xff] }
  0x2e   : > { %v892_v18 = vpop.eup %891  ;;  %917 = vrcp.f32 %v502_v12  ;;  %v504_v19 = vadd.f32 1.0, %v890_v14  ;;  %v828_v14 = vmul.f32 -1.442695, %v388_v55 }
  0x2f   : > { %v894_v22 = vpop.eup %893  ;;  %919 = vrcp.f32 %v503_v15  ;;  %v505_v23 = vadd.f32 1.0, %v892_v18  ;;  %v392_v15 = vadd.f32 %v1122_v50, %v352_v62  ;;  %v833_v41 = vmul.f32 -1.442695, %v393_v21 }
  0x30   : > { %v896_v26 = vpop.eup %895  ;;  %921 = vrcp.f32 %v504_v19  ;;  %v506_v28 = vadd.f32 1.0, %v894_v22  ;;  %v302_v19 = vld [vmem:[%s1099_s26 + $0x48] sm:$0xff]  ;;  %v356_v22 = vld [vmem:[%s1063_s20 + $0xf8] sm:$0xff] }
  0x31   : > { %v898_v31 = vpop.eup %897  ;;  %923 = vrcp.f32 %v505_v23  ;;  %v507_v33 = vadd.f32 1.0, %v896_v26  ;;  %v830_v26 = vmul.f32 -1.442695, %v390_v3  ;;  %v832_v36 = vmul.f32 -1.442695, %v392_v15 }
  0x32   : > { %v900_v37 = vpop.eup %899  ;;  %925 = vrcp.f32 %v506_v28  ;;  %v508_v39 = vadd.f32 1.0, %v898_v31  ;;  %v831_v31 = vmul.f32 -1.442695, %v391_v9 }
  0x33   : > { %v902_v44 = vpop.eup %901  ;;  %v589_v45 = vmul.f32 %v900_v37, %v293_v27  ;;  %927 = vrcp.f32 %v507_v33  ;;  %v394_v27 = vadd.f32 %v1122_v50, %v354_v10  ;;  %v396_v37 = vadd.f32 %v1122_v50, %v356_v22 }
  0x34   : > { %v904_v51 = vpop.eup %903  ;;  %v590_v52 = vmul.f32 %v902_v44, %v294_v32  ;;  %929 = vrcp.f32 %v508_v39  ;;  %v395_v32 = vadd.f32 %v1117_v43, %v355_v16  ;;  %v307_v44 = vld [vmem:[%s1099_s26 + $0x70] sm:$0xff] }
  0x35   : > { %v906_v57 = vpop.eup %905  ;;  %622 = vst.msk [vmem:[%s1112_s29] sm:$0xff] %vm621_vm0, %v589_v45  ;;  %v591_v58 = vmul.f32 %v904_v51, %v295_v38  ;;  %931 = vpow2.f32 %v821_v34  ;;  %v834_v45 = vmul.f32 -1.442695, %v394_v27 }
  0x36   : > { %v908_v63 = vpop.eup %907  ;;  %623 = vst.msk [vmem:[%s1112_s29 + $0x8] sm:$0xff] %vm621_vm0, %v590_v52  ;;  %v592_v0 = vmul.f32 %v906_v57, %v296_v46  ;;  %933 = vpow2.f32 %v822_v40  ;;  %v306_v40 = vld [vmem:[%s1099_s26 + $0x68] sm:$0xff]  ;;  %v835_v49 = vmul.f32 -1.442695, %v395_v32  ;;  %v836_v52 = vmul.f32 -1.442695, %v396_v37 }
  0x37   : > { %v910_v5 = vpop.eup %909  ;;  %624 = vst.msk [vmem:[%s1112_s29 + $0x10] sm:$0xff] %vm621_vm0, %v591_v58  ;;  %v593_v6 = vmul.f32 %v908_v63, %v297_v53  ;;  %935 = vpow2.f32 %v823_v47 }
  0x38   : > { %v912_v11 = vpop.eup %911  ;;  %625 = vst.msk [vmem:[%s1112_s29 + $0x18] sm:$0xff] %vm621_vm0, %v592_v0  ;;  %v594_v12 = vmul.f32 %v910_v5, %v298_v59  ;;  %937 = vpow2.f32 %v824_v54 }
  0x39   : > { %v914_v17 = vpop.eup %913  ;;  %626 = vst.msk [vmem:[%s1112_s29 + $0x20] sm:$0xff] %vm621_vm0, %v593_v6  ;;  %v595_v18 = vmul.f32 %v912_v11, %v299_v1  ;;  %939 = vpow2.f32 %v825_v60 }
  0x3a   : > { %v916_v23 = vpop.eup %915  ;;  %627 = vst.msk [vmem:[%s1112_s29 + $0x28] sm:$0xff] %vm621_vm0, %v594_v12  ;;  %v596_v24 = vmul.f32 %v914_v17, %v300_v7  ;;  %941 = vpow2.f32 %v826_v2 }
  0x3b   : > { %v918_v28 = vpop.eup %917  ;;  %628 = vst.msk [vmem:[%s1112_s29 + $0x30] sm:$0xff] %vm621_vm0, %v595_v18  ;;  %v597_v29 = vmul.f32 %v916_v23, %v301_v13  ;;  %943 = vpow2.f32 %v827_v8  ;;  %v310_v23 = vld [vmem:[%s1099_s26 + $0x88] sm:$0xff] }
  0x3c   : > { %v920_v33 = vpop.eup %919  ;;  %629 = vst.msk [vmem:[%s1112_s29 + $0x38] sm:$0xff] %vm621_vm0, %v596_v24  ;;  %v598_v34 = vmul.f32 %v918_v28, %v302_v19  ;;  %945 = vpow2.f32 %v828_v14 }
  0x3d   : > { %v922_v38 = vpop.eup %921  ;;  %630 = vst.msk [vmem:[%s1112_s29 + $0x40] sm:$0xff] %vm621_vm0, %v597_v29  ;;  %v599_v39 = vmul.f32 %v920_v33, %v303_v25  ;;  %947 = vpow2.f32 %v829_v20  ;;  %v309_v20 = vld [vmem:[%s1099_s26 + $0x80] sm:$0xff] }
  0x3e   : > { %v924_v42 = vpop.eup %923  ;;  %631 = vst.msk [vmem:[%s1112_s29 + $0x48] sm:$0xff] %vm621_vm0, %v598_v34  ;;  %v600_v43 = vmul.f32 %v922_v38, %v304_v30  ;;  %949 = vpow2.f32 %v830_v26  ;;  %v311_v26 = vld [vmem:[%s1099_s26 + $0x90] sm:$0xff]  ;;  %v312_v30 = vld [vmem:[%s1099_s26 + $0x98] sm:$0xff]  ;;  %v313_v33 = vld [vmem:[%s1099_s26 + $0xa0] sm:$0xff] }
  0x3f   : > { %v926_v46 = vpop.eup %925  ;;  %632 = vst.msk [vmem:[%s1112_s29 + $0x50] sm:$0xff] %vm621_vm0, %v599_v39  ;;  %v601_v47 = vmul.f32 %v924_v42, %v305_v35  ;;  %951 = vpow2.f32 %v831_v31  ;;  %v315_v39 = vld [vmem:[%s1099_s26 + $0xb0] sm:$0xff]  ;;  %v316_v42 = vld [vmem:[%s1099_s26 + $0xb8] sm:$0xff] }
  0x40   : > { %v928_v50 = vpop.eup %927  ;;  %633 = vst.msk [vmem:[%s1112_s29 + $0x58] sm:$0xff] %vm621_vm0, %v600_v43  ;;  %v602_v51 = vmul.f32 %v926_v46, %v306_v40  ;;  %953 = vpow2.f32 %v832_v36  ;;  %v314_v36 = vld [vmem:[%s1099_s26 + $0xa8] sm:$0xff] }
  0x41   : > { %v930_v53 = vpop.eup %929  ;;  %634 = vst.msk [vmem:[%s1112_s29 + $0x60] sm:$0xff] %vm621_vm0, %v601_v47  ;;  %v603_v54 = vmul.f32 %v928_v50, %v307_v44  ;;  %955 = vpow2.f32 %v833_v41 }
  0x42   : > { %v932_v55 = vpop.eup %931  ;;  %635 = vst.msk [vmem:[%s1112_s29 + $0x68] sm:$0xff] %vm621_vm0, %v602_v51  ;;  %v604_v56 = vmul.f32 %v930_v53, %v308_v48  ;;  %957 = vpow2.f32 %v834_v45  ;;  %v317_v45 = vld [vmem:[%s1099_s26 + $0xc0] sm:$0xff]  ;;  %v318_v48 = vld [vmem:[%s1099_s26 + $0xc8] sm:$0xff]  ;;  %v319_v51 = vld [vmem:[%s1099_s26 + $0xd0] sm:$0xff] }
  0x43   : > { %v934_v57 = vpop.eup %933  ;;  %636 = vst.msk [vmem:[%s1112_s29 + $0x70] sm:$0xff] %vm621_vm0, %v603_v54  ;;  %v509_v58 = vadd.f32 1.0, %v932_v55  ;;  %959 = vpow2.f32 %v835_v49  ;;  %v320_v54 = vld [vmem:[%s1099_s26 + $0xd8] sm:$0xff] }
  0x44   : > { %v936_v59 = vpop.eup %935  ;;  %637 = vst.msk [vmem:[%s1112_s29 + $0x78] sm:$0xff] %vm621_vm0, %v604_v56  ;;  %v510_v60 = vadd.f32 1.0, %v934_v57  ;;  %961 = vpow2.f32 %v836_v52  ;;  %v321_v57 = vld [vmem:[%s1099_s26 + $0xe0] sm:$0xff] }
  0x45   : > { %v938_v61 = vpop.eup %937  ;;  %963 = vrcp.f32 %v509_v58  ;;  %v511_v62 = vadd.f32 1.0, %v936_v59 }
  0x46   : > { %v940_v63 = vpop.eup %939  ;;  %965 = vrcp.f32 %v510_v60  ;;  %v512_v0 = vadd.f32 1.0, %v938_v61  ;;  %v322_v60 = vld [vmem:[%s1099_s26 + $0xe8] sm:$0xff] }
  0x47   : > { %v942_v1 = vpop.eup %941  ;;  %967 = vrcp.f32 %v511_v62  ;;  %v513_v2 = vadd.f32 1.0, %v940_v63  ;;  %v323_v63 = vld [vmem:[%s1099_s26 + $0xf0] sm:$0xff] }
  0x48   : > { %v944_v3 = vpop.eup %943  ;;  %969 = vrcp.f32 %v512_v0  ;;  %v514_v4 = vadd.f32 1.0, %v942_v1 }
  0x49   : > { %v946_v5 = vpop.eup %945  ;;  %971 = vrcp.f32 %v513_v2  ;;  %v515_v6 = vadd.f32 1.0, %v944_v3  ;;  %v324_v2 = vld [vmem:[%s1099_s26 + $0xf8] sm:$0xff] }
  0x4a   : > { %v948_v7 = vpop.eup %947  ;;  %973 = vrcp.f32 %v514_v4  ;;  %v516_v8 = vadd.f32 1.0, %v946_v5 }
  0x4b   : > { %v950_v9 = vpop.eup %949  ;;  %975 = vrcp.f32 %v515_v6  ;;  %v517_v10 = vadd.f32 1.0, %v948_v7 }
  0x4c   : > { %v952_v11 = vpop.eup %951  ;;  %977 = vrcp.f32 %v516_v8  ;;  %v518_v12 = vadd.f32 1.0, %v950_v9 }
  0x4d   : > { %v954_v13 = vpop.eup %953  ;;  %979 = vrcp.f32 %v517_v10  ;;  %v519_v14 = vadd.f32 1.0, %v952_v11 }
  0x4e   : > { %v956_v15 = vpop.eup %955  ;;  %981 = vrcp.f32 %v518_v12  ;;  %v520_v16 = vadd.f32 1.0, %v954_v13 }
  0x4f   : > { %v958_v17 = vpop.eup %957  ;;  %983 = vrcp.f32 %v519_v14  ;;  %v521_v18 = vadd.f32 1.0, %v956_v15 }
  0x50   : > { %v960_v19 = vpop.eup %959  ;;  %985 = vrcp.f32 %v520_v16  ;;  %v522_v21 = vadd.f32 1.0, %v958_v17 }
  0x51   : > { %v962_v22 = vpop.eup %961  ;;  %987 = vrcp.f32 %v521_v18  ;;  %v523_v24 = vadd.f32 1.0, %v960_v19 }
  0x52   : > { %v964_v25 = vpop.eup %963  ;;  %989 = vrcp.f32 %v522_v21  ;;  %v524_v27 = vadd.f32 1.0, %v962_v22 }
  0x53   : > { %v966_v28 = vpop.eup %965  ;;  %v605_v29 = vmul.f32 %v964_v25, %v309_v20  ;;  %991 = vrcp.f32 %v523_v24 }
  0x54   : > { %v968_v31 = vpop.eup %967  ;;  %v606_v32 = vmul.f32 %v966_v28, %v310_v23  ;;  %993 = vrcp.f32 %v524_v27 }
  0x55   : > { %v970_v34 = vpop.eup %969  ;;  %638 = vst.msk [vmem:[%s1112_s29 + $0x80] sm:$0xff] %vm621_vm0, %v605_v29  ;;  %v607_v35 = vmul.f32 %v968_v31, %v311_v26 }
  0x56   : > { %v972_v37 = vpop.eup %971  ;;  %639 = vst.msk [vmem:[%s1112_s29 + $0x88] sm:$0xff] %vm621_vm0, %v606_v32  ;;  %v608_v38 = vmul.f32 %v970_v34, %v312_v30 }
  0x57   : > { %v974_v40 = vpop.eup %973  ;;  %640 = vst.msk [vmem:[%s1112_s29 + $0x90] sm:$0xff] %vm621_vm0, %v607_v35  ;;  %v609_v41 = vmul.f32 %v972_v37, %v313_v33 }
  0x58   : > { %v976_v43 = vpop.eup %975  ;;  %641 = vst.msk [vmem:[%s1112_s29 + $0x98] sm:$0xff] %vm621_vm0, %v608_v38  ;;  %v610_v44 = vmul.f32 %v974_v40, %v314_v36 }
  0x59   : > { %v978_v46 = vpop.eup %977  ;;  %642 = vst.msk [vmem:[%s1112_s29 + $0xa0] sm:$0xff] %vm621_vm0, %v609_v41  ;;  %v611_v47 = vmul.f32 %v976_v43, %v315_v39 }
  0x5a   : > { %v980_v49 = vpop.eup %979  ;;  %643 = vst.msk [vmem:[%s1112_s29 + $0xa8] sm:$0xff] %vm621_vm0, %v610_v44  ;;  %v612_v50 = vmul.f32 %v978_v46, %v316_v42 }
  0x5b   : > { %v982_v52 = vpop.eup %981  ;;  %644 = vst.msk [vmem:[%s1112_s29 + $0xb0] sm:$0xff] %vm621_vm0, %v611_v47  ;;  %v613_v53 = vmul.f32 %v980_v49, %v317_v45 }
  0x5c   : > { %v984_v55 = vpop.eup %983  ;;  %645 = vst.msk [vmem:[%s1112_s29 + $0xb8] sm:$0xff] %vm621_vm0, %v612_v50  ;;  %v614_v56 = vmul.f32 %v982_v52, %v318_v48 }
  0x5d   : > { %v986_v58 = vpop.eup %985  ;;  %646 = vst.msk [vmem:[%s1112_s29 + $0xc0] sm:$0xff] %vm621_vm0, %v613_v53  ;;  %v615_v59 = vmul.f32 %v984_v55, %v319_v51 }
  0x5e   : > { %v988_v61 = vpop.eup %987  ;;  %647 = vst.msk [vmem:[%s1112_s29 + $0xc8] sm:$0xff] %vm621_vm0, %v614_v56  ;;  %v616_v62 = vmul.f32 %v986_v58, %v320_v54 }
  0x5f   : > { %v990_v0 = vpop.eup %989  ;;  %648 = vst.msk [vmem:[%s1112_s29 + $0xd0] sm:$0xff] %vm621_vm0, %v615_v59  ;;  %v617_v1 = vmul.f32 %v988_v61, %v321_v57 }
  0x60   : > { %v992_v3 = vpop.eup %991  ;;  %649 = vst.msk [vmem:[%s1112_s29 + $0xd8] sm:$0xff] %vm621_vm0, %v616_v62  ;;  %v618_v4 = vmul.f32 %v990_v0, %v322_v60 }
  0x61   : > { %v994_v5 = vpop.eup %993  ;;  %650 = vst.msk [vmem:[%s1112_s29 + $0xe0] sm:$0xff] %vm621_vm0, %v617_v1  ;;  %v619_v6 = vmul.f32 %v992_v3, %v323_v63 }
  0x62   : > { %651 = vst.msk [vmem:[%s1112_s29 + $0xe8] sm:$0xff] %vm621_vm0, %v618_v4  ;;  %v620_v7 = vmul.f32 %v994_v5, %v324_v2 }
  0x63   : > { %652 = vst.msk [vmem:[%s1112_s29 + $0xf0] sm:$0xff] %vm621_vm0, %v619_v6 }
  0x64   : > { %653 = vst.msk [vmem:[%s1112_s29 + $0xf8] sm:$0xff] %vm621_vm0, %v620_v7 }
  0x65 PF: > { %s13_s14 = sadd.s32 1, %s1017_s14   ;;  %s1243_s12 = smov %s1013_s13 }
  0x66   : > { %p10_p5 = scmp.ge.s32.totalorder %s13_s14, 4   ;;  %s1244_s13 = smov %s1246_s15 }
  0x68   :  { %12 = sbr.rel (!%p10_p5) target bundleno = 2 (0x2), region = 68 }

// kernel: sc_bottleneck_forward.11
= control target key start
LH: loop header
LB: loop body
LE: loop exit
PB: predicated region body
PF: predicated region fallthrough
CT: control target
= control target key end

     0   :  { %s3925_s15 = smov 0   ;;  %s3927_s16 = smov 0   ;;  %s5121_s0 = inlined_call_operand.vmem [shape: f32[2,18,18,4], index: 0, kind: input, shape index: {}]   ;;  %s5122_s1 = inlined_call_operand.vmem [shape: bf16[3,3,4,4], index: 1, kind: input, shape index: {}]   ;;  %s5123_s2 = inlined_call_operand.vmem [shape: f32[1,4], index: 2, kind: input, shape index: {}]   ;;  %s5124_s3 = inlined_call_operand.vmem [shape: f32[1,4], index: 3, kind: input, shape index: {}]   ;;  %s5125_s4 = inlined_call_operand.vmem [shape: f32[2,16,16,4], index: 4, kind: output, shape index: {}]  }
   0x1   :  { %s3929_s17 = smov 0  }
   0x2 LB: > { %s26_s18 = sadd.s32 1, %s3894_s16  ;;  %p3027_p0 = scmp.ge.s32.totalorder %s3898_s17, 1  ;;  %s3898_s17 = sphi %s3929_s17, %s14_s17   ;;  %s3894_s16 = sphi %s3927_s16, %s5207_s16   ;;  %s3890_s15 = sphi %s3925_s15, %s5206_s15  }
   0x3   : > { %p28_p1 = scmp.ge.s32.totalorder %s26_s18, 2  ;;  %p176_p2 = scmp.lt.s32.totalorder %s3898_s17, 3 }
   0x5   : > { %s5209_s18 = smov (%p28_p1, %s26_s18), 0  ;;  %p177_p3 = pnand %p3027_p0, %p176_p2 }
   0x7   : > { %180 = sbr.rel (%p177_p3) target bundleno = 512 (0x200), region = 36 }
   0xc   : > { %v3031_v0 = vld [vmem:[%s5122_s1 + $0x2] sm:$0x3]  ;;  %vm375_vm0 = vcmask 1041408   ;;  %p207_p4 = scmp.lt.s32.totalorder %s3890_s15, 1  ;;  %v275_v2 = vld [vmem:[%s5122_s1] sm:$0x3] }
   0xd   : > { %3842 = vmatprep.subr.msk.bf16.mxu1 %vm375_vm0, %v3031_v0  ;;  %3841 = vmatprep.subr.msk.bf16.mxu0 %vm375_vm0, %v3031_v0  ;;  %v377_v1 = vsel %vm375_vm0, %v3031_v0, 0  ;;  %v3064_v3 = vld [vmem:[%s5122_s1 + $0x4] sm:$0x3]  ;;  %vm326_vm1 = vcmask 31744   ;;  %v589_v18 = vsel %vm375_vm0, %v275_v2, 0 }
   0xe   : > { %3840 = vmatpush3.bf16.msra.mxu1 %v377_v1  ;;  %3534 = vmatpush3.bf16.msra.mxu0 %v377_v1  ;;  %s5211_s15 = smov (!%p207_p4, %s3890_s15), 1  ;;  %v851_v15 = vsel %vm375_vm0, %v3064_v3, 0  ;;  %v3997_v24 = vld [vmem:[%s5122_s1 + $0x6] sm:$0x3]  ;;  %v4002_v25 = vld [vmem:[%s5122_s1 + $0x8] sm:$0x3] }
   0xf   : > { %3843 = vmatprep.subr.msk.bf16.mxu1 %vm375_vm0, %v275_v2  ;;  %3844 = vmatprep.subr.msk.bf16.mxu0 %vm375_vm0, %v3064_v3  ;;  %s3851_s25 = smul.u32 432, %s5211_s15  ;;  %s3379_s21 = sshll.u32 %s5211_s15, 8 }
  0x11   : > { %s3963_s28 = scalar_lea.vmem %s5121_s0, %s3851_s25  ;;  %s4906_s25 = scalar_lea.vmem %s5125_s4, %s3379_s21 }
  0x12   : > { %v276_v4 = vld [vmem:[%s3963_s28 + $0x1] sm:$0xff]  ;;  %v277_v5 = vld [vmem:[%s3963_s28 + $0x9] sm:$0xff]  ;;  %v278_v9 = vld [vmem:[%s3963_s28 + $0x19] sm:$0xff] }
  0x13   : > { %v292_v6 = vld [vmem:[%s3963_s28 + $0xc1] sm:$0xff]  ;;  %v308_v7 = vpack.c.bf16 %v277_v5, %v276_v4  ;;  %v293_v8 = vld [vmem:[%s3963_s28 + $0xc9] sm:$0xff]  ;;  %v294_v13 = vld [vmem:[%s3963_s28 + $0xd9] sm:$0xff] }
  0x14   : > { %v279_v10 = vld [vmem:[%s3963_s28 + $0x21] sm:$0xff]  ;;  %v3971_v11 = vpack.c.bf16 %v293_v8, %v292_v6  ;;  %v280_v16 = vld [vmem:[%s3963_s28 + $0x31] sm:$0xff]  ;;  %v281_v19 = vld [vmem:[%s3963_s28 + $0x39] sm:$0xff]  ;;  %v1442_v8 = vsel %vm375_vm0, %v4002_v25, 0 }
  0x15   : > { %v3973_v12 = vpack.c.bf16 %v279_v10, %v278_v9  ;;  %v295_v14 = vld [vmem:[%s3963_s28 + $0xe1] sm:$0xff]  ;;  %3535 = vmatprep.mubr.msk.bf16.mxu0 %vm326_vm1, %v308_v7  ;;  %v296_v20 = vld [vmem:[%s3963_s28 + $0xf1] sm:$0xff]  ;;  %v297_v21 = vld [vmem:[%s3963_s28 + $0xf9] sm:$0xff]  ;;  %v3990_v22 = vpack.c.bf16 %v281_v19, %v280_v16  ;;  %v1148_v10 = vsel %vm375_vm0, %v3997_v24, 0 }
  0x16   : > { %v3980_v17 = vpack.c.bf16 %v295_v14, %v294_v13  ;;  %3551 = vmatprep.mubr.msk.bf16.mxu1 %vm326_vm1, %v3971_v11  ;;  %v3992_v23 = vpack.c.bf16 %v297_v21, %v296_v20  ;;  %v282_v26 = vld [vmem:[%s3963_s28 + $0x49] sm:$0xff]  ;;  %v283_v27 = vld [vmem:[%s3963_s28 + $0x51] sm:$0xff]  ;;  %v284_v30 = vld [vmem:[%s3963_s28 + $0x61] sm:$0xff] }
  0x17   : > { %3536 = vmatmul.mubr.msk.bf16.vlgmr.msra.gmra.mxu0 %vm326_vm1, %v3973_v12  ;;  %v298_v28 = vld [vmem:[%s3963_s28 + $0x109] sm:$0xff]  ;;  %v299_v29 = vld [vmem:[%s3963_s28 + $0x111] sm:$0xff]  ;;  %v300_v32 = vld [vmem:[%s3963_s28 + $0x121] sm:$0xff]  ;;  %v4020_v34 = vpack.c.bf16 %v283_v27, %v282_v26 }
  0x18   : > { %3552 = vmatmul.mubr.msk.bf16.vlgmr.msra.gmra.mxu1 %vm326_vm1, %v3980_v17  ;;  %3602 = vmatpush3.bf16.msra.mxu0 %v851_v15  ;;  %v285_v31 = vld [vmem:[%s3963_s28 + $0x69] sm:$0xff]  ;;  %v4024_v35 = vpack.c.bf16 %v299_v29, %v298_v28  ;;  %v286_v38 = vld [vmem:[%s3963_s28 + $0x79] sm:$0xff]  ;;  %v287_v39 = vld [vmem:[%s3963_s28 + $0x81] sm:$0xff] }
  0x19   : > { %3568 = vmatpush3.bf16.msra.mxu1 %v589_v18  ;;  %3539 = vmatprep.mubr.msk.bf16.mxu0 %vm326_vm1, %v3990_v22  ;;  %v301_v33 = vld [vmem:[%s3963_s28 + $0x129] sm:$0xff]  ;;  %v4026_v36 = vpack.c.bf16 %v285_v31, %v284_v30  ;;  %v302_v40 = vld [vmem:[%s3963_s28 + $0x139] sm:$0xff]  ;;  %v303_v41 = vld [vmem:[%s3963_s28 + $0x141] sm:$0xff]  ;;  %v4046_v46 = vpack.c.bf16 %v287_v39, %v286_v38 }
  0x1a   : > { %3555 = vmatprep.mubr.msk.bf16.mxu1 %vm326_vm1, %v3992_v23  ;;  %3845 = vmatprep.subr.msk.bf16.mxu1 %vm375_vm0, %v3997_v24  ;;  %v4028_v37 = vpack.c.bf16 %v301_v33, %v300_v32  ;;  %v288_v42 = vld [vmem:[%s3963_s28 + $0x91] sm:$0xff]  ;;  %v289_v43 = vld [vmem:[%s3963_s28 + $0x99] sm:$0xff]  ;;  %v4048_v47 = vpack.c.bf16 %v303_v41, %v302_v40  ;;  %v290_v50 = vld [vmem:[%s3963_s28 + $0xa9] sm:$0xff] }
  0x1b   : > { %3846 = vmatprep.subr.msk.bf16.mxu0 %vm375_vm0, %v4002_v25  ;;  %v304_v44 = vld [vmem:[%s3963_s28 + $0x151] sm:$0xff]  ;;  %v305_v45 = vld [vmem:[%s3963_s28 + $0x159] sm:$0xff]  ;;  %v4050_v48 = vpack.c.bf16 %v289_v43, %v288_v42  ;;  %v306_v52 = vld [vmem:[%s3963_s28 + $0x169] sm:$0xff] }
  0x1c   : > { %v4052_v49 = vpack.c.bf16 %v305_v45, %v304_v44  ;;  %v291_v51 = vld [vmem:[%s3963_s28 + $0xb1] sm:$0xff]  ;;  %v752_v54 = vld [vmem:[%s3963_s28 + $0x2] sm:$0xff]  ;;  %v754_v62 = vld [vmem:[%s3963_s28 + $0x1a] sm:$0xff] }
  0x1d   : > { %v307_v53 = vld [vmem:[%s3963_s28 + $0x171] sm:$0xff]  ;;  %v227_v56 = vld [vmem:[%s3963_s28] sm:$0xff]  ;;  %v228_v57 = vld [vmem:[%s3963_s28 + $0x8] sm:$0xff]  ;;  %v4070_v58 = vpack.c.bf16 %v291_v51, %v290_v50 }
  0x1e   : > { %v753_v55 = vld [vmem:[%s3963_s28 + $0xa] sm:$0xff]  ;;  %v4072_v59 = vpack.c.bf16 %v307_v53, %v306_v52  ;;  %v259_v61 = vpack.c.bf16 %v228_v57, %v227_v56  ;;  %v755_v63 = vld [vmem:[%s3963_s28 + $0x22] sm:$0xff]  ;;  %v229_v0 = vld [vmem:[%s3963_s28 + $0x18] sm:$0xff] }
  0x1f   : > { %3540 = vmatmul.mubr.msk.bf16.gmra.mxu0 %vm326_vm1, %v4020_v34  ;;  %v784_v60 = vpack.c.bf16 %v753_v55, %v752_v54  ;;  %v230_v1 = vld [vmem:[%s3963_s28 + $0x20] sm:$0xff]  ;;  %v231_v2 = vld [vmem:[%s3963_s28 + $0x30] sm:$0xff]  ;;  %v232_v3 = vld [vmem:[%s3963_s28 + $0x38] sm:$0xff]  ;;  %v4086_v4 = vpack.c.bf16 %v755_v63, %v754_v62 }
  0x20   : > { %3556 = vmatmul.mubr.msk.bf16.gmra.mxu1 %vm326_vm1, %v4024_v35  ;;  %3543 = vmatprep.mubr.msk.bf16.mxu0 %vm326_vm1, %v4026_v36  ;;  %v756_v5 = vld [vmem:[%s3963_s28 + $0x32] sm:$0xff]  ;;  %v757_v6 = vld [vmem:[%s3963_s28 + $0x3a] sm:$0xff]  ;;  %v4090_v7 = vpack.c.bf16 %v230_v1, %v229_v0  ;;  %v4094_v9 = vpack.c.bf16 %v232_v3, %v231_v2  ;;  %v4105_v14 = vld [vmem:[%s5122_s1 + $0xa] sm:$0x3] }
  0x21   : > { %3559 = vmatprep.mubr.msk.bf16.mxu1 %vm326_vm1, %v4028_v37  ;;  %v4098_v13 = vpack.c.bf16 %v757_v6, %v756_v5  ;;  %v4110_v15 = vld [vmem:[%s5122_s1 + $0xc] sm:$0x3]  ;;  %v759_v19 = vld [vmem:[%s3963_s28 + $0x52] sm:$0xff]  ;;  %v760_v21 = vld [vmem:[%s3963_s28 + $0x62] sm:$0xff] }
  0x22   : > { %v233_v16 = vld [vmem:[%s3963_s28 + $0x48] sm:$0xff]  ;;  %v234_v20 = vld [vmem:[%s3963_s28 + $0x50] sm:$0xff]  ;;  %v235_v25 = vld [vmem:[%s3963_s28 + $0x60] sm:$0xff] }
  0x23   : > { %v758_v18 = vld [vmem:[%s3963_s28 + $0x4a] sm:$0xff]  ;;  %v4132_v28 = vpack.c.bf16 %v234_v20, %v233_v16  ;;  %v237_v31 = vld [vmem:[%s3963_s28 + $0x78] sm:$0xff]  ;;  %v763_v33 = vld [vmem:[%s3963_s28 + $0x82] sm:$0xff] }
  0x24   : > { %v761_v24 = vld [vmem:[%s3963_s28 + $0x6a] sm:$0xff]  ;;  %v4128_v27 = vpack.c.bf16 %v759_v19, %v758_v18  ;;  %v762_v32 = vld [vmem:[%s3963_s28 + $0x7a] sm:$0xff]  ;;  %v764_v39 = vld [vmem:[%s3963_s28 + $0x92] sm:$0xff] }
  0x25   : > { %v236_v26 = vld [vmem:[%s3963_s28 + $0x68] sm:$0xff]  ;;  %v4134_v29 = vpack.c.bf16 %v761_v24, %v760_v21  ;;  %v238_v38 = vld [vmem:[%s3963_s28 + $0x80] sm:$0xff]  ;;  %v239_v41 = vld [vmem:[%s3963_s28 + $0x90] sm:$0xff]  ;;  %v4154_v43 = vpack.c.bf16 %v763_v33, %v762_v32 }
  0x26   : > { %v4136_v30 = vpack.c.bf16 %v236_v26, %v235_v25  ;;  %v765_v40 = vld [vmem:[%s3963_s28 + $0x9a] sm:$0xff]  ;;  %v4156_v44 = vpack.c.bf16 %v238_v38, %v237_v31  ;;  %v241_v51 = vld [vmem:[%s3963_s28 + $0xa8] sm:$0xff]  ;;  %v767_v53 = vld [vmem:[%s3963_s28 + $0xb2] sm:$0xff] }
  0x27   : > { %3544 = vmatmul.mubr.msk.bf16.gmra.mxu0 %vm326_vm1, %v4046_v46  ;;  %v240_v42 = vld [vmem:[%s3963_s28 + $0x98] sm:$0xff]  ;;  %v4158_v45 = vpack.c.bf16 %v765_v40, %v764_v39  ;;  %v766_v52 = vld [vmem:[%s3963_s28 + $0xaa] sm:$0xff]  ;;  %v768_v55 = vld [vmem:[%s3963_s28 + $0xc2] sm:$0xff] }
  0x28   : > { %3560 = vmatmul.mubr.msk.bf16.gmra.mxu1 %vm326_vm1, %v4048_v47  ;;  %3547 = vmatprep.mubr.msk.bf16.mxu0 %vm326_vm1, %v4050_v48  ;;  %v4160_v50 = vpack.c.bf16 %v240_v42, %v239_v41  ;;  %v242_v54 = vld [vmem:[%s3963_s28 + $0xb0] sm:$0xff]  ;;  %v243_v57 = vld [vmem:[%s3963_s28 + $0xc0] sm:$0xff]  ;;  %v245_v1 = vld [vmem:[%s3963_s28 + $0xd8] sm:$0xff] }
  0x29   : > { %3563 = vmatprep.mubr.msk.bf16.mxu1 %vm326_vm1, %v4052_v49  ;;  %v769_v56 = vld [vmem:[%s3963_s28 + $0xca] sm:$0xff]  ;;  %v4180_v62 = vpack.c.bf16 %v242_v54, %v241_v51  ;;  %v770_v2 = vld [vmem:[%s3963_s28 + $0xda] sm:$0xff]  ;;  %v771_v3 = vld [vmem:[%s3963_s28 + $0xe2] sm:$0xff] }
  0x2a   : > { %v4182_v63 = vpack.c.bf16 %v769_v56, %v768_v55  ;;  %v246_v5 = vld [vmem:[%s3963_s28 + $0xe0] sm:$0xff]  ;;  %v772_v6 = vld [vmem:[%s3963_s28 + $0xf2] sm:$0xff]  ;;  %v4202_v18 = vpack.c.bf16 %v771_v3, %v770_v2  ;;  %v249_v24 = vld [vmem:[%s3963_s28 + $0x108] sm:$0xff] }
  0x2b   : > { %v248_v16 = vld [vmem:[%s3963_s28 + $0xf8] sm:$0xff]  ;;  %v4204_v19 = vpack.c.bf16 %v246_v5, %v245_v1  ;;  %v774_v25 = vld [vmem:[%s3963_s28 + $0x10a] sm:$0xff]  ;;  %v776_v32 = vld [vmem:[%s3963_s28 + $0x122] sm:$0xff] }
  0x2c   : > { %v775_v26 = vld [vmem:[%s3963_s28 + $0x112] sm:$0xff]  ;;  %v777_v33 = vld [vmem:[%s3963_s28 + $0x12a] sm:$0xff]  ;;  %v251_v38 = vld [vmem:[%s3963_s28 + $0x120] sm:$0xff] }
  0x2d   : > { %v250_v31 = vld [vmem:[%s3963_s28 + $0x110] sm:$0xff]  ;;  %v252_v39 = vld [vmem:[%s3963_s28 + $0x128] sm:$0xff]  ;;  %v4226_v40 = vpack.c.bf16 %v775_v26, %v774_v25  ;;  %v4230_v42 = vpack.c.bf16 %v777_v33, %v776_v32  ;;  %v254_v55 = vld [vmem:[%s3963_s28 + $0x140] sm:$0xff]  ;;  %v1736_v32 = vsel %vm375_vm0, %v4105_v14, 0 }
  0x2e   : > { %v4228_v41 = vpack.c.bf16 %v250_v31, %v249_v24  ;;  %v4232_v51 = vpack.c.bf16 %v252_v39, %v251_v38  ;;  %v779_v54 = vld [vmem:[%s3963_s28 + $0x142] sm:$0xff]  ;;  %v780_v56 = vld [vmem:[%s3963_s28 + $0x152] sm:$0xff]  ;;  %v2033_v31 = vsel %vm375_vm0, %v4110_v15, 0  ;;  %v3309_v33 = vld [vmem:[%s5122_s1 + $0xe] sm:$0x3] }
  0x2f   : > { %3548 = vmatmul.mubr.msk.bf16.gmra.mxu0 %vm326_vm1, %v4070_v58  ;;  %v256_v1 = vld [vmem:[%s3963_s28 + $0x158] sm:$0xff]  ;;  %v258_v24 = vld [vmem:[%s3963_s28 + $0x170] sm:$0xff] }
  0x30   : > { %3564 = vmatmul.mubr.msk.bf16.gmra.mxu1 %vm326_vm1, %v4072_v59  ;;  %3603 = vmatprep.mubr.msk.bf16.mxu0 %vm326_vm1, %v784_v60  ;;  %v244_v60 = vld [vmem:[%s3963_s28 + $0xc8] sm:$0xff] }
  0x31   : > { %3569 = vmatprep.mubr.msk.bf16.mxu1 %vm326_vm1, %v259_v61  ;;  %v4178_v61 = vpack.c.bf16 %v767_v53, %v766_v52  ;;  %v4184_v0 = vpack.c.bf16 %v244_v60, %v243_v57  ;;  %v253_v52 = vld [vmem:[%s3963_s28 + $0x138] sm:$0xff]  ;;  %v255_v60 = vld [vmem:[%s3963_s28 + $0x150] sm:$0xff] }
  0x32   : > { %v778_v53 = vld [vmem:[%s3963_s28 + $0x13a] sm:$0xff]  ;;  %v4252_v3 = vpack.c.bf16 %v254_v55, %v253_v52  ;;  %v3210_v55 = vld [vmem:[%s3963_s28 + $0x18a] sm:$0xff] }
  0x33   : > { %v781_v57 = vld [vmem:[%s3963_s28 + $0x15a] sm:$0xff]  ;;  %v4250_v2 = vpack.c.bf16 %v779_v54, %v778_v53  ;;  %v3209_v54 = vld [vmem:[%s3963_s28 + $0x182] sm:$0xff] }
  0x34   : > { %v4254_v5 = vpack.c.bf16 %v781_v57, %v780_v56  ;;  %v3259_v52 = vld [vmem:[%s3963_s28 + $0x1a0] sm:$0xff] }
  0x37   : > { %3604 = vmatmul.mubr.msk.bf16.vlgmr.msra.gmra.mxu0 %vm326_vm1, %v4086_v4 }
  0x38   : > { %3570 = vmatmul.mubr.msk.bf16.vlgmr.msra.gmra.mxu1 %vm326_vm1, %v4090_v7  ;;  %3670 = vmatpush3.bf16.msra.mxu0 %v1442_v8  ;;  %v773_v8 = vld [vmem:[%s3963_s28 + $0xfa] sm:$0xff] }
  0x39   : > { %3636 = vmatpush3.bf16.msra.mxu1 %v1148_v10  ;;  %3573 = vmatprep.mubr.msk.bf16.mxu1 %vm326_vm1, %v4094_v9  ;;  %v247_v10 = vld [vmem:[%s3963_s28 + $0xf0] sm:$0xff]  ;;  %v4206_v20 = vpack.c.bf16 %v773_v8, %v772_v6  ;;  %v4256_v6 = vpack.c.bf16 %v256_v1, %v255_v60 }
  0x3a   : > { %3607 = vmatprep.mubr.msk.bf16.mxu0 %vm326_vm1, %v4098_v13  ;;  %3847 = vmatprep.subr.msk.bf16.mxu1 %vm375_vm0, %v4105_v14  ;;  %v4208_v21 = vpack.c.bf16 %v248_v16, %v247_v10  ;;  %v782_v8 = vld [vmem:[%s3963_s28 + $0x16a] sm:$0xff]  ;;  %v783_v10 = vld [vmem:[%s3963_s28 + $0x172] sm:$0xff] }
  0x3b   : > { %3848 = vmatprep.subr.msk.bf16.mxu0 %vm375_vm0, %v4110_v15  ;;  %v257_v16 = vld [vmem:[%s3963_s28 + $0x168] sm:$0xff]  ;;  %v4270_v25 = vpack.c.bf16 %v783_v10, %v782_v8 }
  0x3c   : > { %v4272_v26 = vpack.c.bf16 %v258_v24, %v257_v16 }
  0x3f   : > { %3608 = vmatmul.mubr.msk.bf16.gmra.mxu0 %vm326_vm1, %v4128_v27 }
  0x40   : > { %3574 = vmatmul.mubr.msk.bf16.gmra.mxu1 %vm326_vm1, %v4132_v28  ;;  %3611 = vmatprep.mubr.msk.bf16.mxu0 %vm326_vm1, %v4134_v29 }
  0x41   : > { %3577 = vmatprep.mubr.msk.bf16.mxu1 %vm326_vm1, %v4136_v30 }
  0x47   : > { %3612 = vmatmul.mubr.msk.bf16.gmra.mxu0 %vm326_vm1, %v4154_v43 }
  0x48   : > { %3578 = vmatmul.mubr.msk.bf16.gmra.mxu1 %vm326_vm1, %v4156_v44  ;;  %3615 = vmatprep.mubr.msk.bf16.mxu0 %vm326_vm1, %v4158_v45 }
  0x49   : > { %3581 = vmatprep.mubr.msk.bf16.mxu1 %vm326_vm1, %v4160_v50 }
  0x4f   : > { %3616 = vmatmul.mubr.msk.bf16.gmra.mxu0 %vm326_vm1, %v4178_v61 }
  0x50   : > { %3582 = vmatmul.mubr.msk.bf16.gmra.mxu1 %vm326_vm1, %v4180_v62  ;;  %3619 = vmatprep.mubr.msk.bf16.mxu0 %vm326_vm1, %v4182_v63 }
  0x51   : > { %3585 = vmatprep.mubr.msk.bf16.mxu1 %vm326_vm1, %v4184_v0 }
  0x57   : > { %3620 = vmatmul.mubr.msk.bf16.gmra.mxu0 %vm326_vm1, %v4202_v18 }
  0x58   : > { %3586 = vmatmul.mubr.msk.bf16.gmra.mxu1 %vm326_vm1, %v4204_v19  ;;  %3623 = vmatprep.mubr.msk.bf16.mxu0 %vm326_vm1, %v4206_v20 }
  0x59   : > { %3589 = vmatprep.mubr.msk.bf16.mxu1 %vm326_vm1, %v4208_v21 }
  0x5f   : > { %3624 = vmatmul.mubr.msk.bf16.gmra.mxu0 %vm326_vm1, %v4226_v40 }
  0x60   : > { %3590 = vmatmul.mubr.msk.bf16.gmra.mxu1 %vm326_vm1, %v4228_v41  ;;  %3627 = vmatprep.mubr.msk.bf16.mxu0 %vm326_vm1, %v4230_v42 }
  0x61   : > { %3593 = vmatprep.mubr.msk.bf16.mxu1 %vm326_vm1, %v4232_v51 }
  0x67   : > { %3628 = vmatmul.mubr.msk.bf16.gmra.mxu0 %vm326_vm1, %v4250_v2 }
  0x68   : > { %3594 = vmatmul.mubr.msk.bf16.gmra.mxu1 %vm326_vm1, %v4252_v3  ;;  %3631 = vmatprep.mubr.msk.bf16.mxu0 %vm326_vm1, %v4254_v5 }
  0x69   : > { %3597 = vmatprep.mubr.msk.bf16.mxu1 %vm326_vm1, %v4256_v6 }
  0x6f   : > { %3632 = vmatmul.mubr.msk.bf16.gmra.mxu0 %vm326_vm1, %v4270_v25 }
  0x70   : > { %3598 = vmatmul.mubr.msk.bf16.gmra.mxu1 %vm326_vm1, %v4272_v26  ;;  %3671 = vmatprep.mubr.msk.bf16.mxu0 %vm326_vm1, %v3973_v12  ;;  %v3358_v12 = vld [vmem:[%s5122_s1 + $0x10] sm:$0x3] }
  0x71   : > { %3637 = vmatprep.mubr.msk.bf16.mxu1 %vm326_vm1, %v4090_v7 }
  0x77   : > { %3672 = vmatmul.mubr.msk.bf16.vlgmr.msra.gmra.mxu0 %vm326_vm1, %v3990_v22 }
  0x78   : > { %3638 = vmatmul.mubr.msk.bf16.vlgmr.msra.gmra.mxu1 %vm326_vm1, %v4094_v9  ;;  %3738 = vmatpush3.bf16.msra.mxu0 %v2033_v31 }
  0x79   : > { %3704 = vmatpush3.bf16.msra.mxu1 %v1736_v32  ;;  %3641 = vmatprep.mubr.msk.bf16.mxu1 %vm326_vm1, %v4132_v28 }
  0x7a   : > { %3675 = vmatprep.mubr.msk.bf16.mxu0 %vm326_vm1, %v4020_v34  ;;  %3849 = vmatprep.subr.msk.bf16.mxu1 %vm375_vm0, %v3309_v33 }
  0x7b   : > { %3850 = vmatprep.subr.msk.bf16.mxu0 %vm375_vm0, %v3358_v12 }
  0x7f   : > { %3676 = vmatmul.mubr.msk.bf16.gmra.mxu0 %vm326_vm1, %v4026_v36 }
  0x80   : > { %3642 = vmatmul.mubr.msk.bf16.gmra.mxu1 %vm326_vm1, %v4136_v30  ;;  %3679 = vmatprep.mubr.msk.bf16.mxu0 %vm326_vm1, %v4046_v46 }
  0x81   : > { %3645 = vmatprep.mubr.msk.bf16.mxu1 %vm326_vm1, %v4156_v44 }
  0x87   : > { %3680 = vmatmul.mubr.msk.bf16.gmra.mxu0 %vm326_vm1, %v4050_v48  ;;  %v2621_v48 = vsel %vm375_vm0, %v3358_v12, 0 }
  0x88   : > { %3646 = vmatmul.mubr.msk.bf16.gmra.mxu1 %vm326_vm1, %v4160_v50  ;;  %3683 = vmatprep.mubr.msk.bf16.mxu0 %vm326_vm1, %v4070_v58 }
  0x89   : > { %3649 = vmatprep.mubr.msk.bf16.mxu1 %vm326_vm1, %v4180_v62 }
  0x8f   : > { %3684 = vmatmul.mubr.msk.bf16.gmra.mxu0 %vm326_vm1, %v3971_v11  ;;  %v3160_v11 = vld [vmem:[%s3963_s28 + $0x181] sm:$0xff] }
  0x90   : > { %3650 = vmatmul.mubr.msk.bf16.gmra.mxu1 %vm326_vm1, %v4184_v0  ;;  %3687 = vmatprep.mubr.msk.bf16.mxu0 %vm326_vm1, %v3980_v17  ;;  %v3161_v17 = vld [vmem:[%s3963_s28 + $0x189] sm:$0xff] }
  0x91   : > { %3653 = vmatprep.mubr.msk.bf16.mxu1 %vm326_vm1, %v4204_v19 }
  0x97   : > { %3688 = vmatmul.mubr.msk.bf16.gmra.mxu0 %vm326_vm1, %v3992_v23  ;;  %v3111_v23 = vld [vmem:[%s3963_s28 + $0x180] sm:$0xff] }
  0x98   : > { %3654 = vmatmul.mubr.msk.bf16.gmra.mxu1 %vm326_vm1, %v4208_v21  ;;  %3691 = vmatprep.mubr.msk.bf16.mxu0 %vm326_vm1, %v4024_v35  ;;  %v3112_v35 = vld [vmem:[%s3963_s28 + $0x188] sm:$0xff] }
  0x99   : > { %3657 = vmatprep.mubr.msk.bf16.mxu1 %vm326_vm1, %v4228_v41 }
  0x9f   : > { %3692 = vmatmul.mubr.msk.bf16.gmra.mxu0 %vm326_vm1, %v4028_v37  ;;  %v4354_v37 = vpack.c.bf16 %v3161_v17, %v3160_v11 }
  0xa0   : > { %3658 = vmatmul.mubr.msk.bf16.gmra.mxu1 %vm326_vm1, %v4232_v51  ;;  %3695 = vmatprep.mubr.msk.bf16.mxu0 %vm326_vm1, %v4048_v47  ;;  %v1096_v47 = vpack.c.bf16 %v3112_v35, %v3111_v23  ;;  %v3285_v23 = vld [vmem:[%s3963_s28 + $0x91] sm:$0xff]  ;;  %v3286_v35 = vld [vmem:[%s3963_s28 + $0x99] sm:$0xff] }
  0xa1   : > { %3661 = vmatprep.mubr.msk.bf16.mxu1 %vm326_vm1, %v4252_v3 }
  0xa7   : > { %3696 = vmatmul.mubr.msk.bf16.gmra.mxu0 %vm326_vm1, %v4052_v49  ;;  %v2327_v49 = vsel %vm375_vm0, %v3309_v33, 0 }
  0xa8   : > { %3662 = vmatmul.mubr.msk.bf16.gmra.mxu1 %vm326_vm1, %v4256_v6  ;;  %3699 = vmatprep.mubr.msk.bf16.mxu0 %vm326_vm1, %v4072_v59 }
  0xa9   : > { %3665 = vmatprep.mubr.msk.bf16.mxu1 %vm326_vm1, %v4272_v26 }
  0xaf   : > { %3700 = vmatmul.mubr.msk.bf16.gmra.mxu0 %vm326_vm1, %v4354_v37 }
  0xb0   : > { %3666 = vmatmul.mubr.msk.bf16.gmra.mxu1 %vm326_vm1, %v1096_v47  ;;  %3739 = vmatprep.mubr.msk.bf16.mxu0 %vm326_vm1, %v4094_v9 }
  0xb1   : > { %3705 = vmatprep.mubr.msk.bf16.mxu1 %vm326_vm1, %v4086_v4 }
  0xb7   : > { %3740 = vmatmul.mubr.msk.bf16.vlgmr.msra.gmra.mxu0 %vm326_vm1, %v4132_v28 }
  0xb8   : > { %3706 = vmatmul.mubr.msk.bf16.vlgmr.msra.gmra.mxu1 %vm326_vm1, %v4098_v13  ;;  %3806 = vmatpush3.bf16.msra.mxu0 %v2621_v48 }
  0xb9   : > { %3772 = vmatpush3.bf16.msra.mxu1 %v2327_v49  ;;  %3709 = vmatprep.mubr.msk.bf16.mxu1 %vm326_vm1, %v4128_v27 }
  0xba   : > { %3743 = vmatprep.mubr.msk.bf16.mxu0 %vm326_vm1, %v4136_v30 }
  0xbf   : > { %3744 = vmatmul.mubr.msk.bf16.gmra.mxu0 %vm326_vm1, %v4156_v44 }
  0xc0   : > { %3710 = vmatmul.mubr.msk.bf16.gmra.mxu1 %vm326_vm1, %v4134_v29  ;;  %3747 = vmatprep.mubr.msk.bf16.mxu0 %vm326_vm1, %v4160_v50 }
  0xc1   : > { %3713 = vmatprep.mubr.msk.bf16.mxu1 %vm326_vm1, %v4154_v43 }
  0xc7   : > { %3748 = vmatmul.mubr.msk.bf16.gmra.mxu0 %vm326_vm1, %v4180_v62 }
  0xc8   : > { %3714 = vmatmul.mubr.msk.bf16.gmra.mxu1 %vm326_vm1, %v4158_v45  ;;  %3751 = vmatprep.mubr.msk.bf16.mxu0 %vm326_vm1, %v4184_v0 }
  0xc9   : > { %3717 = vmatprep.mubr.msk.bf16.mxu1 %vm326_vm1, %v4178_v61 }
  0xcf   : > { %3752 = vmatmul.mubr.msk.bf16.gmra.mxu0 %vm326_vm1, %v4204_v19 }
  0xd0   : > { %3718 = vmatmul.mubr.msk.bf16.gmra.mxu1 %vm326_vm1, %v4182_v63  ;;  %3755 = vmatprep.mubr.msk.bf16.mxu0 %vm326_vm1, %v4208_v21 }
  0xd1   : > { %3721 = vmatprep.mubr.msk.bf16.mxu1 %vm326_vm1, %v4202_v18 }
  0xd7   : > { %v3537_v58 = vpop.f32.mrf.mxu0  ;;  %3756 = vmatmul.mubr.msk.bf16.gmra.mxu0 %vm326_vm1, %v4228_v41 }
  0xd8   : > { %v4399_v59 = vpop.f32.mrf.mxu1  ;;  %3722 = vmatmul.mubr.msk.bf16.gmra.mxu1 %vm326_vm1, %v4206_v20  ;;  %3759 = vmatprep.mubr.msk.bf16.mxu0 %vm326_vm1, %v4232_v51  ;;  %v3258_v51 = vld [vmem:[%s3963_s28 + $0x198] sm:$0xff] }
  0xd9   : > { %v413_v4 = vpop.f32.mrf.mxu0  ;;  %3725 = vmatprep.mubr.msk.bf16.mxu1 %vm326_vm1, %v4226_v40  ;;  %v1981_v60 = vpack.c.bf16 %v3259_v52, %v3258_v51 }
  0xda   : > { %v4407_v7 = vpop.f32.mrf.mxu1 }
  0xdb   : > { %v3538_v9 = vpop.f32.mrf.mxu0 }
  0xdc   : > { %v4409_v14 = vpop.f32.mrf.mxu1 }
  0xdd   : > { %v4411_v15 = vpop.f32.mrf.mxu0 }
  0xde   : > { %v4413_v28 = vpop.f32.mrf.mxu1 }
  0xdf   : > { %v4415_v30 = vpop.f32.mrf.mxu0  ;;  %3760 = vmatmul.mubr.msk.bf16.gmra.mxu0 %vm326_vm1, %v4252_v3  ;;  %v4462_v3 = vpack.c.bf16 %v3210_v55, %v3209_v54 }
  0xe0   : > { %v4419_v44 = vpop.f32.mrf.mxu1  ;;  %3726 = vmatmul.mubr.msk.bf16.gmra.mxu1 %vm326_vm1, %v4230_v42  ;;  %3763 = vmatprep.mubr.msk.bf16.mxu0 %vm326_vm1, %v4256_v6 }
  0xe1   : > { %v4425_v50 = vpop.f32.mrf.mxu0  ;;  %3729 = vmatprep.mubr.msk.bf16.mxu1 %vm326_vm1, %v4250_v2 }
  0xe2   : > { %v4429_v62 = vpop.f32.mrf.mxu1 }
  0xe3   : > { %v4431_v0 = vpop.f32.mrf.mxu0 }
  0xe4   : > { %v4433_v19 = vpop.f32.mrf.mxu1 }
  0xe5   : > { %v4435_v21 = vpop.f32.mrf.mxu0 }
  0xe6   : > { %v4437_v38 = vpop.f32.mrf.mxu1 }
  0xe7   : > { %v4439_v39 = vpop.f32.mrf.mxu0  ;;  %3764 = vmatmul.mubr.msk.bf16.gmra.mxu0 %vm326_vm1, %v4272_v26 }
  0xe8   : > { %v4443_v41 = vpop.f32.mrf.mxu1  ;;  %3730 = vmatmul.mubr.msk.bf16.gmra.mxu1 %vm326_vm1, %v4254_v5  ;;  %3767 = vmatprep.mubr.msk.bf16.mxu0 %vm326_vm1, %v1096_v47 }
  0xe9   : > { %v4450_v53 = vpop.f32.mrf.mxu0  ;;  %3733 = vmatprep.mubr.msk.bf16.mxu1 %vm326_vm1, %v4270_v25 }
  0xea   : > { %v4456_v56 = vpop.f32.mrf.mxu1 }
  0xeb   : > { %v4458_v57 = vpop.f32.mrf.mxu0 }
  0xec   : > { %v4460_v1 = vpop.f32.mrf.mxu1 }
  0xed   : > { %v4464_v6 = vpop.f32.mrf.mxu0 }
  0xee   : > { %v4466_v8 = vpop.f32.mrf.mxu1 }
  0xef   : > { %v4468_v10 = vpop.f32.mrf.mxu0  ;;  %3768 = vmatmul.mubr.msk.bf16.gmra.mxu0 %vm326_vm1, %v1981_v60 }
  0xf0   : > { %v4471_v16 = vpop.f32.mrf.mxu1  ;;  %3734 = vmatmul.mubr.msk.bf16.gmra.mxu1 %vm326_vm1, %v4462_v3  ;;  %3807 = vmatprep.mubr.msk.bf16.mxu0 %vm326_vm1, %v4098_v13 }
  0xf1   : > { %v4477_v24 = vpop.f32.mrf.mxu0  ;;  %3773 = vmatprep.mubr.msk.bf16.mxu1 %vm326_vm1, %v3990_v22 }
  0xf2   : > { %v4481_v25 = vpop.f32.mrf.mxu1 }
  0xf3   : > { %v4483_v26 = vpop.f32.mrf.mxu0 }
  0xf4   : > { %v4485_v31 = vpop.f32.mrf.mxu1 }
  0xf5   : > { %v4487_v32 = vpop.f32.mrf.mxu0 }
  0xf6   : > { %v4489_v33 = vpop.f32.mrf.mxu1 }
  0xf7   : > { %v3605_v12 = vpop.f32.mrf.mxu0  ;;  %3808 = vmatmul.mubr.msk.bf16.vlgmr.msra.gmra.mxu0 %vm326_vm1, %v4128_v27 }
  0xf8   : > { %v3571_v13 = vpop.f32.mrf.mxu1  ;;  %3774 = vmatmul.mubr.msk.bf16.vlgmr.msra.gmra.mxu1 %vm326_vm1, %v4020_v34  ;;  %3811 = vmatprep.mubr.msk.bf16.mxu0 %vm326_vm1, %v4134_v29  ;;  %v2264_v29 = vpack.c.bf16 %v3286_v35, %v3285_v23 }
  0xf9   : > { %v634_v22 = vadd.f32 %v3571_v13, %v3537_v58  ;;  %v887_v11 = vpop.f32.mrf.mxu0  ;;  %3777 = vmatprep.mubr.msk.bf16.mxu1 %vm326_vm1, %v4026_v36  ;;  %v3287_v13 = vld [vmem:[%s3963_s28 + $0xa9] sm:$0xff] }
  0xfa   : > { %v625_v17 = vpop.f32.mrf.mxu1 }
  0xfb   : > { %v4501_v47 = vadd.f32 %v3605_v12, %v634_v22  ;;  %v626_v48 = vadd.f32 %v625_v17, %v413_v4  ;;  %v3606_v49 = vpop.f32.mrf.mxu0  ;;  %v3290_v17 = vld [vmem:[%s3963_s28 + $0xc9] sm:$0xff] }
  0xfc   : > { %v3572_v27 = vpop.f32.mrf.mxu1 }
  0xfd   : > { %v4503_v51 = vadd.f32 %v887_v11, %v626_v48  ;;  %v637_v34 = vadd.f32 %v3572_v27, %v3538_v9  ;;  %v890_v52 = vpop.f32.mrf.mxu0  ;;  %v3289_v11 = vld [vmem:[%s3963_s28 + $0xc1] sm:$0xff] }
  0xfe   : > { %v628_v58 = vpop.f32.mrf.mxu1  ;;  %v2266_v27 = vpack.c.bf16 %v3290_v17, %v3289_v11 }
  0xff   : > { %v4505_v54 = vadd.f32 %v3606_v49, %v637_v34  ;;  %v629_v36 = vadd.f32 %v628_v58, %v4411_v15  ;;  %v3609_v55 = vpop.f32.mrf.mxu0  ;;  %3812 = vmatmul.mubr.msk.bf16.gmra.mxu0 %vm326_vm1, %v4154_v43  ;;  %v3288_v15 = vld [vmem:[%s3963_s28 + $0xb1] sm:$0xff] }
 0x100   : > { %v3575_v4 = vpop.f32.mrf.mxu1  ;;  %3778 = vmatmul.mubr.msk.bf16.gmra.mxu1 %vm326_vm1, %v4046_v46  ;;  %3815 = vmatprep.mubr.msk.bf16.mxu0 %vm326_vm1, %v4158_v45  ;;  %v2265_v48 = vpack.c.bf16 %v3288_v15, %v3287_v13  ;;  %v3294_v13 = vld [vmem:[%s3963_s28 + $0xf9] sm:$0xff] }
 0x101   : > { %v4514_v9 = vadd.f32 %v890_v52, %v629_v36  ;;  %v650_v60 = vadd.f32 %v3575_v4, %v4415_v30  ;;  %v903_v12 = vpop.f32.mrf.mxu0  ;;  %3781 = vmatprep.mubr.msk.bf16.mxu1 %vm326_vm1, %v2264_v29  ;;  %v3291_v4 = vld [vmem:[%s3963_s28 + $0xd9] sm:$0xff] }
 0x102   : > { %v641_v22 = vpop.f32.mrf.mxu1 }
 0x103   : > { %v4522_v43 = vadd.f32 %v3609_v55, %v650_v60  ;;  %v642_v23 = vadd.f32 %v641_v22, %v4425_v50  ;;  %v3610_v46 = vpop.f32.mrf.mxu0  ;;  %v3292_v60 = vld [vmem:[%s3963_s28 + $0xe1] sm:$0xff] }
 0x104   : > { %v3576_v35 = vpop.f32.mrf.mxu1  ;;  %v2267_v17 = vpack.c.bf16 %v3292_v60, %v3291_v4 }
 0x105   : > { %v4525_v45 = vadd.f32 %v903_v12, %v642_v23  ;;  %v653_v30 = vadd.f32 %v3576_v35, %v4431_v0  ;;  %v906_v49 = vpop.f32.mrf.mxu0  ;;  %v3293_v12 = vld [vmem:[%s3963_s28 + $0xf1] sm:$0xff] }
 0x106   : > { %v644_v34 = vpop.f32.mrf.mxu1 }
 0x107   : > { %v4528_v52 = vadd.f32 %v3610_v46, %v653_v30  ;;  %v645_v29 = vadd.f32 %v644_v34, %v4435_v21  ;;  %v3613_v58 = vpop.f32.mrf.mxu0  ;;  %3816 = vmatmul.mubr.msk.bf16.gmra.mxu0 %vm326_vm1, %v4178_v61  ;;  %v2268_v46 = vpack.c.bf16 %v3294_v13, %v3293_v12 }
 0x108   : > { %v3579_v50 = vpop.f32.mrf.mxu1  ;;  %3782 = vmatmul.mubr.msk.bf16.gmra.mxu1 %vm326_vm1, %v2265_v48  ;;  %3819 = vmatprep.mubr.msk.bf16.mxu0 %vm326_vm1, %v4182_v63 }
 0x109   : > { %v4536_v0 = vadd.f32 %v906_v49, %v645_v29  ;;  %v666_v36 = vadd.f32 %v3579_v50, %v4439_v39  ;;  %v919_v55 = vpop.f32.mrf.mxu0  ;;  %3785 = vmatprep.mubr.msk.bf16.mxu1 %vm326_vm1, %v2266_v27  ;;  %v3295_v29 = vld [vmem:[%s3963_s28 + $0x109] sm:$0xff]  ;;  %v3297_v50 = vld [vmem:[%s3963_s28 + $0x121] sm:$0xff] }
 0x10a   : > { %v657_v21 = vpop.f32.mrf.mxu1 }
 0x10b   : > { %v4544_v15 = vadd.f32 %v3613_v58, %v666_v36  ;;  %v658_v61 = vadd.f32 %v657_v21, %v4450_v53  ;;  %v3614_v22 = vpop.f32.mrf.mxu0  ;;  %v3296_v58 = vld [vmem:[%s3963_s28 + $0x111] sm:$0xff]  ;;  %v3298_v36 = vld [vmem:[%s3963_s28 + $0x129] sm:$0xff] }
 0x10c   : > { %v3580_v11 = vpop.f32.mrf.mxu1  ;;  %v2269_v21 = vpack.c.bf16 %v3296_v58, %v3295_v29  ;;  %v2270_v13 = vpack.c.bf16 %v3298_v36, %v3297_v50 }
 0x10d   : > { %v4547_v63 = vadd.f32 %v919_v55, %v658_v61  ;;  %v669_v39 = vadd.f32 %v3580_v11, %v4458_v57  ;;  %v922_v23 = vpop.f32.mrf.mxu0 }
 0x10e   : > { %v660_v35 = vpop.f32.mrf.mxu1 }
 0x10f   : > { %v4550_v48 = vadd.f32 %v3614_v22, %v669_v39  ;;  %v661_v30 = vadd.f32 %v660_v35, %v4464_v6  ;;  %v3617_v49 = vpop.f32.mrf.mxu0  ;;  %3820 = vmatmul.mubr.msk.bf16.gmra.mxu0 %vm326_vm1, %v4202_v18  ;;  %v3300_v35 = vld [vmem:[%s3963_s28 + $0x141] sm:$0xff] }
 0x110   : > { %v3583_v53 = vpop.f32.mrf.mxu1  ;;  %3786 = vmatmul.mubr.msk.bf16.gmra.mxu1 %vm326_vm1, %v2267_v17  ;;  %3823 = vmatprep.mubr.msk.bf16.mxu0 %vm326_vm1, %v4206_v20 }
 0x111   : > { %v4558_v57 = vadd.f32 %v922_v23, %v661_v30  ;;  %v682_v27 = vadd.f32 %v3583_v53, %v4468_v10  ;;  %v935_v34 = vpop.f32.mrf.mxu0  ;;  %3789 = vmatprep.mubr.msk.bf16.mxu1 %vm326_vm1, %v2268_v46  ;;  %v3299_v46 = vld [vmem:[%s3963_s28 + $0x139] sm:$0xff]  ;;  %v3301_v30 = vld [vmem:[%s3963_s28 + $0x151] sm:$0xff] }
 0x112   : > { %v673_v6 = vpop.f32.mrf.mxu1 }
 0x113   : > { %v4566_v55 = vadd.f32 %v3617_v49, %v682_v27  ;;  %v674_v18 = vadd.f32 %v673_v6, %v4477_v24  ;;  %v3618_v4 = vpop.f32.mrf.mxu0  ;;  %v3302_v49 = vld [vmem:[%s3963_s28 + $0x159] sm:$0xff] }
 0x114   : > { %v3584_v60 = vpop.f32.mrf.mxu1  ;;  %v2272_v6 = vpack.c.bf16 %v3302_v49, %v3301_v30 }
 0x115   : > { %v4569_v20 = vadd.f32 %v935_v34, %v674_v18  ;;  %v685_v10 = vadd.f32 %v3584_v60, %v4483_v26  ;;  %v938_v12 = vpop.f32.mrf.mxu0  ;;  %v2271_v34 = vpack.c.bf16 %v3300_v35, %v3299_v46  ;;  %v3353_v60 = vld [vmem:[%s3963_s28 + $0x172] sm:$0xff] }
 0x116   : > { %v676_v61 = vpop.f32.mrf.mxu1 }
 0x117   : > { %v4572_v22 = vadd.f32 %v3618_v4, %v685_v10  ;;  %v677_v11 = vadd.f32 %v676_v61, %v4487_v32  ;;  %v3621_v17 = vpop.f32.mrf.mxu0  ;;  %3824 = vmatmul.mubr.msk.bf16.gmra.mxu0 %vm326_vm1, %v4226_v40 }
 0x118   : > { %v3587_v24 = vpop.f32.mrf.mxu1  ;;  %3790 = vmatmul.mubr.msk.bf16.gmra.mxu1 %vm326_vm1, %v2269_v21  ;;  %3827 = vmatprep.mubr.msk.bf16.mxu0 %vm326_vm1, %v4230_v42 }
 0x119   : > { %v4580_v26 = vadd.f32 %v938_v12, %v677_v11  ;;  %v698_v39 = vadd.f32 %v3587_v24, %v4399_v59  ;;  %v951_v23 = vpop.f32.mrf.mxu0  ;;  %3793 = vmatprep.mubr.msk.bf16.mxu1 %vm326_vm1, %v2270_v13  ;;  %v3304_v13 = vld [vmem:[%s3963_s28 + $0x171] sm:$0xff] }
 0x11a   : > { %v689_v32 = vpop.f32.mrf.mxu1 }
 0x11b   : > { %v4588_v53 = vadd.f32 %v3621_v17, %v698_v39  ;;  %v690_v40 = vadd.f32 %v689_v32, %v4407_v7  ;;  %v3622_v27 = vpop.f32.mrf.mxu0 }
 0x11c   : > { %v3588_v42 = vpop.f32.mrf.mxu1 }
 0x11d   : > { %v4591_v29 = vadd.f32 %v951_v23, %v690_v40  ;;  %v701_v59 = vadd.f32 %v3588_v42, %v4409_v14  ;;  %v954_v58 = vpop.f32.mrf.mxu0  ;;  %v3352_v14 = vld [vmem:[%s3963_s28 + $0x16a] sm:$0xff]  ;;  %v3356_v40 = vld [vmem:[%s3963_s28 + $0x19a] sm:$0xff] }
 0x11e   : > { %v692_v50 = vpop.f32.mrf.mxu1 }
 0x11f   : > { %v4594_v36 = vadd.f32 %v3622_v27, %v701_v59  ;;  %v693_v18 = vadd.f32 %v692_v50, %v4413_v28  ;;  %v3625_v4 = vpop.f32.mrf.mxu0  ;;  %3828 = vmatmul.mubr.msk.bf16.gmra.mxu0 %vm326_vm1, %v4250_v2  ;;  %v3303_v28 = vld [vmem:[%s3963_s28 + $0x169] sm:$0xff]  ;;  %v3308_v59 = vld [vmem:[%s3963_s28 + $0x1a1] sm:$0xff] }
 0x120   : > { %v3591_v7 = vpop.f32.mrf.mxu1  ;;  %3794 = vmatmul.mubr.msk.bf16.gmra.mxu1 %vm326_vm1, %v2271_v34  ;;  %3831 = vmatprep.mubr.msk.bf16.mxu0 %vm326_vm1, %v4254_v5  ;;  %v2567_v5 = vpack.c.bf16 %v3353_v60, %v3352_v14  ;;  %v2273_v39 = vpack.c.bf16 %v3304_v13, %v3303_v28  ;;  %v3357_v27 = vld [vmem:[%s3963_s28 + $0x1a2] sm:$0xff] }
 0x121   : > { %v4604_v21 = vadd.f32 %v954_v58, %v693_v18  ;;  %v714_v10 = vadd.f32 %v3591_v7, %v4419_v44  ;;  %v967_v12 = vpop.f32.mrf.mxu0  ;;  %3797 = vmatprep.mubr.msk.bf16.mxu1 %vm326_vm1, %v2272_v6 }
 0x122   : > { %v705_v61 = vpop.f32.mrf.mxu1 }
 0x123   : > { %v4610_v11 = vadd.f32 %v3625_v4, %v714_v10  ;;  %v706_v2 = vadd.f32 %v705_v61, %v4429_v62  ;;  %v3626_v17 = vpop.f32.mrf.mxu0  ;;  %v2569_v4 = vpack.c.bf16 %v3357_v27, %v3356_v40 }
 0x124   : > { %v3592_v24 = vpop.f32.mrf.mxu1 }
 0x125   : > { %v4613_v23 = vadd.f32 %v967_v12, %v706_v2  ;;  %v717_v44 = vadd.f32 %v3592_v24, %v4433_v19  ;;  %v970_v46 = vpop.f32.mrf.mxu0 }
 0x126   : > { %v708_v35 = vpop.f32.mrf.mxu1 }
 0x127   : > { %v4616_v32 = vadd.f32 %v3626_v17, %v717_v44  ;;  %v709_v30 = vadd.f32 %v708_v35, %v4437_v38  ;;  %v3629_v49 = vpop.f32.mrf.mxu0  ;;  %3832 = vmatmul.mubr.msk.bf16.gmra.mxu0 %vm326_vm1, %v2567_v5  ;;  %v3307_v38 = vld [vmem:[%s3963_s28 + $0x199] sm:$0xff] }
 0x128   : > { %v3595_v62 = vpop.f32.mrf.mxu1  ;;  %3798 = vmatmul.mubr.msk.bf16.gmra.mxu1 %vm326_vm1, %v2273_v39  ;;  %3835 = vmatprep.mubr.msk.bf16.mxu0 %vm326_vm1, %v4462_v3  ;;  %v2275_v7 = vpack.c.bf16 %v3308_v59, %v3307_v38 }
 0x129   : > { %v4625_v19 = vadd.f32 %v970_v46, %v709_v30  ;;  %v730_v42 = vadd.f32 %v3595_v62, %v4443_v41  ;;  %v983_v34 = vpop.f32.mrf.mxu0  ;;  %3801 = vmatprep.mubr.msk.bf16.mxu1 %vm326_vm1, %v4354_v37 }
 0x12a   : > { %v721_v58 = vpop.f32.mrf.mxu1 }
 0x12b   : > { %v4632_v6 = vadd.f32 %v3629_v49, %v730_v42  ;;  %v722_v50 = vadd.f32 %v721_v58, %v4456_v56  ;;  %v3630_v18 = vpop.f32.mrf.mxu0 }
 0x12c   : > { %v3596_v3 = vpop.f32.mrf.mxu1 }
 0x12d   : > { %v4635_v14 = vadd.f32 %v983_v34, %v722_v50  ;;  %v733_v60 = vadd.f32 %v3596_v3, %v4460_v1  ;;  %v986_v41 = vpop.f32.mrf.mxu0 }
 0x12e   : > { %v724_v10 = vpop.f32.mrf.mxu1 }
 0x12f   : > { %v4638_v12 = vadd.f32 %v3630_v18, %v733_v60  ;;  %v725_v37 = vadd.f32 %v724_v10, %v4466_v8  ;;  %v3633_v28 = vpop.f32.mrf.mxu0  ;;  %3836 = vmatmul.mubr.msk.bf16.gmra.mxu0 %vm326_vm1, %v2569_v4 }
 0x130   : > { %v3599_v13 = vpop.f32.mrf.mxu1  ;;  %3802 = vmatmul.mubr.msk.bf16.gmra.mxu1 %vm326_vm1, %v2275_v7 }
 0x131   : > { %v4643_v56 = vadd.f32 %v986_v41, %v725_v37  ;;  %v746_v61 = vadd.f32 %v3599_v13, %v4471_v16  ;;  %v999_v2 = vpop.f32.mrf.mxu0 }
 0x132   : > { %v737_v17 = vpop.f32.mrf.mxu1 }
 0x133   : > { %v4646_v5 = vadd.f32 %v3633_v28, %v746_v61  ;;  %v738_v1 = vadd.f32 %v737_v17, %v4481_v25  ;;  %v3634_v24 = vpop.f32.mrf.mxu0 }
 0x134   : > { %v3600_v39 = vpop.f32.mrf.mxu1 }
 0x135   : > { %v4649_v44 = vadd.f32 %v999_v2, %v738_v1  ;;  %v749_v8 = vadd.f32 %v3600_v39, %v4485_v31  ;;  %v1002_v46 = vpop.f32.mrf.mxu0 }
 0x136   : > { %v740_v35 = vpop.f32.mrf.mxu1 }
 0x137   : > { %v4652_v30 = vadd.f32 %v3634_v24, %v749_v8  ;;  %v741_v49 = vadd.f32 %v740_v35, %v4489_v33  ;;  %v3673_v62 = vpop.f32.mrf.mxu0 }
 0x138   : > { %v3639_v16 = vpop.f32.mrf.mxu1 }
 0x139   : > { %v4655_v40 = vadd.f32 %v1002_v46, %v741_v49  ;;  %v1313_v27 = vadd.f32 %v3639_v16, %v4501_v47  ;;  %v1478_v42 = vpop.f32.mrf.mxu0 }
 0x13a   : > { %v1184_v25 = vpop.f32.mrf.mxu1 }
 0x13b   : > { %v4658_v34 = vadd.f32 %v3673_v62, %v1313_v27  ;;  %v1311_v38 = vadd.f32 %v1184_v25, %v4503_v51  ;;  %v3674_v59 = vpop.f32.mrf.mxu0 }
 0x13c   : > { %v3640_v31 = vpop.f32.mrf.mxu1 }
 0x13d   : > { %v4661_v58 = vadd.f32 %v1478_v42, %v1311_v38  ;;  %v1314_v50 = vadd.f32 %v3640_v31, %v4505_v54  ;;  %v1481_v18 = vpop.f32.mrf.mxu0 }
 0x13e   : > { %v1187_v33 = vpop.f32.mrf.mxu1 }
 0x13f   : > { %v4664_v4 = vadd.f32 %v3674_v59, %v1314_v50  ;;  %v1312_v3 = vadd.f32 %v1187_v33, %v4514_v9  ;;  %v3677_v7 = vpop.f32.mrf.mxu0 }
 0x140   : > { %v3643_v47 = vpop.f32.mrf.mxu1 }
 0x141   : > { %v4667_v60 = vadd.f32 %v1481_v18, %v1312_v3  ;;  %v1317_v41 = vadd.f32 %v3643_v47, %v4522_v43  ;;  %v1494_v10 = vpop.f32.mrf.mxu0 }
 0x142   : > { %v1200_v51 = vpop.f32.mrf.mxu1 }
 0x143   : > { %v4670_v37 = vadd.f32 %v3677_v7, %v1317_v41  ;;  %v1315_v28 = vadd.f32 %v1200_v51, %v4525_v45  ;;  %v3678_v13 = vpop.f32.mrf.mxu0 }
 0x144   : > { %v3644_v54 = vpop.f32.mrf.mxu1 }
 0x145   : > { %v4673_v61 = vadd.f32 %v1494_v10, %v1315_v28  ;;  %v1318_v2 = vadd.f32 %v3644_v54, %v4528_v52  ;;  %v1497_v17 = vpop.f32.mrf.mxu0 }
 0x146   : > { %v1203_v9 = vpop.f32.mrf.mxu1 }
 0x147   : > { %v4676_v1 = vadd.f32 %v3678_v13, %v1318_v2  ;;  %v1316_v24 = vadd.f32 %v1203_v9, %v4536_v0  ;;  %v3681_v39 = vpop.f32.mrf.mxu0 }
 0x148   : > { %v3647_v43 = vpop.f32.mrf.mxu1 }
 0x149   : > { %v4679_v8 = vadd.f32 %v1497_v17, %v1316_v24  ;;  %v1321_v46 = vadd.f32 %v3647_v43, %v4544_v15  ;;  %v1510_v35 = vpop.f32.mrf.mxu0 }
 0x14a   : > { %v1216_v45 = vpop.f32.mrf.mxu1 }
 0x14b   : > { %v4682_v49 = vadd.f32 %v3681_v39, %v1321_v46  ;;  %v1319_v62 = vadd.f32 %v1216_v45, %v4547_v63  ;;  %v3682_v16 = vpop.f32.mrf.mxu0 }
 0x14c   : > { %v3648_v52 = vpop.f32.mrf.mxu1 }
 0x14d   : > { %v4685_v27 = vadd.f32 %v1510_v35, %v1319_v62  ;;  %v1322_v42 = vadd.f32 %v3648_v52, %v4550_v48  ;;  %v1513_v25 = vpop.f32.mrf.mxu0 }
 0x14e   : > { %v1219_v0 = vpop.f32.mrf.mxu1 }
 0x14f   : > { %v4688_v38 = vadd.f32 %v3682_v16, %v1322_v42  ;;  %v1320_v59 = vadd.f32 %v1219_v0, %v4558_v57  ;;  %v3685_v31 = vpop.f32.mrf.mxu0 }
 0x150   : > { %v3651_v15 = vpop.f32.mrf.mxu1 }
 0x151   : > { %v4691_v50 = vadd.f32 %v1513_v25, %v1320_v59  ;;  %v1325_v18 = vadd.f32 %v3651_v15, %v4566_v55  ;;  %v1526_v33 = vpop.f32.mrf.mxu0 }
 0x152   : > { %v1232_v63 = vpop.f32.mrf.mxu1 }
 0x153   : > { %v4694_v3 = vadd.f32 %v3685_v31, %v1325_v18  ;;  %v1323_v7 = vadd.f32 %v1232_v63, %v4569_v20  ;;  %v3686_v47 = vpop.f32.mrf.mxu0 }
 0x154   : > { %v3652_v48 = vpop.f32.mrf.mxu1 }
 0x155   : > { %v4697_v41 = vadd.f32 %v1526_v33, %v1323_v7  ;;  %v1326_v10 = vadd.f32 %v3652_v48, %v4572_v22  ;;  %v1529_v51 = vpop.f32.mrf.mxu0 }
 0x156   : > { %v1235_v57 = vpop.f32.mrf.mxu1 }
 0x157   : > { %v4700_v28 = vadd.f32 %v3686_v47, %v1326_v10  ;;  %v1324_v13 = vadd.f32 %v1235_v57, %v4580_v26  ;;  %v3689_v54 = vpop.f32.mrf.mxu0 }
 0x158   : > { %v3655_v55 = vpop.f32.mrf.mxu1 }
 0x159   : > { %v4703_v2 = vadd.f32 %v1529_v51, %v1324_v13  ;;  %v1329_v17 = vadd.f32 %v3655_v55, %v4588_v53  ;;  %v1542_v9 = vpop.f32.mrf.mxu0 }
 0x15a   : > { %v1248_v20 = vpop.f32.mrf.mxu1 }
 0x15b   : > { %v4706_v24 = vadd.f32 %v3689_v54, %v1329_v17  ;;  %v1327_v39 = vadd.f32 %v1248_v20, %v4591_v29  ;;  %v3690_v43 = vpop.f32.mrf.mxu0 }
 0x15c   : > { %v3656_v22 = vpop.f32.mrf.mxu1 }
 0x15d   : > { %v4709_v46 = vadd.f32 %v1542_v9, %v1327_v39  ;;  %v1330_v35 = vadd.f32 %v3656_v22, %v4594_v36  ;;  %v1545_v45 = vpop.f32.mrf.mxu0 }
 0x15e   : > { %v1251_v26 = vpop.f32.mrf.mxu1 }
 0x15f   : > { %v4712_v62 = vadd.f32 %v3690_v43, %v1330_v35  ;;  %v1328_v16 = vadd.f32 %v1251_v26, %v4604_v21  ;;  %v3693_v52 = vpop.f32.mrf.mxu0 }
 0x160   : > { %v3659_v53 = vpop.f32.mrf.mxu1 }
 0x161   : > { %5126 = vst [vmem:[#allocation2_spill] sm:$0xff] %v4712_v62  ;;  %v4715_v42 = vadd.f32 %v1545_v45, %v1328_v16  ;;  %v1333_v25 = vadd.f32 %v3659_v53, %v4610_v11  ;;  %v1558_v0 = vpop.f32.mrf.mxu0 }
 0x162   : > { %v1264_v29 = vpop.f32.mrf.mxu1 }
 0x163   : > { %5127 = vst [vmem:[#allocation3_spill] sm:$0xff] %v4715_v42  ;;  %v4718_v59 = vadd.f32 %v3693_v52, %v1333_v25  ;;  %v1331_v31 = vadd.f32 %v1264_v29, %v4613_v23  ;;  %v3694_v15 = vpop.f32.mrf.mxu0 }
 0x164   : > { %v3660_v36 = vpop.f32.mrf.mxu1 }
 0x165   : > { %5128 = vst [vmem:[#allocation4_spill] sm:$0xff] %v4718_v59  ;;  %v4721_v18 = vadd.f32 %v1558_v0, %v1331_v31  ;;  %v1334_v33 = vadd.f32 %v3660_v36, %v4616_v32  ;;  %v1561_v63 = vpop.f32.mrf.mxu0 }
 0x166   : > { %v1267_v21 = vpop.f32.mrf.mxu1 }
 0x167   : > { %5129 = vst [vmem:[#allocation5_spill] sm:$0xff] %v4721_v18  ;;  %v4724_v7 = vadd.f32 %v3694_v15, %v1334_v33  ;;  %v1332_v47 = vadd.f32 %v1267_v21, %v4625_v19  ;;  %v3697_v48 = vpop.f32.mrf.mxu0 }
 0x168   : > { %v3663_v11 = vpop.f32.mrf.mxu1 }
 0x169   : > { %5130 = vst [vmem:[#allocation6_spill] sm:$0xff] %v4724_v7  ;;  %v4727_v10 = vadd.f32 %v1561_v63, %v1332_v47  ;;  %v1337_v51 = vadd.f32 %v3663_v11, %v4632_v6  ;;  %v1574_v57 = vpop.f32.mrf.mxu0 }
 0x16a   : > { %v1280_v23 = vpop.f32.mrf.mxu1 }
 0x16b   : > { %5131 = vst [vmem:[#allocation7_spill] sm:$0xff] %v4727_v10  ;;  %v4730_v13 = vadd.f32 %v3697_v48, %v1337_v51  ;;  %v1335_v54 = vadd.f32 %v1280_v23, %v4635_v14  ;;  %v3698_v55 = vpop.f32.mrf.mxu0 }
 0x16c   : > { %v3664_v32 = vpop.f32.mrf.mxu1 }
 0x16d   : > { %5132 = vst [vmem:[#allocation8_spill] sm:$0xff] %v4730_v13  ;;  %v4733_v17 = vadd.f32 %v1574_v57, %v1335_v54  ;;  %v1338_v9 = vadd.f32 %v3664_v32, %v4638_v12  ;;  %v1577_v20 = vpop.f32.mrf.mxu0 }
 0x16e   : > { %v1283_v19 = vpop.f32.mrf.mxu1 }
 0x16f   : > { %5133 = vst [vmem:[#allocation9_spill] sm:$0xff] %v4733_v17  ;;  %v4736_v39 = vadd.f32 %v3698_v55, %v1338_v9  ;;  %v1336_v43 = vadd.f32 %v1283_v19, %v4643_v56  ;;  %v3701_v22 = vpop.f32.mrf.mxu0 }
 0x170   : > { %v3667_v6 = vpop.f32.mrf.mxu1 }
 0x171   : > { %5134 = vst [vmem:[#allocation10_spill] sm:$0xff] %v4736_v39  ;;  %v4739_v35 = vadd.f32 %v1577_v20, %v1336_v43  ;;  %v1341_v45 = vadd.f32 %v3667_v6, %v4646_v5  ;;  %v1590_v26 = vpop.f32.mrf.mxu0 }
 0x172   : > { %v1296_v14 = vpop.f32.mrf.mxu1 }
 0x173   : > { %5135 = vst [vmem:[#allocation11_spill] sm:$0xff] %v4739_v35  ;;  %v4742_v16 = vadd.f32 %v3701_v22, %v1341_v45  ;;  %v1339_v52 = vadd.f32 %v1296_v14, %v4649_v44  ;;  %v3702_v53 = vpop.f32.mrf.mxu0 }
 0x174   : > { %v3668_v12 = vpop.f32.mrf.mxu1 }
 0x175   : > { %5136 = vst [vmem:[#allocation12_spill] sm:$0xff] %v4742_v16  ;;  %v4745_v25 = vadd.f32 %v1590_v26, %v1339_v52  ;;  %v1342_v0 = vadd.f32 %v3668_v12, %v4652_v30  ;;  %v1593_v29 = vpop.f32.mrf.mxu0 }
 0x176   : > { %v1299_v56 = vpop.f32.mrf.mxu1 }
 0x177   : > { %5137 = vst [vmem:[#allocation13_spill] sm:$0xff] %v4745_v25  ;;  %v4748_v31 = vadd.f32 %v3702_v53, %v1342_v0  ;;  %v1340_v15 = vadd.f32 %v1299_v56, %v4655_v40  ;;  %v4751_v36 = vpop.f32.mrf.mxu0 }
 0x178   : > { %v3707_v5 = vpop.f32.mrf.mxu1 }
 0x179   : > { %5138 = vst [vmem:[#allocation14_spill] sm:$0xff] %v4748_v31  ;;  %v4753_v33 = vadd.f32 %v1593_v29, %v1340_v15  ;;  %v4755_v63 = vpop.f32.mrf.mxu0 }
 0x17a   : > { %v1772_v44 = vpop.f32.mrf.mxu1 }
 0x17b   : > { %5139 = vst [vmem:[#allocation15_spill] sm:$0xff] %v4753_v33  ;;  %v4757_v21 = vpop.f32.mrf.mxu0 }
 0x17c   : > { %v3708_v47 = vpop.f32.mrf.mxu1 }
 0x17d   : > { %v4759_v48 = vpop.f32.mrf.mxu0 }
 0x17e   : > { %v4761_v30 = vpop.f32.mrf.mxu1 }
 0x17f   : > { %v4763_v11 = vpop.f32.mrf.mxu0 }
 0x180   : > { %v4765_v51 = vpop.f32.mrf.mxu1 }
 0x181   : > { %v4767_v40 = vpop.f32.mrf.mxu0 }
 0x182   : > { %v4769_v57 = vpop.f32.mrf.mxu1 }
 0x183   : > { %v4771_v23 = vpop.f32.mrf.mxu0 }
 0x184   : > { %v4773_v54 = vpop.f32.mrf.mxu1 }
 0x185   : > { %v4775_v55 = vpop.f32.mrf.mxu0 }
 0x186   : > { %v4777_v32 = vpop.f32.mrf.mxu1 }
 0x187   : > { %v4779_v9 = vpop.f32.mrf.mxu0 }
 0x188   : > { %v4781_v20 = vpop.f32.mrf.mxu1 }
 0x189   : > { %v4783_v19 = vpop.f32.mrf.mxu0 }
 0x18a   : > { %v4785_v43 = vpop.f32.mrf.mxu1 }
 0x18b   : > { %v4787_v22 = vpop.f32.mrf.mxu0 }
 0x18c   : > { %v4789_v6 = vpop.f32.mrf.mxu1 }
 0x18d   : > { %v4791_v45 = vpop.f32.mrf.mxu0 }
 0x18e   : > { %v4793_v26 = vpop.f32.mrf.mxu1 }
 0x18f   : > { %v4795_v14 = vpop.f32.mrf.mxu0 }
 0x190   : > { %v4797_v52 = vpop.f32.mrf.mxu1 }
 0x191   : > { %v4799_v53 = vpop.f32.mrf.mxu0 }
 0x192   : > { %v4801_v12 = vpop.f32.mrf.mxu1 }
 0x193   : > { %v4803_v0 = vpop.f32.mrf.mxu0 }
 0x194   : > { %v4805_v29 = vpop.f32.mrf.mxu1 }
 0x195   : > { %v4807_v56 = vpop.f32.mrf.mxu0 }
 0x196   : > { %v4809_v15 = vpop.f32.mrf.mxu1 }
 0x197   : > { %v4811_v33 = vpop.f32.mrf.mxu0 }
 0x198   : > { %v4813_v31 = vpop.f32.mrf.mxu1 }
 0x199   : > { %v4815_v25 = vpop.f32.mrf.mxu0 }
 0x19a   : > { %5140 = vst [vmem:[#allocation16_spill] sm:$0xff] %v4815_v25  ;;  %v4817_v16 = vpop.f32.mrf.mxu1 }
 0x19b   : > { %v4819_v35 = vpop.f32.mrf.mxu0 }
 0x19c   : > { %5141 = vst [vmem:[#allocation17_spill] sm:$0xff] %v4819_v35  ;;  %v4821_v39 = vpop.f32.mrf.mxu1 }
 0x19d   : > { %5142 = vst [vmem:[#allocation18_spill] sm:$0xff] %v4821_v39  ;;  %v4823_v17 = vpop.f32.mrf.mxu0 }
 0x19e   : > { %5143 = vst [vmem:[#allocation19_spill] sm:$0xff] %v4823_v17  ;;  %v4825_v13 = vpop.f32.mrf.mxu1 }
 0x19f   : > { %5144 = vst [vmem:[#allocation20_spill] sm:$0xff] %v4825_v13  ;;  %v4827_v10 = vpop.f32.mrf.mxu0 }
 0x1a0   : > { %5145 = vst [vmem:[#allocation21_spill] sm:$0xff] %v4827_v10  ;;  %v4829_v7 = vpop.f32.mrf.mxu1 }
 0x1a1   : > { %5146 = vst [vmem:[#allocation22_spill] sm:$0xff] %v4829_v7  ;;  %v4831_v18 = vpop.f32.mrf.mxu0 }
 0x1a2   : > { %5147 = vst [vmem:[#allocation23_spill] sm:$0xff] %v4831_v18  ;;  %v4833_v59 = vpop.f32.mrf.mxu1 }
 0x1a3   : > { %5148 = vst [vmem:[#allocation24_spill] sm:$0xff] %v4833_v59  ;;  %v4835_v42 = vpop.f32.mrf.mxu0 }
 0x1a4   : > { %5149 = vst [vmem:[#allocation25_spill] sm:$0xff] %v4835_v42  ;;  %v4837_v25 = vpop.f32.mrf.mxu1 }
 0x1a5   : > { %5150 = vst [vmem:[#allocation26_spill] sm:$0xff] %v4837_v25  ;;  %v4839_v62 = vpop.f32.mrf.mxu0 }
 0x1a6   : > { %5151 = vst [vmem:[#allocation27_spill] sm:$0xff] %v4839_v62  ;;  %v4841_v35 = vpop.f32.mrf.mxu1 }
 0x1a7   : > { %5152 = vst [vmem:[#allocation28_spill] sm:$0xff] %v4841_v35  ;;  %v4843_v39 = vpop.f32.mrf.mxu0 }
 0x1a8   : > { %5153 = vst [vmem:[#allocation29_spill] sm:$0xff] %v4843_v39  ;;  %v4845_v17 = vpop.f32.mrf.mxu1 }
 0x1a9   : > { %5154 = vst [vmem:[#allocation30_spill] sm:$0xff] %v4845_v17  ;;  %v4847_v13 = vpop.f32.mrf.mxu0 }
 0x1aa   : > { %5155 = vst [vmem:[#allocation31_spill] sm:$0xff] %v4847_v13  ;;  %v4849_v10 = vpop.f32.mrf.mxu1  ;;  %v1901_v13 = vadd.f32 %v3707_v5, %v4658_v34  ;;  %v1900_v34 = vadd.f32 %v4761_v30, %v4667_v60  ;;  %v1903_v60 = vadd.f32 %v4769_v57, %v4673_v61 }
 0x1ab   : > { %5156 = vst [vmem:[#allocation32_spill] sm:$0xff] %v4849_v10  ;;  %v4851_v7 = vpop.f32.mrf.mxu0 }
 0x1ac   : > { %5157 = vst [vmem:[#allocation33_spill] sm:$0xff] %v4851_v7  ;;  %v4853_v18 = vpop.f32.mrf.mxu1  ;;  %v1899_v7 = vadd.f32 %v1772_v44, %v4661_v58  ;;  %v1905_v58 = vadd.f32 %v4765_v51, %v4670_v37  ;;  %v4887_v44 = vld [vmem:[%s5123_s2] ss:$0 sm:$0xff] }
 0x1ad   : > { %5158 = vst [vmem:[#allocation34_spill] sm:$0xff] %v4853_v18  ;;  %v4855_v59 = vpop.f32.mrf.mxu0 }
 0x1ae   : > { %5159 = vst [vmem:[#allocation35_spill] sm:$0xff] %v4855_v59  ;;  %v4857_v42 = vpop.f32.mrf.mxu1 }
 0x1af   : > { %5160 = vst [vmem:[#allocation36_spill] sm:$0xff] %v4857_v42  ;;  %v4859_v25 = vpop.f32.mrf.mxu0 }
 0x1b0   : > { %5161 = vst [vmem:[#allocation37_spill] sm:$0xff] %v4859_v25  ;;  %v4861_v62 = vpop.f32.mrf.mxu1  ;;  %v2198_v25 = vadd.f32 %v4751_v36, %v1901_v13 }
 0x1b1   : > { %5162 = vst [vmem:[#allocation38_spill] sm:$0xff] %v4861_v62  ;;  %v4863_v35 = vpop.f32.mrf.mxu0  ;;  %v1902_v62 = vadd.f32 %v3708_v47, %v4664_v4 }
 0x1b2   : > { %5163 = vst [vmem:[#allocation39_spill] sm:$0xff] %v4863_v35  ;;  %v4865_v39 = vpop.f32.mrf.mxu1 }
 0x1b3   : > { %5164 = vst [vmem:[#allocation40_spill] sm:$0xff] %v4865_v39  ;;  %v4868_v17 = vpop.f32.mrf.mxu0  ;;  %v2196_v39 = vadd.f32 %v4755_v63, %v1899_v7  ;;  %v2199_v4 = vadd.f32 %v4757_v21, %v1902_v62 }
 0x1b4   : > { %5165 = vst [vmem:[#allocation41_spill] sm:$0xff] %v4868_v17  ;;  %v4870_v10 = vpop.f32.mrf.mxu1 }
 0x1b5   : > { %v4873_v59 = vpop.f32.mrf.mxu0 }
 0x1b6   : > { %v4875_v42 = vpop.f32.mrf.mxu1 }
 0x1b7   : > { %v3809_v35 = vpop.f32.mrf.mxu0 }
 0x1b8   : > { %v3775_v18 = vpop.f32.mrf.mxu1 }
 0x1b9   : > { %v2492_v5 = vadd.f32 %v3775_v18, %v2198_v25  ;;  %v2657_v17 = vpop.f32.mrf.mxu0  ;;  %v4896_v18 = vld [vmem:[%s5124_s3] ss:$0 sm:$0xff]  ;;  %v2197_v25 = vadd.f32 %v4759_v48, %v1900_v34 }
 0x1ba   : > { %v2363_v13 = vpop.f32.mrf.mxu1 }
 0x1bb   : > { %v2786_v36 = vadd.f32 %v3809_v35, %v2492_v5  ;;  %v2490_v47 = vadd.f32 %v2363_v13, %v2196_v39  ;;  %v3810_v7 = vpop.f32.mrf.mxu0  ;;  %v2202_v35 = vadd.f32 %v4763_v11, %v1905_v58  ;;  %v1906_v39 = vadd.f32 %v4773_v54, %v4676_v1 }
 0x1bc   : > { %v3776_v37 = vpop.f32.mrf.mxu1  ;;  %v2200_v11 = vadd.f32 %v4767_v40, %v1903_v60  ;;  %v1904_v1 = vadd.f32 %v4777_v32, %v4679_v8 }
 0x1bd   : > { %v2825_v63 = vmul.f32 %v4887_v44, %v2786_v36  ;;  %v2784_v30 = vadd.f32 %v2657_v17, %v2490_v47  ;;  %v2493_v51 = vadd.f32 %v3776_v37, %v2199_v4  ;;  %v2660_v62 = vpop.f32.mrf.mxu0  ;;  %v2203_v47 = vadd.f32 %v4771_v23, %v1906_v39 }
 0x1be   : > { %v2366_v61 = vpop.f32.mrf.mxu1 }
 0x1bf   : > { %v2864_v21 = vadd.f32 %v4896_v18, %v2825_v63  ;;  %v2823_v48 = vmul.f32 %v4887_v44, %v2784_v30  ;;  %v2787_v17 = vadd.f32 %v3810_v7, %v2493_v51  ;;  %v2491_v57 = vadd.f32 %v2366_v61, %v2197_v25  ;;  %v3813_v34 = vpop.f32.mrf.mxu0 }
 0x1c0   : > { %v3779_v54 = vpop.f32.mrf.mxu1  ;;  %v1909_v7 = vadd.f32 %v4781_v20, %v4682_v49  ;;  %v2201_v63 = vadd.f32 %v4775_v55, %v1904_v1  ;;  %v1907_v30 = vadd.f32 %v4785_v43, %v4685_v27  ;;  %v1910_v61 = vadd.f32 %v4789_v6, %v4688_v38 }
 0x1c1   : > { %2896 = vst.msk [vmem:[%s4906_s25 + $0x10] sm:$0xff] %vm326_vm1, %v2864_v21  ;;  %v2862_v5 = vadd.f32 %v4896_v18, %v2823_v48  ;;  %v2826_v58 = vmul.f32 %v4887_v44, %v2787_v17  ;;  %v2785_v13 = vadd.f32 %v2660_v62, %v2491_v57  ;;  %v2496_v4 = vadd.f32 %v3779_v54, %v2202_v35  ;;  %v2673_v36 = vpop.f32.mrf.mxu0 }
 0x1c2   : > { %v2379_v40 = vpop.f32.mrf.mxu1  ;;  %v2206_v39 = vadd.f32 %v4779_v9, %v1909_v7  ;;  %v2204_v57 = vadd.f32 %v4783_v19, %v1907_v30  ;;  %v1911_v7 = vadd.f32 %v4801_v12, %v4697_v41 }
 0x1c3   : > { %2894 = vst.msk [vmem:[%s4906_s25] sm:$0xff] %vm326_vm1, %v2862_v5  ;;  %v2865_v8 = vadd.f32 %v4896_v18, %v2826_v58  ;;  %v2824_v32 = vmul.f32 %v4887_v44, %v2785_v13  ;;  %v2790_v60 = vadd.f32 %v3813_v34, %v2496_v4  ;;  %v2494_v37 = vadd.f32 %v2379_v40, %v2200_v11  ;;  %v3814_v25 = vpop.f32.mrf.mxu0 }
 0x1c4   : > { %v3780_v23 = vpop.f32.mrf.mxu1  ;;  %v1908_v34 = vadd.f32 %v4793_v26, %v4691_v50  ;;  %v2207_v5 = vadd.f32 %v4787_v22, %v1910_v61  ;;  %v1913_v58 = vadd.f32 %v4797_v52, %v4694_v3 }
 0x1c5   : > { %2897 = vst.msk [vmem:[%s4906_s25 + $0x18] sm:$0xff] %vm326_vm1, %v2865_v8  ;;  %v2863_v49 = vadd.f32 %v4896_v18, %v2824_v32  ;;  %v2829_v20 = vmul.f32 %v4887_v44, %v2790_v60  ;;  %v2788_v51 = vadd.f32 %v2673_v36, %v2494_v37  ;;  %v2497_v62 = vadd.f32 %v3780_v23, %v2203_v47  ;;  %v2676_v35 = vpop.f32.mrf.mxu0 }
 0x1c6   : > { %v2382_v55 = vpop.f32.mrf.mxu1  ;;  %v2205_v47 = vadd.f32 %v4791_v45, %v1908_v34  ;;  %v2210_v60 = vadd.f32 %v4795_v14, %v1913_v58  ;;  %v1914_v37 = vadd.f32 %v4805_v29, %v4700_v28  ;;  %v2208_v23 = vadd.f32 %v4799_v53, %v1911_v7 }
 0x1c7   : > { %2895 = vst.msk [vmem:[%s4906_s25 + $0x8] sm:$0xff] %vm326_vm1, %v2863_v49  ;;  %v2868_v27 = vadd.f32 %v4896_v18, %v2829_v20  ;;  %v2827_v43 = vmul.f32 %v4887_v44, %v2788_v51  ;;  %v2791_v21 = vadd.f32 %v3814_v25, %v2497_v62  ;;  %v2495_v48 = vadd.f32 %v2382_v55, %v2201_v63  ;;  %v3817_v17 = vpop.f32.mrf.mxu0 }
 0x1c8   : > { %v3783_v9 = vpop.f32.mrf.mxu1  ;;  %v1912_v49 = vadd.f32 %v4809_v15, %v4703_v2 }
 0x1c9   : > { %2900 = vst.msk [vmem:[%s4906_s25 + $0x30] sm:$0xff] %vm326_vm1, %v2868_v27  ;;  %v2866_v38 = vadd.f32 %v4896_v18, %v2827_v43  ;;  %v2830_v6 = vmul.f32 %v4887_v44, %v2791_v21  ;;  %v2789_v11 = vadd.f32 %v2676_v35, %v2495_v48  ;;  %v2500_v1 = vadd.f32 %v3783_v9, %v2206_v39  ;;  %v2689_v54 = vpop.f32.mrf.mxu0  ;;  %v5166_v9 = vld [vmem:[#allocation2_spill] sm:$0xff] }
 0x1ca   : > { %v2395_v19 = vpop.f32.mrf.mxu1  ;;  %v2211_v35 = vadd.f32 %v4803_v0, %v1914_v37  ;;  %v1917_v39 = vadd.f32 %v4813_v31, %v4706_v24  ;;  %v2209_v43 = vadd.f32 %v4807_v56, %v1912_v49  ;;  %v1915_v21 = vadd.f32 %v4817_v16, %v4709_v46 }
 0x1cb   : > { %2898 = vst.msk [vmem:[%s4906_s25 + $0x20] sm:$0xff] %vm326_vm1, %v2866_v38  ;;  %v2869_v50 = vadd.f32 %v4896_v18, %v2830_v6  ;;  %v2828_v26 = vmul.f32 %v4887_v44, %v2789_v11  ;;  %v2794_v13 = vadd.f32 %v3817_v17, %v2500_v1  ;;  %v2498_v4 = vadd.f32 %v2395_v19, %v2204_v57  ;;  %v3818_v36 = vpop.f32.mrf.mxu0  ;;  %v5167_v38 = vld [vmem:[#allocation18_spill] sm:$0xff]  ;;  %v5169_v19 = vld [vmem:[#allocation3_spill] sm:$0xff] }
 0x1cc   : > { %v3784_v22 = vpop.f32.mrf.mxu1  ;;  %v2214_v34 = vadd.f32 %v4811_v33, %v1917_v39  ;;  %v1918_v6 = vadd.f32 %v5167_v38, %v5166_v9 }
 0x1cd   : > { %2901 = vst.msk [vmem:[%s4906_s25 + $0x38] sm:$0xff] %vm326_vm1, %v2869_v50  ;;  %v2867_v3 = vadd.f32 %v4896_v18, %v2828_v26  ;;  %v2833_v52 = vmul.f32 %v4887_v44, %v2794_v13  ;;  %v2792_v40 = vadd.f32 %v2689_v54, %v2498_v4  ;;  %v2501_v8 = vadd.f32 %v3784_v22, %v2207_v5  ;;  %v2692_v32 = vpop.f32.mrf.mxu0  ;;  %v5168_v5 = vld [vmem:[#allocation16_spill] sm:$0xff]  ;;  %v5171_v22 = vld [vmem:[#allocation17_spill] sm:$0xff] }
 0x1ce   : > { %v2398_v45 = vpop.f32.mrf.mxu1  ;;  %v2212_v58 = vadd.f32 %v5168_v5, %v1915_v21  ;;  %v5170_v50 = vld [vmem:[#allocation20_spill] sm:$0xff] }
 0x1cf   : > { %2899 = vst.msk [vmem:[%s4906_s25 + $0x28] sm:$0xff] %vm326_vm1, %v2867_v3  ;;  %v2872_v41 = vadd.f32 %v4896_v18, %v2833_v52  ;;  %v2831_v12 = vmul.f32 %v4887_v44, %v2792_v40  ;;  %v2795_v25 = vadd.f32 %v3818_v36, %v2501_v8  ;;  %v2499_v63 = vadd.f32 %v2398_v45, %v2205_v47  ;;  %v3821_v30 = vpop.f32.mrf.mxu0  ;;  %v5172_v52 = vld [vmem:[#allocation4_spill] sm:$0xff]  ;;  %v5173_v40 = vld [vmem:[#allocation22_spill] sm:$0xff] }
 0x1d0   : > { %v3787_v14 = vpop.f32.mrf.mxu1  ;;  %v1916_v26 = vadd.f32 %v5170_v50, %v5169_v19  ;;  %v2215_v3 = vadd.f32 %v5171_v22, %v1918_v6  ;;  %v1921_v8 = vadd.f32 %v5173_v40, %v5172_v52 }
 0x1d1   : > { %2904 = vst.msk [vmem:[%s4906_s25 + $0x50] sm:$0xff] %vm326_vm1, %v2872_v41  ;;  %v2870_v28 = vadd.f32 %v4896_v18, %v2831_v12  ;;  %v2834_v29 = vmul.f32 %v4887_v44, %v2795_v25  ;;  %v2793_v20 = vadd.f32 %v2692_v32, %v2499_v63  ;;  %v2504_v51 = vadd.f32 %v3787_v14, %v2210_v60  ;;  %v2705_v62 = vpop.f32.mrf.mxu0  ;;  %v5174_v25 = vld [vmem:[#allocation19_spill] sm:$0xff] }
 0x1d2   : > { %v2411_v53 = vpop.f32.mrf.mxu1  ;;  %v2213_v63 = vadd.f32 %v5174_v25, %v1916_v26 }
 0x1d3   : > { %2902 = vst.msk [vmem:[%s4906_s25 + $0x40] sm:$0xff] %vm326_vm1, %v2870_v28  ;;  %v2873_v2 = vadd.f32 %v4896_v18, %v2834_v29  ;;  %v2832_v15 = vmul.f32 %v4887_v44, %v2793_v20  ;;  %v2798_v61 = vadd.f32 %v3821_v30, %v2504_v51  ;;  %v2502_v55 = vadd.f32 %v2411_v53, %v2208_v23  ;;  %v3822_v27 = vpop.f32.mrf.mxu0  ;;  %v5175_v30 = vld [vmem:[#allocation5_spill] sm:$0xff]  ;;  %v5176_v23 = vld [vmem:[#allocation24_spill] sm:$0xff]  ;;  %v5178_v53 = vld [vmem:[#allocation6_spill] sm:$0xff] }
 0x1d4   : > { %v3788_v0 = vpop.f32.mrf.mxu1  ;;  %v1919_v49 = vadd.f32 %v5176_v23, %v5175_v30 }
 0x1d5   : > { %2905 = vst.msk [vmem:[%s4906_s25 + $0x58] sm:$0xff] %vm326_vm1, %v2873_v2  ;;  %v2871_v24 = vadd.f32 %v4896_v18, %v2832_v15  ;;  %v2837_v31 = vmul.f32 %v4887_v44, %v2798_v61  ;;  %v2796_v48 = vadd.f32 %v2705_v62, %v2502_v55  ;;  %v2505_v17 = vadd.f32 %v3788_v0, %v2211_v35  ;;  %v2708_v57 = vpop.f32.mrf.mxu0  ;;  %v5177_v35 = vld [vmem:[#allocation21_spill] sm:$0xff]  ;;  %v5179_v2 = vld [vmem:[#allocation26_spill] sm:$0xff] }
 0x1d6   : > { %v2414_v56 = vpop.f32.mrf.mxu1  ;;  %v2218_v39 = vadd.f32 %v5177_v35, %v1921_v8  ;;  %v1922_v15 = vadd.f32 %v5179_v2, %v5178_v53 }
 0x1d7   : > { %2903 = vst.msk [vmem:[%s4906_s25 + $0x48] sm:$0xff] %vm326_vm1, %v2871_v24  ;;  %v2876_v46 = vadd.f32 %v4896_v18, %v2837_v31  ;;  %v2835_v16 = vmul.f32 %v4887_v44, %v2796_v48  ;;  %v2799_v11 = vadd.f32 %v3822_v27, %v2505_v17  ;;  %v2503_v1 = vadd.f32 %v2414_v56, %v2209_v43  ;;  %v3825_v54 = vpop.f32.mrf.mxu0  ;;  %v5180_v24 = vld [vmem:[#allocation23_spill] sm:$0xff]  ;;  %v5182_v17 = vld [vmem:[#allocation28_spill] sm:$0xff] }
 0x1d8   : > { %v3791_v33 = vpop.f32.mrf.mxu1  ;;  %v2216_v31 = vadd.f32 %v5180_v24, %v1919_v49  ;;  %v5181_v48 = vld [vmem:[#allocation7_spill] sm:$0xff] }
 0x1d9   : > { %2908 = vst.msk [vmem:[%s4906_s25 + $0x70] sm:$0xff] %vm326_vm1, %v2876_v46  ;;  %v2874_v13 = vadd.f32 %v4896_v18, %v2835_v16  ;;  %v2838_v4 = vmul.f32 %v4887_v44, %v2799_v11  ;;  %v2797_v36 = vadd.f32 %v2708_v57, %v2503_v1  ;;  %v2508_v47 = vadd.f32 %v3791_v33, %v2214_v34  ;;  %v2721_v7 = vpop.f32.mrf.mxu0  ;;  %v5183_v16 = vld [vmem:[#allocation25_spill] sm:$0xff]  ;;  %v5184_v1 = vld [vmem:[#allocation8_spill] sm:$0xff] }
 0x1da   : > { %v2427_v32 = vpop.f32.mrf.mxu1  ;;  %v1920_v57 = vadd.f32 %v5182_v17, %v5181_v48  ;;  %v2219_v11 = vadd.f32 %v5183_v16, %v1922_v15 }
 0x1db   : > { %2906 = vst.msk [vmem:[%s4906_s25 + $0x60] sm:$0xff] %vm326_vm1, %v2874_v13  ;;  %v2877_v60 = vadd.f32 %v4896_v18, %v2838_v4  ;;  %v2836_v37 = vmul.f32 %v4887_v44, %v2797_v36  ;;  %v2802_v45 = vadd.f32 %v3825_v54, %v2508_v47  ;;  %v2506_v41 = vadd.f32 %v2427_v32, %v2212_v58  ;;  %v3826_v12 = vpop.f32.mrf.mxu0  ;;  %v5185_v54 = vld [vmem:[#allocation30_spill] sm:$0xff]  ;;  %v5186_v4 = vld [vmem:[#allocation27_spill] sm:$0xff]  ;;  %v5187_v47 = vld [vmem:[#allocation9_spill] sm:$0xff] }
 0x1dc   : > { %v3792_v14 = vpop.f32.mrf.mxu1  ;;  %v1925_v5 = vadd.f32 %v5185_v54, %v5184_v1  ;;  %v2217_v36 = vadd.f32 %v5186_v4, %v1920_v57 }
 0x1dd   : > { %2909 = vst.msk [vmem:[%s4906_s25 + $0x78] sm:$0xff] %vm326_vm1, %v2877_v60  ;;  %v2875_v28 = vadd.f32 %v4896_v18, %v2836_v37  ;;  %v2841_v29 = vmul.f32 %v4887_v44, %v2802_v45  ;;  %v2800_v20 = vadd.f32 %v2721_v7, %v2506_v41  ;;  %v2509_v51 = vadd.f32 %v3792_v14, %v2215_v3  ;;  %v2724_v62 = vpop.f32.mrf.mxu0  ;;  %v5188_v7 = vld [vmem:[#allocation32_spill] sm:$0xff]  ;;  %v5189_v37 = vld [vmem:[#allocation29_spill] sm:$0xff]  ;;  %v5190_v41 = vld [vmem:[#allocation10_spill] sm:$0xff] }
 0x1de   : > { %v2430_v61 = vpop.f32.mrf.mxu1  ;;  %v1923_v22 = vadd.f32 %v5188_v7, %v5187_v47  ;;  %v2222_v45 = vadd.f32 %v5189_v37, %v1925_v5 }
 0x1df   : > { %2907 = vst.msk [vmem:[%s4906_s25 + $0x68] sm:$0xff] %vm326_vm1, %v2875_v28  ;;  %v2880_v55 = vadd.f32 %v4896_v18, %v2841_v29  ;;  %v2839_v27 = vmul.f32 %v4887_v44, %v2800_v20  ;;  %v2803_v43 = vadd.f32 %v3826_v12, %v2509_v51  ;;  %v2507_v21 = vadd.f32 %v2430_v61, %v2213_v63  ;;  %v3829_v0 = vpop.f32.mrf.mxu0  ;;  %v5191_v12 = vld [vmem:[#allocation34_spill] sm:$0xff]  ;;  %v5192_v29 = vld [vmem:[#allocation31_spill] sm:$0xff] }
 0x1e0   : > { %v3795_v34 = vpop.f32.mrf.mxu1  ;;  %v1926_v25 = vadd.f32 %v5191_v12, %v5190_v41  ;;  %v2220_v20 = vadd.f32 %v5192_v29, %v1923_v22  ;;  %v5193_v51 = vld [vmem:[#allocation11_spill] sm:$0xff] }
 0x1e1   : > { %2912 = vst.msk [vmem:[%s4906_s25 + $0x90] sm:$0xff] %vm326_vm1, %v2880_v55  ;;  %v2878_v9 = vadd.f32 %v4896_v18, %v2839_v27  ;;  %v2842_v38 = vmul.f32 %v4887_v44, %v2803_v43  ;;  %v2801_v6 = vadd.f32 %v2724_v62, %v2507_v21  ;;  %v2512_v56 = vadd.f32 %v3795_v34, %v2218_v39  ;;  %v2737_v46 = vpop.f32.mrf.mxu0  ;;  %v5194_v62 = vld [vmem:[#allocation36_spill] sm:$0xff]  ;;  %v5195_v27 = vld [vmem:[#allocation33_spill] sm:$0xff] }
 0x1e2   : > { %v2443_v58 = vpop.f32.mrf.mxu1  ;;  %v1924_v35 = vadd.f32 %v5194_v62, %v5193_v51  ;;  %v2223_v43 = vadd.f32 %v5195_v27, %v1926_v25  ;;  %v5196_v21 = vld [vmem:[#allocation12_spill] sm:$0xff]  ;;  %v5205_v25 = vld [vmem:[#allocation41_spill] sm:$0xff] }
 0x1e3   : > { %2910 = vst.msk [vmem:[%s4906_s25 + $0x80] sm:$0xff] %vm326_vm1, %v2878_v9  ;;  %v2881_v19 = vadd.f32 %v4896_v18, %v2842_v38  ;;  %v2840_v50 = vmul.f32 %v4887_v44, %v2801_v6  ;;  %v2806_v26 = vadd.f32 %v3829_v0, %v2512_v56  ;;  %v2510_v33 = vadd.f32 %v2443_v58, %v2216_v31  ;;  %v3830_v13 = vpop.f32.mrf.mxu0  ;;  %v5197_v0 = vld [vmem:[#allocation38_spill] sm:$0xff]  ;;  %v5198_v38 = vld [vmem:[#allocation35_spill] sm:$0xff]  ;;  %v5199_v56 = vld [vmem:[#allocation13_spill] sm:$0xff] }
 0x1e4   : > { %v3796_v3 = vpop.f32.mrf.mxu1  ;;  %v1929_v24 = vadd.f32 %v5197_v0, %v5196_v21  ;;  %v2221_v6 = vadd.f32 %v5198_v38, %v1924_v35 }
 0x1e5   : > { %2913 = vst.msk [vmem:[%s4906_s25 + $0x98] sm:$0xff] %vm326_vm1, %v2881_v19  ;;  %v2879_v52 = vadd.f32 %v4896_v18, %v2840_v50  ;;  %v2845_v40 = vmul.f32 %v4887_v44, %v2806_v26  ;;  %v2804_v8 = vadd.f32 %v2737_v46, %v2510_v33  ;;  %v2513_v32 = vadd.f32 %v3796_v3, %v2219_v11  ;;  %v2740_v60 = vpop.f32.mrf.mxu0  ;;  %v5200_v46 = vld [vmem:[#allocation40_spill] sm:$0xff]  ;;  %v5201_v50 = vld [vmem:[#allocation37_spill] sm:$0xff]  ;;  %v5202_v33 = vld [vmem:[#allocation14_spill] sm:$0xff] }
 0x1e6   : > { %v2446_v63 = vpop.f32.mrf.mxu1  ;;  %v1927_v16 = vadd.f32 %v5200_v46, %v5199_v56  ;;  %v2226_v26 = vadd.f32 %v5201_v50, %v1929_v24 }
 0x1e7   : > { %2911 = vst.msk [vmem:[%s4906_s25 + $0x88] sm:$0xff] %vm326_vm1, %v2879_v52  ;;  %v2884_v30 = vadd.f32 %v4896_v18, %v2845_v40  ;;  %v2843_v23 = vmul.f32 %v4887_v44, %v2804_v8  ;;  %v2807_v49 = vadd.f32 %v3830_v13, %v2513_v32  ;;  %v2511_v14 = vadd.f32 %v2446_v63, %v2217_v36  ;;  %v3833_v28 = vpop.f32.mrf.mxu0  ;;  %v5203_v52 = vld [vmem:[#allocation39_spill] sm:$0xff] }
 0x1e8   : > { %v3799_v39 = vpop.f32.mrf.mxu1  ;;  %v1930_v13 = vadd.f32 %v4870_v10, %v5202_v33  ;;  %v2224_v40 = vadd.f32 %v5203_v52, %v1927_v16  ;;  %v5204_v8 = vld [vmem:[#allocation15_spill] sm:$0xff] }
 0x1e9   : > { %2916 = vst.msk [vmem:[%s4906_s25 + $0xb0] sm:$0xff] %vm326_vm1, %v2884_v30  ;;  %v2882_v53 = vadd.f32 %v4896_v18, %v2843_v23  ;;  %v2846_v2 = vmul.f32 %v4887_v44, %v2807_v49  ;;  %v2805_v15 = vadd.f32 %v2740_v60, %v2511_v14  ;;  %v2516_v61 = vadd.f32 %v3799_v39, %v2222_v45  ;;  %v2753_v55 = vpop.f32.mrf.mxu0 }
 0x1ea   : > { %v2459_v31 = vpop.f32.mrf.mxu1  ;;  %v1928_v32 = vadd.f32 %v4875_v42, %v5204_v8  ;;  %v2227_v63 = vadd.f32 %v5205_v25, %v1930_v13 }
 0x1eb   : > { %2914 = vst.msk [vmem:[%s4906_s25 + $0xa0] sm:$0xff] %vm326_vm1, %v2882_v53  ;;  %v2885_v48 = vadd.f32 %v4896_v18, %v2846_v2  ;;  %v2844_v17 = vmul.f32 %v4887_v44, %v2805_v15  ;;  %v2810_v57 = vadd.f32 %v3833_v28, %v2516_v61  ;;  %v2514_v34 = vadd.f32 %v2459_v31, %v2220_v20  ;;  %v3834_v9 = vpop.f32.mrf.mxu0 }
 0x1ec   : > { %v3800_v11 = vpop.f32.mrf.mxu1  ;;  %v2225_v28 = vadd.f32 %v4873_v59, %v1928_v32 }
 0x1ed   : > { %2917 = vst.msk [vmem:[%s4906_s25 + $0xb8] sm:$0xff] %vm326_vm1, %v2885_v48  ;;  %v2883_v1 = vadd.f32 %v4896_v18, %v2844_v17  ;;  %v2849_v54 = vmul.f32 %v4887_v44, %v2810_v57  ;;  %v2808_v5 = vadd.f32 %v2753_v55, %v2514_v34  ;;  %v2517_v58 = vadd.f32 %v3800_v11, %v2223_v43  ;;  %v2756_v19 = vpop.f32.mrf.mxu0 }
 0x1ee   : > { %v2462_v4 = vpop.f32.mrf.mxu1 }
 0x1ef   : > { %2915 = vst.msk [vmem:[%s4906_s25 + $0xa8] sm:$0xff] %vm326_vm1, %v2883_v1  ;;  %v2888_v36 = vadd.f32 %v4896_v18, %v2849_v54  ;;  %v2847_v47 = vmul.f32 %v4887_v44, %v2808_v5  ;;  %v2811_v7 = vadd.f32 %v3834_v9, %v2517_v58  ;;  %v2515_v22 = vadd.f32 %v2462_v4, %v2221_v6  ;;  %v3837_v3 = vpop.f32.mrf.mxu0 }
 0x1f0   : > { %v3803_v60 = vpop.f32.mrf.mxu1 }
 0x1f1   : > { %2920 = vst.msk [vmem:[%s4906_s25 + $0xd0] sm:$0xff] %vm326_vm1, %v2888_v36  ;;  %v2886_v10 = vadd.f32 %v4896_v18, %v2847_v47  ;;  %v2850_v37 = vmul.f32 %v4887_v44, %v2811_v7  ;;  %v2809_v45 = vadd.f32 %v2756_v19, %v2515_v22  ;;  %v2520_v41 = vadd.f32 %v3803_v60, %v2226_v26  ;;  %v2769_v12 = vpop.f32.mrf.mxu0 }
 0x1f2   : > { %v2475_v30 = vpop.f32.mrf.mxu1 }
 0x1f3   : > { %2918 = vst.msk [vmem:[%s4906_s25 + $0xc0] sm:$0xff] %vm326_vm1, %v2886_v10  ;;  %v2889_v23 = vadd.f32 %v4896_v18, %v2850_v37  ;;  %v2848_v42 = vmul.f32 %v4887_v44, %v2809_v45  ;;  %v2814_v49 = vadd.f32 %v3837_v3, %v2520_v41  ;;  %v2518_v14 = vadd.f32 %v2475_v30, %v2224_v40  ;;  %v3838_v20 = vpop.f32.mrf.mxu0 }
 0x1f4   : > { %v3804_v29 = vpop.f32.mrf.mxu1 }
 0x1f5   : > { %2921 = vst.msk [vmem:[%s4906_s25 + $0xd8] sm:$0xff] %vm326_vm1, %v2889_v23  ;;  %v2887_v51 = vadd.f32 %v4896_v18, %v2848_v42  ;;  %v2853_v62 = vmul.f32 %v4887_v44, %v2814_v49  ;;  %v2812_v35 = vadd.f32 %v2769_v12, %v2518_v14  ;;  %v2521_v39 = vadd.f32 %v3804_v29, %v2227_v63  ;;  %v2772_v55 = vpop.f32.mrf.mxu0 }
 0x1f6   : > { %v2478_v53 = vpop.f32.mrf.mxu1 }
 0x1f7   : > { %2919 = vst.msk [vmem:[%s4906_s25 + $0xc8] sm:$0xff] %vm326_vm1, %v2887_v51  ;;  %v2892_v2 = vadd.f32 %v4896_v18, %v2853_v62  ;;  %v2851_v59 = vmul.f32 %v4887_v44, %v2812_v35  ;;  %v2815_v15 = vadd.f32 %v3838_v20, %v2521_v39  ;;  %v2519_v61 = vadd.f32 %v2478_v53, %v2225_v28 }
 0x1f9   : > { %2924 = vst.msk [vmem:[%s4906_s25 + $0xf0] sm:$0xff] %vm326_vm1, %v2892_v2  ;;  %v2890_v27 = vadd.f32 %v4896_v18, %v2851_v59  ;;  %v2854_v43 = vmul.f32 %v4887_v44, %v2815_v15  ;;  %v2813_v21 = vadd.f32 %v2772_v55, %v2519_v61 }
 0x1fb   : > { %2922 = vst.msk [vmem:[%s4906_s25 + $0xe0] sm:$0xff] %vm326_vm1, %v2890_v27  ;;  %v2893_v0 = vadd.f32 %v4896_v18, %v2854_v43  ;;  %v2852_v24 = vmul.f32 %v4887_v44, %v2813_v21 }
 0x1fd   : > { %2925 = vst.msk [vmem:[%s4906_s25 + $0xf8] sm:$0xff] %vm326_vm1, %v2893_v0  ;;  %v2891_v31 = vadd.f32 %v4896_v18, %v2852_v24 }
 0x1ff   : > { %2923 = vst.msk [vmem:[%s4906_s25 + $0xe8] sm:$0xff] %vm326_vm1, %v2891_v31 }
 0x200 PF: > { %s14_s17 = sadd.s32 1, %s3898_s17   ;;  %s5206_s15 = smov %s3894_s16 }
 0x201   : > { %p11_p5 = scmp.ge.s32.totalorder %s14_s17, 4   ;;  %s5207_s16 = smov %s5209_s18 }
 0x203   :  { %13 = sbr.rel (!%p11_p5) target bundleno = 2 (0x2), region = 77 }

// kernel: sc_bottleneck_forward.13
= control target key start
LH: loop header
LB: loop body
LE: loop exit
PB: predicated region body
PF: predicated region fallthrough
CT: control target
= control target key end

     0   :  { %s3957_s15 = smov 0   ;;  %s3959_s16 = smov 0   ;;  %s5153_s0 = inlined_call_operand.vmem [shape: f32[2,18,18,4], index: 0, kind: input, shape index: {}]   ;;  %s5154_s1 = inlined_call_operand.vmem [shape: bf16[3,3,4,4], index: 1, kind: input, shape index: {}]   ;;  %s5155_s2 = inlined_call_operand.vmem [shape: f32[1,4], index: 2, kind: input, shape index: {}]   ;;  %s5156_s3 = inlined_call_operand.vmem [shape: f32[1,4], index: 3, kind: input, shape index: {}]   ;;  %s5157_s4 = inlined_call_operand.vmem [shape: f32[2,16,16,4], index: 4, kind: output, shape index: {}]  }
   0x1   :  { %s3961_s17 = smov 0  }
   0x2 LB: > { %s26_s18 = sadd.s32 1, %s3926_s16  ;;  %p3059_p0 = scmp.ge.s32.totalorder %s3930_s17, 1  ;;  %s3930_s17 = sphi %s3961_s17, %s14_s17   ;;  %s3926_s16 = sphi %s3959_s16, %s5241_s16   ;;  %s3922_s15 = sphi %s3957_s15, %s5240_s15  }
   0x3   : > { %p28_p1 = scmp.ge.s32.totalorder %s26_s18, 2  ;;  %p176_p2 = scmp.lt.s32.totalorder %s3930_s17, 3 }
   0x5   : > { %s5243_s18 = smov (%p28_p1, %s26_s18), 0  ;;  %p177_p3 = pnand %p3059_p0, %p176_p2 }
   0x7   : > { %180 = sbr.rel (%p177_p3) target bundleno = 514 (0x202), region = 36 }
   0xc   : > { %v3063_v0 = vld [vmem:[%s5154_s1 + $0x2] sm:$0x3]  ;;  %vm375_vm0 = vcmask 1041408   ;;  %p207_p4 = scmp.lt.s32.totalorder %s3922_s15, 1  ;;  %v275_v2 = vld [vmem:[%s5154_s1] sm:$0x3] }
   0xd   : > { %3874 = vmatprep.subr.msk.bf16.mxu1 %vm375_vm0, %v3063_v0  ;;  %3873 = vmatprep.subr.msk.bf16.mxu0 %vm375_vm0, %v3063_v0  ;;  %v377_v1 = vsel %vm375_vm0, %v3063_v0, 0  ;;  %v3096_v3 = vld [vmem:[%s5154_s1 + $0x4] sm:$0x3]  ;;  %vm326_vm1 = vcmask 31744   ;;  %v589_v18 = vsel %vm375_vm0, %v275_v2, 0 }
   0xe   : > { %3872 = vmatpush3.bf16.msra.mxu1 %v377_v1  ;;  %3566 = vmatpush3.bf16.msra.mxu0 %v377_v1  ;;  %s5245_s15 = smov (!%p207_p4, %s3922_s15), 1  ;;  %v851_v15 = vsel %vm375_vm0, %v3096_v3, 0  ;;  %v4029_v24 = vld [vmem:[%s5154_s1 + $0x6] sm:$0x3]  ;;  %v4034_v25 = vld [vmem:[%s5154_s1 + $0x8] sm:$0x3] }
   0xf   : > { %3875 = vmatprep.subr.msk.bf16.mxu1 %vm375_vm0, %v275_v2  ;;  %3876 = vmatprep.subr.msk.bf16.mxu0 %vm375_vm0, %v3096_v3  ;;  %s3883_s25 = smul.u32 432, %s5245_s15  ;;  %s3411_s23 = sshll.u32 %s5245_s15, 8 }
  0x11   : > { %s3995_s28 = scalar_lea.vmem %s5153_s0, %s3883_s25  ;;  %s4943_s25 = scalar_lea.vmem %s5157_s4, %s3411_s23 }
  0x12   : > { %v276_v4 = vld [vmem:[%s3995_s28 + $0x1] sm:$0xff]  ;;  %v277_v5 = vld [vmem:[%s3995_s28 + $0x9] sm:$0xff]  ;;  %v278_v9 = vld [vmem:[%s3995_s28 + $0x19] sm:$0xff] }
  0x13   : > { %v292_v6 = vld [vmem:[%s3995_s28 + $0xc1] sm:$0xff]  ;;  %v308_v7 = vpack.c.bf16 %v277_v5, %v276_v4  ;;  %v293_v8 = vld [vmem:[%s3995_s28 + $0xc9] sm:$0xff]  ;;  %v294_v13 = vld [vmem:[%s3995_s28 + $0xd9] sm:$0xff] }
  0x14   : > { %v279_v10 = vld [vmem:[%s3995_s28 + $0x21] sm:$0xff]  ;;  %v4003_v11 = vpack.c.bf16 %v293_v8, %v292_v6  ;;  %v280_v16 = vld [vmem:[%s3995_s28 + $0x31] sm:$0xff]  ;;  %v281_v19 = vld [vmem:[%s3995_s28 + $0x39] sm:$0xff]  ;;  %v1442_v8 = vsel %vm375_vm0, %v4034_v25, 0 }
  0x15   : > { %v4005_v12 = vpack.c.bf16 %v279_v10, %v278_v9  ;;  %v295_v14 = vld [vmem:[%s3995_s28 + $0xe1] sm:$0xff]  ;;  %3567 = vmatprep.mubr.msk.bf16.mxu0 %vm326_vm1, %v308_v7  ;;  %v296_v20 = vld [vmem:[%s3995_s28 + $0xf1] sm:$0xff]  ;;  %v297_v21 = vld [vmem:[%s3995_s28 + $0xf9] sm:$0xff]  ;;  %v4022_v22 = vpack.c.bf16 %v281_v19, %v280_v16  ;;  %v1148_v10 = vsel %vm375_vm0, %v4029_v24, 0 }
  0x16   : > { %v4012_v17 = vpack.c.bf16 %v295_v14, %v294_v13  ;;  %3583 = vmatprep.mubr.msk.bf16.mxu1 %vm326_vm1, %v4003_v11  ;;  %v4024_v23 = vpack.c.bf16 %v297_v21, %v296_v20  ;;  %v282_v26 = vld [vmem:[%s3995_s28 + $0x49] sm:$0xff]  ;;  %v283_v27 = vld [vmem:[%s3995_s28 + $0x51] sm:$0xff]  ;;  %v284_v30 = vld [vmem:[%s3995_s28 + $0x61] sm:$0xff] }
  0x17   : > { %3568 = vmatmul.mubr.msk.bf16.vlgmr.msra.gmra.mxu0 %vm326_vm1, %v4005_v12  ;;  %v298_v28 = vld [vmem:[%s3995_s28 + $0x109] sm:$0xff]  ;;  %v299_v29 = vld [vmem:[%s3995_s28 + $0x111] sm:$0xff]  ;;  %v300_v32 = vld [vmem:[%s3995_s28 + $0x121] sm:$0xff]  ;;  %v4052_v34 = vpack.c.bf16 %v283_v27, %v282_v26 }
  0x18   : > { %3584 = vmatmul.mubr.msk.bf16.vlgmr.msra.gmra.mxu1 %vm326_vm1, %v4012_v17  ;;  %3634 = vmatpush3.bf16.msra.mxu0 %v851_v15  ;;  %v285_v31 = vld [vmem:[%s3995_s28 + $0x69] sm:$0xff]  ;;  %v4056_v35 = vpack.c.bf16 %v299_v29, %v298_v28  ;;  %v286_v38 = vld [vmem:[%s3995_s28 + $0x79] sm:$0xff]  ;;  %v287_v39 = vld [vmem:[%s3995_s28 + $0x81] sm:$0xff] }
  0x19   : > { %3600 = vmatpush3.bf16.msra.mxu1 %v589_v18  ;;  %3571 = vmatprep.mubr.msk.bf16.mxu0 %vm326_vm1, %v4022_v22  ;;  %v301_v33 = vld [vmem:[%s3995_s28 + $0x129] sm:$0xff]  ;;  %v4058_v36 = vpack.c.bf16 %v285_v31, %v284_v30  ;;  %v302_v40 = vld [vmem:[%s3995_s28 + $0x139] sm:$0xff]  ;;  %v303_v41 = vld [vmem:[%s3995_s28 + $0x141] sm:$0xff]  ;;  %v4078_v46 = vpack.c.bf16 %v287_v39, %v286_v38 }
  0x1a   : > { %3587 = vmatprep.mubr.msk.bf16.mxu1 %vm326_vm1, %v4024_v23  ;;  %3877 = vmatprep.subr.msk.bf16.mxu1 %vm375_vm0, %v4029_v24  ;;  %v4060_v37 = vpack.c.bf16 %v301_v33, %v300_v32  ;;  %v288_v42 = vld [vmem:[%s3995_s28 + $0x91] sm:$0xff]  ;;  %v289_v43 = vld [vmem:[%s3995_s28 + $0x99] sm:$0xff]  ;;  %v4080_v47 = vpack.c.bf16 %v303_v41, %v302_v40  ;;  %v290_v50 = vld [vmem:[%s3995_s28 + $0xa9] sm:$0xff] }
  0x1b   : > { %3878 = vmatprep.subr.msk.bf16.mxu0 %vm375_vm0, %v4034_v25  ;;  %v304_v44 = vld [vmem:[%s3995_s28 + $0x151] sm:$0xff]  ;;  %v305_v45 = vld [vmem:[%s3995_s28 + $0x159] sm:$0xff]  ;;  %v4082_v48 = vpack.c.bf16 %v289_v43, %v288_v42  ;;  %v306_v52 = vld [vmem:[%s3995_s28 + $0x169] sm:$0xff] }
  0x1c   : > { %v4084_v49 = vpack.c.bf16 %v305_v45, %v304_v44  ;;  %v291_v51 = vld [vmem:[%s3995_s28 + $0xb1] sm:$0xff]  ;;  %v752_v54 = vld [vmem:[%s3995_s28 + $0x2] sm:$0xff]  ;;  %v754_v62 = vld [vmem:[%s3995_s28 + $0x1a] sm:$0xff] }
  0x1d   : > { %v307_v53 = vld [vmem:[%s3995_s28 + $0x171] sm:$0xff]  ;;  %v227_v56 = vld [vmem:[%s3995_s28] sm:$0xff]  ;;  %v228_v57 = vld [vmem:[%s3995_s28 + $0x8] sm:$0xff]  ;;  %v4102_v58 = vpack.c.bf16 %v291_v51, %v290_v50 }
  0x1e   : > { %v753_v55 = vld [vmem:[%s3995_s28 + $0xa] sm:$0xff]  ;;  %v4104_v59 = vpack.c.bf16 %v307_v53, %v306_v52  ;;  %v259_v61 = vpack.c.bf16 %v228_v57, %v227_v56  ;;  %v755_v63 = vld [vmem:[%s3995_s28 + $0x22] sm:$0xff]  ;;  %v229_v0 = vld [vmem:[%s3995_s28 + $0x18] sm:$0xff] }
  0x1f   : > { %3572 = vmatmul.mubr.msk.bf16.gmra.mxu0 %vm326_vm1, %v4052_v34  ;;  %v784_v60 = vpack.c.bf16 %v753_v55, %v752_v54  ;;  %v230_v1 = vld [vmem:[%s3995_s28 + $0x20] sm:$0xff]  ;;  %v231_v2 = vld [vmem:[%s3995_s28 + $0x30] sm:$0xff]  ;;  %v232_v3 = vld [vmem:[%s3995_s28 + $0x38] sm:$0xff]  ;;  %v4118_v4 = vpack.c.bf16 %v755_v63, %v754_v62 }
  0x20   : > { %3588 = vmatmul.mubr.msk.bf16.gmra.mxu1 %vm326_vm1, %v4056_v35  ;;  %3575 = vmatprep.mubr.msk.bf16.mxu0 %vm326_vm1, %v4058_v36  ;;  %v756_v5 = vld [vmem:[%s3995_s28 + $0x32] sm:$0xff]  ;;  %v757_v6 = vld [vmem:[%s3995_s28 + $0x3a] sm:$0xff]  ;;  %v4122_v7 = vpack.c.bf16 %v230_v1, %v229_v0  ;;  %v4126_v9 = vpack.c.bf16 %v232_v3, %v231_v2  ;;  %v4137_v14 = vld [vmem:[%s5154_s1 + $0xa] sm:$0x3] }
  0x21   : > { %3591 = vmatprep.mubr.msk.bf16.mxu1 %vm326_vm1, %v4060_v37  ;;  %v4130_v13 = vpack.c.bf16 %v757_v6, %v756_v5  ;;  %v4142_v15 = vld [vmem:[%s5154_s1 + $0xc] sm:$0x3]  ;;  %v759_v19 = vld [vmem:[%s3995_s28 + $0x52] sm:$0xff]  ;;  %v760_v21 = vld [vmem:[%s3995_s28 + $0x62] sm:$0xff] }
  0x22   : > { %v233_v16 = vld [vmem:[%s3995_s28 + $0x48] sm:$0xff]  ;;  %v234_v20 = vld [vmem:[%s3995_s28 + $0x50] sm:$0xff]  ;;  %v235_v25 = vld [vmem:[%s3995_s28 + $0x60] sm:$0xff] }
  0x23   : > { %v758_v18 = vld [vmem:[%s3995_s28 + $0x4a] sm:$0xff]  ;;  %v4164_v28 = vpack.c.bf16 %v234_v20, %v233_v16  ;;  %v237_v31 = vld [vmem:[%s3995_s28 + $0x78] sm:$0xff]  ;;  %v763_v33 = vld [vmem:[%s3995_s28 + $0x82] sm:$0xff] }
  0x24   : > { %v761_v24 = vld [vmem:[%s3995_s28 + $0x6a] sm:$0xff]  ;;  %v4160_v27 = vpack.c.bf16 %v759_v19, %v758_v18  ;;  %v762_v32 = vld [vmem:[%s3995_s28 + $0x7a] sm:$0xff]  ;;  %v764_v39 = vld [vmem:[%s3995_s28 + $0x92] sm:$0xff] }
  0x25   : > { %v236_v26 = vld [vmem:[%s3995_s28 + $0x68] sm:$0xff]  ;;  %v4166_v29 = vpack.c.bf16 %v761_v24, %v760_v21  ;;  %v238_v38 = vld [vmem:[%s3995_s28 + $0x80] sm:$0xff]  ;;  %v239_v41 = vld [vmem:[%s3995_s28 + $0x90] sm:$0xff]  ;;  %v4186_v43 = vpack.c.bf16 %v763_v33, %v762_v32 }
  0x26   : > { %v4168_v30 = vpack.c.bf16 %v236_v26, %v235_v25  ;;  %v765_v40 = vld [vmem:[%s3995_s28 + $0x9a] sm:$0xff]  ;;  %v4188_v44 = vpack.c.bf16 %v238_v38, %v237_v31  ;;  %v241_v51 = vld [vmem:[%s3995_s28 + $0xa8] sm:$0xff]  ;;  %v767_v53 = vld [vmem:[%s3995_s28 + $0xb2] sm:$0xff] }
  0x27   : > { %3576 = vmatmul.mubr.msk.bf16.gmra.mxu0 %vm326_vm1, %v4078_v46  ;;  %v240_v42 = vld [vmem:[%s3995_s28 + $0x98] sm:$0xff]  ;;  %v4190_v45 = vpack.c.bf16 %v765_v40, %v764_v39  ;;  %v766_v52 = vld [vmem:[%s3995_s28 + $0xaa] sm:$0xff]  ;;  %v768_v55 = vld [vmem:[%s3995_s28 + $0xc2] sm:$0xff] }
  0x28   : > { %3592 = vmatmul.mubr.msk.bf16.gmra.mxu1 %vm326_vm1, %v4080_v47  ;;  %3579 = vmatprep.mubr.msk.bf16.mxu0 %vm326_vm1, %v4082_v48  ;;  %v4192_v50 = vpack.c.bf16 %v240_v42, %v239_v41  ;;  %v242_v54 = vld [vmem:[%s3995_s28 + $0xb0] sm:$0xff]  ;;  %v243_v57 = vld [vmem:[%s3995_s28 + $0xc0] sm:$0xff]  ;;  %v245_v1 = vld [vmem:[%s3995_s28 + $0xd8] sm:$0xff] }
  0x29   : > { %3595 = vmatprep.mubr.msk.bf16.mxu1 %vm326_vm1, %v4084_v49  ;;  %v769_v56 = vld [vmem:[%s3995_s28 + $0xca] sm:$0xff]  ;;  %v4212_v62 = vpack.c.bf16 %v242_v54, %v241_v51  ;;  %v770_v2 = vld [vmem:[%s3995_s28 + $0xda] sm:$0xff]  ;;  %v771_v3 = vld [vmem:[%s3995_s28 + $0xe2] sm:$0xff] }
  0x2a   : > { %v4214_v63 = vpack.c.bf16 %v769_v56, %v768_v55  ;;  %v246_v5 = vld [vmem:[%s3995_s28 + $0xe0] sm:$0xff]  ;;  %v772_v6 = vld [vmem:[%s3995_s28 + $0xf2] sm:$0xff]  ;;  %v4234_v18 = vpack.c.bf16 %v771_v3, %v770_v2  ;;  %v249_v24 = vld [vmem:[%s3995_s28 + $0x108] sm:$0xff] }
  0x2b   : > { %v248_v16 = vld [vmem:[%s3995_s28 + $0xf8] sm:$0xff]  ;;  %v4236_v19 = vpack.c.bf16 %v246_v5, %v245_v1  ;;  %v774_v25 = vld [vmem:[%s3995_s28 + $0x10a] sm:$0xff]  ;;  %v776_v32 = vld [vmem:[%s3995_s28 + $0x122] sm:$0xff] }
  0x2c   : > { %v775_v26 = vld [vmem:[%s3995_s28 + $0x112] sm:$0xff]  ;;  %v777_v33 = vld [vmem:[%s3995_s28 + $0x12a] sm:$0xff]  ;;  %v251_v38 = vld [vmem:[%s3995_s28 + $0x120] sm:$0xff] }
  0x2d   : > { %v250_v31 = vld [vmem:[%s3995_s28 + $0x110] sm:$0xff]  ;;  %v252_v39 = vld [vmem:[%s3995_s28 + $0x128] sm:$0xff]  ;;  %v4258_v40 = vpack.c.bf16 %v775_v26, %v774_v25  ;;  %v4262_v42 = vpack.c.bf16 %v777_v33, %v776_v32  ;;  %v254_v55 = vld [vmem:[%s3995_s28 + $0x140] sm:$0xff]  ;;  %v1736_v32 = vsel %vm375_vm0, %v4137_v14, 0 }
  0x2e   : > { %v4260_v41 = vpack.c.bf16 %v250_v31, %v249_v24  ;;  %v4264_v51 = vpack.c.bf16 %v252_v39, %v251_v38  ;;  %v779_v54 = vld [vmem:[%s3995_s28 + $0x142] sm:$0xff]  ;;  %v780_v56 = vld [vmem:[%s3995_s28 + $0x152] sm:$0xff]  ;;  %v2033_v31 = vsel %vm375_vm0, %v4142_v15, 0  ;;  %v3341_v33 = vld [vmem:[%s5154_s1 + $0xe] sm:$0x3] }
  0x2f   : > { %3580 = vmatmul.mubr.msk.bf16.gmra.mxu0 %vm326_vm1, %v4102_v58  ;;  %v256_v1 = vld [vmem:[%s3995_s28 + $0x158] sm:$0xff]  ;;  %v258_v24 = vld [vmem:[%s3995_s28 + $0x170] sm:$0xff] }
  0x30   : > { %3596 = vmatmul.mubr.msk.bf16.gmra.mxu1 %vm326_vm1, %v4104_v59  ;;  %3635 = vmatprep.mubr.msk.bf16.mxu0 %vm326_vm1, %v784_v60  ;;  %v244_v60 = vld [vmem:[%s3995_s28 + $0xc8] sm:$0xff] }
  0x31   : > { %3601 = vmatprep.mubr.msk.bf16.mxu1 %vm326_vm1, %v259_v61  ;;  %v4210_v61 = vpack.c.bf16 %v767_v53, %v766_v52  ;;  %v4216_v0 = vpack.c.bf16 %v244_v60, %v243_v57  ;;  %v253_v52 = vld [vmem:[%s3995_s28 + $0x138] sm:$0xff]  ;;  %v255_v60 = vld [vmem:[%s3995_s28 + $0x150] sm:$0xff] }
  0x32   : > { %v778_v53 = vld [vmem:[%s3995_s28 + $0x13a] sm:$0xff]  ;;  %v4284_v3 = vpack.c.bf16 %v254_v55, %v253_v52  ;;  %v3242_v55 = vld [vmem:[%s3995_s28 + $0x18a] sm:$0xff] }
  0x33   : > { %v781_v57 = vld [vmem:[%s3995_s28 + $0x15a] sm:$0xff]  ;;  %v4282_v2 = vpack.c.bf16 %v779_v54, %v778_v53  ;;  %v3241_v54 = vld [vmem:[%s3995_s28 + $0x182] sm:$0xff] }
  0x34   : > { %v4286_v5 = vpack.c.bf16 %v781_v57, %v780_v56  ;;  %v3291_v52 = vld [vmem:[%s3995_s28 + $0x1a0] sm:$0xff] }
  0x37   : > { %3636 = vmatmul.mubr.msk.bf16.vlgmr.msra.gmra.mxu0 %vm326_vm1, %v4118_v4 }
  0x38   : > { %3602 = vmatmul.mubr.msk.bf16.vlgmr.msra.gmra.mxu1 %vm326_vm1, %v4122_v7  ;;  %3702 = vmatpush3.bf16.msra.mxu0 %v1442_v8  ;;  %v773_v8 = vld [vmem:[%s3995_s28 + $0xfa] sm:$0xff] }
  0x39   : > { %3668 = vmatpush3.bf16.msra.mxu1 %v1148_v10  ;;  %3605 = vmatprep.mubr.msk.bf16.mxu1 %vm326_vm1, %v4126_v9  ;;  %v247_v10 = vld [vmem:[%s3995_s28 + $0xf0] sm:$0xff]  ;;  %v4238_v20 = vpack.c.bf16 %v773_v8, %v772_v6  ;;  %v4288_v6 = vpack.c.bf16 %v256_v1, %v255_v60 }
  0x3a   : > { %3639 = vmatprep.mubr.msk.bf16.mxu0 %vm326_vm1, %v4130_v13  ;;  %3879 = vmatprep.subr.msk.bf16.mxu1 %vm375_vm0, %v4137_v14  ;;  %v4240_v21 = vpack.c.bf16 %v248_v16, %v247_v10  ;;  %v782_v8 = vld [vmem:[%s3995_s28 + $0x16a] sm:$0xff]  ;;  %v783_v10 = vld [vmem:[%s3995_s28 + $0x172] sm:$0xff] }
  0x3b   : > { %3880 = vmatprep.subr.msk.bf16.mxu0 %vm375_vm0, %v4142_v15  ;;  %v257_v16 = vld [vmem:[%s3995_s28 + $0x168] sm:$0xff]  ;;  %v4302_v25 = vpack.c.bf16 %v783_v10, %v782_v8 }
  0x3c   : > { %v4304_v26 = vpack.c.bf16 %v258_v24, %v257_v16 }
  0x3f   : > { %3640 = vmatmul.mubr.msk.bf16.gmra.mxu0 %vm326_vm1, %v4160_v27 }
  0x40   : > { %3606 = vmatmul.mubr.msk.bf16.gmra.mxu1 %vm326_vm1, %v4164_v28  ;;  %3643 = vmatprep.mubr.msk.bf16.mxu0 %vm326_vm1, %v4166_v29 }
  0x41   : > { %3609 = vmatprep.mubr.msk.bf16.mxu1 %vm326_vm1, %v4168_v30 }
  0x47   : > { %3644 = vmatmul.mubr.msk.bf16.gmra.mxu0 %vm326_vm1, %v4186_v43 }
  0x48   : > { %3610 = vmatmul.mubr.msk.bf16.gmra.mxu1 %vm326_vm1, %v4188_v44  ;;  %3647 = vmatprep.mubr.msk.bf16.mxu0 %vm326_vm1, %v4190_v45 }
  0x49   : > { %3613 = vmatprep.mubr.msk.bf16.mxu1 %vm326_vm1, %v4192_v50 }
  0x4f   : > { %3648 = vmatmul.mubr.msk.bf16.gmra.mxu0 %vm326_vm1, %v4210_v61 }
  0x50   : > { %3614 = vmatmul.mubr.msk.bf16.gmra.mxu1 %vm326_vm1, %v4212_v62  ;;  %3651 = vmatprep.mubr.msk.bf16.mxu0 %vm326_vm1, %v4214_v63 }
  0x51   : > { %3617 = vmatprep.mubr.msk.bf16.mxu1 %vm326_vm1, %v4216_v0 }
  0x57   : > { %3652 = vmatmul.mubr.msk.bf16.gmra.mxu0 %vm326_vm1, %v4234_v18 }
  0x58   : > { %3618 = vmatmul.mubr.msk.bf16.gmra.mxu1 %vm326_vm1, %v4236_v19  ;;  %3655 = vmatprep.mubr.msk.bf16.mxu0 %vm326_vm1, %v4238_v20 }
  0x59   : > { %3621 = vmatprep.mubr.msk.bf16.mxu1 %vm326_vm1, %v4240_v21 }
  0x5f   : > { %3656 = vmatmul.mubr.msk.bf16.gmra.mxu0 %vm326_vm1, %v4258_v40 }
  0x60   : > { %3622 = vmatmul.mubr.msk.bf16.gmra.mxu1 %vm326_vm1, %v4260_v41  ;;  %3659 = vmatprep.mubr.msk.bf16.mxu0 %vm326_vm1, %v4262_v42 }
  0x61   : > { %3625 = vmatprep.mubr.msk.bf16.mxu1 %vm326_vm1, %v4264_v51 }
  0x67   : > { %3660 = vmatmul.mubr.msk.bf16.gmra.mxu0 %vm326_vm1, %v4282_v2 }
  0x68   : > { %3626 = vmatmul.mubr.msk.bf16.gmra.mxu1 %vm326_vm1, %v4284_v3  ;;  %3663 = vmatprep.mubr.msk.bf16.mxu0 %vm326_vm1, %v4286_v5 }
  0x69   : > { %3629 = vmatprep.mubr.msk.bf16.mxu1 %vm326_vm1, %v4288_v6 }
  0x6f   : > { %3664 = vmatmul.mubr.msk.bf16.gmra.mxu0 %vm326_vm1, %v4302_v25 }
  0x70   : > { %3630 = vmatmul.mubr.msk.bf16.gmra.mxu1 %vm326_vm1, %v4304_v26  ;;  %3703 = vmatprep.mubr.msk.bf16.mxu0 %vm326_vm1, %v4005_v12  ;;  %v3390_v12 = vld [vmem:[%s5154_s1 + $0x10] sm:$0x3] }
  0x71   : > { %3669 = vmatprep.mubr.msk.bf16.mxu1 %vm326_vm1, %v4122_v7 }
  0x77   : > { %3704 = vmatmul.mubr.msk.bf16.vlgmr.msra.gmra.mxu0 %vm326_vm1, %v4022_v22 }
  0x78   : > { %3670 = vmatmul.mubr.msk.bf16.vlgmr.msra.gmra.mxu1 %vm326_vm1, %v4126_v9  ;;  %3770 = vmatpush3.bf16.msra.mxu0 %v2033_v31 }
  0x79   : > { %3736 = vmatpush3.bf16.msra.mxu1 %v1736_v32  ;;  %3673 = vmatprep.mubr.msk.bf16.mxu1 %vm326_vm1, %v4164_v28 }
  0x7a   : > { %3707 = vmatprep.mubr.msk.bf16.mxu0 %vm326_vm1, %v4052_v34  ;;  %3881 = vmatprep.subr.msk.bf16.mxu1 %vm375_vm0, %v3341_v33 }
  0x7b   : > { %3882 = vmatprep.subr.msk.bf16.mxu0 %vm375_vm0, %v3390_v12 }
  0x7f   : > { %3708 = vmatmul.mubr.msk.bf16.gmra.mxu0 %vm326_vm1, %v4058_v36 }
  0x80   : > { %3674 = vmatmul.mubr.msk.bf16.gmra.mxu1 %vm326_vm1, %v4168_v30  ;;  %3711 = vmatprep.mubr.msk.bf16.mxu0 %vm326_vm1, %v4078_v46 }
  0x81   : > { %3677 = vmatprep.mubr.msk.bf16.mxu1 %vm326_vm1, %v4188_v44 }
  0x87   : > { %3712 = vmatmul.mubr.msk.bf16.gmra.mxu0 %vm326_vm1, %v4082_v48  ;;  %v2621_v48 = vsel %vm375_vm0, %v3390_v12, 0 }
  0x88   : > { %3678 = vmatmul.mubr.msk.bf16.gmra.mxu1 %vm326_vm1, %v4192_v50  ;;  %3715 = vmatprep.mubr.msk.bf16.mxu0 %vm326_vm1, %v4102_v58 }
  0x89   : > { %3681 = vmatprep.mubr.msk.bf16.mxu1 %vm326_vm1, %v4212_v62 }
  0x8f   : > { %3716 = vmatmul.mubr.msk.bf16.gmra.mxu0 %vm326_vm1, %v4003_v11  ;;  %v3192_v11 = vld [vmem:[%s3995_s28 + $0x181] sm:$0xff] }
  0x90   : > { %3682 = vmatmul.mubr.msk.bf16.gmra.mxu1 %vm326_vm1, %v4216_v0  ;;  %3719 = vmatprep.mubr.msk.bf16.mxu0 %vm326_vm1, %v4012_v17  ;;  %v3193_v17 = vld [vmem:[%s3995_s28 + $0x189] sm:$0xff] }
  0x91   : > { %3685 = vmatprep.mubr.msk.bf16.mxu1 %vm326_vm1, %v4236_v19 }
  0x97   : > { %3720 = vmatmul.mubr.msk.bf16.gmra.mxu0 %vm326_vm1, %v4024_v23  ;;  %v3143_v23 = vld [vmem:[%s3995_s28 + $0x180] sm:$0xff] }
  0x98   : > { %3686 = vmatmul.mubr.msk.bf16.gmra.mxu1 %vm326_vm1, %v4240_v21  ;;  %3723 = vmatprep.mubr.msk.bf16.mxu0 %vm326_vm1, %v4056_v35  ;;  %v3144_v35 = vld [vmem:[%s3995_s28 + $0x188] sm:$0xff] }
  0x99   : > { %3689 = vmatprep.mubr.msk.bf16.mxu1 %vm326_vm1, %v4260_v41 }
  0x9f   : > { %3724 = vmatmul.mubr.msk.bf16.gmra.mxu0 %vm326_vm1, %v4060_v37  ;;  %v4386_v37 = vpack.c.bf16 %v3193_v17, %v3192_v11 }
  0xa0   : > { %3690 = vmatmul.mubr.msk.bf16.gmra.mxu1 %vm326_vm1, %v4264_v51  ;;  %3727 = vmatprep.mubr.msk.bf16.mxu0 %vm326_vm1, %v4080_v47  ;;  %v1096_v47 = vpack.c.bf16 %v3144_v35, %v3143_v23  ;;  %v3317_v23 = vld [vmem:[%s3995_s28 + $0x91] sm:$0xff]  ;;  %v3318_v35 = vld [vmem:[%s3995_s28 + $0x99] sm:$0xff] }
  0xa1   : > { %3693 = vmatprep.mubr.msk.bf16.mxu1 %vm326_vm1, %v4284_v3 }
  0xa7   : > { %3728 = vmatmul.mubr.msk.bf16.gmra.mxu0 %vm326_vm1, %v4084_v49  ;;  %v2327_v49 = vsel %vm375_vm0, %v3341_v33, 0 }
  0xa8   : > { %3694 = vmatmul.mubr.msk.bf16.gmra.mxu1 %vm326_vm1, %v4288_v6  ;;  %3731 = vmatprep.mubr.msk.bf16.mxu0 %vm326_vm1, %v4104_v59 }
  0xa9   : > { %3697 = vmatprep.mubr.msk.bf16.mxu1 %vm326_vm1, %v4304_v26 }
  0xaf   : > { %3732 = vmatmul.mubr.msk.bf16.gmra.mxu0 %vm326_vm1, %v4386_v37 }
  0xb0   : > { %3698 = vmatmul.mubr.msk.bf16.gmra.mxu1 %vm326_vm1, %v1096_v47  ;;  %3771 = vmatprep.mubr.msk.bf16.mxu0 %vm326_vm1, %v4126_v9 }
  0xb1   : > { %3737 = vmatprep.mubr.msk.bf16.mxu1 %vm326_vm1, %v4118_v4 }
  0xb7   : > { %3772 = vmatmul.mubr.msk.bf16.vlgmr.msra.gmra.mxu0 %vm326_vm1, %v4164_v28 }
  0xb8   : > { %3738 = vmatmul.mubr.msk.bf16.vlgmr.msra.gmra.mxu1 %vm326_vm1, %v4130_v13  ;;  %3838 = vmatpush3.bf16.msra.mxu0 %v2621_v48 }
  0xb9   : > { %3804 = vmatpush3.bf16.msra.mxu1 %v2327_v49  ;;  %3741 = vmatprep.mubr.msk.bf16.mxu1 %vm326_vm1, %v4160_v27 }
  0xba   : > { %3775 = vmatprep.mubr.msk.bf16.mxu0 %vm326_vm1, %v4168_v30 }
  0xbf   : > { %3776 = vmatmul.mubr.msk.bf16.gmra.mxu0 %vm326_vm1, %v4188_v44 }
  0xc0   : > { %3742 = vmatmul.mubr.msk.bf16.gmra.mxu1 %vm326_vm1, %v4166_v29  ;;  %3779 = vmatprep.mubr.msk.bf16.mxu0 %vm326_vm1, %v4192_v50 }
  0xc1   : > { %3745 = vmatprep.mubr.msk.bf16.mxu1 %vm326_vm1, %v4186_v43 }
  0xc7   : > { %3780 = vmatmul.mubr.msk.bf16.gmra.mxu0 %vm326_vm1, %v4212_v62 }
  0xc8   : > { %3746 = vmatmul.mubr.msk.bf16.gmra.mxu1 %vm326_vm1, %v4190_v45  ;;  %3783 = vmatprep.mubr.msk.bf16.mxu0 %vm326_vm1, %v4216_v0 }
  0xc9   : > { %3749 = vmatprep.mubr.msk.bf16.mxu1 %vm326_vm1, %v4210_v61 }
  0xcf   : > { %3784 = vmatmul.mubr.msk.bf16.gmra.mxu0 %vm326_vm1, %v4236_v19 }
  0xd0   : > { %3750 = vmatmul.mubr.msk.bf16.gmra.mxu1 %vm326_vm1, %v4214_v63  ;;  %3787 = vmatprep.mubr.msk.bf16.mxu0 %vm326_vm1, %v4240_v21 }
  0xd1   : > { %3753 = vmatprep.mubr.msk.bf16.mxu1 %vm326_vm1, %v4234_v18 }
  0xd7   : > { %v3569_v58 = vpop.f32.mrf.mxu0  ;;  %3788 = vmatmul.mubr.msk.bf16.gmra.mxu0 %vm326_vm1, %v4260_v41 }
  0xd8   : > { %v4431_v59 = vpop.f32.mrf.mxu1  ;;  %3754 = vmatmul.mubr.msk.bf16.gmra.mxu1 %vm326_vm1, %v4238_v20  ;;  %3791 = vmatprep.mubr.msk.bf16.mxu0 %vm326_vm1, %v4264_v51  ;;  %v3290_v51 = vld [vmem:[%s3995_s28 + $0x198] sm:$0xff] }
  0xd9   : > { %v413_v4 = vpop.f32.mrf.mxu0  ;;  %3757 = vmatprep.mubr.msk.bf16.mxu1 %vm326_vm1, %v4258_v40  ;;  %v1981_v60 = vpack.c.bf16 %v3291_v52, %v3290_v51 }
  0xda   : > { %v4439_v7 = vpop.f32.mrf.mxu1 }
  0xdb   : > { %v3570_v9 = vpop.f32.mrf.mxu0 }
  0xdc   : > { %v4441_v14 = vpop.f32.mrf.mxu1 }
  0xdd   : > { %v4443_v15 = vpop.f32.mrf.mxu0 }
  0xde   : > { %v4445_v28 = vpop.f32.mrf.mxu1 }
  0xdf   : > { %v4447_v30 = vpop.f32.mrf.mxu0  ;;  %3792 = vmatmul.mubr.msk.bf16.gmra.mxu0 %vm326_vm1, %v4284_v3  ;;  %v4494_v3 = vpack.c.bf16 %v3242_v55, %v3241_v54 }
  0xe0   : > { %v4451_v44 = vpop.f32.mrf.mxu1  ;;  %3758 = vmatmul.mubr.msk.bf16.gmra.mxu1 %vm326_vm1, %v4262_v42  ;;  %3795 = vmatprep.mubr.msk.bf16.mxu0 %vm326_vm1, %v4288_v6 }
  0xe1   : > { %v4457_v50 = vpop.f32.mrf.mxu0  ;;  %3761 = vmatprep.mubr.msk.bf16.mxu1 %vm326_vm1, %v4282_v2 }
  0xe2   : > { %v4461_v62 = vpop.f32.mrf.mxu1 }
  0xe3   : > { %v4463_v0 = vpop.f32.mrf.mxu0 }
  0xe4   : > { %v4465_v19 = vpop.f32.mrf.mxu1 }
  0xe5   : > { %v4467_v21 = vpop.f32.mrf.mxu0 }
  0xe6   : > { %v4469_v38 = vpop.f32.mrf.mxu1 }
  0xe7   : > { %v4471_v39 = vpop.f32.mrf.mxu0  ;;  %3796 = vmatmul.mubr.msk.bf16.gmra.mxu0 %vm326_vm1, %v4304_v26 }
  0xe8   : > { %v4475_v41 = vpop.f32.mrf.mxu1  ;;  %3762 = vmatmul.mubr.msk.bf16.gmra.mxu1 %vm326_vm1, %v4286_v5  ;;  %3799 = vmatprep.mubr.msk.bf16.mxu0 %vm326_vm1, %v1096_v47 }
  0xe9   : > { %v4482_v53 = vpop.f32.mrf.mxu0  ;;  %3765 = vmatprep.mubr.msk.bf16.mxu1 %vm326_vm1, %v4302_v25 }
  0xea   : > { %v4488_v56 = vpop.f32.mrf.mxu1 }
  0xeb   : > { %v4490_v57 = vpop.f32.mrf.mxu0 }
  0xec   : > { %v4492_v1 = vpop.f32.mrf.mxu1 }
  0xed   : > { %v4496_v6 = vpop.f32.mrf.mxu0 }
  0xee   : > { %v4498_v8 = vpop.f32.mrf.mxu1 }
  0xef   : > { %v4500_v10 = vpop.f32.mrf.mxu0  ;;  %3800 = vmatmul.mubr.msk.bf16.gmra.mxu0 %vm326_vm1, %v1981_v60 }
  0xf0   : > { %v4503_v16 = vpop.f32.mrf.mxu1  ;;  %3766 = vmatmul.mubr.msk.bf16.gmra.mxu1 %vm326_vm1, %v4494_v3  ;;  %3839 = vmatprep.mubr.msk.bf16.mxu0 %vm326_vm1, %v4130_v13 }
  0xf1   : > { %v4509_v24 = vpop.f32.mrf.mxu0  ;;  %3805 = vmatprep.mubr.msk.bf16.mxu1 %vm326_vm1, %v4022_v22 }
  0xf2   : > { %v4513_v25 = vpop.f32.mrf.mxu1 }
  0xf3   : > { %v4515_v26 = vpop.f32.mrf.mxu0 }
  0xf4   : > { %v4517_v31 = vpop.f32.mrf.mxu1 }
  0xf5   : > { %v4519_v32 = vpop.f32.mrf.mxu0 }
  0xf6   : > { %v4521_v33 = vpop.f32.mrf.mxu1 }
  0xf7   : > { %v3637_v12 = vpop.f32.mrf.mxu0  ;;  %3840 = vmatmul.mubr.msk.bf16.vlgmr.msra.gmra.mxu0 %vm326_vm1, %v4160_v27 }
  0xf8   : > { %v3603_v13 = vpop.f32.mrf.mxu1  ;;  %3806 = vmatmul.mubr.msk.bf16.vlgmr.msra.gmra.mxu1 %vm326_vm1, %v4052_v34  ;;  %3843 = vmatprep.mubr.msk.bf16.mxu0 %vm326_vm1, %v4166_v29  ;;  %v2264_v29 = vpack.c.bf16 %v3318_v35, %v3317_v23 }
  0xf9   : > { %v634_v22 = vadd.f32 %v3603_v13, %v3569_v58  ;;  %v887_v11 = vpop.f32.mrf.mxu0  ;;  %3809 = vmatprep.mubr.msk.bf16.mxu1 %vm326_vm1, %v4058_v36  ;;  %v3319_v13 = vld [vmem:[%s3995_s28 + $0xa9] sm:$0xff] }
  0xfa   : > { %v625_v17 = vpop.f32.mrf.mxu1 }
  0xfb   : > { %v4533_v47 = vadd.f32 %v3637_v12, %v634_v22  ;;  %v626_v48 = vadd.f32 %v625_v17, %v413_v4  ;;  %v3638_v49 = vpop.f32.mrf.mxu0  ;;  %v3322_v17 = vld [vmem:[%s3995_s28 + $0xc9] sm:$0xff] }
  0xfc   : > { %v3604_v27 = vpop.f32.mrf.mxu1 }
  0xfd   : > { %v4535_v51 = vadd.f32 %v887_v11, %v626_v48  ;;  %v637_v34 = vadd.f32 %v3604_v27, %v3570_v9  ;;  %v890_v52 = vpop.f32.mrf.mxu0  ;;  %v3321_v11 = vld [vmem:[%s3995_s28 + $0xc1] sm:$0xff] }
  0xfe   : > { %v628_v58 = vpop.f32.mrf.mxu1  ;;  %v2266_v27 = vpack.c.bf16 %v3322_v17, %v3321_v11 }
  0xff   : > { %v4537_v54 = vadd.f32 %v3638_v49, %v637_v34  ;;  %v629_v36 = vadd.f32 %v628_v58, %v4443_v15  ;;  %v3641_v55 = vpop.f32.mrf.mxu0  ;;  %3844 = vmatmul.mubr.msk.bf16.gmra.mxu0 %vm326_vm1, %v4186_v43  ;;  %v3320_v15 = vld [vmem:[%s3995_s28 + $0xb1] sm:$0xff] }
 0x100   : > { %v3607_v4 = vpop.f32.mrf.mxu1  ;;  %3810 = vmatmul.mubr.msk.bf16.gmra.mxu1 %vm326_vm1, %v4078_v46  ;;  %3847 = vmatprep.mubr.msk.bf16.mxu0 %vm326_vm1, %v4190_v45  ;;  %v2265_v48 = vpack.c.bf16 %v3320_v15, %v3319_v13  ;;  %v3326_v13 = vld [vmem:[%s3995_s28 + $0xf9] sm:$0xff] }
 0x101   : > { %v4546_v9 = vadd.f32 %v890_v52, %v629_v36  ;;  %v650_v60 = vadd.f32 %v3607_v4, %v4447_v30  ;;  %v903_v12 = vpop.f32.mrf.mxu0  ;;  %3813 = vmatprep.mubr.msk.bf16.mxu1 %vm326_vm1, %v2264_v29  ;;  %v3323_v4 = vld [vmem:[%s3995_s28 + $0xd9] sm:$0xff] }
 0x102   : > { %v641_v22 = vpop.f32.mrf.mxu1 }
 0x103   : > { %v4554_v43 = vadd.f32 %v3641_v55, %v650_v60  ;;  %v642_v23 = vadd.f32 %v641_v22, %v4457_v50  ;;  %v3642_v46 = vpop.f32.mrf.mxu0  ;;  %v3324_v60 = vld [vmem:[%s3995_s28 + $0xe1] sm:$0xff] }
 0x104   : > { %v3608_v35 = vpop.f32.mrf.mxu1  ;;  %v2267_v17 = vpack.c.bf16 %v3324_v60, %v3323_v4 }
 0x105   : > { %v4557_v45 = vadd.f32 %v903_v12, %v642_v23  ;;  %v653_v30 = vadd.f32 %v3608_v35, %v4463_v0  ;;  %v906_v49 = vpop.f32.mrf.mxu0  ;;  %v3325_v12 = vld [vmem:[%s3995_s28 + $0xf1] sm:$0xff] }
 0x106   : > { %v644_v34 = vpop.f32.mrf.mxu1 }
 0x107   : > { %v4560_v52 = vadd.f32 %v3642_v46, %v653_v30  ;;  %v645_v29 = vadd.f32 %v644_v34, %v4467_v21  ;;  %v3645_v58 = vpop.f32.mrf.mxu0  ;;  %3848 = vmatmul.mubr.msk.bf16.gmra.mxu0 %vm326_vm1, %v4210_v61  ;;  %v2268_v46 = vpack.c.bf16 %v3326_v13, %v3325_v12 }
 0x108   : > { %v3611_v50 = vpop.f32.mrf.mxu1  ;;  %3814 = vmatmul.mubr.msk.bf16.gmra.mxu1 %vm326_vm1, %v2265_v48  ;;  %3851 = vmatprep.mubr.msk.bf16.mxu0 %vm326_vm1, %v4214_v63 }
 0x109   : > { %v4568_v0 = vadd.f32 %v906_v49, %v645_v29  ;;  %v666_v36 = vadd.f32 %v3611_v50, %v4471_v39  ;;  %v919_v55 = vpop.f32.mrf.mxu0  ;;  %3817 = vmatprep.mubr.msk.bf16.mxu1 %vm326_vm1, %v2266_v27  ;;  %v3327_v29 = vld [vmem:[%s3995_s28 + $0x109] sm:$0xff]  ;;  %v3329_v50 = vld [vmem:[%s3995_s28 + $0x121] sm:$0xff] }
 0x10a   : > { %v657_v21 = vpop.f32.mrf.mxu1 }
 0x10b   : > { %v4576_v15 = vadd.f32 %v3645_v58, %v666_v36  ;;  %v658_v61 = vadd.f32 %v657_v21, %v4482_v53  ;;  %v3646_v22 = vpop.f32.mrf.mxu0  ;;  %v3328_v58 = vld [vmem:[%s3995_s28 + $0x111] sm:$0xff]  ;;  %v3330_v36 = vld [vmem:[%s3995_s28 + $0x129] sm:$0xff] }
 0x10c   : > { %v3612_v11 = vpop.f32.mrf.mxu1  ;;  %v2269_v21 = vpack.c.bf16 %v3328_v58, %v3327_v29  ;;  %v2270_v13 = vpack.c.bf16 %v3330_v36, %v3329_v50 }
 0x10d   : > { %v4579_v63 = vadd.f32 %v919_v55, %v658_v61  ;;  %v669_v39 = vadd.f32 %v3612_v11, %v4490_v57  ;;  %v922_v23 = vpop.f32.mrf.mxu0 }
 0x10e   : > { %v660_v35 = vpop.f32.mrf.mxu1 }
 0x10f   : > { %v4582_v48 = vadd.f32 %v3646_v22, %v669_v39  ;;  %v661_v30 = vadd.f32 %v660_v35, %v4496_v6  ;;  %v3649_v49 = vpop.f32.mrf.mxu0  ;;  %3852 = vmatmul.mubr.msk.bf16.gmra.mxu0 %vm326_vm1, %v4234_v18  ;;  %v3332_v35 = vld [vmem:[%s3995_s28 + $0x141] sm:$0xff] }
 0x110   : > { %v3615_v53 = vpop.f32.mrf.mxu1  ;;  %3818 = vmatmul.mubr.msk.bf16.gmra.mxu1 %vm326_vm1, %v2267_v17  ;;  %3855 = vmatprep.mubr.msk.bf16.mxu0 %vm326_vm1, %v4238_v20 }
 0x111   : > { %v4590_v57 = vadd.f32 %v922_v23, %v661_v30  ;;  %v682_v27 = vadd.f32 %v3615_v53, %v4500_v10  ;;  %v935_v34 = vpop.f32.mrf.mxu0  ;;  %3821 = vmatprep.mubr.msk.bf16.mxu1 %vm326_vm1, %v2268_v46  ;;  %v3331_v46 = vld [vmem:[%s3995_s28 + $0x139] sm:$0xff]  ;;  %v3333_v30 = vld [vmem:[%s3995_s28 + $0x151] sm:$0xff] }
 0x112   : > { %v673_v6 = vpop.f32.mrf.mxu1 }
 0x113   : > { %v4598_v55 = vadd.f32 %v3649_v49, %v682_v27  ;;  %v674_v18 = vadd.f32 %v673_v6, %v4509_v24  ;;  %v3650_v4 = vpop.f32.mrf.mxu0  ;;  %v3334_v49 = vld [vmem:[%s3995_s28 + $0x159] sm:$0xff] }
 0x114   : > { %v3616_v60 = vpop.f32.mrf.mxu1  ;;  %v2272_v6 = vpack.c.bf16 %v3334_v49, %v3333_v30 }
 0x115   : > { %v4601_v20 = vadd.f32 %v935_v34, %v674_v18  ;;  %v685_v10 = vadd.f32 %v3616_v60, %v4515_v26  ;;  %v938_v12 = vpop.f32.mrf.mxu0  ;;  %v2271_v34 = vpack.c.bf16 %v3332_v35, %v3331_v46  ;;  %v3385_v60 = vld [vmem:[%s3995_s28 + $0x172] sm:$0xff] }
 0x116   : > { %v676_v61 = vpop.f32.mrf.mxu1 }
 0x117   : > { %v4604_v22 = vadd.f32 %v3650_v4, %v685_v10  ;;  %v677_v11 = vadd.f32 %v676_v61, %v4519_v32  ;;  %v3653_v17 = vpop.f32.mrf.mxu0  ;;  %3856 = vmatmul.mubr.msk.bf16.gmra.mxu0 %vm326_vm1, %v4258_v40 }
 0x118   : > { %v3619_v24 = vpop.f32.mrf.mxu1  ;;  %3822 = vmatmul.mubr.msk.bf16.gmra.mxu1 %vm326_vm1, %v2269_v21  ;;  %3859 = vmatprep.mubr.msk.bf16.mxu0 %vm326_vm1, %v4262_v42 }
 0x119   : > { %v4612_v26 = vadd.f32 %v938_v12, %v677_v11  ;;  %v698_v39 = vadd.f32 %v3619_v24, %v4431_v59  ;;  %v951_v23 = vpop.f32.mrf.mxu0  ;;  %3825 = vmatprep.mubr.msk.bf16.mxu1 %vm326_vm1, %v2270_v13  ;;  %v3336_v13 = vld [vmem:[%s3995_s28 + $0x171] sm:$0xff] }
 0x11a   : > { %v689_v32 = vpop.f32.mrf.mxu1 }
 0x11b   : > { %v4620_v53 = vadd.f32 %v3653_v17, %v698_v39  ;;  %v690_v40 = vadd.f32 %v689_v32, %v4439_v7  ;;  %v3654_v27 = vpop.f32.mrf.mxu0 }
 0x11c   : > { %v3620_v42 = vpop.f32.mrf.mxu1 }
 0x11d   : > { %v4623_v29 = vadd.f32 %v951_v23, %v690_v40  ;;  %v701_v59 = vadd.f32 %v3620_v42, %v4441_v14  ;;  %v954_v58 = vpop.f32.mrf.mxu0  ;;  %v3384_v14 = vld [vmem:[%s3995_s28 + $0x16a] sm:$0xff]  ;;  %v3388_v40 = vld [vmem:[%s3995_s28 + $0x19a] sm:$0xff] }
 0x11e   : > { %v692_v50 = vpop.f32.mrf.mxu1 }
 0x11f   : > { %v4626_v36 = vadd.f32 %v3654_v27, %v701_v59  ;;  %v693_v18 = vadd.f32 %v692_v50, %v4445_v28  ;;  %v3657_v4 = vpop.f32.mrf.mxu0  ;;  %3860 = vmatmul.mubr.msk.bf16.gmra.mxu0 %vm326_vm1, %v4282_v2  ;;  %v3335_v28 = vld [vmem:[%s3995_s28 + $0x169] sm:$0xff]  ;;  %v3340_v59 = vld [vmem:[%s3995_s28 + $0x1a1] sm:$0xff] }
 0x120   : > { %v3623_v7 = vpop.f32.mrf.mxu1  ;;  %3826 = vmatmul.mubr.msk.bf16.gmra.mxu1 %vm326_vm1, %v2271_v34  ;;  %3863 = vmatprep.mubr.msk.bf16.mxu0 %vm326_vm1, %v4286_v5  ;;  %v2567_v5 = vpack.c.bf16 %v3385_v60, %v3384_v14  ;;  %v2273_v39 = vpack.c.bf16 %v3336_v13, %v3335_v28  ;;  %v3389_v27 = vld [vmem:[%s3995_s28 + $0x1a2] sm:$0xff] }
 0x121   : > { %v4636_v21 = vadd.f32 %v954_v58, %v693_v18  ;;  %v714_v10 = vadd.f32 %v3623_v7, %v4451_v44  ;;  %v967_v12 = vpop.f32.mrf.mxu0  ;;  %3829 = vmatprep.mubr.msk.bf16.mxu1 %vm326_vm1, %v2272_v6 }
 0x122   : > { %v705_v61 = vpop.f32.mrf.mxu1 }
 0x123   : > { %v4642_v11 = vadd.f32 %v3657_v4, %v714_v10  ;;  %v706_v2 = vadd.f32 %v705_v61, %v4461_v62  ;;  %v3658_v17 = vpop.f32.mrf.mxu0  ;;  %v2569_v4 = vpack.c.bf16 %v3389_v27, %v3388_v40 }
 0x124   : > { %v3624_v24 = vpop.f32.mrf.mxu1 }
 0x125   : > { %v4645_v23 = vadd.f32 %v967_v12, %v706_v2  ;;  %v717_v44 = vadd.f32 %v3624_v24, %v4465_v19  ;;  %v970_v46 = vpop.f32.mrf.mxu0 }
 0x126   : > { %v708_v35 = vpop.f32.mrf.mxu1 }
 0x127   : > { %v4648_v32 = vadd.f32 %v3658_v17, %v717_v44  ;;  %v709_v30 = vadd.f32 %v708_v35, %v4469_v38  ;;  %v3661_v49 = vpop.f32.mrf.mxu0  ;;  %3864 = vmatmul.mubr.msk.bf16.gmra.mxu0 %vm326_vm1, %v2567_v5  ;;  %v3339_v38 = vld [vmem:[%s3995_s28 + $0x199] sm:$0xff] }
 0x128   : > { %v3627_v62 = vpop.f32.mrf.mxu1  ;;  %3830 = vmatmul.mubr.msk.bf16.gmra.mxu1 %vm326_vm1, %v2273_v39  ;;  %3867 = vmatprep.mubr.msk.bf16.mxu0 %vm326_vm1, %v4494_v3  ;;  %v2275_v7 = vpack.c.bf16 %v3340_v59, %v3339_v38 }
 0x129   : > { %v4657_v19 = vadd.f32 %v970_v46, %v709_v30  ;;  %v730_v42 = vadd.f32 %v3627_v62, %v4475_v41  ;;  %v983_v34 = vpop.f32.mrf.mxu0  ;;  %3833 = vmatprep.mubr.msk.bf16.mxu1 %vm326_vm1, %v4386_v37 }
 0x12a   : > { %v721_v58 = vpop.f32.mrf.mxu1 }
 0x12b   : > { %v4664_v6 = vadd.f32 %v3661_v49, %v730_v42  ;;  %v722_v50 = vadd.f32 %v721_v58, %v4488_v56  ;;  %v3662_v18 = vpop.f32.mrf.mxu0 }
 0x12c   : > { %v3628_v3 = vpop.f32.mrf.mxu1 }
 0x12d   : > { %v4667_v14 = vadd.f32 %v983_v34, %v722_v50  ;;  %v733_v60 = vadd.f32 %v3628_v3, %v4492_v1  ;;  %v986_v41 = vpop.f32.mrf.mxu0 }
 0x12e   : > { %v724_v10 = vpop.f32.mrf.mxu1 }
 0x12f   : > { %v4670_v12 = vadd.f32 %v3662_v18, %v733_v60  ;;  %v725_v37 = vadd.f32 %v724_v10, %v4498_v8  ;;  %v3665_v28 = vpop.f32.mrf.mxu0  ;;  %3868 = vmatmul.mubr.msk.bf16.gmra.mxu0 %vm326_vm1, %v2569_v4 }
 0x130   : > { %v3631_v13 = vpop.f32.mrf.mxu1  ;;  %3834 = vmatmul.mubr.msk.bf16.gmra.mxu1 %vm326_vm1, %v2275_v7 }
 0x131   : > { %v4675_v56 = vadd.f32 %v986_v41, %v725_v37  ;;  %v746_v61 = vadd.f32 %v3631_v13, %v4503_v16  ;;  %v999_v2 = vpop.f32.mrf.mxu0 }
 0x132   : > { %v737_v17 = vpop.f32.mrf.mxu1 }
 0x133   : > { %v4678_v5 = vadd.f32 %v3665_v28, %v746_v61  ;;  %v738_v1 = vadd.f32 %v737_v17, %v4513_v25  ;;  %v3666_v24 = vpop.f32.mrf.mxu0 }
 0x134   : > { %v3632_v39 = vpop.f32.mrf.mxu1 }
 0x135   : > { %v4681_v44 = vadd.f32 %v999_v2, %v738_v1  ;;  %v749_v8 = vadd.f32 %v3632_v39, %v4517_v31  ;;  %v1002_v46 = vpop.f32.mrf.mxu0 }
 0x136   : > { %v740_v35 = vpop.f32.mrf.mxu1 }
 0x137   : > { %v4684_v30 = vadd.f32 %v3666_v24, %v749_v8  ;;  %v741_v49 = vadd.f32 %v740_v35, %v4521_v33  ;;  %v3705_v62 = vpop.f32.mrf.mxu0 }
 0x138   : > { %v3671_v16 = vpop.f32.mrf.mxu1 }
 0x139   : > { %v4687_v40 = vadd.f32 %v1002_v46, %v741_v49  ;;  %v1313_v27 = vadd.f32 %v3671_v16, %v4533_v47  ;;  %v1478_v42 = vpop.f32.mrf.mxu0 }
 0x13a   : > { %v1184_v25 = vpop.f32.mrf.mxu1 }
 0x13b   : > { %v4690_v34 = vadd.f32 %v3705_v62, %v1313_v27  ;;  %v1311_v38 = vadd.f32 %v1184_v25, %v4535_v51  ;;  %v3706_v59 = vpop.f32.mrf.mxu0 }
 0x13c   : > { %v3672_v31 = vpop.f32.mrf.mxu1 }
 0x13d   : > { %v4693_v58 = vadd.f32 %v1478_v42, %v1311_v38  ;;  %v1314_v50 = vadd.f32 %v3672_v31, %v4537_v54  ;;  %v1481_v18 = vpop.f32.mrf.mxu0 }
 0x13e   : > { %v1187_v33 = vpop.f32.mrf.mxu1 }
 0x13f   : > { %v4696_v4 = vadd.f32 %v3706_v59, %v1314_v50  ;;  %v1312_v3 = vadd.f32 %v1187_v33, %v4546_v9  ;;  %v3709_v7 = vpop.f32.mrf.mxu0 }
 0x140   : > { %v3675_v47 = vpop.f32.mrf.mxu1 }
 0x141   : > { %v4699_v60 = vadd.f32 %v1481_v18, %v1312_v3  ;;  %v1317_v41 = vadd.f32 %v3675_v47, %v4554_v43  ;;  %v1494_v10 = vpop.f32.mrf.mxu0 }
 0x142   : > { %v1200_v51 = vpop.f32.mrf.mxu1 }
 0x143   : > { %v4702_v37 = vadd.f32 %v3709_v7, %v1317_v41  ;;  %v1315_v28 = vadd.f32 %v1200_v51, %v4557_v45  ;;  %v3710_v13 = vpop.f32.mrf.mxu0 }
 0x144   : > { %v3676_v54 = vpop.f32.mrf.mxu1 }
 0x145   : > { %v4705_v61 = vadd.f32 %v1494_v10, %v1315_v28  ;;  %v1318_v2 = vadd.f32 %v3676_v54, %v4560_v52  ;;  %v1497_v17 = vpop.f32.mrf.mxu0 }
 0x146   : > { %v1203_v9 = vpop.f32.mrf.mxu1 }
 0x147   : > { %v4708_v1 = vadd.f32 %v3710_v13, %v1318_v2  ;;  %v1316_v24 = vadd.f32 %v1203_v9, %v4568_v0  ;;  %v3713_v39 = vpop.f32.mrf.mxu0 }
 0x148   : > { %v3679_v43 = vpop.f32.mrf.mxu1 }
 0x149   : > { %v4711_v8 = vadd.f32 %v1497_v17, %v1316_v24  ;;  %v1321_v46 = vadd.f32 %v3679_v43, %v4576_v15  ;;  %v1510_v35 = vpop.f32.mrf.mxu0 }
 0x14a   : > { %v1216_v45 = vpop.f32.mrf.mxu1 }
 0x14b   : > { %v4714_v49 = vadd.f32 %v3713_v39, %v1321_v46  ;;  %v1319_v62 = vadd.f32 %v1216_v45, %v4579_v63  ;;  %v3714_v16 = vpop.f32.mrf.mxu0 }
 0x14c   : > { %v3680_v52 = vpop.f32.mrf.mxu1 }
 0x14d   : > { %v4717_v27 = vadd.f32 %v1510_v35, %v1319_v62  ;;  %v1322_v42 = vadd.f32 %v3680_v52, %v4582_v48  ;;  %v1513_v25 = vpop.f32.mrf.mxu0 }
 0x14e   : > { %v1219_v0 = vpop.f32.mrf.mxu1 }
 0x14f   : > { %v4720_v38 = vadd.f32 %v3714_v16, %v1322_v42  ;;  %v1320_v59 = vadd.f32 %v1219_v0, %v4590_v57  ;;  %v3717_v31 = vpop.f32.mrf.mxu0 }
 0x150   : > { %v3683_v15 = vpop.f32.mrf.mxu1 }
 0x151   : > { %v4723_v50 = vadd.f32 %v1513_v25, %v1320_v59  ;;  %v1325_v18 = vadd.f32 %v3683_v15, %v4598_v55  ;;  %v1526_v33 = vpop.f32.mrf.mxu0 }
 0x152   : > { %v1232_v63 = vpop.f32.mrf.mxu1 }
 0x153   : > { %v4726_v3 = vadd.f32 %v3717_v31, %v1325_v18  ;;  %v1323_v7 = vadd.f32 %v1232_v63, %v4601_v20  ;;  %v3718_v47 = vpop.f32.mrf.mxu0 }
 0x154   : > { %v3684_v48 = vpop.f32.mrf.mxu1 }
 0x155   : > { %v4729_v41 = vadd.f32 %v1526_v33, %v1323_v7  ;;  %v1326_v10 = vadd.f32 %v3684_v48, %v4604_v22  ;;  %v1529_v51 = vpop.f32.mrf.mxu0 }
 0x156   : > { %v1235_v57 = vpop.f32.mrf.mxu1 }
 0x157   : > { %v4732_v28 = vadd.f32 %v3718_v47, %v1326_v10  ;;  %v1324_v13 = vadd.f32 %v1235_v57, %v4612_v26  ;;  %v3721_v54 = vpop.f32.mrf.mxu0 }
 0x158   : > { %v3687_v55 = vpop.f32.mrf.mxu1 }
 0x159   : > { %v4735_v2 = vadd.f32 %v1529_v51, %v1324_v13  ;;  %v1329_v17 = vadd.f32 %v3687_v55, %v4620_v53  ;;  %v1542_v9 = vpop.f32.mrf.mxu0 }
 0x15a   : > { %v1248_v20 = vpop.f32.mrf.mxu1 }
 0x15b   : > { %v4738_v24 = vadd.f32 %v3721_v54, %v1329_v17  ;;  %v1327_v39 = vadd.f32 %v1248_v20, %v4623_v29  ;;  %v3722_v43 = vpop.f32.mrf.mxu0 }
 0x15c   : > { %v3688_v22 = vpop.f32.mrf.mxu1 }
 0x15d   : > { %v4741_v46 = vadd.f32 %v1542_v9, %v1327_v39  ;;  %v1330_v35 = vadd.f32 %v3688_v22, %v4626_v36  ;;  %v1545_v45 = vpop.f32.mrf.mxu0 }
 0x15e   : > { %v1251_v26 = vpop.f32.mrf.mxu1 }
 0x15f   : > { %v4744_v62 = vadd.f32 %v3722_v43, %v1330_v35  ;;  %v1328_v16 = vadd.f32 %v1251_v26, %v4636_v21  ;;  %v3725_v52 = vpop.f32.mrf.mxu0 }
 0x160   : > { %v3691_v53 = vpop.f32.mrf.mxu1 }
 0x161   : > { %5158 = vst [vmem:[#allocation2_spill] sm:$0xff] %v4744_v62  ;;  %v4747_v42 = vadd.f32 %v1545_v45, %v1328_v16  ;;  %v1333_v25 = vadd.f32 %v3691_v53, %v4642_v11  ;;  %v1558_v0 = vpop.f32.mrf.mxu0 }
 0x162   : > { %v1264_v29 = vpop.f32.mrf.mxu1 }
 0x163   : > { %5159 = vst [vmem:[#allocation3_spill] sm:$0xff] %v4747_v42  ;;  %v4750_v59 = vadd.f32 %v3725_v52, %v1333_v25  ;;  %v1331_v31 = vadd.f32 %v1264_v29, %v4645_v23  ;;  %v3726_v15 = vpop.f32.mrf.mxu0 }
 0x164   : > { %v3692_v36 = vpop.f32.mrf.mxu1 }
 0x165   : > { %5160 = vst [vmem:[#allocation4_spill] sm:$0xff] %v4750_v59  ;;  %v4753_v18 = vadd.f32 %v1558_v0, %v1331_v31  ;;  %v1334_v33 = vadd.f32 %v3692_v36, %v4648_v32  ;;  %v1561_v63 = vpop.f32.mrf.mxu0 }
 0x166   : > { %v1267_v21 = vpop.f32.mrf.mxu1 }
 0x167   : > { %5161 = vst [vmem:[#allocation5_spill] sm:$0xff] %v4753_v18  ;;  %v4756_v7 = vadd.f32 %v3726_v15, %v1334_v33  ;;  %v1332_v47 = vadd.f32 %v1267_v21, %v4657_v19  ;;  %v3729_v48 = vpop.f32.mrf.mxu0 }
 0x168   : > { %v3695_v11 = vpop.f32.mrf.mxu1 }
 0x169   : > { %5162 = vst [vmem:[#allocation6_spill] sm:$0xff] %v4756_v7  ;;  %v4759_v10 = vadd.f32 %v1561_v63, %v1332_v47  ;;  %v1337_v51 = vadd.f32 %v3695_v11, %v4664_v6  ;;  %v1574_v57 = vpop.f32.mrf.mxu0 }
 0x16a   : > { %v1280_v23 = vpop.f32.mrf.mxu1 }
 0x16b   : > { %5163 = vst [vmem:[#allocation7_spill] sm:$0xff] %v4759_v10  ;;  %v4762_v13 = vadd.f32 %v3729_v48, %v1337_v51  ;;  %v1335_v54 = vadd.f32 %v1280_v23, %v4667_v14  ;;  %v3730_v55 = vpop.f32.mrf.mxu0 }
 0x16c   : > { %v3696_v32 = vpop.f32.mrf.mxu1 }
 0x16d   : > { %5164 = vst [vmem:[#allocation8_spill] sm:$0xff] %v4762_v13  ;;  %v4765_v17 = vadd.f32 %v1574_v57, %v1335_v54  ;;  %v1338_v9 = vadd.f32 %v3696_v32, %v4670_v12  ;;  %v1577_v20 = vpop.f32.mrf.mxu0 }
 0x16e   : > { %v1283_v19 = vpop.f32.mrf.mxu1 }
 0x16f   : > { %5165 = vst [vmem:[#allocation9_spill] sm:$0xff] %v4765_v17  ;;  %v4768_v39 = vadd.f32 %v3730_v55, %v1338_v9  ;;  %v1336_v43 = vadd.f32 %v1283_v19, %v4675_v56  ;;  %v3733_v22 = vpop.f32.mrf.mxu0 }
 0x170   : > { %v3699_v6 = vpop.f32.mrf.mxu1 }
 0x171   : > { %5166 = vst [vmem:[#allocation10_spill] sm:$0xff] %v4768_v39  ;;  %v4771_v35 = vadd.f32 %v1577_v20, %v1336_v43  ;;  %v1341_v45 = vadd.f32 %v3699_v6, %v4678_v5  ;;  %v1590_v26 = vpop.f32.mrf.mxu0 }
 0x172   : > { %v1296_v14 = vpop.f32.mrf.mxu1 }
 0x173   : > { %5167 = vst [vmem:[#allocation11_spill] sm:$0xff] %v4771_v35  ;;  %v4774_v16 = vadd.f32 %v3733_v22, %v1341_v45  ;;  %v1339_v52 = vadd.f32 %v1296_v14, %v4681_v44  ;;  %v3734_v53 = vpop.f32.mrf.mxu0 }
 0x174   : > { %v3700_v12 = vpop.f32.mrf.mxu1 }
 0x175   : > { %5168 = vst [vmem:[#allocation12_spill] sm:$0xff] %v4774_v16  ;;  %v4777_v25 = vadd.f32 %v1590_v26, %v1339_v52  ;;  %v1342_v0 = vadd.f32 %v3700_v12, %v4684_v30  ;;  %v1593_v29 = vpop.f32.mrf.mxu0 }
 0x176   : > { %v1299_v56 = vpop.f32.mrf.mxu1 }
 0x177   : > { %5169 = vst [vmem:[#allocation13_spill] sm:$0xff] %v4777_v25  ;;  %v4780_v31 = vadd.f32 %v3734_v53, %v1342_v0  ;;  %v1340_v15 = vadd.f32 %v1299_v56, %v4687_v40  ;;  %v4783_v36 = vpop.f32.mrf.mxu0 }
 0x178   : > { %v3739_v5 = vpop.f32.mrf.mxu1 }
 0x179   : > { %5170 = vst [vmem:[#allocation14_spill] sm:$0xff] %v4780_v31  ;;  %v4785_v33 = vadd.f32 %v1593_v29, %v1340_v15  ;;  %v4787_v63 = vpop.f32.mrf.mxu0 }
 0x17a   : > { %v1772_v44 = vpop.f32.mrf.mxu1 }
 0x17b   : > { %5171 = vst [vmem:[#allocation15_spill] sm:$0xff] %v4785_v33  ;;  %v4789_v21 = vpop.f32.mrf.mxu0 }
 0x17c   : > { %v3740_v47 = vpop.f32.mrf.mxu1 }
 0x17d   : > { %v4791_v48 = vpop.f32.mrf.mxu0 }
 0x17e   : > { %v4793_v30 = vpop.f32.mrf.mxu1 }
 0x17f   : > { %v4795_v11 = vpop.f32.mrf.mxu0 }
 0x180   : > { %v4797_v51 = vpop.f32.mrf.mxu1 }
 0x181   : > { %v4799_v40 = vpop.f32.mrf.mxu0 }
 0x182   : > { %v4801_v57 = vpop.f32.mrf.mxu1 }
 0x183   : > { %v4803_v23 = vpop.f32.mrf.mxu0 }
 0x184   : > { %v4805_v54 = vpop.f32.mrf.mxu1 }
 0x185   : > { %v4807_v55 = vpop.f32.mrf.mxu0 }
 0x186   : > { %v4809_v32 = vpop.f32.mrf.mxu1 }
 0x187   : > { %v4811_v9 = vpop.f32.mrf.mxu0 }
 0x188   : > { %v4813_v20 = vpop.f32.mrf.mxu1 }
 0x189   : > { %v4815_v19 = vpop.f32.mrf.mxu0 }
 0x18a   : > { %v4817_v43 = vpop.f32.mrf.mxu1 }
 0x18b   : > { %v4819_v22 = vpop.f32.mrf.mxu0 }
 0x18c   : > { %v4821_v6 = vpop.f32.mrf.mxu1 }
 0x18d   : > { %v4823_v45 = vpop.f32.mrf.mxu0 }
 0x18e   : > { %v4825_v26 = vpop.f32.mrf.mxu1 }
 0x18f   : > { %v4827_v14 = vpop.f32.mrf.mxu0 }
 0x190   : > { %v4829_v52 = vpop.f32.mrf.mxu1 }
 0x191   : > { %v4831_v53 = vpop.f32.mrf.mxu0 }
 0x192   : > { %v4833_v12 = vpop.f32.mrf.mxu1 }
 0x193   : > { %v4835_v0 = vpop.f32.mrf.mxu0 }
 0x194   : > { %v4837_v29 = vpop.f32.mrf.mxu1 }
 0x195   : > { %v4839_v56 = vpop.f32.mrf.mxu0 }
 0x196   : > { %v4841_v15 = vpop.f32.mrf.mxu1 }
 0x197   : > { %v4843_v33 = vpop.f32.mrf.mxu0 }
 0x198   : > { %v4845_v31 = vpop.f32.mrf.mxu1 }
 0x199   : > { %v4847_v25 = vpop.f32.mrf.mxu0 }
 0x19a   : > { %5172 = vst [vmem:[#allocation16_spill] sm:$0xff] %v4847_v25  ;;  %v4849_v16 = vpop.f32.mrf.mxu1 }
 0x19b   : > { %v4851_v35 = vpop.f32.mrf.mxu0 }
 0x19c   : > { %5173 = vst [vmem:[#allocation17_spill] sm:$0xff] %v4851_v35  ;;  %v4853_v39 = vpop.f32.mrf.mxu1 }
 0x19d   : > { %5174 = vst [vmem:[#allocation18_spill] sm:$0xff] %v4853_v39  ;;  %v4855_v17 = vpop.f32.mrf.mxu0 }
 0x19e   : > { %5175 = vst [vmem:[#allocation19_spill] sm:$0xff] %v4855_v17  ;;  %v4857_v13 = vpop.f32.mrf.mxu1 }
 0x19f   : > { %5176 = vst [vmem:[#allocation20_spill] sm:$0xff] %v4857_v13  ;;  %v4859_v10 = vpop.f32.mrf.mxu0 }
 0x1a0   : > { %5177 = vst [vmem:[#allocation21_spill] sm:$0xff] %v4859_v10  ;;  %v4861_v7 = vpop.f32.mrf.mxu1 }
 0x1a1   : > { %5178 = vst [vmem:[#allocation22_spill] sm:$0xff] %v4861_v7  ;;  %v4863_v18 = vpop.f32.mrf.mxu0 }
 0x1a2   : > { %5179 = vst [vmem:[#allocation23_spill] sm:$0xff] %v4863_v18  ;;  %v4865_v59 = vpop.f32.mrf.mxu1 }
 0x1a3   : > { %5180 = vst [vmem:[#allocation24_spill] sm:$0xff] %v4865_v59  ;;  %v4867_v42 = vpop.f32.mrf.mxu0 }
 0x1a4   : > { %5181 = vst [vmem:[#allocation25_spill] sm:$0xff] %v4867_v42  ;;  %v4869_v25 = vpop.f32.mrf.mxu1 }
 0x1a5   : > { %5182 = vst [vmem:[#allocation26_spill] sm:$0xff] %v4869_v25  ;;  %v4871_v62 = vpop.f32.mrf.mxu0 }
 0x1a6   : > { %5183 = vst [vmem:[#allocation27_spill] sm:$0xff] %v4871_v62  ;;  %v4873_v35 = vpop.f32.mrf.mxu1 }
 0x1a7   : > { %5184 = vst [vmem:[#allocation28_spill] sm:$0xff] %v4873_v35  ;;  %v4875_v39 = vpop.f32.mrf.mxu0 }
 0x1a8   : > { %5185 = vst [vmem:[#allocation29_spill] sm:$0xff] %v4875_v39  ;;  %v4877_v17 = vpop.f32.mrf.mxu1 }
 0x1a9   : > { %5186 = vst [vmem:[#allocation30_spill] sm:$0xff] %v4877_v17  ;;  %v4879_v13 = vpop.f32.mrf.mxu0 }
 0x1aa   : > { %5187 = vst [vmem:[#allocation31_spill] sm:$0xff] %v4879_v13  ;;  %v4881_v10 = vpop.f32.mrf.mxu1  ;;  %v1901_v13 = vadd.f32 %v3739_v5, %v4690_v34  ;;  %v1900_v34 = vadd.f32 %v4793_v30, %v4699_v60  ;;  %v4927_v60 = vld [vmem:[%s5156_s3] ss:$0 sm:$0xff] }
 0x1ab   : > { %5188 = vst [vmem:[#allocation32_spill] sm:$0xff] %v4881_v10  ;;  %v4883_v7 = vpop.f32.mrf.mxu0 }
 0x1ac   : > { %5189 = vst [vmem:[#allocation33_spill] sm:$0xff] %v4883_v7  ;;  %v4885_v18 = vpop.f32.mrf.mxu1  ;;  %v1899_v7 = vadd.f32 %v1772_v44, %v4693_v58  ;;  %v4917_v58 = vld [vmem:[%s5155_s2] ss:$0 sm:$0xff] }
 0x1ad   : > { %5190 = vst [vmem:[#allocation34_spill] sm:$0xff] %v4885_v18  ;;  %v4887_v59 = vpop.f32.mrf.mxu0 }
 0x1ae   : > { %5191 = vst [vmem:[#allocation35_spill] sm:$0xff] %v4887_v59  ;;  %v4889_v42 = vpop.f32.mrf.mxu1 }
 0x1af   : > { %5192 = vst [vmem:[#allocation36_spill] sm:$0xff] %v4889_v42  ;;  %v4891_v25 = vpop.f32.mrf.mxu0 }
 0x1b0   : > { %5193 = vst [vmem:[#allocation37_spill] sm:$0xff] %v4891_v25  ;;  %v4893_v62 = vpop.f32.mrf.mxu1  ;;  %v2198_v25 = vadd.f32 %v4783_v36, %v1901_v13 }
 0x1b1   : > { %5194 = vst [vmem:[#allocation38_spill] sm:$0xff] %v4893_v62  ;;  %v4895_v35 = vpop.f32.mrf.mxu0  ;;  %v1902_v62 = vadd.f32 %v3740_v47, %v4696_v4 }
 0x1b2   : > { %5195 = vst [vmem:[#allocation39_spill] sm:$0xff] %v4895_v35  ;;  %v4897_v39 = vpop.f32.mrf.mxu1 }
 0x1b3   : > { %5196 = vst [vmem:[#allocation40_spill] sm:$0xff] %v4897_v39  ;;  %v4900_v17 = vpop.f32.mrf.mxu0  ;;  %v2196_v39 = vadd.f32 %v4787_v63, %v1899_v7  ;;  %v2199_v13 = vadd.f32 %v4789_v21, %v1902_v62  ;;  %v1903_v7 = vadd.f32 %v4801_v57, %v4705_v61 }
 0x1b4   : > { %5197 = vst [vmem:[#allocation41_spill] sm:$0xff] %v4900_v17  ;;  %v4902_v10 = vpop.f32.mrf.mxu1 }
 0x1b5   : > { %v4905_v18 = vpop.f32.mrf.mxu0 }
 0x1b6   : > { %5198 = vst [vmem:[#allocation42_spill] sm:$0xff] %v4905_v18  ;;  %v4907_v59 = vpop.f32.mrf.mxu1  ;;  %v1905_v18 = vadd.f32 %v4797_v51, %v4702_v37  ;;  %v1906_v37 = vadd.f32 %v4805_v54, %v4708_v1 }
 0x1b7   : > { %v3841_v42 = vpop.f32.mrf.mxu0 }
 0x1b8   : > { %v3807_v35 = vpop.f32.mrf.mxu1 }
 0x1b9   : > { %v2492_v5 = vadd.f32 %v3807_v35, %v2198_v25  ;;  %v2657_v17 = vpop.f32.mrf.mxu0  ;;  %v2197_v25 = vadd.f32 %v4791_v48, %v1900_v34  ;;  %v2200_v48 = vadd.f32 %v4799_v40, %v1903_v7 }
 0x1ba   : > { %v2363_v44 = vpop.f32.mrf.mxu1 }
 0x1bb   : > { %v2786_v36 = vadd.f32 %v3841_v42, %v2492_v5  ;;  %v2490_v4 = vadd.f32 %v2363_v44, %v2196_v39  ;;  %v3842_v47 = vpop.f32.mrf.mxu0  ;;  %v2202_v44 = vadd.f32 %v4795_v11, %v1905_v18  ;;  %v2203_v11 = vadd.f32 %v4803_v23, %v1906_v37 }
 0x1bc   : > { %v3808_v35 = vpop.f32.mrf.mxu1 }
 0x1bd   : > { %v2825_v62 = vmul.f32 %v4917_v58, %v2786_v36  ;;  %v2784_v42 = vadd.f32 %v2657_v17, %v2490_v4  ;;  %v2493_v39 = vadd.f32 %v3808_v35, %v2199_v13  ;;  %v2660_v63 = vpop.f32.mrf.mxu0  ;;  %v1904_v17 = vadd.f32 %v4809_v32, %v4711_v8 }
 0x1be   : > { %v2366_v21 = vpop.f32.mrf.mxu1  ;;  %v1909_v8 = vadd.f32 %v4813_v20, %v4714_v49 }
 0x1bf   : > { %v2864_v61 = vadd.f32 %v4927_v60, %v2825_v62  ;;  %v2823_v30 = vmul.f32 %v4917_v58, %v2784_v42  ;;  %v2787_v51 = vadd.f32 %v3842_v47, %v2493_v39  ;;  %v2491_v57 = vadd.f32 %v2366_v21, %v2197_v25  ;;  %v3845_v5 = vpop.f32.mrf.mxu0 }
 0x1c0   : > { %v3811_v1 = vpop.f32.mrf.mxu1  ;;  %v2201_v62 = vadd.f32 %v4807_v55, %v1904_v17  ;;  %v2206_v21 = vadd.f32 %v4811_v9, %v1909_v8  ;;  %v1908_v9 = vadd.f32 %v4825_v26, %v4723_v50  ;;  %v1913_v50 = vadd.f32 %v4829_v52, %v4726_v3 }
 0x1c1   : > { %v2896_v54 = vmax.f32 %v2864_v61, 0.0  ;;  %v2862_v34 = vadd.f32 %v4927_v60, %v2823_v30  ;;  %v2826_v13 = vmul.f32 %v4917_v58, %v2787_v51  ;;  %v2785_v36 = vadd.f32 %v2660_v63, %v2491_v57  ;;  %v2673_v18 = vpop.f32.mrf.mxu0 }
 0x1c2   : > { %v2496_v40 = vadd.f32 %v3811_v1, %v2202_v44  ;;  %v2379_v32 = vpop.f32.mrf.mxu1  ;;  %v1907_v61 = vadd.f32 %v4817_v43, %v4717_v27  ;;  %v1910_v30 = vadd.f32 %v4821_v6, %v4720_v38 }
 0x1c3   : > { %2928 = vst.msk [vmem:[%s4943_s25 + $0x10] sm:$0xff] %vm326_vm1, %v2896_v54  ;;  %v2894_v4 = vmax.f32 %v2862_v34, 0.0  ;;  %v2865_v47 = vadd.f32 %v4927_v60, %v2826_v13  ;;  %v2824_v7 = vmul.f32 %v4917_v58, %v2785_v36  ;;  %v2494_v35 = vadd.f32 %v2379_v32, %v2200_v48  ;;  %v3846_v25 = vpop.f32.mrf.mxu0 }
 0x1c4   : > { %v2790_v42 = vadd.f32 %v3845_v5, %v2496_v40  ;;  %v3812_v39 = vpop.f32.mrf.mxu1  ;;  %v2204_v13 = vadd.f32 %v4815_v19, %v1907_v61  ;;  %v2207_v36 = vadd.f32 %v4819_v22, %v1910_v30  ;;  %v1911_v19 = vadd.f32 %v4833_v12, %v4729_v41 }
 0x1c5   : > { %2926 = vst.msk [vmem:[%s4943_s25] sm:$0xff] %vm326_vm1, %v2894_v4  ;;  %v2897_v23 = vmax.f32 %v2865_v47, 0.0  ;;  %v2863_v49 = vadd.f32 %v4927_v60, %v2824_v7  ;;  %v2788_v20 = vadd.f32 %v2673_v18, %v2494_v35  ;;  %v2497_v63 = vadd.f32 %v3812_v39, %v2203_v11  ;;  %v2676_v37 = vpop.f32.mrf.mxu0 }
 0x1c6   : > { %v2829_v55 = vmul.f32 %v4917_v58, %v2790_v42  ;;  %v2382_v51 = vpop.f32.mrf.mxu1  ;;  %v2205_v47 = vadd.f32 %v4823_v45, %v1908_v9  ;;  %v2210_v42 = vadd.f32 %v4827_v14, %v1913_v50  ;;  %v5200_v50 = vld [vmem:[#allocation18_spill] sm:$0xff] }
 0x1c7   : > { %2929 = vst.msk [vmem:[%s4943_s25 + $0x18] sm:$0xff] %vm326_vm1, %v2897_v23  ;;  %v2895_v57 = vmax.f32 %v2863_v49, 0.0  ;;  %v2827_v5 = vmul.f32 %v4917_v58, %v2788_v20  ;;  %v2791_v44 = vadd.f32 %v3846_v25, %v2497_v63  ;;  %v2495_v48 = vadd.f32 %v2382_v51, %v2201_v62  ;;  %v3849_v17 = vpop.f32.mrf.mxu0 }
 0x1c8   : > { %v2868_v1 = vadd.f32 %v4927_v60, %v2829_v55  ;;  %v3815_v27 = vpop.f32.mrf.mxu1  ;;  %v2208_v63 = vadd.f32 %v4831_v53, %v1911_v19  ;;  %v1917_v53 = vadd.f32 %v4845_v31, %v4738_v24  ;;  %v1915_v24 = vadd.f32 %v4849_v16, %v4741_v46 }
 0x1c9   : > { %2927 = vst.msk [vmem:[%s4943_s25 + $0x8] sm:$0xff] %vm326_vm1, %v2895_v57  ;;  %v2866_v38 = vadd.f32 %v4927_v60, %v2827_v5  ;;  %v2830_v43 = vmul.f32 %v4917_v58, %v2791_v44  ;;  %v2789_v6 = vadd.f32 %v2676_v37, %v2495_v48  ;;  %v2500_v54 = vadd.f32 %v3815_v27, %v2206_v21  ;;  %v2689_v34 = vpop.f32.mrf.mxu0 }
 0x1ca   : > { %v2900_v26 = vmax.f32 %v2868_v1, 0.0  ;;  %v2395_v18 = vpop.f32.mrf.mxu1  ;;  %v1914_v37 = vadd.f32 %v4837_v29, %v4732_v28  ;;  %v1912_v21 = vadd.f32 %v4841_v15, %v4735_v2 }
 0x1cb   : > { %v2898_v11 = vmax.f32 %v2866_v38, 0.0  ;;  %v2869_v8 = vadd.f32 %v4927_v60, %v2830_v43  ;;  %v2828_v40 = vmul.f32 %v4917_v58, %v2789_v6  ;;  %v2794_v32 = vadd.f32 %v3849_v17, %v2500_v54  ;;  %v3850_v4 = vpop.f32.mrf.mxu0 }
 0x1cc   : > { %2932 = vst.msk [vmem:[%s4943_s25 + $0x30] sm:$0xff] %vm326_vm1, %v2900_v26  ;;  %v2498_v22 = vadd.f32 %v2395_v18, %v2204_v13  ;;  %v3816_v7 = vpop.f32.mrf.mxu1  ;;  %v2211_v9 = vadd.f32 %v4835_v0, %v1914_v37  ;;  %v2209_v1 = vadd.f32 %v4839_v56, %v1912_v21  ;;  %v2214_v13 = vadd.f32 %v4843_v33, %v1917_v53 }
 0x1cd   : > { %2930 = vst.msk [vmem:[%s4943_s25 + $0x20] sm:$0xff] %vm326_vm1, %v2898_v11  ;;  %v2901_v3 = vmax.f32 %v2869_v8, 0.0  ;;  %v2867_v52 = vadd.f32 %v4927_v60, %v2828_v40  ;;  %v2833_v35 = vmul.f32 %v4917_v58, %v2794_v32  ;;  %v2501_v25 = vadd.f32 %v3816_v7, %v2207_v36  ;;  %v2692_v62 = vpop.f32.mrf.mxu0  ;;  %v5199_v36 = vld [vmem:[#allocation2_spill] sm:$0xff]  ;;  %v5201_v40 = vld [vmem:[#allocation16_spill] sm:$0xff] }
 0x1ce   : > { %v2792_v45 = vadd.f32 %v2689_v34, %v2498_v22  ;;  %v2398_v39 = vpop.f32.mrf.mxu1  ;;  %v1918_v0 = vadd.f32 %v5200_v50, %v5199_v36  ;;  %v2212_v32 = vadd.f32 %v5201_v40, %v1915_v24  ;;  %v5214_v36 = vld [vmem:[#allocation7_spill] sm:$0xff]  ;;  %v5215_v50 = vld [vmem:[#allocation28_spill] sm:$0xff]  ;;  %v5216_v40 = vld [vmem:[#allocation25_spill] sm:$0xff] }
 0x1cf   : > { %2933 = vst.msk [vmem:[%s4943_s25 + $0x38] sm:$0xff] %vm326_vm1, %v2901_v3  ;;  %v2899_v41 = vmax.f32 %v2867_v52, 0.0  ;;  %v2872_v12 = vadd.f32 %v4927_v60, %v2833_v35  ;;  %v2795_v23 = vadd.f32 %v3850_v4, %v2501_v25  ;;  %v2499_v49 = vadd.f32 %v2398_v39, %v2205_v47  ;;  %v3853_v20 = vpop.f32.mrf.mxu0  ;;  %v5202_v52 = vld [vmem:[#allocation17_spill] sm:$0xff]  ;;  %v5203_v25 = vld [vmem:[#allocation3_spill] sm:$0xff]  ;;  %v5206_v39 = vld [vmem:[#allocation22_spill] sm:$0xff] }
 0x1d0   : > { %v2831_v14 = vmul.f32 %v4917_v58, %v2792_v45  ;;  %v3819_v61 = vpop.f32.mrf.mxu1  ;;  %v2215_v35 = vadd.f32 %v5202_v52, %v1918_v0  ;;  %v5205_v45 = vld [vmem:[#allocation4_spill] sm:$0xff]  ;;  %v1920_v0 = vadd.f32 %v5215_v50, %v5214_v36  ;;  %v5217_v52 = vld [vmem:[#allocation27_spill] sm:$0xff]  ;;  %v5230_v50 = vld [vmem:[#allocation38_spill] sm:$0xff] }
 0x1d1   : > { %2931 = vst.msk [vmem:[%s4943_s25 + $0x28] sm:$0xff] %vm326_vm1, %v2899_v41  ;;  %v2904_v30 = vmax.f32 %v2872_v12, 0.0  ;;  %v2834_v55 = vmul.f32 %v4917_v58, %v2795_v23  ;;  %v2793_v51 = vadd.f32 %v2692_v62, %v2499_v49  ;;  %v2504_v57 = vadd.f32 %v3819_v61, %v2210_v42  ;;  %v2705_v5 = vpop.f32.mrf.mxu0  ;;  %v5204_v62 = vld [vmem:[#allocation20_spill] sm:$0xff] }
 0x1d2   : > { %v2870_v44 = vadd.f32 %v4927_v60, %v2831_v14  ;;  %v2411_v28 = vpop.f32.mrf.mxu1  ;;  %v1916_v42 = vadd.f32 %v5204_v62, %v5203_v25  ;;  %v1921_v41 = vadd.f32 %v5206_v39, %v5205_v45  ;;  %v5207_v14 = vld [vmem:[#allocation5_spill] sm:$0xff]  ;;  %v5208_v61 = vld [vmem:[#allocation24_spill] sm:$0xff]  ;;  %v5219_v62 = vld [vmem:[#allocation30_spill] sm:$0xff] }
 0x1d3   : > { %2936 = vst.msk [vmem:[%s4943_s25 + $0x50] sm:$0xff] %vm326_vm1, %v2904_v30  ;;  %v2873_v2 = vadd.f32 %v4927_v60, %v2834_v55  ;;  %v2832_v29 = vmul.f32 %v4917_v58, %v2793_v51  ;;  %v2798_v15 = vadd.f32 %v3853_v20, %v2504_v57  ;;  %v2502_v48 = vadd.f32 %v2411_v28, %v2208_v63  ;;  %v3854_v17 = vpop.f32.mrf.mxu0  ;;  %v5218_v25 = vld [vmem:[#allocation8_spill] sm:$0xff]  ;;  %v5220_v45 = vld [vmem:[#allocation9_spill] sm:$0xff] }
 0x1d4   : > { %v2902_v31 = vmax.f32 %v2870_v44, 0.0  ;;  %v3820_v27 = vpop.f32.mrf.mxu1  ;;  %v1919_v30 = vadd.f32 %v5208_v61, %v5207_v14  ;;  %v5221_v39 = vld [vmem:[#allocation32_spill] sm:$0xff]  ;;  %v5222_v14 = vld [vmem:[#allocation10_spill] sm:$0xff] }
 0x1d5   : > { %v2905_v38 = vmax.f32 %v2873_v2, 0.0  ;;  %v2871_v43 = vadd.f32 %v4927_v60, %v2832_v29  ;;  %v2837_v6 = vmul.f32 %v4917_v58, %v2798_v15  ;;  %v2796_v54 = vadd.f32 %v2705_v5, %v2502_v48  ;;  %v2708_v34 = vpop.f32.mrf.mxu0  ;;  %v5209_v2 = vld [vmem:[#allocation19_spill] sm:$0xff]  ;;  %v5210_v15 = vld [vmem:[#allocation21_spill] sm:$0xff]  ;;  %v5223_v61 = vld [vmem:[#allocation34_spill] sm:$0xff] }
 0x1d6   : > { %2934 = vst.msk [vmem:[%s4943_s25 + $0x40] sm:$0xff] %vm326_vm1, %v2902_v31  ;;  %v2505_v56 = vadd.f32 %v3820_v27, %v2211_v9  ;;  %v2414_v26 = vpop.f32.mrf.mxu1  ;;  %v2213_v29 = vadd.f32 %v5209_v2, %v1916_v42  ;;  %v2218_v48 = vadd.f32 %v5210_v15, %v1921_v41  ;;  %v5212_v9 = vld [vmem:[#allocation26_spill] sm:$0xff]  ;;  %v1925_v42 = vadd.f32 %v5219_v62, %v5218_v25  ;;  %v5224_v2 = vld [vmem:[#allocation29_spill] sm:$0xff]  ;;  %v5225_v15 = vld [vmem:[#allocation31_spill] sm:$0xff] }
 0x1d7   : > { %2937 = vst.msk [vmem:[%s4943_s25 + $0x58] sm:$0xff] %vm326_vm1, %v2905_v38  ;;  %v2903_v46 = vmax.f32 %v2871_v43, 0.0  ;;  %v2876_v16 = vadd.f32 %v4927_v60, %v2837_v6  ;;  %v2835_v18 = vmul.f32 %v4917_v58, %v2796_v54  ;;  %v2503_v11 = vadd.f32 %v2414_v26, %v2209_v1  ;;  %v3857_v8 = vpop.f32.mrf.mxu0  ;;  %v5229_v36 = vld [vmem:[#allocation12_spill] sm:$0xff]  ;;  %v5233_v25 = vld [vmem:[#allocation13_spill] sm:$0xff] }
 0x1d8   : > { %v2799_v33 = vadd.f32 %v3854_v17, %v2505_v56  ;;  %v3823_v4 = vpop.f32.mrf.mxu1  ;;  %v5211_v17 = vld [vmem:[#allocation6_spill] sm:$0xff]  ;;  %v1923_v41 = vadd.f32 %v5221_v39, %v5220_v45  ;;  %v5234_v62 = vld [vmem:[#allocation40_spill] sm:$0xff] }
 0x1d9   : > { %2935 = vst.msk [vmem:[%s4943_s25 + $0x48] sm:$0xff] %vm326_vm1, %v2903_v46  ;;  %v2908_v47 = vmax.f32 %v2876_v16, 0.0  ;;  %v2874_v19 = vadd.f32 %v4927_v60, %v2835_v18  ;;  %v2797_v22 = vadd.f32 %v2708_v34, %v2503_v11  ;;  %v2508_v7 = vadd.f32 %v3823_v4, %v2214_v13  ;;  %v2721_v3 = vpop.f32.mrf.mxu0  ;;  %v5213_v34 = vld [vmem:[#allocation23_spill] sm:$0xff]  ;;  %v5235_v45 = vld [vmem:[#allocation14_spill] sm:$0xff] }
 0x1da   : > { %v2838_v12 = vmul.f32 %v4917_v58, %v2799_v33  ;;  %v2427_v23 = vpop.f32.mrf.mxu1  ;;  %v1922_v1 = vadd.f32 %v5212_v9, %v5211_v17  ;;  %v2216_v13 = vadd.f32 %v5213_v34, %v1919_v30  ;;  %v1926_v30 = vadd.f32 %v5223_v61, %v5222_v14  ;;  %v5226_v17 = vld [vmem:[#allocation11_spill] sm:$0xff]  ;;  %v5227_v9 = vld [vmem:[#allocation36_spill] sm:$0xff]  ;;  %v5228_v34 = vld [vmem:[#allocation33_spill] sm:$0xff] }
 0x1db   : > { %2940 = vst.msk [vmem:[%s4943_s25 + $0x70] sm:$0xff] %vm326_vm1, %v2908_v47  ;;  %v2906_v49 = vmax.f32 %v2874_v19, 0.0  ;;  %v2836_v20 = vmul.f32 %v4917_v58, %v2797_v22  ;;  %v2802_v63 = vadd.f32 %v3857_v8, %v2508_v7  ;;  %v2506_v37 = vadd.f32 %v2427_v23, %v2212_v32  ;;  %v3858_v21 = vpop.f32.mrf.mxu0 }
 0x1dc   : > { %v2877_v55 = vadd.f32 %v4927_v60, %v2838_v12  ;;  %v3824_v51 = vpop.f32.mrf.mxu1  ;;  %v2219_v32 = vadd.f32 %v5216_v40, %v1922_v1  ;;  %v1924_v1 = vadd.f32 %v5227_v9, %v5226_v17  ;;  %v5231_v40 = vld [vmem:[#allocation35_spill] sm:$0xff]  ;;  %v1930_v39 = vadd.f32 %v4902_v10, %v5235_v45 }
 0x1dd   : > { %2938 = vst.msk [vmem:[%s4943_s25 + $0x60] sm:$0xff] %vm326_vm1, %v2906_v49  ;;  %v2875_v57 = vadd.f32 %v4927_v60, %v2836_v20  ;;  %v2841_v5 = vmul.f32 %v4917_v58, %v2802_v63  ;;  %v2800_v53 = vadd.f32 %v2721_v3, %v2506_v37  ;;  %v2509_v44 = vadd.f32 %v3824_v51, %v2215_v35  ;;  %v2724_v28 = vpop.f32.mrf.mxu0 }
 0x1de   : > { %v2909_v24 = vmax.f32 %v2877_v55, 0.0  ;;  %v2430_v31 = vpop.f32.mrf.mxu1  ;;  %v2217_v35 = vadd.f32 %v5217_v52, %v1920_v0  ;;  %v1929_v0 = vadd.f32 %v5230_v50, %v5229_v36  ;;  %v5232_v52 = vld [vmem:[#allocation37_spill] sm:$0xff] }
 0x1df   : > { %v2907_v27 = vmax.f32 %v2875_v57, 0.0  ;;  %v2880_v38 = vadd.f32 %v4927_v60, %v2841_v5  ;;  %v2839_v43 = vmul.f32 %v4917_v58, %v2800_v53  ;;  %v2803_v6 = vadd.f32 %v3858_v21, %v2509_v44  ;;  %v3861_v54 = vpop.f32.mrf.mxu0 }
 0x1e0   : > { %2941 = vst.msk [vmem:[%s4943_s25 + $0x78] sm:$0xff] %vm326_vm1, %v2909_v24  ;;  %v2507_v56 = vadd.f32 %v2430_v31, %v2213_v29  ;;  %v3827_v26 = vpop.f32.mrf.mxu1  ;;  %v2222_v29 = vadd.f32 %v5224_v2, %v1925_v42  ;;  %v1927_v42 = vadd.f32 %v5234_v62, %v5233_v25 }
 0x1e1   : > { %2939 = vst.msk [vmem:[%s4943_s25 + $0x68] sm:$0xff] %vm326_vm1, %v2907_v27  ;;  %v2912_v46 = vmax.f32 %v2880_v38, 0.0  ;;  %v2878_v16 = vadd.f32 %v4927_v60, %v2839_v43  ;;  %v2842_v18 = vmul.f32 %v4917_v58, %v2803_v6  ;;  %v2512_v11 = vadd.f32 %v3827_v26, %v2218_v48  ;;  %v2737_v8 = vpop.f32.mrf.mxu0 }
 0x1e2   : > { %v2801_v33 = vadd.f32 %v2724_v28, %v2507_v56  ;;  %v2443_v4 = vpop.f32.mrf.mxu1  ;;  %v2220_v48 = vadd.f32 %v5225_v15, %v1923_v41 }
 0x1e3   : > { %2944 = vst.msk [vmem:[%s4943_s25 + $0x90] sm:$0xff] %vm326_vm1, %v2912_v46  ;;  %v2910_v47 = vmax.f32 %v2878_v16, 0.0  ;;  %v2881_v19 = vadd.f32 %v4927_v60, %v2842_v18  ;;  %v2806_v22 = vadd.f32 %v3861_v54, %v2512_v11  ;;  %v2510_v7 = vadd.f32 %v2443_v4, %v2216_v13  ;;  %v3862_v3 = vpop.f32.mrf.mxu0 }
 0x1e4   : > { %v2840_v12 = vmul.f32 %v4917_v58, %v2801_v33  ;;  %v3828_v23 = vpop.f32.mrf.mxu1  ;;  %v2223_v13 = vadd.f32 %v5228_v34, %v1926_v30 }
 0x1e5   : > { %2942 = vst.msk [vmem:[%s4943_s25 + $0x80] sm:$0xff] %vm326_vm1, %v2910_v47  ;;  %v2913_v49 = vmax.f32 %v2881_v19, 0.0  ;;  %v2845_v20 = vmul.f32 %v4917_v58, %v2806_v22  ;;  %v2804_v63 = vadd.f32 %v2737_v8, %v2510_v7  ;;  %v2513_v37 = vadd.f32 %v3828_v23, %v2219_v32  ;;  %v2740_v21 = vpop.f32.mrf.mxu0 }
 0x1e6   : > { %v2879_v55 = vadd.f32 %v4927_v60, %v2840_v12  ;;  %v2446_v51 = vpop.f32.mrf.mxu1  ;;  %v2221_v32 = vadd.f32 %v5231_v40, %v1924_v1  ;;  %v5239_v1 = vld [vmem:[#allocation42_spill] sm:$0xff] }
 0x1e7   : > { %2945 = vst.msk [vmem:[%s4943_s25 + $0x98] sm:$0xff] %vm326_vm1, %v2913_v49  ;;  %v2884_v57 = vadd.f32 %v4927_v60, %v2845_v20  ;;  %v2843_v5 = vmul.f32 %v4917_v58, %v2804_v63  ;;  %v2807_v53 = vadd.f32 %v3862_v3, %v2513_v37  ;;  %v2511_v44 = vadd.f32 %v2446_v51, %v2217_v35  ;;  %v3865_v28 = vpop.f32.mrf.mxu0 }
 0x1e8   : > { %v2911_v24 = vmax.f32 %v2879_v55, 0.0  ;;  %v3831_v31 = vpop.f32.mrf.mxu1  ;;  %v2226_v35 = vadd.f32 %v5232_v52, %v1929_v0 }
 0x1e9   : > { %v2916_v27 = vmax.f32 %v2884_v57, 0.0  ;;  %v2882_v38 = vadd.f32 %v4927_v60, %v2843_v5  ;;  %v2846_v43 = vmul.f32 %v4917_v58, %v2807_v53  ;;  %v2805_v6 = vadd.f32 %v2740_v21, %v2511_v44  ;;  %v2753_v54 = vpop.f32.mrf.mxu0  ;;  %v5236_v21 = vld [vmem:[#allocation15_spill] sm:$0xff] }
 0x1ea   : > { %2943 = vst.msk [vmem:[%s4943_s25 + $0x88] sm:$0xff] %vm326_vm1, %v2911_v24  ;;  %v2516_v56 = vadd.f32 %v3831_v31, %v2222_v29  ;;  %v2459_v26 = vpop.f32.mrf.mxu1  ;;  %v1928_v14 = vadd.f32 %v4907_v59, %v5236_v21  ;;  %v5237_v53 = vld [vmem:[#allocation39_spill] sm:$0xff] }
 0x1eb   : > { %2948 = vst.msk [vmem:[%s4943_s25 + $0xb0] sm:$0xff] %vm326_vm1, %v2916_v27  ;;  %v2914_v46 = vmax.f32 %v2882_v38, 0.0  ;;  %v2885_v16 = vadd.f32 %v4927_v60, %v2846_v43  ;;  %v2844_v18 = vmul.f32 %v4917_v58, %v2805_v6  ;;  %v2514_v11 = vadd.f32 %v2459_v26, %v2220_v48  ;;  %v3866_v8 = vpop.f32.mrf.mxu0 }
 0x1ec   : > { %v2810_v33 = vadd.f32 %v3865_v28, %v2516_v56  ;;  %v3832_v4 = vpop.f32.mrf.mxu1  ;;  %v2224_v44 = vadd.f32 %v5237_v53, %v1927_v42  ;;  %v5238_v28 = vld [vmem:[#allocation41_spill] sm:$0xff]  ;;  %v2225_v24 = vadd.f32 %v5239_v1, %v1928_v14 }
 0x1ed   : > { %2946 = vst.msk [vmem:[%s4943_s25 + $0xa0] sm:$0xff] %vm326_vm1, %v2914_v46  ;;  %v2917_v47 = vmax.f32 %v2885_v16, 0.0  ;;  %v2883_v19 = vadd.f32 %v4927_v60, %v2844_v18  ;;  %v2808_v22 = vadd.f32 %v2753_v54, %v2514_v11  ;;  %v2517_v7 = vadd.f32 %v3832_v4, %v2223_v13  ;;  %v2756_v3 = vpop.f32.mrf.mxu0 }
 0x1ee   : > { %v2849_v41 = vmul.f32 %v4917_v58, %v2810_v33  ;;  %v2462_v12 = vpop.f32.mrf.mxu1  ;;  %v2227_v2 = vadd.f32 %v5238_v28, %v1930_v39 }
 0x1ef   : > { %2949 = vst.msk [vmem:[%s4943_s25 + $0xb8] sm:$0xff] %vm326_vm1, %v2917_v47  ;;  %v2915_v23 = vmax.f32 %v2883_v19, 0.0  ;;  %v2847_v49 = vmul.f32 %v4917_v58, %v2808_v22  ;;  %v2811_v20 = vadd.f32 %v3866_v8, %v2517_v7  ;;  %v2515_v63 = vadd.f32 %v2462_v12, %v2221_v32  ;;  %v3869_v37 = vpop.f32.mrf.mxu0 }
 0x1f0   : > { %v2888_v61 = vadd.f32 %v4927_v60, %v2849_v41  ;;  %v3835_v30 = vpop.f32.mrf.mxu1 }
 0x1f1   : > { %2947 = vst.msk [vmem:[%s4943_s25 + $0xa8] sm:$0xff] %vm326_vm1, %v2915_v23  ;;  %v2886_v10 = vadd.f32 %v4927_v60, %v2847_v49  ;;  %v2850_v55 = vmul.f32 %v4917_v58, %v2811_v20  ;;  %v2809_v51 = vadd.f32 %v2756_v3, %v2515_v63  ;;  %v2520_v57 = vadd.f32 %v3835_v30, %v2226_v35  ;;  %v2769_v5 = vpop.f32.mrf.mxu0 }
 0x1f2   : > { %v2920_v29 = vmax.f32 %v2888_v61, 0.0  ;;  %v2475_v59 = vpop.f32.mrf.mxu1 }
 0x1f3   : > { %v2918_v15 = vmax.f32 %v2886_v10, 0.0  ;;  %v2889_v48 = vadd.f32 %v4927_v60, %v2850_v55  ;;  %v2848_v17 = vmul.f32 %v4917_v58, %v2809_v51  ;;  %v2814_v9 = vadd.f32 %v3869_v37, %v2520_v57  ;;  %v3870_v38 = vpop.f32.mrf.mxu0 }
 0x1f4   : > { %2952 = vst.msk [vmem:[%s4943_s25 + $0xd0] sm:$0xff] %vm326_vm1, %v2920_v29  ;;  %v2518_v31 = vadd.f32 %v2475_v59, %v2224_v44  ;;  %v3836_v27 = vpop.f32.mrf.mxu1 }
 0x1f5   : > { %2950 = vst.msk [vmem:[%s4943_s25 + $0xc0] sm:$0xff] %vm326_vm1, %v2918_v15  ;;  %v2921_v43 = vmax.f32 %v2889_v48, 0.0  ;;  %v2887_v6 = vadd.f32 %v4927_v60, %v2848_v17  ;;  %v2853_v54 = vmul.f32 %v4917_v58, %v2814_v9  ;;  %v2521_v34 = vadd.f32 %v3836_v27, %v2227_v2  ;;  %v2772_v16 = vpop.f32.mrf.mxu0 }
 0x1f6   : > { %v2812_v13 = vadd.f32 %v2769_v5, %v2518_v31  ;;  %v2478_v36 = vpop.f32.mrf.mxu1 }
 0x1f7   : > { %2953 = vst.msk [vmem:[%s4943_s25 + $0xd8] sm:$0xff] %vm326_vm1, %v2921_v43  ;;  %v2919_v50 = vmax.f32 %v2887_v6, 0.0  ;;  %v2892_v0 = vadd.f32 %v4927_v60, %v2853_v54  ;;  %v2815_v56 = vadd.f32 %v3870_v38, %v2521_v34  ;;  %v2519_v26 = vadd.f32 %v2478_v36, %v2225_v24 }
 0x1f8   : > { %v2851_v46 = vmul.f32 %v4917_v58, %v2812_v13 }
 0x1f9   : > { %2951 = vst.msk [vmem:[%s4943_s25 + $0xc8] sm:$0xff] %vm326_vm1, %v2919_v50  ;;  %v2924_v18 = vmax.f32 %v2892_v0, 0.0  ;;  %v2854_v11 = vmul.f32 %v4917_v58, %v2815_v56  ;;  %v2813_v8 = vadd.f32 %v2772_v16, %v2519_v26 }
 0x1fa   : > { %v2890_v40 = vadd.f32 %v4927_v60, %v2851_v46 }
 0x1fb   : > { %2956 = vst.msk [vmem:[%s4943_s25 + $0xf0] sm:$0xff] %vm326_vm1, %v2924_v18  ;;  %v2893_v32 = vadd.f32 %v4927_v60, %v2854_v11  ;;  %v2852_v33 = vmul.f32 %v4917_v58, %v2813_v8 }
 0x1fc   : > { %v2922_v4 = vmax.f32 %v2890_v40, 0.0 }
 0x1fd   : > { %v2925_v47 = vmax.f32 %v2893_v32, 0.0  ;;  %v2891_v19 = vadd.f32 %v4927_v60, %v2852_v33 }
 0x1fe   : > { %2954 = vst.msk [vmem:[%s4943_s25 + $0xe0] sm:$0xff] %vm326_vm1, %v2922_v4 }
 0x1ff   : > { %2957 = vst.msk [vmem:[%s4943_s25 + $0xf8] sm:$0xff] %vm326_vm1, %v2925_v47  ;;  %v2923_v22 = vmax.f32 %v2891_v19, 0.0 }
 0x201   : > { %2955 = vst.msk [vmem:[%s4943_s25 + $0xe8] sm:$0xff] %vm326_vm1, %v2923_v22 }
 0x202 PF: > { %s14_s17 = sadd.s32 1, %s3930_s17   ;;  %s5240_s15 = smov %s3926_s16 }
 0x203   : > { %p11_p5 = scmp.ge.s32.totalorder %s14_s17, 4   ;;  %s5241_s16 = smov %s5243_s18 }
 0x205   :  { %13 = sbr.rel (!%p11_p5) target bundleno = 2 (0x2), region = 77 }

</bundles_post_ra>
